<compile_context>
chip_gen: v6e
topology: v6e:2x2x1
jax: 0.10.0
libtpu: 0.0.40
codegen_flags: <defaults>
</compile_context>

<pallas_src>
import numpy as np
import jax
import jax.numpy as jnp
from jax import lax
from jax.experimental import pallas as pl
from jax.experimental.pallas import tpu as pltpu


_VMEM = pl.BlockSpec(memory_space=pltpu.MemorySpace.VMEM)


# --------------------------- fused Pallas kernel -----------------------------

def _make_fused_kernel(layer_meta, batch, m0_sp, num_layers, neg_slope, eps):
    """Fused NetD forward.  Ref order (all VMEM, gridless single block):
         patches0 (k0^2*Cin0, B*m0_sp), w0 (C0, k0^2*Cin0), b0 (C0, 1),
         then for l = 1..L-1:
             tgt_l (1, k^2*m_out) int32, w_l (k^2, C_out, C_in), b_l (C_out, 1)
             [, gamma_l (C_out,1), beta_l (C_out,1) for BatchNorm layers],
         lin_w (zx^2, 1), lin_b (1, 1), out (1, batch)."""

    def kernel(*refs):
        o_ref = refs[-1]
        it = iter(refs[:-1])

        # ---- layer 0: channel-major im2col matmul + bias + LeakyReLU --------
        p0 = next(it)[...]                             # (k0^2*Cin0, B*m0_sp)
        w0 = next(it)[...]                             # (C0, k0^2*Cin0)
        b0 = next(it)[...]                             # (C0, 1)
        y = jnp.dot(w0, p0, preferred_element_type=jnp.float32) + b0
        y = jnp.maximum(y, neg_slope * y)              # LeakyReLU(0.2)

        # split into per-batch channel-major blocks (static lane slices, x128)
        ys = [y[:, b * m0_sp:(b + 1) * m0_sp] for b in range(batch)]

        # ---- layers 1..L-1: in-kernel gather mask + per-tap MXU dots --------
        for l in range(1, num_layers):
            meta = layer_meta[l]
            kk, m_in, m_out = meta["kk"], meta["m_in"], meta["m_out"]
            tgt = next(it)[...]                        # (1, kk*m_out) int32
            w = next(it)[...]                          # (kk, C_out, C_in)
            bias = next(it)[...]                       # (C_out, 1)

            # Batch-independent 0/1 gather mask generated in VMEM (no HBM):
            # mask[in, tap*m_out + out] = 1 iff `in` is tap's source pixel.
            rows = lax.broadcasted_iota(jnp.int32, (m_in, kk * m_out), 0)
            mask = jnp.where(rows == tgt, 1.0, 0.0)    # padded taps: tgt == -1

            zs = []
            for b in range(batch):
                # one gather matmul per batch element (stays in VMEM)
                p = jnp.dot(ys[b], mask,
                            preferred_element_type=jnp.float32)   # (C_in, kk*m_out)
                # per-tap weight matmuls, lane-dense outputs; acc from tap 0
                acc = jnp.dot(w[0], p[:, 0:m_out],
                              preferred_element_type=jnp.float32)
                for t in range(1, kk):
                    acc = acc + jnp.dot(w[t], p[:, t * m_out:(t + 1) * m_out],
                                        preferred_element_type=jnp.float32)
                zs.append(acc + bias)                  # (C_out, m_out)

            if meta["bn"]:
                # BatchNorm2d (training mode, biased var) with joint stats
                # over all batch blocks; two-pass (shift-by-mean) variance.
                gamma = next(it)[...]                  # (C_out, 1)
                beta = next(it)[...]                   # (C_out, 1)
                cnt = float(batch * m_out)
                mean = sum(jnp.sum(z, axis=1, keepdims=True) for z in zs) / cnt
                var = sum(jnp.sum((z - mean) * (z - mean), axis=1, keepdims=True)
                          for z in zs) / cnt
                inv = lax.rsqrt(var + eps) * gamma
                zs = [(z - mean) * inv + beta for z in zs]
                zs = [jnp.maximum(z, neg_slope * z) for z in zs]   # LeakyReLU
            ys = zs

        # ---- final Linear folded in; lane-friendly (1, batch) output --------
        lin_w = next(it)[...]                          # (zx^2, 1)
        lin_b = next(it)[...]                          # (1, 1)
        for b in range(batch):
            o_ref[:, b:b + 1] = (jnp.dot(ys[b], lin_w,
                                         preferred_element_type=jnp.float32)
                                 + lin_b)

    return kernel


# ------------------------------ host-side prep -------------------------------

def _im2col_cm(x_nchw, k, stride, pad):
    """Channel-major patch extraction for layer 0 only (tiny).
       Returns (C*k*k, B*Ho*Wo) with rows ordered (c, ki, kj) and columns
       ordered (b, oh, ow) -- matching torch's OIHW weight reshape."""
    B, C, H, W = x_nchw.shape
    xp = jnp.pad(x_nchw, ((0, 0), (0, 0), (pad, pad), (pad, pad)))
    Ho = (H + 2 * pad - k) // stride + 1
    Wo = (W + 2 * pad - k) // stride + 1
    rows = []
    for c in range(C):
        for ki in range(k):
            for kj in range(k):
                sl = xp[:, c, ki:ki + stride * Ho:stride,
                        kj:kj + stride * Wo:stride]            # (B, Ho, Wo)
                rows.append(sl.reshape(B * Ho * Wo))
    return jnp.stack(rows, axis=0), Ho, Wo


def _build_targets(h_in, w_in, k, stride, pad):
    """Tiny int32 row: tgt[tap*m_out + out] = flat input index of that tap
       (batch independent), -1 for padded (out-of-bounds) taps."""
    h_out = (h_in + 2 * pad - k) // stride + 1
    w_out = (w_in + 2 * pad - k) // stride + 1
    m_out = h_out * w_out
    tgt = np.full((1, k * k * m_out), -1, np.int32)
    for ki in range(k):
        for kj in range(k):
            t = ki * k + kj
            for oh in range(h_out):
                h = oh * stride + ki - pad
                if h < 0 or h >= h_in:
                    continue
                for ow in range(w_out):
                    w = ow * stride + kj - pad
                    if w < 0 or w >= w_in:
                        continue
                    tgt[0, t * m_out + oh * w_out + ow] = h * w_in + w
    return tgt, h_out, w_out


def make_netd_forward(params, cfg, batch):
    """Returns a jitted forward(x_nchw) -> (batch, 1) using one fused Pallas kernel."""
    L = cfg["disLayers"]
    pad = cfg["disPadding"]
    npx = cfg["npx"]
    slope, eps = 0.2, 1e-5

    k0, s0 = cfg["disKernelSize"][0], cfg["disStride"][0]
    cin0, c0 = cfg["disInChannels"][0], cfg["disOutChannels"][0]
    h0 = (npx + 2 * pad - k0) // s0 + 1
    m0 = h0 * h0                                       # per-batch spatial after layer 0

    w0m = params["conv_w"][0].reshape(c0, cin0 * k0 * k0)
    b0 = params["conv_b"][0].reshape(c0, 1)
    ops = [w0m, b0]
    flops = 2 * c0 * (cin0 * k0 * k0) * (batch * m0)

    layer_meta = {}
    h = h0
    for l in range(1, L):
        k, s = cfg["disKernelSize"][l], cfg["disStride"][l]
        c_in, c_out = cfg["disInChannels"][l], cfg["disOutChannels"][l]
        tgt_np, h_out, _ = _build_targets(h, h, k, s, pad)
        m_in, m_out = h * h, h_out * h_out
        wl = jnp.transpose(params["conv_w"][l], (2, 3, 0, 1)).reshape(k * k, c_out, c_in)
        bl = params["conv_b"][l].reshape(c_out, 1)
        ops += [jnp.asarray(tgt_np), wl, bl]
        flops += batch * 2 * c_in * m_in * (k * k * m_out)       # gather matmuls
        flops += batch * k * k * 2 * c_out * c_in * m_out        # per-tap weight matmuls
        has_bn = l < L - 1
        if has_bn:
            ops += [params["bn_g"][l].reshape(c_out, 1),
                    params["bn_b"][l].reshape(c_out, 1)]
        layer_meta[l] = dict(kk=k * k, m_in=m_in, m_out=m_out, bn=has_bn)
        h = h_out

    zx2 = cfg["zx"] * cfg["zx"]
    assert h * h == zx2
    ops += [params["lin_w"].reshape(zx2, 1), params["lin_b"].reshape(1, 1)]
    flops += 2 * batch * zx2
    ops = tuple(ops)

    n_in = 1 + len(ops)
    bytes_accessed = (4 * (cin0 * k0 * k0) * (batch * m0)
                      + sum(int(o.size) * o.dtype.itemsize for o in ops)
                      + 4 * batch)
    transcendentals = sum(cfg["disOutChannels"][l] for l in range(1, L - 1))

    kernel = _make_fused_kernel(layer_meta, batch, m0, L, slope, eps)
    fused = pl.pallas_call(
        kernel,
        out_shape=jax.ShapeDtypeStruct((1, batch), jnp.float32),
        in_specs=[_VMEM] * n_in,
        out_specs=_VMEM,
        compiler_params=pltpu.CompilerParams(vmem_limit_bytes=32 * 1024 * 1024),
        cost_estimate=pl.CostEstimate(flops=int(flops),
                                      transcendentals=int(transcendentals),
                                      bytes_accessed=int(bytes_accessed)),
    )

    @jax.jit
    def forward(x_nchw, static_ops):
        patches0, _, _ = _im2col_cm(x_nchw, k0, s0, pad)      # (k0^2*Cin0, B*m0)
        out = fused(patches0, *static_ops)                    # (1, batch)
        return out.reshape(batch, 1)

    return lambda x: forward(x, ops)


# ------------------------------ reference & init -----------------------------

def netd_reference(params, x_nchw, cfg):
    """Pure-JAX/XLA reference mirroring the PyTorch forward."""
    out = x_nchw
    L = cfg["disLayers"]
    for l in range(L):
        w, b = params["conv_w"][l], params["conv_b"][l]
        s, p = cfg["disStride"][l], cfg["disPadding"]
        out = lax.conv_general_dilated(
            out, w, (s, s), [(p, p), (p, p)],
            dimension_numbers=("NCHW", "OIHW", "NCHW"),
            precision=lax.Precision.HIGHEST)
        out = out + b.reshape(1, -1, 1, 1)
        if l == 0:
            out = jnp.where(out >= 0, out, 0.2 * out)
        elif l < L - 1:
            mean = jnp.mean(out, axis=(0, 2, 3), keepdims=True)
            var = jnp.mean(jnp.square(out - mean), axis=(0, 2, 3), keepdims=True)
            out = (out - mean) / jnp.sqrt(var + 1e-5)
            out = out * params["bn_g"][l].reshape(1, -1, 1, 1)
            out = out + params["bn_b"][l].reshape(1, -1, 1, 1)
            out = jnp.where(out >= 0, out, 0.2 * out)
    out = out.reshape(-1, cfg["zx"] * cfg["zx"])
    return jnp.dot(out, params["lin_w"], precision=lax.Precision.HIGHEST) + params["lin_b"]


def init_params(key, cfg):
    params = {"conv_w": [], "conv_b": [], "bn_g": {}, "bn_b": {}}
    L = cfg["disLayers"]
    for l in range(L):
        k = cfg["disKernelSize"][l]
        c_in, c_out = cfg["disInChannels"][l], cfg["disOutChannels"][l]
        key, kw, kb = jax.random.split(key, 3)
        params["conv_w"].append(0.05 * jax.random.normal(kw, (c_out, c_in, k, k), jnp.float32))
        params["conv_b"].append(0.05 * jax.random.normal(kb, (c_out,), jnp.float32))
        if 0 < l < L - 1:
            key, kg, kb2 = jax.random.split(key, 3)
            params["bn_g"][l] = 1.0 + 0.1 * jax.random.normal(kg, (c_out,), jnp.float32)
            params["bn_b"][l] = 0.1 * jax.random.normal(kb2, (c_out,), jnp.float32)
    key, kw, kb = jax.random.split(key, 3)
    d = cfg["zx"] * cfg["zx"]
    params["lin_w"] = 0.1 * jax.random.normal(kw, (d, 1), jnp.float32)
    params["lin_b"] = 0.1 * jax.random.normal(kb, (1,), jnp.float32)
    return params, key


if __name__ == "__main__":
    cfg = {
        "disLayers": 3,
        "disInChannels": [1, 8, 16],
        "disOutChannels": [8, 16, 1],
        "disKernelSize": [5, 5, 5],
        "disStride": [2, 2, 2],
        "disPadding": 2,
        "zx": 4,
        "npx": 4 * 2 ** 3,   # 32
    }
    batch = 2

    key = jax.random.PRNGKey(0)
    params, key = init_params(key, cfg)
    key, kx = jax.random.split(key)
    x = jax.random.normal(kx, (batch, cfg["disInChannels"][0], cfg["npx"], cfg["npx"]),
                          jnp.float32)

    forward = make_netd_forward(params, cfg, batch)
    out = jax.block_until_ready(forward(x))

    ref = netd_reference(params, x, cfg)
    assert out.shape == (batch, 1), out.shape
    # Kernel matmuls use default MXU precision vs. HIGHEST in the reference.
    assert jnp.allclose(out, ref, atol=5e-2, rtol=5e-2), (out, ref)
    print("KERNEL_OK")
</pallas_src>

<mosaic_0001>
module attributes {stable_mosaic.version = 11 : i64} {
  func.func @kernel(%arg0: memref<25x512xf32, #tpu.memory_space<vmem>>, %arg1: memref<8x25xf32, #tpu.memory_space<vmem>>, %arg2: memref<8x1xf32, #tpu.memory_space<vmem>>, %arg3: memref<1x1600xi32, #tpu.memory_space<vmem>>, %arg4: memref<25x16x8xf32, #tpu.memory_space<vmem>>, %arg5: memref<16x1xf32, #tpu.memory_space<vmem>>, %arg6: memref<16x1xf32, #tpu.memory_space<vmem>>, %arg7: memref<16x1xf32, #tpu.memory_space<vmem>>, %arg8: memref<1x400xi32, #tpu.memory_space<vmem>>, %arg9: memref<25x1x16xf32, #tpu.memory_space<vmem>>, %arg10: memref<1x1xf32, #tpu.memory_space<vmem>>, %arg11: memref<16x1xf32, #tpu.memory_space<vmem>>, %arg12: memref<1x1xf32, #tpu.memory_space<vmem>>, %arg13: memref<1x2xf32, #tpu.memory_space<vmem>>) attributes {dimension_semantics = [], scalar_prefetch = 0 : i64, scratch_operands = 0 : i64, tpu.core_type = #tpu.core_type<tc>} {
    %c0 = arith.constant 0 : index
    %c0_0 = arith.constant 0 : index
    %0 = vector.load %arg0[%c0, %c0_0] : memref<25x512xf32, #tpu.memory_space<vmem>>, vector<25x512xf32>
    %c0_1 = arith.constant 0 : index
    %c0_2 = arith.constant 0 : index
    %1 = vector.load %arg1[%c0_1, %c0_2] : memref<8x25xf32, #tpu.memory_space<vmem>>, vector<8x25xf32>
    %c0_3 = arith.constant 0 : index
    %c0_4 = arith.constant 0 : index
    %2 = vector.load %arg2[%c0_3, %c0_4] : memref<8x1xf32, #tpu.memory_space<vmem>>, vector<8x1xf32>
    %cst = arith.constant dense<0.000000e+00> : vector<8x512xf32>
    %3 = tpu.matmul %1, %0, %cst {dimension_numbers = #tpu.dot_dimension_numbers<[1], [0], [0], [1], [0, 0, 1, 1], [], []>} : vector<8x25xf32>, vector<25x512xf32>, vector<8x512xf32> -> vector<8x512xf32>
    %4 = vector.broadcast %2 : vector<8x1xf32> to vector<8x512xf32>
    %5 = arith.addf %3, %4 : vector<8x512xf32>
    %cst_5 = arith.constant 2.000000e-01 : f32
    %6 = vector.broadcast %cst_5 : f32 to vector<8x512xf32>
    %7 = arith.mulf %6, %5 : vector<8x512xf32>
    %8 = arith.maximumf %5, %7 : vector<8x512xf32>
    %9 = vector.extract_strided_slice %8 {offsets = [0, 0], sizes = [8, 256], strides = [1, 1]} : vector<8x512xf32> to vector<8x256xf32>
    %10 = vector.extract_strided_slice %8 {offsets = [0, 256], sizes = [8, 256], strides = [1, 1]} : vector<8x512xf32> to vector<8x256xf32>
    %c0_6 = arith.constant 0 : index
    %c0_7 = arith.constant 0 : index
    %11 = vector.load %arg3[%c0_6, %c0_7] : memref<1x1600xi32, #tpu.memory_space<vmem>>, vector<1x1600xi32>
    %c0_8 = arith.constant 0 : index
    %c0_9 = arith.constant 0 : index
    %c0_10 = arith.constant 0 : index
    %12 = vector.load %arg4[%c0_8, %c0_9, %c0_10] : memref<25x16x8xf32, #tpu.memory_space<vmem>>, vector<25x16x8xf32>
    %c0_11 = arith.constant 0 : index
    %c0_12 = arith.constant 0 : index
    %13 = vector.load %arg5[%c0_11, %c0_12] : memref<16x1xf32, #tpu.memory_space<vmem>>, vector<16x1xf32>
    %14 = tpu.iota {dimensions = array<i32: 0>} : vector<256x1600xi32>
    %15 = vector.broadcast %11 : vector<1x1600xi32> to vector<256x1600xi32>
    %16 = arith.cmpi eq, %14, %15 : vector<256x1600xi32>
    %cst_13 = arith.constant 1.000000e+00 : f32
    %cst_14 = arith.constant 0.000000e+00 : f32
    %17 = vector.broadcast %cst_13 : f32 to vector<256x1600xf32>
    %18 = vector.broadcast %cst_14 : f32 to vector<256x1600xf32>
    %19 = arith.select %16, %17, %18 : vector<256x1600xi1>, vector<256x1600xf32>
    %cst_15 = arith.constant dense<0.000000e+00> : vector<8x1600xf32>
    %20 = tpu.matmul %9, %19, %cst_15 {dimension_numbers = #tpu.dot_dimension_numbers<[1], [0], [0], [1], [0, 0, 1, 1], [], []>} : vector<8x256xf32>, vector<256x1600xf32>, vector<8x1600xf32> -> vector<8x1600xf32>
    %21 = vector.extract_strided_slice %12 {offsets = [0, 0, 0], sizes = [1, 16, 8], strides = [1, 1, 1]} : vector<25x16x8xf32> to vector<1x16x8xf32>
    %22 = vector.shape_cast %21 : vector<1x16x8xf32> to vector<16x8xf32>
    %23 = vector.extract_strided_slice %20 {offsets = [0, 0], sizes = [8, 64], strides = [1, 1]} : vector<8x1600xf32> to vector<8x64xf32>
    %cst_16 = arith.constant dense<0.000000e+00> : vector<16x64xf32>
    %24 = tpu.matmul %22, %23, %cst_16 {dimension_numbers = #tpu.dot_dimension_numbers<[1], [0], [0], [1], [0, 0, 1, 1], [], []>} : vector<16x8xf32>, vector<8x64xf32>, vector<16x64xf32> -> vector<16x64xf32>
    %25 = vector.extract_strided_slice %12 {offsets = [1, 0, 0], sizes = [1, 16, 8], strides = [1, 1, 1]} : vector<25x16x8xf32> to vector<1x16x8xf32>
    %26 = vector.shape_cast %25 : vector<1x16x8xf32> to vector<16x8xf32>
    %27 = vector.extract_strided_slice %20 {offsets = [0, 64], sizes = [8, 64], strides = [1, 1]} : vector<8x1600xf32> to vector<8x64xf32>
    %cst_17 = arith.constant dense<0.000000e+00> : vector<16x64xf32>
    %28 = tpu.matmul %26, %27, %cst_17 {dimension_numbers = #tpu.dot_dimension_numbers<[1], [0], [0], [1], [0, 0, 1, 1], [], []>} : vector<16x8xf32>, vector<8x64xf32>, vector<16x64xf32> -> vector<16x64xf32>
    %29 = arith.addf %24, %28 : vector<16x64xf32>
    %30 = vector.extract_strided_slice %12 {offsets = [2, 0, 0], sizes = [1, 16, 8], strides = [1, 1, 1]} : vector<25x16x8xf32> to vector<1x16x8xf32>
    %31 = vector.shape_cast %30 : vector<1x16x8xf32> to vector<16x8xf32>
    %32 = vector.extract_strided_slice %20 {offsets = [0, 128], sizes = [8, 64], strides = [1, 1]} : vector<8x1600xf32> to vector<8x64xf32>
    %cst_18 = arith.constant dense<0.000000e+00> : vector<16x64xf32>
    %33 = tpu.matmul %31, %32, %cst_18 {dimension_numbers = #tpu.dot_dimension_numbers<[1], [0], [0], [1], [0, 0, 1, 1], [], []>} : vector<16x8xf32>, vector<8x64xf32>, vector<16x64xf32> -> vector<16x64xf32>
    %34 = arith.addf %29, %33 : vector<16x64xf32>
    %35 = vector.extract_strided_slice %12 {offsets = [3, 0, 0], sizes = [1, 16, 8], strides = [1, 1, 1]} : vector<25x16x8xf32> to vector<1x16x8xf32>
    %36 = vector.shape_cast %35 : vector<1x16x8xf32> to vector<16x8xf32>
    %37 = vector.extract_strided_slice %20 {offsets = [0, 192], sizes = [8, 64], strides = [1, 1]} : vector<8x1600xf32> to vector<8x64xf32>
    %cst_19 = arith.constant dense<0.000000e+00> : vector<16x64xf32>
    %38 = tpu.matmul %36, %37, %cst_19 {dimension_numbers = #tpu.dot_dimension_numbers<[1], [0], [0], [1], [0, 0, 1, 1], [], []>} : vector<16x8xf32>, vector<8x64xf32>, vector<16x64xf32> -> vector<16x64xf32>
    %39 = arith.addf %34, %38 : vector<16x64xf32>
    %40 = vector.extract_strided_slice %12 {offsets = [4, 0, 0], sizes = [1, 16, 8], strides = [1, 1, 1]} : vector<25x16x8xf32> to vector<1x16x8xf32>
    %41 = vector.shape_cast %40 : vector<1x16x8xf32> to vector<16x8xf32>
    %42 = vector.extract_strided_slice %20 {offsets = [0, 256], sizes = [8, 64], strides = [1, 1]} : vector<8x1600xf32> to vector<8x64xf32>
    %cst_20 = arith.constant dense<0.000000e+00> : vector<16x64xf32>
    %43 = tpu.matmul %41, %42, %cst_20 {dimension_numbers = #tpu.dot_dimension_numbers<[1], [0], [0], [1], [0, 0, 1, 1], [], []>} : vector<16x8xf32>, vector<8x64xf32>, vector<16x64xf32> -> vector<16x64xf32>
    %44 = arith.addf %39, %43 : vector<16x64xf32>
    %45 = vector.extract_strided_slice %12 {offsets = [5, 0, 0], sizes = [1, 16, 8], strides = [1, 1, 1]} : vector<25x16x8xf32> to vector<1x16x8xf32>
    %46 = vector.shape_cast %45 : vector<1x16x8xf32> to vector<16x8xf32>
    %47 = vector.extract_strided_slice %20 {offsets = [0, 320], sizes = [8, 64], strides = [1, 1]} : vector<8x1600xf32> to vector<8x64xf32>
    %cst_21 = arith.constant dense<0.000000e+00> : vector<16x64xf32>
    %48 = tpu.matmul %46, %47, %cst_21 {dimension_numbers = #tpu.dot_dimension_numbers<[1], [0], [0], [1], [0, 0, 1, 1], [], []>} : vector<16x8xf32>, vector<8x64xf32>, vector<16x64xf32> -> vector<16x64xf32>
    %49 = arith.addf %44, %48 : vector<16x64xf32>
    %50 = vector.extract_strided_slice %12 {offsets = [6, 0, 0], sizes = [1, 16, 8], strides = [1, 1, 1]} : vector<25x16x8xf32> to vector<1x16x8xf32>
    %51 = vector.shape_cast %50 : vector<1x16x8xf32> to vector<16x8xf32>
    %52 = vector.extract_strided_slice %20 {offsets = [0, 384], sizes = [8, 64], strides = [1, 1]} : vector<8x1600xf32> to vector<8x64xf32>
    %cst_22 = arith.constant dense<0.000000e+00> : vector<16x64xf32>
    %53 = tpu.matmul %51, %52, %cst_22 {dimension_numbers = #tpu.dot_dimension_numbers<[1], [0], [0], [1], [0, 0, 1, 1], [], []>} : vector<16x8xf32>, vector<8x64xf32>, vector<16x64xf32> -> vector<16x64xf32>
    %54 = arith.addf %49, %53 : vector<16x64xf32>
    %55 = vector.extract_strided_slice %12 {offsets = [7, 0, 0], sizes = [1, 16, 8], strides = [1, 1, 1]} : vector<25x16x8xf32> to vector<1x16x8xf32>
    %56 = vector.shape_cast %55 : vector<1x16x8xf32> to vector<16x8xf32>
    %57 = vector.extract_strided_slice %20 {offsets = [0, 448], sizes = [8, 64], strides = [1, 1]} : vector<8x1600xf32> to vector<8x64xf32>
    %cst_23 = arith.constant dense<0.000000e+00> : vector<16x64xf32>
    %58 = tpu.matmul %56, %57, %cst_23 {dimension_numbers = #tpu.dot_dimension_numbers<[1], [0], [0], [1], [0, 0, 1, 1], [], []>} : vector<16x8xf32>, vector<8x64xf32>, vector<16x64xf32> -> vector<16x64xf32>
    %59 = arith.addf %54, %58 : vector<16x64xf32>
    %60 = vector.extract_strided_slice %12 {offsets = [8, 0, 0], sizes = [1, 16, 8], strides = [1, 1, 1]} : vector<25x16x8xf32> to vector<1x16x8xf32>
    %61 = vector.shape_cast %60 : vector<1x16x8xf32> to vector<16x8xf32>
    %62 = vector.extract_strided_slice %20 {offsets = [0, 512], sizes = [8, 64], strides = [1, 1]} : vector<8x1600xf32> to vector<8x64xf32>
    %cst_24 = arith.constant dense<0.000000e+00> : vector<16x64xf32>
    %63 = tpu.matmul %61, %62, %cst_24 {dimension_numbers = #tpu.dot_dimension_numbers<[1], [0], [0], [1], [0, 0, 1, 1], [], []>} : vector<16x8xf32>, vector<8x64xf32>, vector<16x64xf32> -> vector<16x64xf32>
    %64 = arith.addf %59, %63 : vector<16x64xf32>
    %65 = vector.extract_strided_slice %12 {offsets = [9, 0, 0], sizes = [1, 16, 8], strides = [1, 1, 1]} : vector<25x16x8xf32> to vector<1x16x8xf32>
    %66 = vector.shape_cast %65 : vector<1x16x8xf32> to vector<16x8xf32>
    %67 = vector.extract_strided_slice %20 {offsets = [0, 576], sizes = [8, 64], strides = [1, 1]} : vector<8x1600xf32> to vector<8x64xf32>
    %cst_25 = arith.constant dense<0.000000e+00> : vector<16x64xf32>
    %68 = tpu.matmul %66, %67, %cst_25 {dimension_numbers = #tpu.dot_dimension_numbers<[1], [0], [0], [1], [0, 0, 1, 1], [], []>} : vector<16x8xf32>, vector<8x64xf32>, vector<16x64xf32> -> vector<16x64xf32>
    %69 = arith.addf %64, %68 : vector<16x64xf32>
    %70 = vector.extract_strided_slice %12 {offsets = [10, 0, 0], sizes = [1, 16, 8], strides = [1, 1, 1]} : vector<25x16x8xf32> to vector<1x16x8xf32>
    %71 = vector.shape_cast %70 : vector<1x16x8xf32> to vector<16x8xf32>
    %72 = vector.extract_strided_slice %20 {offsets = [0, 640], sizes = [8, 64], strides = [1, 1]} : vector<8x1600xf32> to vector<8x64xf32>
    %cst_26 = arith.constant dense<0.000000e+00> : vector<16x64xf32>
    %73 = tpu.matmul %71, %72, %cst_26 {dimension_numbers = #tpu.dot_dimension_numbers<[1], [0], [0], [1], [0, 0, 1, 1], [], []>} : vector<16x8xf32>, vector<8x64xf32>, vector<16x64xf32> -> vector<16x64xf32>
    %74 = arith.addf %69, %73 : vector<16x64xf32>
    %75 = vector.extract_strided_slice %12 {offsets = [11, 0, 0], sizes = [1, 16, 8], strides = [1, 1, 1]} : vector<25x16x8xf32> to vector<1x16x8xf32>
    %76 = vector.shape_cast %75 : vector<1x16x8xf32> to vector<16x8xf32>
    %77 = vector.extract_strided_slice %20 {offsets = [0, 704], sizes = [8, 64], strides = [1, 1]} : vector<8x1600xf32> to vector<8x64xf32>
    %cst_27 = arith.constant dense<0.000000e+00> : vector<16x64xf32>
    %78 = tpu.matmul %76, %77, %cst_27 {dimension_numbers = #tpu.dot_dimension_numbers<[1], [0], [0], [1], [0, 0, 1, 1], [], []>} : vector<16x8xf32>, vector<8x64xf32>, vector<16x64xf32> -> vector<16x64xf32>
    %79 = arith.addf %74, %78 : vector<16x64xf32>
    %80 = vector.extract_strided_slice %12 {offsets = [12, 0, 0], sizes = [1, 16, 8], strides = [1, 1, 1]} : vector<25x16x8xf32> to vector<1x16x8xf32>
    %81 = vector.shape_cast %80 : vector<1x16x8xf32> to vector<16x8xf32>
    %82 = vector.extract_strided_slice %20 {offsets = [0, 768], sizes = [8, 64], strides = [1, 1]} : vector<8x1600xf32> to vector<8x64xf32>
    %cst_28 = arith.constant dense<0.000000e+00> : vector<16x64xf32>
    %83 = tpu.matmul %81, %82, %cst_28 {dimension_numbers = #tpu.dot_dimension_numbers<[1], [0], [0], [1], [0, 0, 1, 1], [], []>} : vector<16x8xf32>, vector<8x64xf32>, vector<16x64xf32> -> vector<16x64xf32>
    %84 = arith.addf %79, %83 : vector<16x64xf32>
    %85 = vector.extract_strided_slice %12 {offsets = [13, 0, 0], sizes = [1, 16, 8], strides = [1, 1, 1]} : vector<25x16x8xf32> to vector<1x16x8xf32>
    %86 = vector.shape_cast %85 : vector<1x16x8xf32> to vector<16x8xf32>
    %87 = vector.extract_strided_slice %20 {offsets = [0, 832], sizes = [8, 64], strides = [1, 1]} : vector<8x1600xf32> to vector<8x64xf32>
    %cst_29 = arith.constant dense<0.000000e+00> : vector<16x64xf32>
    %88 = tpu.matmul %86, %87, %cst_29 {dimension_numbers = #tpu.dot_dimension_numbers<[1], [0], [0], [1], [0, 0, 1, 1], [], []>} : vector<16x8xf32>, vector<8x64xf32>, vector<16x64xf32> -> vector<16x64xf32>
    %89 = arith.addf %84, %88 : vector<16x64xf32>
    %90 = vector.extract_strided_slice %12 {offsets = [14, 0, 0], sizes = [1, 16, 8], strides = [1, 1, 1]} : vector<25x16x8xf32> to vector<1x16x8xf32>
    %91 = vector.shape_cast %90 : vector<1x16x8xf32> to vector<16x8xf32>
    %92 = vector.extract_strided_slice %20 {offsets = [0, 896], sizes = [8, 64], strides = [1, 1]} : vector<8x1600xf32> to vector<8x64xf32>
    %cst_30 = arith.constant dense<0.000000e+00> : vector<16x64xf32>
    %93 = tpu.matmul %91, %92, %cst_30 {dimension_numbers = #tpu.dot_dimension_numbers<[1], [0], [0], [1], [0, 0, 1, 1], [], []>} : vector<16x8xf32>, vector<8x64xf32>, vector<16x64xf32> -> vector<16x64xf32>
    %94 = arith.addf %89, %93 : vector<16x64xf32>
    %95 = vector.extract_strided_slice %12 {offsets = [15, 0, 0], sizes = [1, 16, 8], strides = [1, 1, 1]} : vector<25x16x8xf32> to vector<1x16x8xf32>
    %96 = vector.shape_cast %95 : vector<1x16x8xf32> to vector<16x8xf32>
    %97 = vector.extract_strided_slice %20 {offsets = [0, 960], sizes = [8, 64], strides = [1, 1]} : vector<8x1600xf32> to vector<8x64xf32>
    %cst_31 = arith.constant dense<0.000000e+00> : vector<16x64xf32>
    %98 = tpu.matmul %96, %97, %cst_31 {dimension_numbers = #tpu.dot_dimension_numbers<[1], [0], [0], [1], [0, 0, 1, 1], [], []>} : vector<16x8xf32>, vector<8x64xf32>, vector<16x64xf32> -> vector<16x64xf32>
    %99 = arith.addf %94, %98 : vector<16x64xf32>
    %100 = vector.extract_strided_slice %12 {offsets = [16, 0, 0], sizes = [1, 16, 8], strides = [1, 1, 1]} : vector<25x16x8xf32> to vector<1x16x8xf32>
    %101 = vector.shape_cast %100 : vector<1x16x8xf32> to vector<16x8xf32>
    %102 = vector.extract_strided_slice %20 {offsets = [0, 1024], sizes = [8, 64], strides = [1, 1]} : vector<8x1600xf32> to vector<8x64xf32>
    %cst_32 = arith.constant dense<0.000000e+00> : vector<16x64xf32>
    %103 = tpu.matmul %101, %102, %cst_32 {dimension_numbers = #tpu.dot_dimension_numbers<[1], [0], [0], [1], [0, 0, 1, 1], [], []>} : vector<16x8xf32>, vector<8x64xf32>, vector<16x64xf32> -> vector<16x64xf32>
    %104 = arith.addf %99, %103 : vector<16x64xf32>
    %105 = vector.extract_strided_slice %12 {offsets = [17, 0, 0], sizes = [1, 16, 8], strides = [1, 1, 1]} : vector<25x16x8xf32> to vector<1x16x8xf32>
    %106 = vector.shape_cast %105 : vector<1x16x8xf32> to vector<16x8xf32>
    %107 = vector.extract_strided_slice %20 {offsets = [0, 1088], sizes = [8, 64], strides = [1, 1]} : vector<8x1600xf32> to vector<8x64xf32>
    %cst_33 = arith.constant dense<0.000000e+00> : vector<16x64xf32>
    %108 = tpu.matmul %106, %107, %cst_33 {dimension_numbers = #tpu.dot_dimension_numbers<[1], [0], [0], [1], [0, 0, 1, 1], [], []>} : vector<16x8xf32>, vector<8x64xf32>, vector<16x64xf32> -> vector<16x64xf32>
    %109 = arith.addf %104, %108 : vector<16x64xf32>
    %110 = vector.extract_strided_slice %12 {offsets = [18, 0, 0], sizes = [1, 16, 8], strides = [1, 1, 1]} : vector<25x16x8xf32> to vector<1x16x8xf32>
    %111 = vector.shape_cast %110 : vector<1x16x8xf32> to vector<16x8xf32>
    %112 = vector.extract_strided_slice %20 {offsets = [0, 1152], sizes = [8, 64], strides = [1, 1]} : vector<8x1600xf32> to vector<8x64xf32>
    %cst_34 = arith.constant dense<0.000000e+00> : vector<16x64xf32>
    %113 = tpu.matmul %111, %112, %cst_34 {dimension_numbers = #tpu.dot_dimension_numbers<[1], [0], [0], [1], [0, 0, 1, 1], [], []>} : vector<16x8xf32>, vector<8x64xf32>, vector<16x64xf32> -> vector<16x64xf32>
    %114 = arith.addf %109, %113 : vector<16x64xf32>
    %115 = vector.extract_strided_slice %12 {offsets = [19, 0, 0], sizes = [1, 16, 8], strides = [1, 1, 1]} : vector<25x16x8xf32> to vector<1x16x8xf32>
    %116 = vector.shape_cast %115 : vector<1x16x8xf32> to vector<16x8xf32>
    %117 = vector.extract_strided_slice %20 {offsets = [0, 1216], sizes = [8, 64], strides = [1, 1]} : vector<8x1600xf32> to vector<8x64xf32>
    %cst_35 = arith.constant dense<0.000000e+00> : vector<16x64xf32>
    %118 = tpu.matmul %116, %117, %cst_35 {dimension_numbers = #tpu.dot_dimension_numbers<[1], [0], [0], [1], [0, 0, 1, 1], [], []>} : vector<16x8xf32>, vector<8x64xf32>, vector<16x64xf32> -> vector<16x64xf32>
    %119 = arith.addf %114, %118 : vector<16x64xf32>
    %120 = vector.extract_strided_slice %12 {offsets = [20, 0, 0], sizes = [1, 16, 8], strides = [1, 1, 1]} : vector<25x16x8xf32> to vector<1x16x8xf32>
    %121 = vector.shape_cast %120 : vector<1x16x8xf32> to vector<16x8xf32>
    %122 = vector.extract_strided_slice %20 {offsets = [0, 1280], sizes = [8, 64], strides = [1, 1]} : vector<8x1600xf32> to vector<8x64xf32>
    %cst_36 = arith.constant dense<0.000000e+00> : vector<16x64xf32>
    %123 = tpu.matmul %121, %122, %cst_36 {dimension_numbers = #tpu.dot_dimension_numbers<[1], [0], [0], [1], [0, 0, 1, 1], [], []>} : vector<16x8xf32>, vector<8x64xf32>, vector<16x64xf32> -> vector<16x64xf32>
    %124 = arith.addf %119, %123 : vector<16x64xf32>
    %125 = vector.extract_strided_slice %12 {offsets = [21, 0, 0], sizes = [1, 16, 8], strides = [1, 1, 1]} : vector<25x16x8xf32> to vector<1x16x8xf32>
    %126 = vector.shape_cast %125 : vector<1x16x8xf32> to vector<16x8xf32>
    %127 = vector.extract_strided_slice %20 {offsets = [0, 1344], sizes = [8, 64], strides = [1, 1]} : vector<8x1600xf32> to vector<8x64xf32>
    %cst_37 = arith.constant dense<0.000000e+00> : vector<16x64xf32>
    %128 = tpu.matmul %126, %127, %cst_37 {dimension_numbers = #tpu.dot_dimension_numbers<[1], [0], [0], [1], [0, 0, 1, 1], [], []>} : vector<16x8xf32>, vector<8x64xf32>, vector<16x64xf32> -> vector<16x64xf32>
    %129 = arith.addf %124, %128 : vector<16x64xf32>
    %130 = vector.extract_strided_slice %12 {offsets = [22, 0, 0], sizes = [1, 16, 8], strides = [1, 1, 1]} : vector<25x16x8xf32> to vector<1x16x8xf32>
    %131 = vector.shape_cast %130 : vector<1x16x8xf32> to vector<16x8xf32>
    %132 = vector.extract_strided_slice %20 {offsets = [0, 1408], sizes = [8, 64], strides = [1, 1]} : vector<8x1600xf32> to vector<8x64xf32>
    %cst_38 = arith.constant dense<0.000000e+00> : vector<16x64xf32>
    %133 = tpu.matmul %131, %132, %cst_38 {dimension_numbers = #tpu.dot_dimension_numbers<[1], [0], [0], [1], [0, 0, 1, 1], [], []>} : vector<16x8xf32>, vector<8x64xf32>, vector<16x64xf32> -> vector<16x64xf32>
    %134 = arith.addf %129, %133 : vector<16x64xf32>
    %135 = vector.extract_strided_slice %12 {offsets = [23, 0, 0], sizes = [1, 16, 8], strides = [1, 1, 1]} : vector<25x16x8xf32> to vector<1x16x8xf32>
    %136 = vector.shape_cast %135 : vector<1x16x8xf32> to vector<16x8xf32>
    %137 = vector.extract_strided_slice %20 {offsets = [0, 1472], sizes = [8, 64], strides = [1, 1]} : vector<8x1600xf32> to vector<8x64xf32>
    %cst_39 = arith.constant dense<0.000000e+00> : vector<16x64xf32>
    %138 = tpu.matmul %136, %137, %cst_39 {dimension_numbers = #tpu.dot_dimension_numbers<[1], [0], [0], [1], [0, 0, 1, 1], [], []>} : vector<16x8xf32>, vector<8x64xf32>, vector<16x64xf32> -> vector<16x64xf32>
    %139 = arith.addf %134, %138 : vector<16x64xf32>
    %140 = vector.extract_strided_slice %12 {offsets = [24, 0, 0], sizes = [1, 16, 8], strides = [1, 1, 1]} : vector<25x16x8xf32> to vector<1x16x8xf32>
    %141 = vector.shape_cast %140 : vector<1x16x8xf32> to vector<16x8xf32>
    %142 = vector.extract_strided_slice %20 {offsets = [0, 1536], sizes = [8, 64], strides = [1, 1]} : vector<8x1600xf32> to vector<8x64xf32>
    %cst_40 = arith.constant dense<0.000000e+00> : vector<16x64xf32>
    %143 = tpu.matmul %141, %142, %cst_40 {dimension_numbers = #tpu.dot_dimension_numbers<[1], [0], [0], [1], [0, 0, 1, 1], [], []>} : vector<16x8xf32>, vector<8x64xf32>, vector<16x64xf32> -> vector<16x64xf32>
    %144 = arith.addf %139, %143 : vector<16x64xf32>
    %145 = vector.broadcast %13 : vector<16x1xf32> to vector<16x64xf32>
    %146 = arith.addf %144, %145 : vector<16x64xf32>
    %cst_41 = arith.constant dense<0.000000e+00> : vector<8x1600xf32>
    %147 = tpu.matmul %10, %19, %cst_41 {dimension_numbers = #tpu.dot_dimension_numbers<[1], [0], [0], [1], [0, 0, 1, 1], [], []>} : vector<8x256xf32>, vector<256x1600xf32>, vector<8x1600xf32> -> vector<8x1600xf32>
    %148 = vector.extract_strided_slice %12 {offsets = [0, 0, 0], sizes = [1, 16, 8], strides = [1, 1, 1]} : vector<25x16x8xf32> to vector<1x16x8xf32>
    %149 = vector.shape_cast %148 : vector<1x16x8xf32> to vector<16x8xf32>
    %150 = vector.extract_strided_slice %147 {offsets = [0, 0], sizes = [8, 64], strides = [1, 1]} : vector<8x1600xf32> to vector<8x64xf32>
    %cst_42 = arith.constant dense<0.000000e+00> : vector<16x64xf32>
    %151 = tpu.matmul %149, %150, %cst_42 {dimension_numbers = #tpu.dot_dimension_numbers<[1], [0], [0], [1], [0, 0, 1, 1], [], []>} : vector<16x8xf32>, vector<8x64xf32>, vector<16x64xf32> -> vector<16x64xf32>
    %152 = vector.extract_strided_slice %12 {offsets = [1, 0, 0], sizes = [1, 16, 8], strides = [1, 1, 1]} : vector<25x16x8xf32> to vector<1x16x8xf32>
    %153 = vector.shape_cast %152 : vector<1x16x8xf32> to vector<16x8xf32>
    %154 = vector.extract_strided_slice %147 {offsets = [0, 64], sizes = [8, 64], strides = [1, 1]} : vector<8x1600xf32> to vector<8x64xf32>
    %cst_43 = arith.constant dense<0.000000e+00> : vector<16x64xf32>
    %155 = tpu.matmul %153, %154, %cst_43 {dimension_numbers = #tpu.dot_dimension_numbers<[1], [0], [0], [1], [0, 0, 1, 1], [], []>} : vector<16x8xf32>, vector<8x64xf32>, vector<16x64xf32> -> vector<16x64xf32>
    %156 = arith.addf %151, %155 : vector<16x64xf32>
    %157 = vector.extract_strided_slice %12 {offsets = [2, 0, 0], sizes = [1, 16, 8], strides = [1, 1, 1]} : vector<25x16x8xf32> to vector<1x16x8xf32>
    %158 = vector.shape_cast %157 : vector<1x16x8xf32> to vector<16x8xf32>
    %159 = vector.extract_strided_slice %147 {offsets = [0, 128], sizes = [8, 64], strides = [1, 1]} : vector<8x1600xf32> to vector<8x64xf32>
    %cst_44 = arith.constant dense<0.000000e+00> : vector<16x64xf32>
    %160 = tpu.matmul %158, %159, %cst_44 {dimension_numbers = #tpu.dot_dimension_numbers<[1], [0], [0], [1], [0, 0, 1, 1], [], []>} : vector<16x8xf32>, vector<8x64xf32>, vector<16x64xf32> -> vector<16x64xf32>
    %161 = arith.addf %156, %160 : vector<16x64xf32>
    %162 = vector.extract_strided_slice %12 {offsets = [3, 0, 0], sizes = [1, 16, 8], strides = [1, 1, 1]} : vector<25x16x8xf32> to vector<1x16x8xf32>
    %163 = vector.shape_cast %162 : vector<1x16x8xf32> to vector<16x8xf32>
    %164 = vector.extract_strided_slice %147 {offsets = [0, 192], sizes = [8, 64], strides = [1, 1]} : vector<8x1600xf32> to vector<8x64xf32>
    %cst_45 = arith.constant dense<0.000000e+00> : vector<16x64xf32>
    %165 = tpu.matmul %163, %164, %cst_45 {dimension_numbers = #tpu.dot_dimension_numbers<[1], [0], [0], [1], [0, 0, 1, 1], [], []>} : vector<16x8xf32>, vector<8x64xf32>, vector<16x64xf32> -> vector<16x64xf32>
    %166 = arith.addf %161, %165 : vector<16x64xf32>
    %167 = vector.extract_strided_slice %12 {offsets = [4, 0, 0], sizes = [1, 16, 8], strides = [1, 1, 1]} : vector<25x16x8xf32> to vector<1x16x8xf32>
    %168 = vector.shape_cast %167 : vector<1x16x8xf32> to vector<16x8xf32>
    %169 = vector.extract_strided_slice %147 {offsets = [0, 256], sizes = [8, 64], strides = [1, 1]} : vector<8x1600xf32> to vector<8x64xf32>
    %cst_46 = arith.constant dense<0.000000e+00> : vector<16x64xf32>
    %170 = tpu.matmul %168, %169, %cst_46 {dimension_numbers = #tpu.dot_dimension_numbers<[1], [0], [0], [1], [0, 0, 1, 1], [], []>} : vector<16x8xf32>, vector<8x64xf32>, vector<16x64xf32> -> vector<16x64xf32>
    %171 = arith.addf %166, %170 : vector<16x64xf32>
    %172 = vector.extract_strided_slice %12 {offsets = [5, 0, 0], sizes = [1, 16, 8], strides = [1, 1, 1]} : vector<25x16x8xf32> to vector<1x16x8xf32>
    %173 = vector.shape_cast %172 : vector<1x16x8xf32> to vector<16x8xf32>
    %174 = vector.extract_strided_slice %147 {offsets = [0, 320], sizes = [8, 64], strides = [1, 1]} : vector<8x1600xf32> to vector<8x64xf32>
    %cst_47 = arith.constant dense<0.000000e+00> : vector<16x64xf32>
    %175 = tpu.matmul %173, %174, %cst_47 {dimension_numbers = #tpu.dot_dimension_numbers<[1], [0], [0], [1], [0, 0, 1, 1], [], []>} : vector<16x8xf32>, vector<8x64xf32>, vector<16x64xf32> -> vector<16x64xf32>
    %176 = arith.addf %171, %175 : vector<16x64xf32>
    %177 = vector.extract_strided_slice %12 {offsets = [6, 0, 0], sizes = [1, 16, 8], strides = [1, 1, 1]} : vector<25x16x8xf32> to vector<1x16x8xf32>
    %178 = vector.shape_cast %177 : vector<1x16x8xf32> to vector<16x8xf32>
    %179 = vector.extract_strided_slice %147 {offsets = [0, 384], sizes = [8, 64], strides = [1, 1]} : vector<8x1600xf32> to vector<8x64xf32>
    %cst_48 = arith.constant dense<0.000000e+00> : vector<16x64xf32>
    %180 = tpu.matmul %178, %179, %cst_48 {dimension_numbers = #tpu.dot_dimension_numbers<[1], [0], [0], [1], [0, 0, 1, 1], [], []>} : vector<16x8xf32>, vector<8x64xf32>, vector<16x64xf32> -> vector<16x64xf32>
    %181 = arith.addf %176, %180 : vector<16x64xf32>
    %182 = vector.extract_strided_slice %12 {offsets = [7, 0, 0], sizes = [1, 16, 8], strides = [1, 1, 1]} : vector<25x16x8xf32> to vector<1x16x8xf32>
    %183 = vector.shape_cast %182 : vector<1x16x8xf32> to vector<16x8xf32>
    %184 = vector.extract_strided_slice %147 {offsets = [0, 448], sizes = [8, 64], strides = [1, 1]} : vector<8x1600xf32> to vector<8x64xf32>
    %cst_49 = arith.constant dense<0.000000e+00> : vector<16x64xf32>
    %185 = tpu.matmul %183, %184, %cst_49 {dimension_numbers = #tpu.dot_dimension_numbers<[1], [0], [0], [1], [0, 0, 1, 1], [], []>} : vector<16x8xf32>, vector<8x64xf32>, vector<16x64xf32> -> vector<16x64xf32>
    %186 = arith.addf %181, %185 : vector<16x64xf32>
    %187 = vector.extract_strided_slice %12 {offsets = [8, 0, 0], sizes = [1, 16, 8], strides = [1, 1, 1]} : vector<25x16x8xf32> to vector<1x16x8xf32>
    %188 = vector.shape_cast %187 : vector<1x16x8xf32> to vector<16x8xf32>
    %189 = vector.extract_strided_slice %147 {offsets = [0, 512], sizes = [8, 64], strides = [1, 1]} : vector<8x1600xf32> to vector<8x64xf32>
    %cst_50 = arith.constant dense<0.000000e+00> : vector<16x64xf32>
    %190 = tpu.matmul %188, %189, %cst_50 {dimension_numbers = #tpu.dot_dimension_numbers<[1], [0], [0], [1], [0, 0, 1, 1], [], []>} : vector<16x8xf32>, vector<8x64xf32>, vector<16x64xf32> -> vector<16x64xf32>
    %191 = arith.addf %186, %190 : vector<16x64xf32>
    %192 = vector.extract_strided_slice %12 {offsets = [9, 0, 0], sizes = [1, 16, 8], strides = [1, 1, 1]} : vector<25x16x8xf32> to vector<1x16x8xf32>
    %193 = vector.shape_cast %192 : vector<1x16x8xf32> to vector<16x8xf32>
    %194 = vector.extract_strided_slice %147 {offsets = [0, 576], sizes = [8, 64], strides = [1, 1]} : vector<8x1600xf32> to vector<8x64xf32>
    %cst_51 = arith.constant dense<0.000000e+00> : vector<16x64xf32>
    %195 = tpu.matmul %193, %194, %cst_51 {dimension_numbers = #tpu.dot_dimension_numbers<[1], [0], [0], [1], [0, 0, 1, 1], [], []>} : vector<16x8xf32>, vector<8x64xf32>, vector<16x64xf32> -> vector<16x64xf32>
    %196 = arith.addf %191, %195 : vector<16x64xf32>
    %197 = vector.extract_strided_slice %12 {offsets = [10, 0, 0], sizes = [1, 16, 8], strides = [1, 1, 1]} : vector<25x16x8xf32> to vector<1x16x8xf32>
    %198 = vector.shape_cast %197 : vector<1x16x8xf32> to vector<16x8xf32>
    %199 = vector.extract_strided_slice %147 {offsets = [0, 640], sizes = [8, 64], strides = [1, 1]} : vector<8x1600xf32> to vector<8x64xf32>
    %cst_52 = arith.constant dense<0.000000e+00> : vector<16x64xf32>
    %200 = tpu.matmul %198, %199, %cst_52 {dimension_numbers = #tpu.dot_dimension_numbers<[1], [0], [0], [1], [0, 0, 1, 1], [], []>} : vector<16x8xf32>, vector<8x64xf32>, vector<16x64xf32> -> vector<16x64xf32>
    %201 = arith.addf %196, %200 : vector<16x64xf32>
    %202 = vector.extract_strided_slice %12 {offsets = [11, 0, 0], sizes = [1, 16, 8], strides = [1, 1, 1]} : vector<25x16x8xf32> to vector<1x16x8xf32>
    %203 = vector.shape_cast %202 : vector<1x16x8xf32> to vector<16x8xf32>
    %204 = vector.extract_strided_slice %147 {offsets = [0, 704], sizes = [8, 64], strides = [1, 1]} : vector<8x1600xf32> to vector<8x64xf32>
    %cst_53 = arith.constant dense<0.000000e+00> : vector<16x64xf32>
    %205 = tpu.matmul %203, %204, %cst_53 {dimension_numbers = #tpu.dot_dimension_numbers<[1], [0], [0], [1], [0, 0, 1, 1], [], []>} : vector<16x8xf32>, vector<8x64xf32>, vector<16x64xf32> -> vector<16x64xf32>
    %206 = arith.addf %201, %205 : vector<16x64xf32>
    %207 = vector.extract_strided_slice %12 {offsets = [12, 0, 0], sizes = [1, 16, 8], strides = [1, 1, 1]} : vector<25x16x8xf32> to vector<1x16x8xf32>
    %208 = vector.shape_cast %207 : vector<1x16x8xf32> to vector<16x8xf32>
    %209 = vector.extract_strided_slice %147 {offsets = [0, 768], sizes = [8, 64], strides = [1, 1]} : vector<8x1600xf32> to vector<8x64xf32>
    %cst_54 = arith.constant dense<0.000000e+00> : vector<16x64xf32>
    %210 = tpu.matmul %208, %209, %cst_54 {dimension_numbers = #tpu.dot_dimension_numbers<[1], [0], [0], [1], [0, 0, 1, 1], [], []>} : vector<16x8xf32>, vector<8x64xf32>, vector<16x64xf32> -> vector<16x64xf32>
    %211 = arith.addf %206, %210 : vector<16x64xf32>
    %212 = vector.extract_strided_slice %12 {offsets = [13, 0, 0], sizes = [1, 16, 8], strides = [1, 1, 1]} : vector<25x16x8xf32> to vector<1x16x8xf32>
    %213 = vector.shape_cast %212 : vector<1x16x8xf32> to vector<16x8xf32>
    %214 = vector.extract_strided_slice %147 {offsets = [0, 832], sizes = [8, 64], strides = [1, 1]} : vector<8x1600xf32> to vector<8x64xf32>
    %cst_55 = arith.constant dense<0.000000e+00> : vector<16x64xf32>
    %215 = tpu.matmul %213, %214, %cst_55 {dimension_numbers = #tpu.dot_dimension_numbers<[1], [0], [0], [1], [0, 0, 1, 1], [], []>} : vector<16x8xf32>, vector<8x64xf32>, vector<16x64xf32> -> vector<16x64xf32>
    %216 = arith.addf %211, %215 : vector<16x64xf32>
    %217 = vector.extract_strided_slice %12 {offsets = [14, 0, 0], sizes = [1, 16, 8], strides = [1, 1, 1]} : vector<25x16x8xf32> to vector<1x16x8xf32>
    %218 = vector.shape_cast %217 : vector<1x16x8xf32> to vector<16x8xf32>
    %219 = vector.extract_strided_slice %147 {offsets = [0, 896], sizes = [8, 64], strides = [1, 1]} : vector<8x1600xf32> to vector<8x64xf32>
    %cst_56 = arith.constant dense<0.000000e+00> : vector<16x64xf32>
    %220 = tpu.matmul %218, %219, %cst_56 {dimension_numbers = #tpu.dot_dimension_numbers<[1], [0], [0], [1], [0, 0, 1, 1], [], []>} : vector<16x8xf32>, vector<8x64xf32>, vector<16x64xf32> -> vector<16x64xf32>
    %221 = arith.addf %216, %220 : vector<16x64xf32>
    %222 = vector.extract_strided_slice %12 {offsets = [15, 0, 0], sizes = [1, 16, 8], strides = [1, 1, 1]} : vector<25x16x8xf32> to vector<1x16x8xf32>
    %223 = vector.shape_cast %222 : vector<1x16x8xf32> to vector<16x8xf32>
    %224 = vector.extract_strided_slice %147 {offsets = [0, 960], sizes = [8, 64], strides = [1, 1]} : vector<8x1600xf32> to vector<8x64xf32>
    %cst_57 = arith.constant dense<0.000000e+00> : vector<16x64xf32>
    %225 = tpu.matmul %223, %224, %cst_57 {dimension_numbers = #tpu.dot_dimension_numbers<[1], [0], [0], [1], [0, 0, 1, 1], [], []>} : vector<16x8xf32>, vector<8x64xf32>, vector<16x64xf32> -> vector<16x64xf32>
    %226 = arith.addf %221, %225 : vector<16x64xf32>
    %227 = vector.extract_strided_slice %12 {offsets = [16, 0, 0], sizes = [1, 16, 8], strides = [1, 1, 1]} : vector<25x16x8xf32> to vector<1x16x8xf32>
    %228 = vector.shape_cast %227 : vector<1x16x8xf32> to vector<16x8xf32>
    %229 = vector.extract_strided_slice %147 {offsets = [0, 1024], sizes = [8, 64], strides = [1, 1]} : vector<8x1600xf32> to vector<8x64xf32>
    %cst_58 = arith.constant dense<0.000000e+00> : vector<16x64xf32>
    %230 = tpu.matmul %228, %229, %cst_58 {dimension_numbers = #tpu.dot_dimension_numbers<[1], [0], [0], [1], [0, 0, 1, 1], [], []>} : vector<16x8xf32>, vector<8x64xf32>, vector<16x64xf32> -> vector<16x64xf32>
    %231 = arith.addf %226, %230 : vector<16x64xf32>
    %232 = vector.extract_strided_slice %12 {offsets = [17, 0, 0], sizes = [1, 16, 8], strides = [1, 1, 1]} : vector<25x16x8xf32> to vector<1x16x8xf32>
    %233 = vector.shape_cast %232 : vector<1x16x8xf32> to vector<16x8xf32>
    %234 = vector.extract_strided_slice %147 {offsets = [0, 1088], sizes = [8, 64], strides = [1, 1]} : vector<8x1600xf32> to vector<8x64xf32>
    %cst_59 = arith.constant dense<0.000000e+00> : vector<16x64xf32>
    %235 = tpu.matmul %233, %234, %cst_59 {dimension_numbers = #tpu.dot_dimension_numbers<[1], [0], [0], [1], [0, 0, 1, 1], [], []>} : vector<16x8xf32>, vector<8x64xf32>, vector<16x64xf32> -> vector<16x64xf32>
    %236 = arith.addf %231, %235 : vector<16x64xf32>
    %237 = vector.extract_strided_slice %12 {offsets = [18, 0, 0], sizes = [1, 16, 8], strides = [1, 1, 1]} : vector<25x16x8xf32> to vector<1x16x8xf32>
    %238 = vector.shape_cast %237 : vector<1x16x8xf32> to vector<16x8xf32>
    %239 = vector.extract_strided_slice %147 {offsets = [0, 1152], sizes = [8, 64], strides = [1, 1]} : vector<8x1600xf32> to vector<8x64xf32>
    %cst_60 = arith.constant dense<0.000000e+00> : vector<16x64xf32>
    %240 = tpu.matmul %238, %239, %cst_60 {dimension_numbers = #tpu.dot_dimension_numbers<[1], [0], [0], [1], [0, 0, 1, 1], [], []>} : vector<16x8xf32>, vector<8x64xf32>, vector<16x64xf32> -> vector<16x64xf32>
    %241 = arith.addf %236, %240 : vector<16x64xf32>
    %242 = vector.extract_strided_slice %12 {offsets = [19, 0, 0], sizes = [1, 16, 8], strides = [1, 1, 1]} : vector<25x16x8xf32> to vector<1x16x8xf32>
    %243 = vector.shape_cast %242 : vector<1x16x8xf32> to vector<16x8xf32>
    %244 = vector.extract_strided_slice %147 {offsets = [0, 1216], sizes = [8, 64], strides = [1, 1]} : vector<8x1600xf32> to vector<8x64xf32>
    %cst_61 = arith.constant dense<0.000000e+00> : vector<16x64xf32>
    %245 = tpu.matmul %243, %244, %cst_61 {dimension_numbers = #tpu.dot_dimension_numbers<[1], [0], [0], [1], [0, 0, 1, 1], [], []>} : vector<16x8xf32>, vector<8x64xf32>, vector<16x64xf32> -> vector<16x64xf32>
    %246 = arith.addf %241, %245 : vector<16x64xf32>
    %247 = vector.extract_strided_slice %12 {offsets = [20, 0, 0], sizes = [1, 16, 8], strides = [1, 1, 1]} : vector<25x16x8xf32> to vector<1x16x8xf32>
    %248 = vector.shape_cast %247 : vector<1x16x8xf32> to vector<16x8xf32>
    %249 = vector.extract_strided_slice %147 {offsets = [0, 1280], sizes = [8, 64], strides = [1, 1]} : vector<8x1600xf32> to vector<8x64xf32>
    %cst_62 = arith.constant dense<0.000000e+00> : vector<16x64xf32>
    %250 = tpu.matmul %248, %249, %cst_62 {dimension_numbers = #tpu.dot_dimension_numbers<[1], [0], [0], [1], [0, 0, 1, 1], [], []>} : vector<16x8xf32>, vector<8x64xf32>, vector<16x64xf32> -> vector<16x64xf32>
    %251 = arith.addf %246, %250 : vector<16x64xf32>
    %252 = vector.extract_strided_slice %12 {offsets = [21, 0, 0], sizes = [1, 16, 8], strides = [1, 1, 1]} : vector<25x16x8xf32> to vector<1x16x8xf32>
    %253 = vector.shape_cast %252 : vector<1x16x8xf32> to vector<16x8xf32>
    %254 = vector.extract_strided_slice %147 {offsets = [0, 1344], sizes = [8, 64], strides = [1, 1]} : vector<8x1600xf32> to vector<8x64xf32>
    %cst_63 = arith.constant dense<0.000000e+00> : vector<16x64xf32>
    %255 = tpu.matmul %253, %254, %cst_63 {dimension_numbers = #tpu.dot_dimension_numbers<[1], [0], [0], [1], [0, 0, 1, 1], [], []>} : vector<16x8xf32>, vector<8x64xf32>, vector<16x64xf32> -> vector<16x64xf32>
    %256 = arith.addf %251, %255 : vector<16x64xf32>
    %257 = vector.extract_strided_slice %12 {offsets = [22, 0, 0], sizes = [1, 16, 8], strides = [1, 1, 1]} : vector<25x16x8xf32> to vector<1x16x8xf32>
    %258 = vector.shape_cast %257 : vector<1x16x8xf32> to vector<16x8xf32>
    %259 = vector.extract_strided_slice %147 {offsets = [0, 1408], sizes = [8, 64], strides = [1, 1]} : vector<8x1600xf32> to vector<8x64xf32>
    %cst_64 = arith.constant dense<0.000000e+00> : vector<16x64xf32>
    %260 = tpu.matmul %258, %259, %cst_64 {dimension_numbers = #tpu.dot_dimension_numbers<[1], [0], [0], [1], [0, 0, 1, 1], [], []>} : vector<16x8xf32>, vector<8x64xf32>, vector<16x64xf32> -> vector<16x64xf32>
    %261 = arith.addf %256, %260 : vector<16x64xf32>
    %262 = vector.extract_strided_slice %12 {offsets = [23, 0, 0], sizes = [1, 16, 8], strides = [1, 1, 1]} : vector<25x16x8xf32> to vector<1x16x8xf32>
    %263 = vector.shape_cast %262 : vector<1x16x8xf32> to vector<16x8xf32>
    %264 = vector.extract_strided_slice %147 {offsets = [0, 1472], sizes = [8, 64], strides = [1, 1]} : vector<8x1600xf32> to vector<8x64xf32>
    %cst_65 = arith.constant dense<0.000000e+00> : vector<16x64xf32>
    %265 = tpu.matmul %263, %264, %cst_65 {dimension_numbers = #tpu.dot_dimension_numbers<[1], [0], [0], [1], [0, 0, 1, 1], [], []>} : vector<16x8xf32>, vector<8x64xf32>, vector<16x64xf32> -> vector<16x64xf32>
    %266 = arith.addf %261, %265 : vector<16x64xf32>
    %267 = vector.extract_strided_slice %12 {offsets = [24, 0, 0], sizes = [1, 16, 8], strides = [1, 1, 1]} : vector<25x16x8xf32> to vector<1x16x8xf32>
    %268 = vector.shape_cast %267 : vector<1x16x8xf32> to vector<16x8xf32>
    %269 = vector.extract_strided_slice %147 {offsets = [0, 1536], sizes = [8, 64], strides = [1, 1]} : vector<8x1600xf32> to vector<8x64xf32>
    %cst_66 = arith.constant dense<0.000000e+00> : vector<16x64xf32>
    %270 = tpu.matmul %268, %269, %cst_66 {dimension_numbers = #tpu.dot_dimension_numbers<[1], [0], [0], [1], [0, 0, 1, 1], [], []>} : vector<16x8xf32>, vector<8x64xf32>, vector<16x64xf32> -> vector<16x64xf32>
    %271 = arith.addf %266, %270 : vector<16x64xf32>
    %272 = vector.broadcast %13 : vector<16x1xf32> to vector<16x64xf32>
    %273 = arith.addf %271, %272 : vector<16x64xf32>
    %c0_67 = arith.constant 0 : index
    %c0_68 = arith.constant 0 : index
    %274 = vector.load %arg6[%c0_67, %c0_68] : memref<16x1xf32, #tpu.memory_space<vmem>>, vector<16x1xf32>
    %c0_69 = arith.constant 0 : index
    %c0_70 = arith.constant 0 : index
    %275 = vector.load %arg7[%c0_69, %c0_70] : memref<16x1xf32, #tpu.memory_space<vmem>>, vector<16x1xf32>
    %cst_71 = arith.constant dense<0.000000e+00> : vector<16xf32>
    %276 = vector.multi_reduction <add>, %146, %cst_71 [1] : vector<16x64xf32> to vector<16xf32>
    %277 = vector.shape_cast %276 : vector<16xf32> to vector<16x1xf32>
    %cst_72 = arith.constant 0.000000e+00 : f32
    %278 = vector.broadcast %cst_72 : f32 to vector<16x1xf32>
    %279 = arith.addf %278, %277 : vector<16x1xf32>
    %cst_73 = arith.constant dense<0.000000e+00> : vector<16xf32>
    %280 = vector.multi_reduction <add>, %273, %cst_73 [1] : vector<16x64xf32> to vector<16xf32>
    %281 = vector.shape_cast %280 : vector<16xf32> to vector<16x1xf32>
    %282 = arith.addf %279, %281 : vector<16x1xf32>
    %cst_74 = arith.constant 1.280000e+02 : f32
    %283 = vector.broadcast %cst_74 : f32 to vector<16x1xf32>
    %284 = arith.divf %282, %283 : vector<16x1xf32>
    %285 = vector.broadcast %284 : vector<16x1xf32> to vector<16x64xf32>
    %286 = arith.subf %146, %285 : vector<16x64xf32>
    %287 = vector.broadcast %284 : vector<16x1xf32> to vector<16x64xf32>
    %288 = arith.subf %146, %287 : vector<16x64xf32>
    %289 = arith.mulf %286, %288 : vector<16x64xf32>
    %cst_75 = arith.constant dense<0.000000e+00> : vector<16xf32>
    %290 = vector.multi_reduction <add>, %289, %cst_75 [1] : vector<16x64xf32> to vector<16xf32>
    %291 = vector.shape_cast %290 : vector<16xf32> to vector<16x1xf32>
    %cst_76 = arith.constant 0.000000e+00 : f32
    %292 = vector.broadcast %cst_76 : f32 to vector<16x1xf32>
    %293 = arith.addf %292, %291 : vector<16x1xf32>
    %294 = vector.broadcast %284 : vector<16x1xf32> to vector<16x64xf32>
    %295 = arith.subf %273, %294 : vector<16x64xf32>
    %296 = vector.broadcast %284 : vector<16x1xf32> to vector<16x64xf32>
    %297 = arith.subf %273, %296 : vector<16x64xf32>
    %298 = arith.mulf %295, %297 : vector<16x64xf32>
    %cst_77 = arith.constant dense<0.000000e+00> : vector<16xf32>
    %299 = vector.multi_reduction <add>, %298, %cst_77 [1] : vector<16x64xf32> to vector<16xf32>
    %300 = vector.shape_cast %299 : vector<16xf32> to vector<16x1xf32>
    %301 = arith.addf %293, %300 : vector<16x1xf32>
    %cst_78 = arith.constant 1.280000e+02 : f32
    %302 = vector.broadcast %cst_78 : f32 to vector<16x1xf32>
    %303 = arith.divf %301, %302 : vector<16x1xf32>
    %cst_79 = arith.constant 9.99999974E-6 : f32
    %304 = vector.broadcast %cst_79 : f32 to vector<16x1xf32>
    %305 = arith.addf %303, %304 : vector<16x1xf32>
    %306 = math.rsqrt %305 : vector<16x1xf32>
    %307 = arith.mulf %306, %274 : vector<16x1xf32>
    %308 = vector.broadcast %284 : vector<16x1xf32> to vector<16x64xf32>
    %309 = arith.subf %146, %308 : vector<16x64xf32>
    %310 = vector.broadcast %307 : vector<16x1xf32> to vector<16x64xf32>
    %311 = arith.mulf %309, %310 : vector<16x64xf32>
    %312 = vector.broadcast %275 : vector<16x1xf32> to vector<16x64xf32>
    %313 = arith.addf %311, %312 : vector<16x64xf32>
    %314 = vector.broadcast %284 : vector<16x1xf32> to vector<16x64xf32>
    %315 = arith.subf %273, %314 : vector<16x64xf32>
    %316 = vector.broadcast %307 : vector<16x1xf32> to vector<16x64xf32>
    %317 = arith.mulf %315, %316 : vector<16x64xf32>
    %318 = vector.broadcast %275 : vector<16x1xf32> to vector<16x64xf32>
    %319 = arith.addf %317, %318 : vector<16x64xf32>
    %cst_80 = arith.constant 2.000000e-01 : f32
    %320 = vector.broadcast %cst_80 : f32 to vector<16x64xf32>
    %321 = arith.mulf %320, %313 : vector<16x64xf32>
    %322 = arith.maximumf %313, %321 : vector<16x64xf32>
    %cst_81 = arith.constant 2.000000e-01 : f32
    %323 = vector.broadcast %cst_81 : f32 to vector<16x64xf32>
    %324 = arith.mulf %323, %319 : vector<16x64xf32>
    %325 = arith.maximumf %319, %324 : vector<16x64xf32>
    %c0_82 = arith.constant 0 : index
    %c0_83 = arith.constant 0 : index
    %326 = vector.load %arg8[%c0_82, %c0_83] : memref<1x400xi32, #tpu.memory_space<vmem>>, vector<1x400xi32>
    %c0_84 = arith.constant 0 : index
    %c0_85 = arith.constant 0 : index
    %c0_86 = arith.constant 0 : index
    %327 = vector.load %arg9[%c0_84, %c0_85, %c0_86] : memref<25x1x16xf32, #tpu.memory_space<vmem>>, vector<25x1x16xf32>
    %c0_87 = arith.constant 0 : index
    %c0_88 = arith.constant 0 : index
    %328 = vector.load %arg10[%c0_87, %c0_88] : memref<1x1xf32, #tpu.memory_space<vmem>>, vector<1x1xf32>
    %329 = tpu.iota {dimensions = array<i32: 0>} : vector<64x400xi32>
    %330 = vector.broadcast %326 : vector<1x400xi32> to vector<64x400xi32>
    %331 = arith.cmpi eq, %329, %330 : vector<64x400xi32>
    %cst_89 = arith.constant 1.000000e+00 : f32
    %cst_90 = arith.constant 0.000000e+00 : f32
    %332 = vector.broadcast %cst_89 : f32 to vector<64x400xf32>
    %333 = vector.broadcast %cst_90 : f32 to vector<64x400xf32>
    %334 = arith.select %331, %332, %333 : vector<64x400xi1>, vector<64x400xf32>
    %cst_91 = arith.constant dense<0.000000e+00> : vector<16x400xf32>
    %335 = tpu.matmul %322, %334, %cst_91 {dimension_numbers = #tpu.dot_dimension_numbers<[1], [0], [0], [1], [0, 0, 1, 1], [], []>} : vector<16x64xf32>, vector<64x400xf32>, vector<16x400xf32> -> vector<16x400xf32>
    %336 = vector.extract_strided_slice %327 {offsets = [0, 0, 0], sizes = [1, 1, 16], strides = [1, 1, 1]} : vector<25x1x16xf32> to vector<1x1x16xf32>
    %337 = vector.shape_cast %336 : vector<1x1x16xf32> to vector<1x16xf32>
    %338 = vector.extract_strided_slice %335 {offsets = [0, 0], sizes = [16, 16], strides = [1, 1]} : vector<16x400xf32> to vector<16x16xf32>
    %cst_92 = arith.constant dense<0.000000e+00> : vector<1x16xf32>
    %339 = tpu.matmul %337, %338, %cst_92 {dimension_numbers = #tpu.dot_dimension_numbers<[1], [0], [0], [1], [0, 0, 1, 1], [], []>} : vector<1x16xf32>, vector<16x16xf32>, vector<1x16xf32> -> vector<1x16xf32>
    %340 = vector.extract_strided_slice %327 {offsets = [1, 0, 0], sizes = [1, 1, 16], strides = [1, 1, 1]} : vector<25x1x16xf32> to vector<1x1x16xf32>
    %341 = vector.shape_cast %340 : vector<1x1x16xf32> to vector<1x16xf32>
    %342 = vector.extract_strided_slice %335 {offsets = [0, 16], sizes = [16, 16], strides = [1, 1]} : vector<16x400xf32> to vector<16x16xf32>
    %cst_93 = arith.constant dense<0.000000e+00> : vector<1x16xf32>
    %343 = tpu.matmul %341, %342, %cst_93 {dimension_numbers = #tpu.dot_dimension_numbers<[1], [0], [0], [1], [0, 0, 1, 1], [], []>} : vector<1x16xf32>, vector<16x16xf32>, vector<1x16xf32> -> vector<1x16xf32>
    %344 = arith.addf %339, %343 : vector<1x16xf32>
    %345 = vector.extract_strided_slice %327 {offsets = [2, 0, 0], sizes = [1, 1, 16], strides = [1, 1, 1]} : vector<25x1x16xf32> to vector<1x1x16xf32>
    %346 = vector.shape_cast %345 : vector<1x1x16xf32> to vector<1x16xf32>
    %347 = vector.extract_strided_slice %335 {offsets = [0, 32], sizes = [16, 16], strides = [1, 1]} : vector<16x400xf32> to vector<16x16xf32>
    %cst_94 = arith.constant dense<0.000000e+00> : vector<1x16xf32>
    %348 = tpu.matmul %346, %347, %cst_94 {dimension_numbers = #tpu.dot_dimension_numbers<[1], [0], [0], [1], [0, 0, 1, 1], [], []>} : vector<1x16xf32>, vector<16x16xf32>, vector<1x16xf32> -> vector<1x16xf32>
    %349 = arith.addf %344, %348 : vector<1x16xf32>
    %350 = vector.extract_strided_slice %327 {offsets = [3, 0, 0], sizes = [1, 1, 16], strides = [1, 1, 1]} : vector<25x1x16xf32> to vector<1x1x16xf32>
    %351 = vector.shape_cast %350 : vector<1x1x16xf32> to vector<1x16xf32>
    %352 = vector.extract_strided_slice %335 {offsets = [0, 48], sizes = [16, 16], strides = [1, 1]} : vector<16x400xf32> to vector<16x16xf32>
    %cst_95 = arith.constant dense<0.000000e+00> : vector<1x16xf32>
    %353 = tpu.matmul %351, %352, %cst_95 {dimension_numbers = #tpu.dot_dimension_numbers<[1], [0], [0], [1], [0, 0, 1, 1], [], []>} : vector<1x16xf32>, vector<16x16xf32>, vector<1x16xf32> -> vector<1x16xf32>
    %354 = arith.addf %349, %353 : vector<1x16xf32>
    %355 = vector.extract_strided_slice %327 {offsets = [4, 0, 0], sizes = [1, 1, 16], strides = [1, 1, 1]} : vector<25x1x16xf32> to vector<1x1x16xf32>
    %356 = vector.shape_cast %355 : vector<1x1x16xf32> to vector<1x16xf32>
    %357 = vector.extract_strided_slice %335 {offsets = [0, 64], sizes = [16, 16], strides = [1, 1]} : vector<16x400xf32> to vector<16x16xf32>
    %cst_96 = arith.constant dense<0.000000e+00> : vector<1x16xf32>
    %358 = tpu.matmul %356, %357, %cst_96 {dimension_numbers = #tpu.dot_dimension_numbers<[1], [0], [0], [1], [0, 0, 1, 1], [], []>} : vector<1x16xf32>, vector<16x16xf32>, vector<1x16xf32> -> vector<1x16xf32>
    %359 = arith.addf %354, %358 : vector<1x16xf32>
    %360 = vector.extract_strided_slice %327 {offsets = [5, 0, 0], sizes = [1, 1, 16], strides = [1, 1, 1]} : vector<25x1x16xf32> to vector<1x1x16xf32>
    %361 = vector.shape_cast %360 : vector<1x1x16xf32> to vector<1x16xf32>
    %362 = vector.extract_strided_slice %335 {offsets = [0, 80], sizes = [16, 16], strides = [1, 1]} : vector<16x400xf32> to vector<16x16xf32>
    %cst_97 = arith.constant dense<0.000000e+00> : vector<1x16xf32>
    %363 = tpu.matmul %361, %362, %cst_97 {dimension_numbers = #tpu.dot_dimension_numbers<[1], [0], [0], [1], [0, 0, 1, 1], [], []>} : vector<1x16xf32>, vector<16x16xf32>, vector<1x16xf32> -> vector<1x16xf32>
    %364 = arith.addf %359, %363 : vector<1x16xf32>
    %365 = vector.extract_strided_slice %327 {offsets = [6, 0, 0], sizes = [1, 1, 16], strides = [1, 1, 1]} : vector<25x1x16xf32> to vector<1x1x16xf32>
    %366 = vector.shape_cast %365 : vector<1x1x16xf32> to vector<1x16xf32>
    %367 = vector.extract_strided_slice %335 {offsets = [0, 96], sizes = [16, 16], strides = [1, 1]} : vector<16x400xf32> to vector<16x16xf32>
    %cst_98 = arith.constant dense<0.000000e+00> : vector<1x16xf32>
    %368 = tpu.matmul %366, %367, %cst_98 {dimension_numbers = #tpu.dot_dimension_numbers<[1], [0], [0], [1], [0, 0, 1, 1], [], []>} : vector<1x16xf32>, vector<16x16xf32>, vector<1x16xf32> -> vector<1x16xf32>
    %369 = arith.addf %364, %368 : vector<1x16xf32>
    %370 = vector.extract_strided_slice %327 {offsets = [7, 0, 0], sizes = [1, 1, 16], strides = [1, 1, 1]} : vector<25x1x16xf32> to vector<1x1x16xf32>
    %371 = vector.shape_cast %370 : vector<1x1x16xf32> to vector<1x16xf32>
    %372 = vector.extract_strided_slice %335 {offsets = [0, 112], sizes = [16, 16], strides = [1, 1]} : vector<16x400xf32> to vector<16x16xf32>
    %cst_99 = arith.constant dense<0.000000e+00> : vector<1x16xf32>
    %373 = tpu.matmul %371, %372, %cst_99 {dimension_numbers = #tpu.dot_dimension_numbers<[1], [0], [0], [1], [0, 0, 1, 1], [], []>} : vector<1x16xf32>, vector<16x16xf32>, vector<1x16xf32> -> vector<1x16xf32>
    %374 = arith.addf %369, %373 : vector<1x16xf32>
    %375 = vector.extract_strided_slice %327 {offsets = [8, 0, 0], sizes = [1, 1, 16], strides = [1, 1, 1]} : vector<25x1x16xf32> to vector<1x1x16xf32>
    %376 = vector.shape_cast %375 : vector<1x1x16xf32> to vector<1x16xf32>
    %377 = vector.extract_strided_slice %335 {offsets = [0, 128], sizes = [16, 16], strides = [1, 1]} : vector<16x400xf32> to vector<16x16xf32>
    %cst_100 = arith.constant dense<0.000000e+00> : vector<1x16xf32>
    %378 = tpu.matmul %376, %377, %cst_100 {dimension_numbers = #tpu.dot_dimension_numbers<[1], [0], [0], [1], [0, 0, 1, 1], [], []>} : vector<1x16xf32>, vector<16x16xf32>, vector<1x16xf32> -> vector<1x16xf32>
    %379 = arith.addf %374, %378 : vector<1x16xf32>
    %380 = vector.extract_strided_slice %327 {offsets = [9, 0, 0], sizes = [1, 1, 16], strides = [1, 1, 1]} : vector<25x1x16xf32> to vector<1x1x16xf32>
    %381 = vector.shape_cast %380 : vector<1x1x16xf32> to vector<1x16xf32>
    %382 = vector.extract_strided_slice %335 {offsets = [0, 144], sizes = [16, 16], strides = [1, 1]} : vector<16x400xf32> to vector<16x16xf32>
    %cst_101 = arith.constant dense<0.000000e+00> : vector<1x16xf32>
    %383 = tpu.matmul %381, %382, %cst_101 {dimension_numbers = #tpu.dot_dimension_numbers<[1], [0], [0], [1], [0, 0, 1, 1], [], []>} : vector<1x16xf32>, vector<16x16xf32>, vector<1x16xf32> -> vector<1x16xf32>
    %384 = arith.addf %379, %383 : vector<1x16xf32>
    %385 = vector.extract_strided_slice %327 {offsets = [10, 0, 0], sizes = [1, 1, 16], strides = [1, 1, 1]} : vector<25x1x16xf32> to vector<1x1x16xf32>
    %386 = vector.shape_cast %385 : vector<1x1x16xf32> to vector<1x16xf32>
    %387 = vector.extract_strided_slice %335 {offsets = [0, 160], sizes = [16, 16], strides = [1, 1]} : vector<16x400xf32> to vector<16x16xf32>
    %cst_102 = arith.constant dense<0.000000e+00> : vector<1x16xf32>
    %388 = tpu.matmul %386, %387, %cst_102 {dimension_numbers = #tpu.dot_dimension_numbers<[1], [0], [0], [1], [0, 0, 1, 1], [], []>} : vector<1x16xf32>, vector<16x16xf32>, vector<1x16xf32> -> vector<1x16xf32>
    %389 = arith.addf %384, %388 : vector<1x16xf32>
    %390 = vector.extract_strided_slice %327 {offsets = [11, 0, 0], sizes = [1, 1, 16], strides = [1, 1, 1]} : vector<25x1x16xf32> to vector<1x1x16xf32>
    %391 = vector.shape_cast %390 : vector<1x1x16xf32> to vector<1x16xf32>
    %392 = vector.extract_strided_slice %335 {offsets = [0, 176], sizes = [16, 16], strides = [1, 1]} : vector<16x400xf32> to vector<16x16xf32>
    %cst_103 = arith.constant dense<0.000000e+00> : vector<1x16xf32>
    %393 = tpu.matmul %391, %392, %cst_103 {dimension_numbers = #tpu.dot_dimension_numbers<[1], [0], [0], [1], [0, 0, 1, 1], [], []>} : vector<1x16xf32>, vector<16x16xf32>, vector<1x16xf32> -> vector<1x16xf32>
    %394 = arith.addf %389, %393 : vector<1x16xf32>
    %395 = vector.extract_strided_slice %327 {offsets = [12, 0, 0], sizes = [1, 1, 16], strides = [1, 1, 1]} : vector<25x1x16xf32> to vector<1x1x16xf32>
    %396 = vector.shape_cast %395 : vector<1x1x16xf32> to vector<1x16xf32>
    %397 = vector.extract_strided_slice %335 {offsets = [0, 192], sizes = [16, 16], strides = [1, 1]} : vector<16x400xf32> to vector<16x16xf32>
    %cst_104 = arith.constant dense<0.000000e+00> : vector<1x16xf32>
    %398 = tpu.matmul %396, %397, %cst_104 {dimension_numbers = #tpu.dot_dimension_numbers<[1], [0], [0], [1], [0, 0, 1, 1], [], []>} : vector<1x16xf32>, vector<16x16xf32>, vector<1x16xf32> -> vector<1x16xf32>
    %399 = arith.addf %394, %398 : vector<1x16xf32>
    %400 = vector.extract_strided_slice %327 {offsets = [13, 0, 0], sizes = [1, 1, 16], strides = [1, 1, 1]} : vector<25x1x16xf32> to vector<1x1x16xf32>
    %401 = vector.shape_cast %400 : vector<1x1x16xf32> to vector<1x16xf32>
    %402 = vector.extract_strided_slice %335 {offsets = [0, 208], sizes = [16, 16], strides = [1, 1]} : vector<16x400xf32> to vector<16x16xf32>
    %cst_105 = arith.constant dense<0.000000e+00> : vector<1x16xf32>
    %403 = tpu.matmul %401, %402, %cst_105 {dimension_numbers = #tpu.dot_dimension_numbers<[1], [0], [0], [1], [0, 0, 1, 1], [], []>} : vector<1x16xf32>, vector<16x16xf32>, vector<1x16xf32> -> vector<1x16xf32>
    %404 = arith.addf %399, %403 : vector<1x16xf32>
    %405 = vector.extract_strided_slice %327 {offsets = [14, 0, 0], sizes = [1, 1, 16], strides = [1, 1, 1]} : vector<25x1x16xf32> to vector<1x1x16xf32>
    %406 = vector.shape_cast %405 : vector<1x1x16xf32> to vector<1x16xf32>
    %407 = vector.extract_strided_slice %335 {offsets = [0, 224], sizes = [16, 16], strides = [1, 1]} : vector<16x400xf32> to vector<16x16xf32>
    %cst_106 = arith.constant dense<0.000000e+00> : vector<1x16xf32>
    %408 = tpu.matmul %406, %407, %cst_106 {dimension_numbers = #tpu.dot_dimension_numbers<[1], [0], [0], [1], [0, 0, 1, 1], [], []>} : vector<1x16xf32>, vector<16x16xf32>, vector<1x16xf32> -> vector<1x16xf32>
    %409 = arith.addf %404, %408 : vector<1x16xf32>
    %410 = vector.extract_strided_slice %327 {offsets = [15, 0, 0], sizes = [1, 1, 16], strides = [1, 1, 1]} : vector<25x1x16xf32> to vector<1x1x16xf32>
    %411 = vector.shape_cast %410 : vector<1x1x16xf32> to vector<1x16xf32>
    %412 = vector.extract_strided_slice %335 {offsets = [0, 240], sizes = [16, 16], strides = [1, 1]} : vector<16x400xf32> to vector<16x16xf32>
    %cst_107 = arith.constant dense<0.000000e+00> : vector<1x16xf32>
    %413 = tpu.matmul %411, %412, %cst_107 {dimension_numbers = #tpu.dot_dimension_numbers<[1], [0], [0], [1], [0, 0, 1, 1], [], []>} : vector<1x16xf32>, vector<16x16xf32>, vector<1x16xf32> -> vector<1x16xf32>
    %414 = arith.addf %409, %413 : vector<1x16xf32>
    %415 = vector.extract_strided_slice %327 {offsets = [16, 0, 0], sizes = [1, 1, 16], strides = [1, 1, 1]} : vector<25x1x16xf32> to vector<1x1x16xf32>
    %416 = vector.shape_cast %415 : vector<1x1x16xf32> to vector<1x16xf32>
    %417 = vector.extract_strided_slice %335 {offsets = [0, 256], sizes = [16, 16], strides = [1, 1]} : vector<16x400xf32> to vector<16x16xf32>
    %cst_108 = arith.constant dense<0.000000e+00> : vector<1x16xf32>
    %418 = tpu.matmul %416, %417, %cst_108 {dimension_numbers = #tpu.dot_dimension_numbers<[1], [0], [0], [1], [0, 0, 1, 1], [], []>} : vector<1x16xf32>, vector<16x16xf32>, vector<1x16xf32> -> vector<1x16xf32>
    %419 = arith.addf %414, %418 : vector<1x16xf32>
    %420 = vector.extract_strided_slice %327 {offsets = [17, 0, 0], sizes = [1, 1, 16], strides = [1, 1, 1]} : vector<25x1x16xf32> to vector<1x1x16xf32>
    %421 = vector.shape_cast %420 : vector<1x1x16xf32> to vector<1x16xf32>
    %422 = vector.extract_strided_slice %335 {offsets = [0, 272], sizes = [16, 16], strides = [1, 1]} : vector<16x400xf32> to vector<16x16xf32>
    %cst_109 = arith.constant dense<0.000000e+00> : vector<1x16xf32>
    %423 = tpu.matmul %421, %422, %cst_109 {dimension_numbers = #tpu.dot_dimension_numbers<[1], [0], [0], [1], [0, 0, 1, 1], [], []>} : vector<1x16xf32>, vector<16x16xf32>, vector<1x16xf32> -> vector<1x16xf32>
    %424 = arith.addf %419, %423 : vector<1x16xf32>
    %425 = vector.extract_strided_slice %327 {offsets = [18, 0, 0], sizes = [1, 1, 16], strides = [1, 1, 1]} : vector<25x1x16xf32> to vector<1x1x16xf32>
    %426 = vector.shape_cast %425 : vector<1x1x16xf32> to vector<1x16xf32>
    %427 = vector.extract_strided_slice %335 {offsets = [0, 288], sizes = [16, 16], strides = [1, 1]} : vector<16x400xf32> to vector<16x16xf32>
    %cst_110 = arith.constant dense<0.000000e+00> : vector<1x16xf32>
    %428 = tpu.matmul %426, %427, %cst_110 {dimension_numbers = #tpu.dot_dimension_numbers<[1], [0], [0], [1], [0, 0, 1, 1], [], []>} : vector<1x16xf32>, vector<16x16xf32>, vector<1x16xf32> -> vector<1x16xf32>
    %429 = arith.addf %424, %428 : vector<1x16xf32>
    %430 = vector.extract_strided_slice %327 {offsets = [19, 0, 0], sizes = [1, 1, 16], strides = [1, 1, 1]} : vector<25x1x16xf32> to vector<1x1x16xf32>
    %431 = vector.shape_cast %430 : vector<1x1x16xf32> to vector<1x16xf32>
    %432 = vector.extract_strided_slice %335 {offsets = [0, 304], sizes = [16, 16], strides = [1, 1]} : vector<16x400xf32> to vector<16x16xf32>
    %cst_111 = arith.constant dense<0.000000e+00> : vector<1x16xf32>
    %433 = tpu.matmul %431, %432, %cst_111 {dimension_numbers = #tpu.dot_dimension_numbers<[1], [0], [0], [1], [0, 0, 1, 1], [], []>} : vector<1x16xf32>, vector<16x16xf32>, vector<1x16xf32> -> vector<1x16xf32>
    %434 = arith.addf %429, %433 : vector<1x16xf32>
    %435 = vector.extract_strided_slice %327 {offsets = [20, 0, 0], sizes = [1, 1, 16], strides = [1, 1, 1]} : vector<25x1x16xf32> to vector<1x1x16xf32>
    %436 = vector.shape_cast %435 : vector<1x1x16xf32> to vector<1x16xf32>
    %437 = vector.extract_strided_slice %335 {offsets = [0, 320], sizes = [16, 16], strides = [1, 1]} : vector<16x400xf32> to vector<16x16xf32>
    %cst_112 = arith.constant dense<0.000000e+00> : vector<1x16xf32>
    %438 = tpu.matmul %436, %437, %cst_112 {dimension_numbers = #tpu.dot_dimension_numbers<[1], [0], [0], [1], [0, 0, 1, 1], [], []>} : vector<1x16xf32>, vector<16x16xf32>, vector<1x16xf32> -> vector<1x16xf32>
    %439 = arith.addf %434, %438 : vector<1x16xf32>
    %440 = vector.extract_strided_slice %327 {offsets = [21, 0, 0], sizes = [1, 1, 16], strides = [1, 1, 1]} : vector<25x1x16xf32> to vector<1x1x16xf32>
    %441 = vector.shape_cast %440 : vector<1x1x16xf32> to vector<1x16xf32>
    %442 = vector.extract_strided_slice %335 {offsets = [0, 336], sizes = [16, 16], strides = [1, 1]} : vector<16x400xf32> to vector<16x16xf32>
    %cst_113 = arith.constant dense<0.000000e+00> : vector<1x16xf32>
    %443 = tpu.matmul %441, %442, %cst_113 {dimension_numbers = #tpu.dot_dimension_numbers<[1], [0], [0], [1], [0, 0, 1, 1], [], []>} : vector<1x16xf32>, vector<16x16xf32>, vector<1x16xf32> -> vector<1x16xf32>
    %444 = arith.addf %439, %443 : vector<1x16xf32>
    %445 = vector.extract_strided_slice %327 {offsets = [22, 0, 0], sizes = [1, 1, 16], strides = [1, 1, 1]} : vector<25x1x16xf32> to vector<1x1x16xf32>
    %446 = vector.shape_cast %445 : vector<1x1x16xf32> to vector<1x16xf32>
    %447 = vector.extract_strided_slice %335 {offsets = [0, 352], sizes = [16, 16], strides = [1, 1]} : vector<16x400xf32> to vector<16x16xf32>
    %cst_114 = arith.constant dense<0.000000e+00> : vector<1x16xf32>
    %448 = tpu.matmul %446, %447, %cst_114 {dimension_numbers = #tpu.dot_dimension_numbers<[1], [0], [0], [1], [0, 0, 1, 1], [], []>} : vector<1x16xf32>, vector<16x16xf32>, vector<1x16xf32> -> vector<1x16xf32>
    %449 = arith.addf %444, %448 : vector<1x16xf32>
    %450 = vector.extract_strided_slice %327 {offsets = [23, 0, 0], sizes = [1, 1, 16], strides = [1, 1, 1]} : vector<25x1x16xf32> to vector<1x1x16xf32>
    %451 = vector.shape_cast %450 : vector<1x1x16xf32> to vector<1x16xf32>
    %452 = vector.extract_strided_slice %335 {offsets = [0, 368], sizes = [16, 16], strides = [1, 1]} : vector<16x400xf32> to vector<16x16xf32>
    %cst_115 = arith.constant dense<0.000000e+00> : vector<1x16xf32>
    %453 = tpu.matmul %451, %452, %cst_115 {dimension_numbers = #tpu.dot_dimension_numbers<[1], [0], [0], [1], [0, 0, 1, 1], [], []>} : vector<1x16xf32>, vector<16x16xf32>, vector<1x16xf32> -> vector<1x16xf32>
    %454 = arith.addf %449, %453 : vector<1x16xf32>
    %455 = vector.extract_strided_slice %327 {offsets = [24, 0, 0], sizes = [1, 1, 16], strides = [1, 1, 1]} : vector<25x1x16xf32> to vector<1x1x16xf32>
    %456 = vector.shape_cast %455 : vector<1x1x16xf32> to vector<1x16xf32>
    %457 = vector.extract_strided_slice %335 {offsets = [0, 384], sizes = [16, 16], strides = [1, 1]} : vector<16x400xf32> to vector<16x16xf32>
    %cst_116 = arith.constant dense<0.000000e+00> : vector<1x16xf32>
    %458 = tpu.matmul %456, %457, %cst_116 {dimension_numbers = #tpu.dot_dimension_numbers<[1], [0], [0], [1], [0, 0, 1, 1], [], []>} : vector<1x16xf32>, vector<16x16xf32>, vector<1x16xf32> -> vector<1x16xf32>
    %459 = arith.addf %454, %458 : vector<1x16xf32>
    %460 = vector.broadcast %328 : vector<1x1xf32> to vector<1x16xf32>
    %461 = arith.addf %459, %460 : vector<1x16xf32>
    %cst_117 = arith.constant dense<0.000000e+00> : vector<16x400xf32>
    %462 = tpu.matmul %325, %334, %cst_117 {dimension_numbers = #tpu.dot_dimension_numbers<[1], [0], [0], [1], [0, 0, 1, 1], [], []>} : vector<16x64xf32>, vector<64x400xf32>, vector<16x400xf32> -> vector<16x400xf32>
    %463 = vector.extract_strided_slice %327 {offsets = [0, 0, 0], sizes = [1, 1, 16], strides = [1, 1, 1]} : vector<25x1x16xf32> to vector<1x1x16xf32>
    %464 = vector.shape_cast %463 : vector<1x1x16xf32> to vector<1x16xf32>
    %465 = vector.extract_strided_slice %462 {offsets = [0, 0], sizes = [16, 16], strides = [1, 1]} : vector<16x400xf32> to vector<16x16xf32>
    %cst_118 = arith.constant dense<0.000000e+00> : vector<1x16xf32>
    %466 = tpu.matmul %464, %465, %cst_118 {dimension_numbers = #tpu.dot_dimension_numbers<[1], [0], [0], [1], [0, 0, 1, 1], [], []>} : vector<1x16xf32>, vector<16x16xf32>, vector<1x16xf32> -> vector<1x16xf32>
    %467 = vector.extract_strided_slice %327 {offsets = [1, 0, 0], sizes = [1, 1, 16], strides = [1, 1, 1]} : vector<25x1x16xf32> to vector<1x1x16xf32>
    %468 = vector.shape_cast %467 : vector<1x1x16xf32> to vector<1x16xf32>
    %469 = vector.extract_strided_slice %462 {offsets = [0, 16], sizes = [16, 16], strides = [1, 1]} : vector<16x400xf32> to vector<16x16xf32>
    %cst_119 = arith.constant dense<0.000000e+00> : vector<1x16xf32>
    %470 = tpu.matmul %468, %469, %cst_119 {dimension_numbers = #tpu.dot_dimension_numbers<[1], [0], [0], [1], [0, 0, 1, 1], [], []>} : vector<1x16xf32>, vector<16x16xf32>, vector<1x16xf32> -> vector<1x16xf32>
    %471 = arith.addf %466, %470 : vector<1x16xf32>
    %472 = vector.extract_strided_slice %327 {offsets = [2, 0, 0], sizes = [1, 1, 16], strides = [1, 1, 1]} : vector<25x1x16xf32> to vector<1x1x16xf32>
    %473 = vector.shape_cast %472 : vector<1x1x16xf32> to vector<1x16xf32>
    %474 = vector.extract_strided_slice %462 {offsets = [0, 32], sizes = [16, 16], strides = [1, 1]} : vector<16x400xf32> to vector<16x16xf32>
    %cst_120 = arith.constant dense<0.000000e+00> : vector<1x16xf32>
    %475 = tpu.matmul %473, %474, %cst_120 {dimension_numbers = #tpu.dot_dimension_numbers<[1], [0], [0], [1], [0, 0, 1, 1], [], []>} : vector<1x16xf32>, vector<16x16xf32>, vector<1x16xf32> -> vector<1x16xf32>
    %476 = arith.addf %471, %475 : vector<1x16xf32>
    %477 = vector.extract_strided_slice %327 {offsets = [3, 0, 0], sizes = [1, 1, 16], strides = [1, 1, 1]} : vector<25x1x16xf32> to vector<1x1x16xf32>
    %478 = vector.shape_cast %477 : vector<1x1x16xf32> to vector<1x16xf32>
    %479 = vector.extract_strided_slice %462 {offsets = [0, 48], sizes = [16, 16], strides = [1, 1]} : vector<16x400xf32> to vector<16x16xf32>
    %cst_121 = arith.constant dense<0.000000e+00> : vector<1x16xf32>
    %480 = tpu.matmul %478, %479, %cst_121 {dimension_numbers = #tpu.dot_dimension_numbers<[1], [0], [0], [1], [0, 0, 1, 1], [], []>} : vector<1x16xf32>, vector<16x16xf32>, vector<1x16xf32> -> vector<1x16xf32>
    %481 = arith.addf %476, %480 : vector<1x16xf32>
    %482 = vector.extract_strided_slice %327 {offsets = [4, 0, 0], sizes = [1, 1, 16], strides = [1, 1, 1]} : vector<25x1x16xf32> to vector<1x1x16xf32>
    %483 = vector.shape_cast %482 : vector<1x1x16xf32> to vector<1x16xf32>
    %484 = vector.extract_strided_slice %462 {offsets = [0, 64], sizes = [16, 16], strides = [1, 1]} : vector<16x400xf32> to vector<16x16xf32>
    %cst_122 = arith.constant dense<0.000000e+00> : vector<1x16xf32>
    %485 = tpu.matmul %483, %484, %cst_122 {dimension_numbers = #tpu.dot_dimension_numbers<[1], [0], [0], [1], [0, 0, 1, 1], [], []>} : vector<1x16xf32>, vector<16x16xf32>, vector<1x16xf32> -> vector<1x16xf32>
    %486 = arith.addf %481, %485 : vector<1x16xf32>
    %487 = vector.extract_strided_slice %327 {offsets = [5, 0, 0], sizes = [1, 1, 16], strides = [1, 1, 1]} : vector<25x1x16xf32> to vector<1x1x16xf32>
    %488 = vector.shape_cast %487 : vector<1x1x16xf32> to vector<1x16xf32>
    %489 = vector.extract_strided_slice %462 {offsets = [0, 80], sizes = [16, 16], strides = [1, 1]} : vector<16x400xf32> to vector<16x16xf32>
    %cst_123 = arith.constant dense<0.000000e+00> : vector<1x16xf32>
    %490 = tpu.matmul %488, %489, %cst_123 {dimension_numbers = #tpu.dot_dimension_numbers<[1], [0], [0], [1], [0, 0, 1, 1], [], []>} : vector<1x16xf32>, vector<16x16xf32>, vector<1x16xf32> -> vector<1x16xf32>
    %491 = arith.addf %486, %490 : vector<1x16xf32>
    %492 = vector.extract_strided_slice %327 {offsets = [6, 0, 0], sizes = [1, 1, 16], strides = [1, 1, 1]} : vector<25x1x16xf32> to vector<1x1x16xf32>
    %493 = vector.shape_cast %492 : vector<1x1x16xf32> to vector<1x16xf32>
    %494 = vector.extract_strided_slice %462 {offsets = [0, 96], sizes = [16, 16], strides = [1, 1]} : vector<16x400xf32> to vector<16x16xf32>
    %cst_124 = arith.constant dense<0.000000e+00> : vector<1x16xf32>
    %495 = tpu.matmul %493, %494, %cst_124 {dimension_numbers = #tpu.dot_dimension_numbers<[1], [0], [0], [1], [0, 0, 1, 1], [], []>} : vector<1x16xf32>, vector<16x16xf32>, vector<1x16xf32> -> vector<1x16xf32>
    %496 = arith.addf %491, %495 : vector<1x16xf32>
    %497 = vector.extract_strided_slice %327 {offsets = [7, 0, 0], sizes = [1, 1, 16], strides = [1, 1, 1]} : vector<25x1x16xf32> to vector<1x1x16xf32>
    %498 = vector.shape_cast %497 : vector<1x1x16xf32> to vector<1x16xf32>
    %499 = vector.extract_strided_slice %462 {offsets = [0, 112], sizes = [16, 16], strides = [1, 1]} : vector<16x400xf32> to vector<16x16xf32>
    %cst_125 = arith.constant dense<0.000000e+00> : vector<1x16xf32>
    %500 = tpu.matmul %498, %499, %cst_125 {dimension_numbers = #tpu.dot_dimension_numbers<[1], [0], [0], [1], [0, 0, 1, 1], [], []>} : vector<1x16xf32>, vector<16x16xf32>, vector<1x16xf32> -> vector<1x16xf32>
    %501 = arith.addf %496, %500 : vector<1x16xf32>
    %502 = vector.extract_strided_slice %327 {offsets = [8, 0, 0], sizes = [1, 1, 16], strides = [1, 1, 1]} : vector<25x1x16xf32> to vector<1x1x16xf32>
    %503 = vector.shape_cast %502 : vector<1x1x16xf32> to vector<1x16xf32>
    %504 = vector.extract_strided_slice %462 {offsets = [0, 128], sizes = [16, 16], strides = [1, 1]} : vector<16x400xf32> to vector<16x16xf32>
    %cst_126 = arith.constant dense<0.000000e+00> : vector<1x16xf32>
    %505 = tpu.matmul %503, %504, %cst_126 {dimension_numbers = #tpu.dot_dimension_numbers<[1], [0], [0], [1], [0, 0, 1, 1], [], []>} : vector<1x16xf32>, vector<16x16xf32>, vector<1x16xf32> -> vector<1x16xf32>
    %506 = arith.addf %501, %505 : vector<1x16xf32>
    %507 = vector.extract_strided_slice %327 {offsets = [9, 0, 0], sizes = [1, 1, 16], strides = [1, 1, 1]} : vector<25x1x16xf32> to vector<1x1x16xf32>
    %508 = vector.shape_cast %507 : vector<1x1x16xf32> to vector<1x16xf32>
    %509 = vector.extract_strided_slice %462 {offsets = [0, 144], sizes = [16, 16], strides = [1, 1]} : vector<16x400xf32> to vector<16x16xf32>
    %cst_127 = arith.constant dense<0.000000e+00> : vector<1x16xf32>
    %510 = tpu.matmul %508, %509, %cst_127 {dimension_numbers = #tpu.dot_dimension_numbers<[1], [0], [0], [1], [0, 0, 1, 1], [], []>} : vector<1x16xf32>, vector<16x16xf32>, vector<1x16xf32> -> vector<1x16xf32>
    %511 = arith.addf %506, %510 : vector<1x16xf32>
    %512 = vector.extract_strided_slice %327 {offsets = [10, 0, 0], sizes = [1, 1, 16], strides = [1, 1, 1]} : vector<25x1x16xf32> to vector<1x1x16xf32>
    %513 = vector.shape_cast %512 : vector<1x1x16xf32> to vector<1x16xf32>
    %514 = vector.extract_strided_slice %462 {offsets = [0, 160], sizes = [16, 16], strides = [1, 1]} : vector<16x400xf32> to vector<16x16xf32>
    %cst_128 = arith.constant dense<0.000000e+00> : vector<1x16xf32>
    %515 = tpu.matmul %513, %514, %cst_128 {dimension_numbers = #tpu.dot_dimension_numbers<[1], [0], [0], [1], [0, 0, 1, 1], [], []>} : vector<1x16xf32>, vector<16x16xf32>, vector<1x16xf32> -> vector<1x16xf32>
    %516 = arith.addf %511, %515 : vector<1x16xf32>
    %517 = vector.extract_strided_slice %327 {offsets = [11, 0, 0], sizes = [1, 1, 16], strides = [1, 1, 1]} : vector<25x1x16xf32> to vector<1x1x16xf32>
    %518 = vector.shape_cast %517 : vector<1x1x16xf32> to vector<1x16xf32>
    %519 = vector.extract_strided_slice %462 {offsets = [0, 176], sizes = [16, 16], strides = [1, 1]} : vector<16x400xf32> to vector<16x16xf32>
    %cst_129 = arith.constant dense<0.000000e+00> : vector<1x16xf32>
    %520 = tpu.matmul %518, %519, %cst_129 {dimension_numbers = #tpu.dot_dimension_numbers<[1], [0], [0], [1], [0, 0, 1, 1], [], []>} : vector<1x16xf32>, vector<16x16xf32>, vector<1x16xf32> -> vector<1x16xf32>
    %521 = arith.addf %516, %520 : vector<1x16xf32>
    %522 = vector.extract_strided_slice %327 {offsets = [12, 0, 0], sizes = [1, 1, 16], strides = [1, 1, 1]} : vector<25x1x16xf32> to vector<1x1x16xf32>
    %523 = vector.shape_cast %522 : vector<1x1x16xf32> to vector<1x16xf32>
    %524 = vector.extract_strided_slice %462 {offsets = [0, 192], sizes = [16, 16], strides = [1, 1]} : vector<16x400xf32> to vector<16x16xf32>
    %cst_130 = arith.constant dense<0.000000e+00> : vector<1x16xf32>
    %525 = tpu.matmul %523, %524, %cst_130 {dimension_numbers = #tpu.dot_dimension_numbers<[1], [0], [0], [1], [0, 0, 1, 1], [], []>} : vector<1x16xf32>, vector<16x16xf32>, vector<1x16xf32> -> vector<1x16xf32>
    %526 = arith.addf %521, %525 : vector<1x16xf32>
    %527 = vector.extract_strided_slice %327 {offsets = [13, 0, 0], sizes = [1, 1, 16], strides = [1, 1, 1]} : vector<25x1x16xf32> to vector<1x1x16xf32>
    %528 = vector.shape_cast %527 : vector<1x1x16xf32> to vector<1x16xf32>
    %529 = vector.extract_strided_slice %462 {offsets = [0, 208], sizes = [16, 16], strides = [1, 1]} : vector<16x400xf32> to vector<16x16xf32>
    %cst_131 = arith.constant dense<0.000000e+00> : vector<1x16xf32>
    %530 = tpu.matmul %528, %529, %cst_131 {dimension_numbers = #tpu.dot_dimension_numbers<[1], [0], [0], [1], [0, 0, 1, 1], [], []>} : vector<1x16xf32>, vector<16x16xf32>, vector<1x16xf32> -> vector<1x16xf32>
    %531 = arith.addf %526, %530 : vector<1x16xf32>
    %532 = vector.extract_strided_slice %327 {offsets = [14, 0, 0], sizes = [1, 1, 16], strides = [1, 1, 1]} : vector<25x1x16xf32> to vector<1x1x16xf32>
    %533 = vector.shape_cast %532 : vector<1x1x16xf32> to vector<1x16xf32>
    %534 = vector.extract_strided_slice %462 {offsets = [0, 224], sizes = [16, 16], strides = [1, 1]} : vector<16x400xf32> to vector<16x16xf32>
    %cst_132 = arith.constant dense<0.000000e+00> : vector<1x16xf32>
    %535 = tpu.matmul %533, %534, %cst_132 {dimension_numbers = #tpu.dot_dimension_numbers<[1], [0], [0], [1], [0, 0, 1, 1], [], []>} : vector<1x16xf32>, vector<16x16xf32>, vector<1x16xf32> -> vector<1x16xf32>
    %536 = arith.addf %531, %535 : vector<1x16xf32>
    %537 = vector.extract_strided_slice %327 {offsets = [15, 0, 0], sizes = [1, 1, 16], strides = [1, 1, 1]} : vector<25x1x16xf32> to vector<1x1x16xf32>
    %538 = vector.shape_cast %537 : vector<1x1x16xf32> to vector<1x16xf32>
    %539 = vector.extract_strided_slice %462 {offsets = [0, 240], sizes = [16, 16], strides = [1, 1]} : vector<16x400xf32> to vector<16x16xf32>
    %cst_133 = arith.constant dense<0.000000e+00> : vector<1x16xf32>
    %540 = tpu.matmul %538, %539, %cst_133 {dimension_numbers = #tpu.dot_dimension_numbers<[1], [0], [0], [1], [0, 0, 1, 1], [], []>} : vector<1x16xf32>, vector<16x16xf32>, vector<1x16xf32> -> vector<1x16xf32>
    %541 = arith.addf %536, %540 : vector<1x16xf32>
    %542 = vector.extract_strided_slice %327 {offsets = [16, 0, 0], sizes = [1, 1, 16], strides = [1, 1, 1]} : vector<25x1x16xf32> to vector<1x1x16xf32>
    %543 = vector.shape_cast %542 : vector<1x1x16xf32> to vector<1x16xf32>
    %544 = vector.extract_strided_slice %462 {offsets = [0, 256], sizes = [16, 16], strides = [1, 1]} : vector<16x400xf32> to vector<16x16xf32>
    %cst_134 = arith.constant dense<0.000000e+00> : vector<1x16xf32>
    %545 = tpu.matmul %543, %544, %cst_134 {dimension_numbers = #tpu.dot_dimension_numbers<[1], [0], [0], [1], [0, 0, 1, 1], [], []>} : vector<1x16xf32>, vector<16x16xf32>, vector<1x16xf32> -> vector<1x16xf32>
    %546 = arith.addf %541, %545 : vector<1x16xf32>
    %547 = vector.extract_strided_slice %327 {offsets = [17, 0, 0], sizes = [1, 1, 16], strides = [1, 1, 1]} : vector<25x1x16xf32> to vector<1x1x16xf32>
    %548 = vector.shape_cast %547 : vector<1x1x16xf32> to vector<1x16xf32>
    %549 = vector.extract_strided_slice %462 {offsets = [0, 272], sizes = [16, 16], strides = [1, 1]} : vector<16x400xf32> to vector<16x16xf32>
    %cst_135 = arith.constant dense<0.000000e+00> : vector<1x16xf32>
    %550 = tpu.matmul %548, %549, %cst_135 {dimension_numbers = #tpu.dot_dimension_numbers<[1], [0], [0], [1], [0, 0, 1, 1], [], []>} : vector<1x16xf32>, vector<16x16xf32>, vector<1x16xf32> -> vector<1x16xf32>
    %551 = arith.addf %546, %550 : vector<1x16xf32>
    %552 = vector.extract_strided_slice %327 {offsets = [18, 0, 0], sizes = [1, 1, 16], strides = [1, 1, 1]} : vector<25x1x16xf32> to vector<1x1x16xf32>
    %553 = vector.shape_cast %552 : vector<1x1x16xf32> to vector<1x16xf32>
    %554 = vector.extract_strided_slice %462 {offsets = [0, 288], sizes = [16, 16], strides = [1, 1]} : vector<16x400xf32> to vector<16x16xf32>
    %cst_136 = arith.constant dense<0.000000e+00> : vector<1x16xf32>
    %555 = tpu.matmul %553, %554, %cst_136 {dimension_numbers = #tpu.dot_dimension_numbers<[1], [0], [0], [1], [0, 0, 1, 1], [], []>} : vector<1x16xf32>, vector<16x16xf32>, vector<1x16xf32> -> vector<1x16xf32>
    %556 = arith.addf %551, %555 : vector<1x16xf32>
    %557 = vector.extract_strided_slice %327 {offsets = [19, 0, 0], sizes = [1, 1, 16], strides = [1, 1, 1]} : vector<25x1x16xf32> to vector<1x1x16xf32>
    %558 = vector.shape_cast %557 : vector<1x1x16xf32> to vector<1x16xf32>
    %559 = vector.extract_strided_slice %462 {offsets = [0, 304], sizes = [16, 16], strides = [1, 1]} : vector<16x400xf32> to vector<16x16xf32>
    %cst_137 = arith.constant dense<0.000000e+00> : vector<1x16xf32>
    %560 = tpu.matmul %558, %559, %cst_137 {dimension_numbers = #tpu.dot_dimension_numbers<[1], [0], [0], [1], [0, 0, 1, 1], [], []>} : vector<1x16xf32>, vector<16x16xf32>, vector<1x16xf32> -> vector<1x16xf32>
    %561 = arith.addf %556, %560 : vector<1x16xf32>
    %562 = vector.extract_strided_slice %327 {offsets = [20, 0, 0], sizes = [1, 1, 16], strides = [1, 1, 1]} : vector<25x1x16xf32> to vector<1x1x16xf32>
    %563 = vector.shape_cast %562 : vector<1x1x16xf32> to vector<1x16xf32>
    %564 = vector.extract_strided_slice %462 {offsets = [0, 320], sizes = [16, 16], strides = [1, 1]} : vector<16x400xf32> to vector<16x16xf32>
    %cst_138 = arith.constant dense<0.000000e+00> : vector<1x16xf32>
    %565 = tpu.matmul %563, %564, %cst_138 {dimension_numbers = #tpu.dot_dimension_numbers<[1], [0], [0], [1], [0, 0, 1, 1], [], []>} : vector<1x16xf32>, vector<16x16xf32>, vector<1x16xf32> -> vector<1x16xf32>
    %566 = arith.addf %561, %565 : vector<1x16xf32>
    %567 = vector.extract_strided_slice %327 {offsets = [21, 0, 0], sizes = [1, 1, 16], strides = [1, 1, 1]} : vector<25x1x16xf32> to vector<1x1x16xf32>
    %568 = vector.shape_cast %567 : vector<1x1x16xf32> to vector<1x16xf32>
    %569 = vector.extract_strided_slice %462 {offsets = [0, 336], sizes = [16, 16], strides = [1, 1]} : vector<16x400xf32> to vector<16x16xf32>
    %cst_139 = arith.constant dense<0.000000e+00> : vector<1x16xf32>
    %570 = tpu.matmul %568, %569, %cst_139 {dimension_numbers = #tpu.dot_dimension_numbers<[1], [0], [0], [1], [0, 0, 1, 1], [], []>} : vector<1x16xf32>, vector<16x16xf32>, vector<1x16xf32> -> vector<1x16xf32>
    %571 = arith.addf %566, %570 : vector<1x16xf32>
    %572 = vector.extract_strided_slice %327 {offsets = [22, 0, 0], sizes = [1, 1, 16], strides = [1, 1, 1]} : vector<25x1x16xf32> to vector<1x1x16xf32>
    %573 = vector.shape_cast %572 : vector<1x1x16xf32> to vector<1x16xf32>
    %574 = vector.extract_strided_slice %462 {offsets = [0, 352], sizes = [16, 16], strides = [1, 1]} : vector<16x400xf32> to vector<16x16xf32>
    %cst_140 = arith.constant dense<0.000000e+00> : vector<1x16xf32>
    %575 = tpu.matmul %573, %574, %cst_140 {dimension_numbers = #tpu.dot_dimension_numbers<[1], [0], [0], [1], [0, 0, 1, 1], [], []>} : vector<1x16xf32>, vector<16x16xf32>, vector<1x16xf32> -> vector<1x16xf32>
    %576 = arith.addf %571, %575 : vector<1x16xf32>
    %577 = vector.extract_strided_slice %327 {offsets = [23, 0, 0], sizes = [1, 1, 16], strides = [1, 1, 1]} : vector<25x1x16xf32> to vector<1x1x16xf32>
    %578 = vector.shape_cast %577 : vector<1x1x16xf32> to vector<1x16xf32>
    %579 = vector.extract_strided_slice %462 {offsets = [0, 368], sizes = [16, 16], strides = [1, 1]} : vector<16x400xf32> to vector<16x16xf32>
    %cst_141 = arith.constant dense<0.000000e+00> : vector<1x16xf32>
    %580 = tpu.matmul %578, %579, %cst_141 {dimension_numbers = #tpu.dot_dimension_numbers<[1], [0], [0], [1], [0, 0, 1, 1], [], []>} : vector<1x16xf32>, vector<16x16xf32>, vector<1x16xf32> -> vector<1x16xf32>
    %581 = arith.addf %576, %580 : vector<1x16xf32>
    %582 = vector.extract_strided_slice %327 {offsets = [24, 0, 0], sizes = [1, 1, 16], strides = [1, 1, 1]} : vector<25x1x16xf32> to vector<1x1x16xf32>
    %583 = vector.shape_cast %582 : vector<1x1x16xf32> to vector<1x16xf32>
    %584 = vector.extract_strided_slice %462 {offsets = [0, 384], sizes = [16, 16], strides = [1, 1]} : vector<16x400xf32> to vector<16x16xf32>
    %cst_142 = arith.constant dense<0.000000e+00> : vector<1x16xf32>
    %585 = tpu.matmul %583, %584, %cst_142 {dimension_numbers = #tpu.dot_dimension_numbers<[1], [0], [0], [1], [0, 0, 1, 1], [], []>} : vector<1x16xf32>, vector<16x16xf32>, vector<1x16xf32> -> vector<1x16xf32>
    %586 = arith.addf %581, %585 : vector<1x16xf32>
    %587 = vector.broadcast %328 : vector<1x1xf32> to vector<1x16xf32>
    %588 = arith.addf %586, %587 : vector<1x16xf32>
    %c0_143 = arith.constant 0 : index
    %c0_144 = arith.constant 0 : index
    %589 = vector.load %arg11[%c0_143, %c0_144] : memref<16x1xf32, #tpu.memory_space<vmem>>, vector<16x1xf32>
    %c0_145 = arith.constant 0 : index
    %c0_146 = arith.constant 0 : index
    %590 = vector.load %arg12[%c0_145, %c0_146] : memref<1x1xf32, #tpu.memory_space<vmem>>, vector<1x1xf32>
    %cst_147 = arith.constant dense<0.000000e+00> : vector<1x1xf32>
    %591 = tpu.matmul %461, %589, %cst_147 {dimension_numbers = #tpu.dot_dimension_numbers<[1], [0], [0], [1], [0, 0, 1, 1], [], []>} : vector<1x16xf32>, vector<16x1xf32>, vector<1x1xf32> -> vector<1x1xf32>
    %592 = arith.addf %591, %590 : vector<1x1xf32>
    %c0_148 = arith.constant 0 : index
    %c0_149 = arith.constant 0 : index
    %593 = vector.load %arg13[%c0_148, %c0_149] : memref<1x2xf32, #tpu.memory_space<vmem>>, vector<1x1xf32>
    tpu.vector_store %arg13[%c0_148, %c0_149], %592 {strides = array<i32>} : memref<1x2xf32, #tpu.memory_space<vmem>>, vector<1x1xf32>,
    %cst_150 = arith.constant dense<0.000000e+00> : vector<1x1xf32>
    %594 = tpu.matmul %588, %589, %cst_150 {dimension_numbers = #tpu.dot_dimension_numbers<[1], [0], [0], [1], [0, 0, 1, 1], [], []>} : vector<1x16xf32>, vector<16x1xf32>, vector<1x1xf32> -> vector<1x1xf32>
    %595 = arith.addf %594, %590 : vector<1x1xf32>
    %c0_151 = arith.constant 0 : index
    %c1 = arith.constant 1 : index
    %596 = vector.load %arg13[%c0_151, %c1] : memref<1x2xf32, #tpu.memory_space<vmem>>, vector<1x1xf32>
    tpu.vector_store %arg13[%c0_151, %c1], %595 {strides = array<i32>} : memref<1x2xf32, #tpu.memory_space<vmem>>, vector<1x1xf32>,
    return
  }
}

</mosaic_0001>

<bundles_post_ra>
// kernel: squeeze.49
= control target key start
LH: loop header
LB: loop body
LE: loop exit
PB: predicated region body
PF: predicated region fallthrough
CT: control target
= control target key end

     0   :  { %s94_s8 = smov 112   ;;  %s95_s11 = smov 80   ;;  %vm3_vm0 = vcmask 130048   ;;  %vm9_vm1 = vcmask 1048448   ;;  %vm15_vm2 = vcmask 917248   ;;  %vm21_vm3 = vcmask 786048   ;;  %s147_s0 = inlined_call_operand.vmem [shape: f32[2,1,16,16], index: 0, kind: input, shape index: {}]   ;;  %s148_s1 = inlined_call_operand.vmem [shape: f32[1,512], index: 1, kind: output, shape index: {}]  }
   0x1   :  { %v77_v0 = vld [vmem:[%s147_s0 + $0x7] ss:$8 sm:$0xf]   ;;  %v79_v1 = vld [vmem:[%s147_s0 + $0x5] ss:$8 sm:$0xf]  }
   0x2   :  { %7 = vrot.lane.b32.xlu0 %v77_v0, %s94_s8  ;;  %19 = vrot.lane.b32.xlu1 %v79_v1, %s95_s11  ;;  %v78_v2 = vld [vmem:[%s147_s0 + $0x6] ss:$8 sm:$0xf]   ;;  %v80_v3 = vld [vmem:[%s147_s0 + $0x4] ss:$8 sm:$0xf]  }
   0x3   :  { %s96_s16 = smov 96   ;;  %v2_v4 = vld [vmem:[%s147_s0] ss:$8 sm:$0xf]   ;;  %s97_s19 = smov 64   ;;  %vm27_vm4 = vcmask 654848  }
   0x4   :  { %v81_v5 = vld [vmem:[%s147_s0 + $0x3] ss:$8 sm:$0xf]   ;;  %4 = vst.msk [vmem:[#allocation0] ss:$8 sm:$0xf] %vm3_vm0, %v2_v4  }
   0x5   :  { %v82_v6 = vld [vmem:[%s147_s0 + $0x2] ss:$8 sm:$0xf]   ;;  %s98_s24 = smov 48   ;;  %s99_s25 = smov 32   ;;  %vm33_vm5 = vcmask 523648  }
   0x6   :  { %13 = vrot.lane.b32.xlu0 %v78_v2, %s96_s16  ;;  %25 = vrot.lane.b32.xlu1 %v80_v3, %s97_s19  ;;  %v83_v7 = vld [vmem:[%s147_s0 + $0x1] ss:$8 sm:$0xf]   ;;  %s100_s0 = smov 16   ;;  %vm39_vm6 = vcmask 392448   ;;  %vm45_vm7 = vcmask 261248  }
   0xa   :  { %31 = vrot.lane.b32.xlu0 %v81_v5, %s98_s24  ;;  %37 = vrot.lane.b32.xlu1 %v82_v6, %s99_s25 }
   0xe   :  { %43 = vrot.lane.b32.xlu0 %v83_v7, %s100_s0 }
  0x74   :  { %v8_v8 = vpop.permute.xlu0 %7   ;;  %v20_v9 = vpop.permute.xlu1 %19  }
  0x75   :  { %10 = vst.msk [vmem:[#allocation0] ss:$8 sm:$0xf] %vm9_vm1, %v8_v8  }
  0x78   :  { %v14_v10 = vpop.permute.xlu0 %13   ;;  %v26_v11 = vpop.permute.xlu1 %25  }
  0x79   :  { %16 = vst.msk [vmem:[#allocation0] ss:$8 sm:$0xf] %vm15_vm2, %v14_v10  }
  0x7a   :  { %22 = vst.msk [vmem:[#allocation0] ss:$8 sm:$0xf] %vm21_vm3, %v20_v9  }
  0x7b   :  { %28 = vst.msk [vmem:[#allocation0] ss:$8 sm:$0xf] %vm27_vm4, %v26_v11  }
  0x7c   :  { %v32_v12 = vpop.permute.xlu0 %31   ;;  %v38_v13 = vpop.permute.xlu1 %37  }
  0x7d   :  { %34 = vst.msk [vmem:[#allocation0] ss:$8 sm:$0xf] %vm33_vm5, %v32_v12  }
  0x7e   :  { %40 = vst.msk [vmem:[#allocation0] ss:$8 sm:$0xf] %vm39_vm6, %v38_v13  }
  0x80   :  { %v44_v14 = vpop.permute.xlu0 %43  }
  0x81   :  { %46 = vst.msk [vmem:[#allocation0] ss:$8 sm:$0xf] %vm45_vm7, %v44_v14  }
  0x88   :  { %v51_v15 = vld [vmem:[#allocation0] sm:$0x1]  ;;  %v56_v16 = vld [vmem:[#allocation0 + $0x8] sm:$0x1]  ;;  %v62_v17 = vld [vmem:[#allocation0 + $0x10] sm:$0x1] }
  0x89   :  { %54 = vst [vmem:[%s148_s1] sm:$0x1] %v51_v15  ;;  %84 = vst [vmem:[%s148_s1 + $0x1] sm:$0x1] %v56_v16  ;;  %v69_v18 = vld [vmem:[#allocation0 + $0x18] sm:$0x1] }
  0x8a   :  { %85 = vst [vmem:[%s148_s1 + $0x2] sm:$0x1] %v62_v17  ;;  %86 = vst [vmem:[%s148_s1 + $0x3] sm:$0x1] %v69_v18 }

// kernel: forward.1
= control target key start
LH: loop header
LB: loop body
LE: loop exit
PB: predicated region body
PF: predicated region fallthrough
CT: control target
= control target key end

     0   :  { %s19075_s0 = inlined_call_operand.vmem [shape: f32[25,512], index: 0, kind: input, shape index: {}]   ;;  %s19076_s1 = inlined_call_operand.vmem [shape: f32[8,25], index: 1, kind: input, shape index: {}]   ;;  %s19077_s2 = inlined_call_operand.vmem [shape: f32[8,1], index: 2, kind: input, shape index: {}]   ;;  %s19078_s3 = inlined_call_operand.vmem [shape: s32[1,1600], index: 3, kind: input, shape index: {}]   ;;  %s19079_s4 = inlined_call_operand.vmem [shape: f32[25,16,8], index: 4, kind: input, shape index: {}]   ;;  %s19080_s5 = inlined_call_operand.vmem [shape: f32[16,1], index: 5, kind: input, shape index: {}]   ;;  %s19081_s6 = inlined_call_operand.vmem [shape: f32[16,1], index: 6, kind: input, shape index: {}]   ;;  %s19082_s7 = inlined_call_operand.vmem [shape: f32[16,1], index: 7, kind: input, shape index: {}]   ;;  %s19083_s8 = inlined_call_operand.vmem [shape: s32[1,400], index: 8, kind: input, shape index: {}]   ;;  %s19084_s9 = inlined_call_operand.vmem [shape: f32[25,1,16], index: 9, kind: input, shape index: {}]   ;;  %s19085_s10 = inlined_call_operand.<no memory space> [shape: f32[1,1], index: 10, kind: input, shape index: {}]   ;;  %s19086_s11 = inlined_call_operand.vmem [shape: f32[16,1], index: 11, kind: input, shape index: {}]   ;;  %s19087_s13 = inlined_call_operand.hbm [shape: f32[1,2], index: 13, kind: output, shape index: {}]   ;;  %s19088_s12 = inlined_call_operand.<no memory space> [shape: f32[1,1], index: 12, kind: input, shape index: {}]  }
   0x1   :  { %v18_v0 = vstv %s19085_s10  ;;  %v20_v1 = vstv %s19088_s12 }
   0x2   :  { %19 = vst [vmem:[#allocation2] sm:$0x1] %v18_v0  ;;  %21 = vst [vmem:[#allocation3] sm:$0x1] %v20_v1 }
   0x3   :  { %v62_v2 = vld [vmem:[%s19075_s0 + $0x68] sm:$0x1]  ;;  %vm76_vm0 = vcmask 1040384   ;;  %v64_v3 = vld [vmem:[%s19075_s0 + $0x78] sm:$0x1]  ;;  %v293_v5 = vlaneseq  ;;  %v57_v9 = vld [vmem:[%s19075_s0 + $0x40] sm:$0xff] }
   0x4   :  { %v58_v4 = vld [vmem:[%s19075_s0 + $0x48] sm:$0xff]  ;;  %10892 = vmatprep.subr.msk.mxu0 %vm76_vm0, %v62_v2  ;;  %10895 = vmatprep.subr.msk.mxu1 %vm76_vm0, %v64_v3  ;;  %v61_v6 = vld [vmem:[%s19075_s0 + $0x60] sm:$0x1]  ;;  %v63_v7 = vld [vmem:[%s19075_s0 + $0x70] sm:$0x1]  ;;  %vm72_vm1 = vcmask 203776  }
   0x5   :  { %v60_v8 = vld [vmem:[%s19075_s0 + $0x58] sm:$0xff]  ;;  %10893 = vmatpush1.msk.msra.mxu0 %vm76_vm0, %v61_v6  ;;  %10896 = vmatpush1.msk.msra.mxu1 %vm76_vm0, %v63_v7  ;;  %v59_v10 = vld [vmem:[%s19075_s0 + $0x50] sm:$0xff]  ;;  %v54_v11 = vld [vmem:[%s19075_s0 + $0x28] sm:$0xff]  ;;  %v13151_v12 = vshrl.u32 %v293_v5, 7 }
   0x6   :  { %115 = vmatprep.subr.mxu0 %v58_v4  ;;  %186 = vmatprep.subr.mxu1 %v60_v8  ;;  %v56_v13 = vld [vmem:[%s19075_s0 + $0x38] sm:$0xff]  ;;  %v53_v14 = vld [vmem:[%s19075_s0 + $0x20] sm:$0xff]  ;;  %v55_v15 = vld [vmem:[%s19075_s0 + $0x30] sm:$0xff] }
   0x7   :  { %116 = vmatpush1.msra.mxu0 %v57_v9  ;;  %187 = vmatpush1.msra.mxu1 %v59_v10  ;;  %v50_v16 = vld [vmem:[%s19075_s0 + $0x8] sm:$0xff]  ;;  %v52_v17 = vld [vmem:[%s19075_s0 + $0x18] sm:$0xff]  ;;  %v13169_v18 = vsub.s32 1, %v13151_v12  ;;  %v13172_v19 = vsub.s32 3, %v13151_v12  ;;  %v49_v20 = vld [vmem:[%s19075_s0] sm:$0xff]  ;;  %v13178_v21 = vadd.s32 120, %v13151_v12 }
   0x8   :  { %117 = vmatprep.subr.mxu0 %v54_v11  ;;  %188 = vmatprep.subr.mxu1 %v56_v13  ;;  %v13181_v22 = vsub.s32 0, %v13151_v12  ;;  %v13184_v23 = vsub.s32 2, %v13151_v12  ;;  %v51_v24 = vld [vmem:[%s19075_s0 + $0x10] sm:$0xff]  ;;  %v13192_v25 = vld [vmem:[%s19078_s3] sm:$0xff]  ;;  %v13210_v30 = vadd.s32 112, %v13151_v12 }
   0x9   :  { %118 = vmatpush1.msra.mxu0 %v53_v14  ;;  %189 = vmatpush1.msra.mxu1 %v55_v15  ;;  %v65_v26 = vld [vmem:[%s19076_s1] sm:$0xff]  ;;  %v13199_v27 = vrot.slane %v13192_v25, %v13169_v18  ;;  %v13203_v28 = vrot.slane %v13192_v25, %v13172_v19 }
   0xa   :  { %119 = vmatprep.subr.mxu0 %v50_v16  ;;  %190 = vmatprep.subr.mxu1 %v52_v17  ;;  %v13207_v29 = vrot.slane %v13192_v25, %v13181_v22 }
   0xb   :  { %22 = vsyncpa [#allocation5], 0  ;;  %120 = vmatpush1.msra.mxu0 %v49_v20  ;;  %v19490_v31 = vmov 0.0   ;;  %v13215_v32 = vrot.slane %v13192_v25, %v13184_v23  ;;  %191 = vmatpush1.msra.mxu1 %v51_v24  ;;  %v66_v33 = vld [vmem:[%s19077_s2] sm:$0xff]  ;;  %vm19096_vm2 = vcmp.eq.s32.totalorder %v13178_v21, %v13199_v27  ;;  %vm576_vm3 = vcmp.eq.s32.totalorder %v13178_v21, %v13203_v28  ;;  %v14799_v24 = vld [vmem:[%s19078_s3 + $0x8] sm:$0x1f] }
   0xc   :  { %153 = vmatprep.mubr.f32.mxu0 %v19490_v31  ;;  %224 = vmatprep.mubr.f32.mxu1 %v19490_v31  ;;  %v13226_v34 = vadd.s32 104, %v13151_v12  ;;  %vm19094_vm4 = vcmp.eq.s32.totalorder %v13178_v21, %v13207_v29  ;;  %v13036_v35 = vmov 0   ;;  %v19492_v36 = vmov 1.0   ;;  %s13038_s14 = smov 64   ;;  %v265_v31 = vld [vmem:[%s19079_s4 + $0xc0] sm:$0xff]  ;;  %s13041_s19 = smov 80  }
   0xd   :  { %10894 = vmatmul.mubr.msk.f32.vlgmr.msra.gmra.mxu0 %vm72_vm1, %v65_v26  ;;  %10897 = vmatmul.mubr.msk.f32.vlgmr.msra.gmra.mxu1 %vm72_vm1, %v65_v26  ;;  %vm575_vm5 = vcmp.eq.s32.totalorder %v13178_v21, %v13215_v32  ;;  %vm19092_vm6 = vcmp.eq.s32.totalorder %v13210_v30, %v13199_v27  ;;  %vm563_vm7 = vcmp.eq.s32.totalorder %v13210_v30, %v13203_v28  ;;  %v13244_v37 = vadd.s32 96, %v13151_v12  ;;  %s13042_s20 = smov 48   ;;  %s13043_s21 = smov 16  }
   0xe   :  { %12957 = vset.pattern.permute.xlu0 %v13036_v35  ;;  %10898 = vmatprep.subr.msk.mxu0 %vm19096_vm2, %v19492_v36  ;;  %vm19090_vm8 = vcmp.eq.s32.totalorder %v13210_v30, %v13207_v29  ;;  %vm562_vm9 = vcmp.eq.s32.totalorder %v13210_v30, %v13215_v32  ;;  %vm19089_vm10 = vcmp.eq.s32.totalorder %v13226_v34, %v13199_v27  ;;  %v13267_v38 = vadd.s32 88, %v13151_v12  ;;  %s13044_s24 = smov 96   ;;  %s13045_s25 = smov 32  }
   0xf   :  { %69 = vperm.xlu0 %12957, %v66_v33   ;;  %10962 = vmatprep.subr.msk.mxu1 %vm576_vm3, %v19492_v36  ;;  %vm550_vm11 = vcmp.eq.s32.totalorder %v13226_v34, %v13203_v28  ;;  %vm19091_vm12 = vcmp.eq.s32.totalorder %v13226_v34, %v13207_v29  ;;  %vm549_vm13 = vcmp.eq.s32.totalorder %v13226_v34, %v13215_v32  ;;  %v13294_v39 = vadd.s32 80, %v13151_v12 }
  0x10   :  { %10899 = vmatpush1.msk.msra.mxu0 %vm19094_vm4, %v19492_v36  ;;  %10963 = vmatpush1.msk.msra.mxu1 %vm575_vm5, %v19492_v36  ;;  %vm19093_vm14 = vcmp.eq.s32.totalorder %v13244_v37, %v13199_v27  ;;  %vm537_vm15 = vcmp.eq.s32.totalorder %v13244_v37, %v13203_v28  ;;  %vm19095_vm0 = vcmp.eq.s32.totalorder %v13244_v37, %v13207_v29  ;;  %v13321_v40 = vadd.s32 72, %v13151_v12 }
  0x11   :  { %10900 = vmatprep.subr.msk.mxu0 %vm19092_vm6, %v19492_v36  ;;  %10964 = vmatprep.subr.msk.mxu1 %vm563_vm7, %v19492_v36  ;;  %vm19323_vm1 = vcmp.eq.s32.totalorder %v13244_v37, %v13215_v32  ;;  %vm19100_vm6 = vcmp.eq.s32.totalorder %v13267_v38, %v13215_v32  ;;  %vm19102_vm4 = vcmp.eq.s32.totalorder %v13294_v39, %v13203_v28  ;;  %v13348_v41 = vadd.s32 64, %v13151_v12 }
  0x12   :  { %10901 = vmatpush1.msk.msra.mxu0 %vm19090_vm8, %v19492_v36  ;;  %10965 = vmatpush1.msk.msra.mxu1 %vm562_vm9, %v19492_v36  ;;  %vm19098_vm8 = vcmp.eq.s32.totalorder %v13267_v38, %v13203_v28  ;;  %vm19104_vm2 = vcmp.eq.s32.totalorder %v13294_v39, %v13215_v32  ;;  %v13375_v42 = vadd.s32 56, %v13151_v12  ;;  %v13402_v43 = vadd.s32 48, %v13151_v12 }
  0x13   :  { %10902 = vmatprep.subr.msk.mxu0 %vm19089_vm10, %v19492_v36  ;;  %10966 = vmatprep.subr.msk.mxu1 %vm550_vm11, %v19492_v36  ;;  %vm19097_vm10 = vcmp.eq.s32.totalorder %v13267_v38, %v13199_v27  ;;  %v13429_v44 = vadd.s32 40, %v13151_v12  ;;  %v13456_v45 = vadd.s32 32, %v13151_v12  ;;  %v13483_v46 = vadd.s32 24, %v13151_v12 }
  0x14   :  { %10903 = vmatpush1.msk.msra.mxu0 %vm19091_vm12, %v19492_v36  ;;  %10967 = vmatpush1.msk.msra.mxu1 %vm549_vm13, %v19492_v36  ;;  %vm19099_vm12 = vcmp.eq.s32.totalorder %v13267_v38, %v13207_v29  ;;  %v13510_v47 = vadd.s32 16, %v13151_v12  ;;  %v13537_v48 = vadd.s32 8, %v13151_v12  ;;  %v13588_v49 = vadd.s32 248, %v13151_v12 }
  0x15   :  { %10904 = vmatprep.subr.msk.mxu0 %vm19093_vm14, %v19492_v36  ;;  %10968 = vmatprep.subr.msk.mxu1 %vm537_vm15, %v19492_v36  ;;  %vm19101_vm14 = vcmp.eq.s32.totalorder %v13294_v39, %v13199_v27  ;;  %v13615_v50 = vadd.s32 240, %v13151_v12  ;;  %v13642_v51 = vadd.s32 232, %v13151_v12  ;;  %v13669_v52 = vadd.s32 224, %v13151_v12 }
  0x16   :  { %10905 = vmatpush1.msk.msra.mxu0 %vm19095_vm0, %v19492_v36  ;;  %10969 = vmatpush1.msk.msra.mxu1 %vm19323_vm1, %v19492_v36  ;;  %vm19103_vm0 = vcmp.eq.s32.totalorder %v13294_v39, %v13207_v29  ;;  %v13696_v53 = vadd.s32 216, %v13151_v12  ;;  %v13723_v54 = vadd.s32 208, %v13151_v12  ;;  %v13750_v55 = vadd.s32 200, %v13151_v12 }
  0x17   :  { %10906 = vmatprep.subr.msk.mxu0 %vm19097_vm10, %v19492_v36  ;;  %10970 = vmatprep.subr.msk.mxu1 %vm19098_vm8, %v19492_v36  ;;  %vm19105_vm10 = vcmp.eq.s32.totalorder %v13321_v40, %v13199_v27  ;;  %vm19106_vm8 = vcmp.eq.s32.totalorder %v13321_v40, %v13203_v28  ;;  %v13777_v56 = vadd.s32 192, %v13151_v12  ;;  %v13804_v57 = vadd.s32 184, %v13151_v12 }
  0x18   :  { %10907 = vmatpush1.msk.msra.mxu0 %vm19099_vm12, %v19492_v36  ;;  %10971 = vmatpush1.msk.msra.mxu1 %vm19100_vm6, %v19492_v36  ;;  %vm19107_vm12 = vcmp.eq.s32.totalorder %v13321_v40, %v13207_v29  ;;  %vm19108_vm6 = vcmp.eq.s32.totalorder %v13321_v40, %v13215_v32  ;;  %v13831_v58 = vadd.s32 176, %v13151_v12  ;;  %v13858_v59 = vadd.s32 168, %v13151_v12 }
  0x19   :  { %10908 = vmatprep.subr.msk.mxu0 %vm19101_vm14, %v19492_v36  ;;  %10972 = vmatprep.subr.msk.mxu1 %vm19102_vm4, %v19492_v36  ;;  %vm19109_vm14 = vcmp.eq.s32.totalorder %v13348_v41, %v13199_v27  ;;  %vm19110_vm4 = vcmp.eq.s32.totalorder %v13348_v41, %v13203_v28  ;;  %v13885_v60 = vadd.s32 160, %v13151_v12  ;;  %v13961_v61 = vadd.s32 152, %v13151_v12 }
  0x1a   :  { %10909 = vmatpush1.msk.msra.mxu0 %vm19103_vm0, %v19492_v36  ;;  %10973 = vmatpush1.msk.msra.mxu1 %vm19104_vm2, %v19492_v36  ;;  %vm19111_vm0 = vcmp.eq.s32.totalorder %v13348_v41, %v13207_v29  ;;  %vm19112_vm2 = vcmp.eq.s32.totalorder %v13348_v41, %v13215_v32  ;;  %v13980_v62 = vadd.s32 144, %v13151_v12  ;;  %v14007_v63 = vadd.s32 136, %v13151_v12 }
  0x1b   :  { %10910 = vmatprep.subr.msk.mxu0 %vm19105_vm10, %v19492_v36  ;;  %10974 = vmatprep.subr.msk.mxu1 %vm19106_vm8, %v19492_v36  ;;  %vm19113_vm10 = vcmp.eq.s32.totalorder %v13375_v42, %v13199_v27  ;;  %vm19114_vm8 = vcmp.eq.s32.totalorder %v13375_v42, %v13203_v28  ;;  %v14034_v0 = vadd.s32 128, %v13151_v12  ;;  %v348_v1 = vsub.s32 5, %v13151_v12 }
  0x1c   :  { %10911 = vmatpush1.msk.msra.mxu0 %vm19107_vm12, %v19492_v36  ;;  %10975 = vmatpush1.msk.msra.mxu1 %vm19108_vm6, %v19492_v36  ;;  %vm19115_vm12 = vcmp.eq.s32.totalorder %v13375_v42, %v13207_v29  ;;  %vm19116_vm6 = vcmp.eq.s32.totalorder %v13375_v42, %v13215_v32  ;;  %v356_v2 = vsub.s32 7, %v13151_v12  ;;  %v344_v7 = vsub.s32 4, %v13151_v12 }
  0x1d   :  { %10912 = vmatprep.subr.msk.mxu0 %vm19109_vm14, %v19492_v36  ;;  %10976 = vmatprep.subr.msk.mxu1 %vm19110_vm4, %v19492_v36  ;;  %vm19117_vm14 = vcmp.eq.s32.totalorder %v13402_v43, %v13199_v27  ;;  %vm19118_vm4 = vcmp.eq.s32.totalorder %v13402_v43, %v13203_v28  ;;  %v14063_v3 = vrot.slane %v13192_v25, %v348_v1  ;;  %v352_v8 = vsub.s32 6, %v13151_v12 }
  0x1e   :  { %10913 = vmatpush1.msk.msra.mxu0 %vm19111_vm0, %v19492_v36  ;;  %10977 = vmatpush1.msk.msra.mxu1 %vm19112_vm2, %v19492_v36  ;;  %vm19119_vm0 = vcmp.eq.s32.totalorder %v13402_v43, %v13207_v29  ;;  %vm19120_vm2 = vcmp.eq.s32.totalorder %v13402_v43, %v13215_v32  ;;  %v14078_v4 = vrot.slane %v13192_v25, %v356_v2  ;;  %v257_v2 = vld [vmem:[%s19079_s4 + $0x80] sm:$0xff] }
  0x1f   :  { %10914 = vmatprep.subr.msk.mxu0 %vm19113_vm10, %v19492_v36  ;;  %10978 = vmatprep.subr.msk.mxu1 %vm19114_vm8, %v19492_v36  ;;  %vm19121_vm10 = vcmp.eq.s32.totalorder %v13429_v44, %v13199_v27  ;;  %vm19122_vm8 = vcmp.eq.s32.totalorder %v13429_v44, %v13203_v28  ;;  %v14109_v14 = vrot.slane %v13192_v25, %v344_v7 }
  0x20   :  { %10915 = vmatpush1.msk.msra.mxu0 %vm19115_vm12, %v19492_v36  ;;  %10979 = vmatpush1.msk.msra.mxu1 %vm19116_vm6, %v19492_v36  ;;  %vm19123_vm12 = vcmp.eq.s32.totalorder %v13429_v44, %v13207_v29  ;;  %vm19124_vm6 = vcmp.eq.s32.totalorder %v13429_v44, %v13215_v32  ;;  %v14112_v15 = vrot.slane %v13192_v25, %v352_v8 }
  0x21   :  { %10916 = vmatprep.subr.msk.mxu0 %vm19117_vm14, %v19492_v36  ;;  %10980 = vmatprep.subr.msk.mxu1 %vm19118_vm4, %v19492_v36  ;;  %vm19125_vm14 = vcmp.eq.s32.totalorder %v13456_v45, %v13199_v27  ;;  %vm19126_vm4 = vcmp.eq.s32.totalorder %v13456_v45, %v13203_v28  ;;  %vm19330_vm1 = vcmp.eq.s32.totalorder %v14007_v63, %v14109_v14 }
  0x22   :  { %10917 = vmatpush1.msk.msra.mxu0 %vm19119_vm0, %v19492_v36  ;;  %10981 = vmatpush1.msk.msra.mxu1 %vm19120_vm2, %v19492_v36  ;;  %vm19127_vm0 = vcmp.eq.s32.totalorder %v13456_v45, %v13207_v29  ;;  %vm19128_vm2 = vcmp.eq.s32.totalorder %v13456_v45, %v13215_v32  ;;  %v14839_v25 = vrot.slane %v14799_v24, %v13169_v18 }
  0x23   :  { %10918 = vmatprep.subr.msk.mxu0 %vm19121_vm10, %v19492_v36  ;;  %10982 = vmatprep.subr.msk.mxu1 %vm19122_vm8, %v19492_v36  ;;  %vm19129_vm10 = vcmp.eq.s32.totalorder %v13483_v46, %v13199_v27  ;;  %vm19130_vm8 = vcmp.eq.s32.totalorder %v13483_v46, %v13203_v28  ;;  %v14843_v26 = vrot.slane %v14799_v24, %v13172_v19 }
  0x24   :  { %10919 = vmatpush1.msk.msra.mxu0 %vm19123_vm12, %v19492_v36  ;;  %10983 = vmatpush1.msk.msra.mxu1 %vm19124_vm6, %v19492_v36  ;;  %vm19131_vm12 = vcmp.eq.s32.totalorder %v13483_v46, %v13207_v29  ;;  %vm19132_vm6 = vcmp.eq.s32.totalorder %v13483_v46, %v13215_v32  ;;  %v14859_v33 = vrot.slane %v14799_v24, %v13181_v22 }
  0x25   :  { %10920 = vmatprep.subr.msk.mxu0 %vm19125_vm14, %v19492_v36  ;;  %10984 = vmatprep.subr.msk.mxu1 %vm19126_vm4, %v19492_v36  ;;  %vm19133_vm14 = vcmp.eq.s32.totalorder %v13510_v47, %v13199_v27  ;;  %vm19134_vm4 = vcmp.eq.s32.totalorder %v13510_v47, %v13203_v28  ;;  %v15628_v1 = vrot.slane %v14799_v24, %v344_v7 }
  0x26   :  { %10921 = vmatpush1.msk.msra.mxu0 %vm19127_vm0, %v19492_v36  ;;  %10985 = vmatpush1.msk.msra.mxu1 %vm19128_vm2, %v19492_v36  ;;  %vm19135_vm0 = vcmp.eq.s32.totalorder %v13510_v47, %v13207_v29  ;;  %vm19136_vm2 = vcmp.eq.s32.totalorder %v13510_v47, %v13215_v32 }
  0x27   :  { %10922 = vmatprep.subr.msk.mxu0 %vm19129_vm10, %v19492_v36  ;;  %10986 = vmatprep.subr.msk.mxu1 %vm19130_vm8, %v19492_v36  ;;  %vm19137_vm10 = vcmp.eq.s32.totalorder %v13537_v48, %v13199_v27  ;;  %vm19138_vm8 = vcmp.eq.s32.totalorder %v13537_v48, %v13203_v28 }
  0x28   :  { %10923 = vmatpush1.msk.msra.mxu0 %vm19131_vm12, %v19492_v36  ;;  %10987 = vmatpush1.msk.msra.mxu1 %vm19132_vm6, %v19492_v36  ;;  %vm19139_vm12 = vcmp.eq.s32.totalorder %v13537_v48, %v13207_v29  ;;  %vm19140_vm6 = vcmp.eq.s32.totalorder %v13537_v48, %v13215_v32 }
  0x29   :  { %10924 = vmatprep.subr.msk.mxu0 %vm19133_vm14, %v19492_v36  ;;  %10988 = vmatprep.subr.msk.mxu1 %vm19134_vm4, %v19492_v36  ;;  %vm19141_vm14 = vcmp.eq.s32.totalorder %v13151_v12, %v13199_v27  ;;  %vm19142_vm4 = vcmp.eq.s32.totalorder %v13151_v12, %v13203_v28 }
  0x2a   :  { %10925 = vmatpush1.msk.msra.mxu0 %vm19135_vm0, %v19492_v36  ;;  %10989 = vmatpush1.msk.msra.mxu1 %vm19136_vm2, %v19492_v36  ;;  %vm19143_vm0 = vcmp.eq.s32.totalorder %v13151_v12, %v13207_v29  ;;  %vm19144_vm2 = vcmp.eq.s32.totalorder %v13151_v12, %v13215_v32 }
  0x2b   :  { %10926 = vmatprep.subr.msk.mxu0 %vm19137_vm10, %v19492_v36  ;;  %10990 = vmatprep.subr.msk.mxu1 %vm19138_vm8, %v19492_v36  ;;  %vm19145_vm10 = vcmp.eq.s32.totalorder %v13588_v49, %v13199_v27  ;;  %vm19146_vm8 = vcmp.eq.s32.totalorder %v13588_v49, %v13203_v28 }
  0x2c   :  { %10927 = vmatpush1.msk.msra.mxu0 %vm19139_vm12, %v19492_v36  ;;  %10991 = vmatpush1.msk.msra.mxu1 %vm19140_vm6, %v19492_v36  ;;  %vm19147_vm12 = vcmp.eq.s32.totalorder %v13588_v49, %v13207_v29  ;;  %vm19148_vm6 = vcmp.eq.s32.totalorder %v13588_v49, %v13215_v32 }
  0x2d   :  { %10928 = vmatprep.subr.msk.mxu0 %vm19141_vm14, %v19492_v36  ;;  %10992 = vmatprep.subr.msk.mxu1 %vm19142_vm4, %v19492_v36  ;;  %vm19149_vm14 = vcmp.eq.s32.totalorder %v13615_v50, %v13199_v27  ;;  %vm19150_vm4 = vcmp.eq.s32.totalorder %v13615_v50, %v13203_v28 }
  0x2e   :  { %10929 = vmatpush1.msk.msra.mxu0 %vm19143_vm0, %v19492_v36  ;;  %10993 = vmatpush1.msk.msra.mxu1 %vm19144_vm2, %v19492_v36  ;;  %vm19151_vm0 = vcmp.eq.s32.totalorder %v13615_v50, %v13207_v29  ;;  %vm19152_vm2 = vcmp.eq.s32.totalorder %v13615_v50, %v13215_v32 }
  0x2f   :  { %10930 = vmatprep.subr.msk.mxu0 %vm19145_vm10, %v19492_v36  ;;  %10994 = vmatprep.subr.msk.mxu1 %vm19146_vm8, %v19492_v36  ;;  %vm19153_vm10 = vcmp.eq.s32.totalorder %v13642_v51, %v13199_v27  ;;  %vm19154_vm8 = vcmp.eq.s32.totalorder %v13642_v51, %v13203_v28 }
  0x30   :  { %10931 = vmatpush2.msk.msra.mxu0 %vm19147_vm12, %v19492_v36  ;;  %10995 = vmatpush2.msk.msra.mxu1 %vm19148_vm6, %v19492_v36  ;;  %vm19155_vm12 = vcmp.eq.s32.totalorder %v13642_v51, %v13207_v29  ;;  %vm19156_vm6 = vcmp.eq.s32.totalorder %v13642_v51, %v13215_v32 }
  0x31   :  { %10932 = vmatprep.subr.msk.mxu0 %vm19149_vm14, %v19492_v36  ;;  %10996 = vmatprep.subr.msk.mxu1 %vm19150_vm4, %v19492_v36  ;;  %vm19157_vm14 = vcmp.eq.s32.totalorder %v13669_v52, %v13199_v27  ;;  %vm19158_vm4 = vcmp.eq.s32.totalorder %v13669_v52, %v13203_v28 }
  0x32   :  { %10933 = vmatpush2.msk.msra.mxu0 %vm19151_vm0, %v19492_v36  ;;  %10997 = vmatpush2.msk.msra.mxu1 %vm19152_vm2, %v19492_v36  ;;  %vm19159_vm0 = vcmp.eq.s32.totalorder %v13669_v52, %v13207_v29  ;;  %vm19160_vm2 = vcmp.eq.s32.totalorder %v13669_v52, %v13215_v32 }
  0x33   :  { %10934 = vmatprep.subr.msk.mxu0 %vm19153_vm10, %v19492_v36  ;;  %10998 = vmatprep.subr.msk.mxu1 %vm19154_vm8, %v19492_v36  ;;  %vm19161_vm10 = vcmp.eq.s32.totalorder %v13696_v53, %v13199_v27  ;;  %vm19162_vm8 = vcmp.eq.s32.totalorder %v13696_v53, %v13203_v28 }
  0x34   :  { %10935 = vmatpush2.msk.msra.mxu0 %vm19155_vm12, %v19492_v36  ;;  %10999 = vmatpush2.msk.msra.mxu1 %vm19156_vm6, %v19492_v36  ;;  %vm19163_vm12 = vcmp.eq.s32.totalorder %v13696_v53, %v13207_v29  ;;  %vm19164_vm6 = vcmp.eq.s32.totalorder %v13696_v53, %v13215_v32 }
  0x35   :  { %10936 = vmatprep.subr.msk.mxu0 %vm19157_vm14, %v19492_v36  ;;  %11000 = vmatprep.subr.msk.mxu1 %vm19158_vm4, %v19492_v36  ;;  %vm19165_vm14 = vcmp.eq.s32.totalorder %v13723_v54, %v13199_v27  ;;  %vm19166_vm4 = vcmp.eq.s32.totalorder %v13723_v54, %v13203_v28 }
  0x36   :  { %10937 = vmatpush2.msk.msra.mxu0 %vm19159_vm0, %v19492_v36  ;;  %11001 = vmatpush2.msk.msra.mxu1 %vm19160_vm2, %v19492_v36  ;;  %vm19167_vm0 = vcmp.eq.s32.totalorder %v13723_v54, %v13207_v29  ;;  %vm19168_vm2 = vcmp.eq.s32.totalorder %v13723_v54, %v13215_v32 }
  0x37   :  { %10938 = vmatprep.subr.msk.mxu0 %vm19161_vm10, %v19492_v36  ;;  %11002 = vmatprep.subr.msk.mxu1 %vm19162_vm8, %v19492_v36  ;;  %vm19169_vm10 = vcmp.eq.s32.totalorder %v13750_v55, %v13199_v27  ;;  %vm19170_vm8 = vcmp.eq.s32.totalorder %v13750_v55, %v13203_v28 }
  0x38   :  { %10939 = vmatpush2.msk.msra.mxu0 %vm19163_vm12, %v19492_v36  ;;  %11003 = vmatpush2.msk.msra.mxu1 %vm19164_vm6, %v19492_v36  ;;  %vm19171_vm12 = vcmp.eq.s32.totalorder %v13750_v55, %v13207_v29  ;;  %vm19172_vm6 = vcmp.eq.s32.totalorder %v13750_v55, %v13215_v32 }
  0x39   :  { %10940 = vmatprep.subr.msk.mxu0 %vm19165_vm14, %v19492_v36  ;;  %11004 = vmatprep.subr.msk.mxu1 %vm19166_vm4, %v19492_v36  ;;  %vm19173_vm14 = vcmp.eq.s32.totalorder %v13777_v56, %v13199_v27  ;;  %vm19174_vm4 = vcmp.eq.s32.totalorder %v13777_v56, %v13203_v28 }
  0x3a   :  { %10941 = vmatpush2.msk.msra.mxu0 %vm19167_vm0, %v19492_v36  ;;  %11005 = vmatpush2.msk.msra.mxu1 %vm19168_vm2, %v19492_v36  ;;  %vm19175_vm0 = vcmp.eq.s32.totalorder %v13777_v56, %v13207_v29  ;;  %vm19176_vm2 = vcmp.eq.s32.totalorder %v13777_v56, %v13215_v32 }
  0x3b   :  { %10942 = vmatprep.subr.msk.mxu0 %vm19169_vm10, %v19492_v36  ;;  %11006 = vmatprep.subr.msk.mxu1 %vm19170_vm8, %v19492_v36  ;;  %vm19177_vm10 = vcmp.eq.s32.totalorder %v13804_v57, %v13199_v27  ;;  %vm19178_vm8 = vcmp.eq.s32.totalorder %v13804_v57, %v13203_v28 }
  0x3c   :  { %10943 = vmatpush2.msk.msra.mxu0 %vm19171_vm12, %v19492_v36  ;;  %11007 = vmatpush2.msk.msra.mxu1 %vm19172_vm6, %v19492_v36  ;;  %vm19179_vm12 = vcmp.eq.s32.totalorder %v13804_v57, %v13207_v29  ;;  %vm19180_vm6 = vcmp.eq.s32.totalorder %v13804_v57, %v13215_v32 }
  0x3d   :  { %10944 = vmatprep.subr.msk.mxu0 %vm19173_vm14, %v19492_v36  ;;  %11008 = vmatprep.subr.msk.mxu1 %vm19174_vm4, %v19492_v36  ;;  %vm19181_vm14 = vcmp.eq.s32.totalorder %v13831_v58, %v13199_v27  ;;  %vm19182_vm4 = vcmp.eq.s32.totalorder %v13831_v58, %v13203_v28 }
  0x3e   :  { %10945 = vmatpush2.msk.msra.mxu0 %vm19175_vm0, %v19492_v36  ;;  %11009 = vmatpush2.msk.msra.mxu1 %vm19176_vm2, %v19492_v36  ;;  %vm19186_vm0 = vcmp.eq.s32.totalorder %v13831_v58, %v13207_v29  ;;  %vm19214_vm2 = vcmp.eq.s32.totalorder %v13831_v58, %v13215_v32 }
  0x3f   :  { %10946 = vmatprep.subr.msk.mxu0 %vm19177_vm10, %v19492_v36  ;;  %11010 = vmatprep.subr.msk.mxu1 %vm19178_vm8, %v19492_v36  ;;  %vm19184_vm10 = vcmp.eq.s32.totalorder %v13858_v59, %v13199_v27  ;;  %vm19210_vm8 = vcmp.eq.s32.totalorder %v13858_v59, %v13203_v28 }
  0x40   :  { %10947 = vmatpush2.msk.msra.mxu0 %vm19179_vm12, %v19492_v36  ;;  %11011 = vmatpush2.msk.msra.mxu1 %vm19180_vm6, %v19492_v36  ;;  %vm19183_vm12 = vcmp.eq.s32.totalorder %v13858_v59, %v13207_v29  ;;  %vm19208_vm6 = vcmp.eq.s32.totalorder %v13858_v59, %v13215_v32 }
  0x41   :  { %10948 = vmatprep.subr.msk.mxu0 %vm19181_vm14, %v19492_v36  ;;  %11012 = vmatprep.subr.msk.mxu1 %vm19182_vm4, %v19492_v36  ;;  %vm19185_vm14 = vcmp.eq.s32.totalorder %v13885_v60, %v13199_v27  ;;  %vm19207_vm4 = vcmp.eq.s32.totalorder %v13885_v60, %v13203_v28 }
  0x42   :  { %10949 = vmatpush2.msk.msra.mxu0 %vm19186_vm0, %v19492_v36  ;;  %11013 = vmatpush2.msk.msra.mxu1 %vm19214_vm2, %v19492_v36  ;;  %vm19190_vm0 = vcmp.eq.s32.totalorder %v13961_v61, %v13203_v28  ;;  %vm19222_vm2 = vcmp.eq.s32.totalorder %v13244_v37, %v14078_v4 }
  0x43   :  { %10950 = vmatprep.subr.msk.mxu0 %vm19184_vm10, %v19492_v36  ;;  %11014 = vmatprep.subr.msk.mxu1 %vm19210_vm8, %v19492_v36  ;;  %vm19188_vm10 = vcmp.eq.s32.totalorder %v13885_v60, %v13215_v32  ;;  %vm19218_vm8 = vcmp.eq.s32.totalorder %v13226_v34, %v14078_v4 }
  0x44   :  { %10951 = vmatpush2.msk.msra.mxu0 %vm19183_vm12, %v19492_v36  ;;  %11015 = vmatpush2.msk.msra.mxu1 %vm19208_vm6, %v19492_v36  ;;  %vm19187_vm12 = vcmp.eq.s32.totalorder %v13885_v60, %v13207_v29  ;;  %vm19216_vm6 = vcmp.eq.s32.totalorder %v13210_v30, %v14112_v15 }
  0x45   :  { %10952 = vmatprep.subr.msk.mxu0 %vm19185_vm14, %v19492_v36  ;;  %11016 = vmatprep.subr.msk.mxu1 %vm19207_vm4, %v19492_v36  ;;  %vm19189_vm14 = vcmp.eq.s32.totalorder %v13961_v61, %v13199_v27  ;;  %vm19215_vm4 = vcmp.eq.s32.totalorder %v13210_v30, %v14109_v14 }
  0x46   :  { %12958 = vset.pattern.permute.xlu1 %v13036_v35  ;;  %10953 = vmatpush2.msk.msra.mxu0 %vm19187_vm12, %v19492_v36  ;;  %vm19191_vm12 = vcmp.eq.s32.totalorder %v13961_v61, %v13207_v29  ;;  %v14875_v35 = vrot.slane %v14799_v24, %v13184_v23 }
  0x47   :  { %11017 = vmatpush2.msk.msra.mxu1 %vm19188_vm10, %v19492_v36  ;;  %10954 = vmatprep.subr.msk.mxu0 %vm19189_vm14, %v19492_v36  ;;  %vm19192_vm10 = vcmp.eq.s32.totalorder %v13961_v61, %v13215_v32  ;;  %vm19193_vm14 = vcmp.eq.s32.totalorder %v13980_v62, %v13199_v27 }
  0x48   :  { %11018 = vmatprep.subr.msk.mxu1 %vm19190_vm0, %v19492_v36  ;;  %10955 = vmatpush2.msk.msra.mxu0 %vm19191_vm12, %v19492_v36  ;;  %vm19194_vm0 = vcmp.eq.s32.totalorder %v13980_v62, %v13203_v28  ;;  %vm19195_vm12 = vcmp.eq.s32.totalorder %v13980_v62, %v13207_v29 }
  0x49   :  { %11019 = vmatpush2.msk.msra.mxu1 %vm19192_vm10, %v19492_v36  ;;  %10956 = vmatprep.subr.msk.mxu0 %vm19193_vm14, %v19492_v36  ;;  %vm19196_vm10 = vcmp.eq.s32.totalorder %v13980_v62, %v13215_v32  ;;  %vm19197_vm14 = vcmp.eq.s32.totalorder %v14007_v63, %v13199_v27 }
  0x4a   :  { %11020 = vmatprep.subr.msk.mxu1 %vm19194_vm0, %v19492_v36  ;;  %10957 = vmatpush2.msk.msra.mxu0 %vm19195_vm12, %v19492_v36  ;;  %vm19198_vm0 = vcmp.eq.s32.totalorder %v14007_v63, %v13203_v28  ;;  %vm19199_vm12 = vcmp.eq.s32.totalorder %v14007_v63, %v13207_v29 }
  0x4b   :  { %11021 = vmatpush2.msk.msra.mxu1 %vm19196_vm10, %v19492_v36  ;;  %10958 = vmatprep.subr.msk.mxu0 %vm19197_vm14, %v19492_v36  ;;  %vm19200_vm10 = vcmp.eq.s32.totalorder %v14007_v63, %v13215_v32  ;;  %vm19201_vm14 = vcmp.eq.s32.totalorder %v14034_v0, %v13199_v27 }
  0x4c   :  { %11022 = vmatprep.subr.msk.mxu1 %vm19198_vm0, %v19492_v36  ;;  %10959 = vmatpush2.msk.msra.mxu0 %vm19199_vm12, %v19492_v36  ;;  %vm19202_vm0 = vcmp.eq.s32.totalorder %v14034_v0, %v13203_v28  ;;  %vm19204_vm12 = vcmp.eq.s32.totalorder %v14034_v0, %v13207_v29 }
  0x4d   :  { %11023 = vmatpush2.msk.msra.mxu1 %vm19200_vm10, %v19492_v36  ;;  %10960 = vmatprep.subr.msk.mxu0 %vm19201_vm14, %v19492_v36  ;;  %vm19206_vm10 = vcmp.eq.s32.totalorder %v14034_v0, %v13215_v32  ;;  %vm19203_vm14 = vcmp.eq.s32.totalorder %v13178_v21, %v14063_v3 }
  0x4e   :  { %11024 = vmatprep.subr.msk.mxu1 %vm19202_vm0, %v19492_v36  ;;  %10961 = vmatpush2.msk.msra.mxu0 %vm19204_vm12, %v19492_v36  ;;  %vm19205_vm0 = vcmp.eq.s32.totalorder %v13178_v21, %v14078_v4  ;;  %vm19211_vm12 = vcmp.eq.s32.totalorder %v13178_v21, %v14112_v15 }
  0x4f   :  { %11025 = vmatpush2.msk.msra.mxu1 %vm19206_vm10, %v19492_v36  ;;  %11026 = vmatprep.subr.msk.mxu0 %vm19203_vm14, %v19492_v36  ;;  %vm19209_vm14 = vcmp.eq.s32.totalorder %v13178_v21, %v14109_v14  ;;  %vm19213_vm10 = vcmp.eq.s32.totalorder %v13210_v30, %v14078_v4 }
  0x50   :  { %11090 = vmatprep.subr.msk.mxu1 %vm19205_vm0, %v19492_v36  ;;  %vm19212_vm0 = vcmp.eq.s32.totalorder %v13210_v30, %v14063_v3 }
  0x8a   :  { %v14100_v5 = vpop.permute.xlu0 %69 }
  0xcd   :  { %v155_v6 = vpop.f32.mrf.mxu0  ;;  %v15882_v7 = vpop.f32.mrf.mxu1 }
  0xce   :  { %v156_v9 = vadd.f32 %v155_v6, %v14100_v5  ;;  %v243_v6 = vld [vmem:[%s19079_s4 + $0x10] sm:$0xff] }
  0xcf   :  { %v157_v10 = vpop.f32.mrf.mxu0  ;;  %v15884_v8 = vpop.f32.mrf.mxu1 }
  0xd0   :  { %v158_v11 = vadd.f32 %v157_v10, %v14100_v5  ;;  %v231_v13 = vmul.f32 0.2, %v156_v9 }
  0xd2   :  { %v232_v16 = vmul.f32 0.2, %v158_v11  ;;  %v14116_v20 = vmax.f32 %v156_v9, %v231_v13 }
  0xd4   :  { %v14114_v17 = vmax.f32 %v158_v11, %v232_v16 }
  0xd6   :  { %1274 = vmatprep.mubr.f32.mxu0 %v14114_v17  ;;  %1345 = vmatprep.mubr.f32.mxu1 %v14114_v17 }
  0xd7   :  { %1275 = vmatmul.mubr.f32.vlgmr.msra.gmra.mxu0 %v14116_v20  ;;  %1346 = vmatmul.mubr.f32.vlgmr.msra.gmra.mxu1 %v14116_v20 }
  0xd8   :  { %11027 = vmatpush1.msk.msra.mxu0 %vm19209_vm14, %v19492_v36  ;;  %11091 = vmatpush1.msk.msra.mxu1 %vm19211_vm12, %v19492_v36  ;;  %vm19217_vm14 = vcmp.eq.s32.totalorder %v13226_v34, %v14063_v3  ;;  %vm19219_vm12 = vcmp.eq.s32.totalorder %v13226_v34, %v14109_v14 }
  0xd9   :  { %11028 = vmatprep.subr.msk.mxu0 %vm19212_vm0, %v19492_v36  ;;  %1416 = vmatprep.mubr.f32.mxu0 %v14114_v17  ;;  %vm19220_vm0 = vcmp.eq.s32.totalorder %v13226_v34, %v14112_v15 }
  0xda   :  { %11092 = vmatprep.subr.msk.mxu1 %vm19213_vm10, %v19492_v36  ;;  %1487 = vmatprep.mubr.f32.mxu1 %v14114_v17  ;;  %vm19221_vm10 = vcmp.eq.s32.totalorder %v13244_v37, %v14063_v3 }
  0xdb   :  { %11029 = vmatpush1.msk.msra.mxu0 %vm19215_vm4, %v19492_v36  ;;  %11093 = vmatpush1.msk.msra.mxu1 %vm19216_vm6, %v19492_v36  ;;  %vm19223_vm4 = vcmp.eq.s32.totalorder %v13244_v37, %v14109_v14  ;;  %vm19224_vm6 = vcmp.eq.s32.totalorder %v13244_v37, %v14112_v15 }
  0xdc   :  { %11030 = vmatprep.subr.msk.mxu0 %vm19217_vm14, %v19492_v36  ;;  %11094 = vmatprep.subr.msk.mxu1 %vm19218_vm8, %v19492_v36  ;;  %vm19225_vm14 = vcmp.eq.s32.totalorder %v13267_v38, %v14063_v3  ;;  %vm19226_vm8 = vcmp.eq.s32.totalorder %v13267_v38, %v14078_v4 }
  0xdd   :  { %11031 = vmatpush1.msk.msra.mxu0 %vm19219_vm12, %v19492_v36  ;;  %11095 = vmatpush1.msk.msra.mxu1 %vm19220_vm0, %v19492_v36  ;;  %vm19227_vm12 = vcmp.eq.s32.totalorder %v13267_v38, %v14109_v14  ;;  %vm19228_vm0 = vcmp.eq.s32.totalorder %v13267_v38, %v14112_v15 }
  0xde   :  { %11032 = vmatprep.subr.msk.mxu0 %vm19221_vm10, %v19492_v36  ;;  %11096 = vmatprep.subr.msk.mxu1 %vm19222_vm2, %v19492_v36  ;;  %vm19229_vm10 = vcmp.eq.s32.totalorder %v13294_v39, %v14063_v3  ;;  %vm19230_vm2 = vcmp.eq.s32.totalorder %v13294_v39, %v14078_v4 }
  0xdf   :  { %11033 = vmatpush1.msk.msra.mxu0 %vm19223_vm4, %v19492_v36  ;;  %11097 = vmatpush1.msk.msra.mxu1 %vm19224_vm6, %v19492_v36  ;;  %vm19231_vm4 = vcmp.eq.s32.totalorder %v13294_v39, %v14109_v14  ;;  %vm19232_vm6 = vcmp.eq.s32.totalorder %v13294_v39, %v14112_v15 }
  0xe0   :  { %11034 = vmatprep.subr.msk.mxu0 %vm19225_vm14, %v19492_v36  ;;  %11098 = vmatprep.subr.msk.mxu1 %vm19226_vm8, %v19492_v36  ;;  %vm19233_vm14 = vcmp.eq.s32.totalorder %v13321_v40, %v14063_v3  ;;  %vm19234_vm8 = vcmp.eq.s32.totalorder %v13321_v40, %v14078_v4 }
  0xe1   :  { %11035 = vmatpush1.msk.msra.mxu0 %vm19227_vm12, %v19492_v36  ;;  %11099 = vmatpush1.msk.msra.mxu1 %vm19228_vm0, %v19492_v36  ;;  %vm19235_vm12 = vcmp.eq.s32.totalorder %v13321_v40, %v14109_v14  ;;  %vm19236_vm0 = vcmp.eq.s32.totalorder %v13321_v40, %v14112_v15 }
  0xe2   :  { %11036 = vmatprep.subr.msk.mxu0 %vm19229_vm10, %v19492_v36  ;;  %11100 = vmatprep.subr.msk.mxu1 %vm19230_vm2, %v19492_v36  ;;  %vm19237_vm10 = vcmp.eq.s32.totalorder %v13348_v41, %v14063_v3  ;;  %vm19238_vm2 = vcmp.eq.s32.totalorder %v13348_v41, %v14078_v4 }
  0xe3   :  { %11037 = vmatpush1.msk.msra.mxu0 %vm19231_vm4, %v19492_v36  ;;  %11101 = vmatpush1.msk.msra.mxu1 %vm19232_vm6, %v19492_v36  ;;  %vm19239_vm4 = vcmp.eq.s32.totalorder %v13348_v41, %v14109_v14  ;;  %vm19240_vm6 = vcmp.eq.s32.totalorder %v13348_v41, %v14112_v15 }
  0xe4   :  { %11038 = vmatprep.subr.msk.mxu0 %vm19233_vm14, %v19492_v36  ;;  %11102 = vmatprep.subr.msk.mxu1 %vm19234_vm8, %v19492_v36  ;;  %vm19241_vm14 = vcmp.eq.s32.totalorder %v13375_v42, %v14063_v3  ;;  %vm19242_vm8 = vcmp.eq.s32.totalorder %v13375_v42, %v14078_v4 }
  0xe5   :  { %11039 = vmatpush1.msk.msra.mxu0 %vm19235_vm12, %v19492_v36  ;;  %11103 = vmatpush1.msk.msra.mxu1 %vm19236_vm0, %v19492_v36  ;;  %vm19243_vm12 = vcmp.eq.s32.totalorder %v13375_v42, %v14109_v14  ;;  %vm19244_vm0 = vcmp.eq.s32.totalorder %v13375_v42, %v14112_v15 }
  0xe6   :  { %11040 = vmatprep.subr.msk.mxu0 %vm19237_vm10, %v19492_v36  ;;  %11104 = vmatprep.subr.msk.mxu1 %vm19238_vm2, %v19492_v36  ;;  %vm19245_vm10 = vcmp.eq.s32.totalorder %v13402_v43, %v14063_v3  ;;  %vm19246_vm2 = vcmp.eq.s32.totalorder %v13402_v43, %v14078_v4 }
  0xe7   :  { %11041 = vmatpush1.msk.msra.mxu0 %vm19239_vm4, %v19492_v36  ;;  %11105 = vmatpush1.msk.msra.mxu1 %vm19240_vm6, %v19492_v36  ;;  %vm19247_vm4 = vcmp.eq.s32.totalorder %v13402_v43, %v14109_v14  ;;  %vm19248_vm6 = vcmp.eq.s32.totalorder %v13402_v43, %v14112_v15 }
  0xe8   :  { %11042 = vmatprep.subr.msk.mxu0 %vm19241_vm14, %v19492_v36  ;;  %11106 = vmatprep.subr.msk.mxu1 %vm19242_vm8, %v19492_v36  ;;  %vm19249_vm14 = vcmp.eq.s32.totalorder %v13429_v44, %v14063_v3  ;;  %vm19250_vm8 = vcmp.eq.s32.totalorder %v13429_v44, %v14078_v4 }
  0xe9   :  { %11043 = vmatpush1.msk.msra.mxu0 %vm19243_vm12, %v19492_v36  ;;  %11107 = vmatpush1.msk.msra.mxu1 %vm19244_vm0, %v19492_v36  ;;  %vm19251_vm12 = vcmp.eq.s32.totalorder %v13429_v44, %v14109_v14  ;;  %vm19252_vm0 = vcmp.eq.s32.totalorder %v13429_v44, %v14112_v15 }
  0xea   :  { %11044 = vmatprep.subr.msk.mxu0 %vm19245_vm10, %v19492_v36  ;;  %11108 = vmatprep.subr.msk.mxu1 %vm19246_vm2, %v19492_v36  ;;  %vm19253_vm10 = vcmp.eq.s32.totalorder %v13456_v45, %v14063_v3  ;;  %vm19254_vm2 = vcmp.eq.s32.totalorder %v13456_v45, %v14078_v4 }
  0xeb   :  { %11045 = vmatpush1.msk.msra.mxu0 %vm19247_vm4, %v19492_v36  ;;  %11109 = vmatpush1.msk.msra.mxu1 %vm19248_vm6, %v19492_v36  ;;  %vm19255_vm4 = vcmp.eq.s32.totalorder %v13456_v45, %v14109_v14  ;;  %vm19256_vm6 = vcmp.eq.s32.totalorder %v13456_v45, %v14112_v15 }
  0xec   :  { %11046 = vmatprep.subr.msk.mxu0 %vm19249_vm14, %v19492_v36  ;;  %11110 = vmatprep.subr.msk.mxu1 %vm19250_vm8, %v19492_v36  ;;  %vm19257_vm14 = vcmp.eq.s32.totalorder %v13483_v46, %v14063_v3  ;;  %vm19258_vm8 = vcmp.eq.s32.totalorder %v13483_v46, %v14078_v4 }
  0xed   :  { %11047 = vmatpush1.msk.msra.mxu0 %vm19251_vm12, %v19492_v36  ;;  %11111 = vmatpush1.msk.msra.mxu1 %vm19252_vm0, %v19492_v36  ;;  %vm19259_vm12 = vcmp.eq.s32.totalorder %v13483_v46, %v14109_v14  ;;  %vm19260_vm0 = vcmp.eq.s32.totalorder %v13483_v46, %v14112_v15 }
  0xee   :  { %11048 = vmatprep.subr.msk.mxu0 %vm19253_vm10, %v19492_v36  ;;  %11112 = vmatprep.subr.msk.mxu1 %vm19254_vm2, %v19492_v36  ;;  %vm19261_vm10 = vcmp.eq.s32.totalorder %v13510_v47, %v14063_v3  ;;  %vm19262_vm2 = vcmp.eq.s32.totalorder %v13510_v47, %v14078_v4 }
  0xef   :  { %11049 = vmatpush1.msk.msra.mxu0 %vm19255_vm4, %v19492_v36  ;;  %11113 = vmatpush1.msk.msra.mxu1 %vm19256_vm6, %v19492_v36  ;;  %vm19263_vm4 = vcmp.eq.s32.totalorder %v13510_v47, %v14109_v14  ;;  %vm19264_vm6 = vcmp.eq.s32.totalorder %v13510_v47, %v14112_v15 }
  0xf0   :  { %11050 = vmatprep.subr.msk.mxu0 %vm19257_vm14, %v19492_v36  ;;  %11114 = vmatprep.subr.msk.mxu1 %vm19258_vm8, %v19492_v36  ;;  %vm19265_vm14 = vcmp.eq.s32.totalorder %v13537_v48, %v14063_v3  ;;  %vm19266_vm8 = vcmp.eq.s32.totalorder %v13537_v48, %v14078_v4 }
  0xf1   :  { %11051 = vmatpush1.msk.msra.mxu0 %vm19259_vm12, %v19492_v36  ;;  %11115 = vmatpush1.msk.msra.mxu1 %vm19260_vm0, %v19492_v36  ;;  %vm19267_vm12 = vcmp.eq.s32.totalorder %v13537_v48, %v14109_v14  ;;  %vm19268_vm0 = vcmp.eq.s32.totalorder %v13537_v48, %v14112_v15 }
  0xf2   :  { %11052 = vmatprep.subr.msk.mxu0 %vm19261_vm10, %v19492_v36  ;;  %11116 = vmatprep.subr.msk.mxu1 %vm19262_vm2, %v19492_v36  ;;  %vm19269_vm10 = vcmp.eq.s32.totalorder %v13151_v12, %v14063_v3  ;;  %vm19270_vm2 = vcmp.eq.s32.totalorder %v13151_v12, %v14078_v4 }
  0xf3   :  { %11053 = vmatpush1.msk.msra.mxu0 %vm19263_vm4, %v19492_v36  ;;  %11117 = vmatpush1.msk.msra.mxu1 %vm19264_vm6, %v19492_v36  ;;  %vm19271_vm4 = vcmp.eq.s32.totalorder %v13151_v12, %v14109_v14  ;;  %vm19272_vm6 = vcmp.eq.s32.totalorder %v13151_v12, %v14112_v15 }
  0xf4   :  { %11054 = vmatprep.subr.msk.mxu0 %vm19265_vm14, %v19492_v36  ;;  %11118 = vmatprep.subr.msk.mxu1 %vm19266_vm8, %v19492_v36  ;;  %vm19273_vm14 = vcmp.eq.s32.totalorder %v13588_v49, %v14063_v3  ;;  %vm19274_vm8 = vcmp.eq.s32.totalorder %v13588_v49, %v14078_v4 }
  0xf5   :  { %11055 = vmatpush1.msk.msra.mxu0 %vm19267_vm12, %v19492_v36  ;;  %11119 = vmatpush1.msk.msra.mxu1 %vm19268_vm0, %v19492_v36  ;;  %vm19275_vm12 = vcmp.eq.s32.totalorder %v13588_v49, %v14109_v14  ;;  %vm19276_vm0 = vcmp.eq.s32.totalorder %v13588_v49, %v14112_v15 }
  0xf6   :  { %11056 = vmatprep.subr.msk.mxu0 %vm19269_vm10, %v19492_v36  ;;  %11120 = vmatprep.subr.msk.mxu1 %vm19270_vm2, %v19492_v36  ;;  %vm19277_vm10 = vcmp.eq.s32.totalorder %v13615_v50, %v14063_v3  ;;  %vm19278_vm2 = vcmp.eq.s32.totalorder %v13615_v50, %v14078_v4 }
  0xf7   :  { %11057 = vmatpush1.msk.msra.mxu0 %vm19271_vm4, %v19492_v36  ;;  %11121 = vmatpush1.msk.msra.mxu1 %vm19272_vm6, %v19492_v36  ;;  %vm19279_vm4 = vcmp.eq.s32.totalorder %v13615_v50, %v14109_v14  ;;  %vm19280_vm6 = vcmp.eq.s32.totalorder %v13615_v50, %v14112_v15 }
  0xf8   :  { %11058 = vmatprep.subr.msk.mxu0 %vm19273_vm14, %v19492_v36  ;;  %11122 = vmatprep.subr.msk.mxu1 %vm19274_vm8, %v19492_v36  ;;  %vm19281_vm14 = vcmp.eq.s32.totalorder %v13642_v51, %v14063_v3  ;;  %vm19282_vm8 = vcmp.eq.s32.totalorder %v13642_v51, %v14078_v4 }
  0xf9   :  { %11059 = vmatpush2.msk.msra.mxu0 %vm19275_vm12, %v19492_v36  ;;  %11123 = vmatpush2.msk.msra.mxu1 %vm19276_vm0, %v19492_v36  ;;  %vm19283_vm12 = vcmp.eq.s32.totalorder %v13642_v51, %v14109_v14  ;;  %vm19284_vm0 = vcmp.eq.s32.totalorder %v13642_v51, %v14112_v15 }
  0xfa   :  { %11060 = vmatprep.subr.msk.mxu0 %vm19277_vm10, %v19492_v36  ;;  %11124 = vmatprep.subr.msk.mxu1 %vm19278_vm2, %v19492_v36  ;;  %vm19285_vm10 = vcmp.eq.s32.totalorder %v13669_v52, %v14063_v3  ;;  %vm19286_vm2 = vcmp.eq.s32.totalorder %v13669_v52, %v14078_v4 }
  0xfb   :  { %11061 = vmatpush2.msk.msra.mxu0 %vm19279_vm4, %v19492_v36  ;;  %11125 = vmatpush2.msk.msra.mxu1 %vm19280_vm6, %v19492_v36  ;;  %vm19287_vm4 = vcmp.eq.s32.totalorder %v13669_v52, %v14109_v14  ;;  %vm19288_vm6 = vcmp.eq.s32.totalorder %v13669_v52, %v14112_v15 }
  0xfc   :  { %11062 = vmatprep.subr.msk.mxu0 %vm19281_vm14, %v19492_v36  ;;  %11126 = vmatprep.subr.msk.mxu1 %vm19282_vm8, %v19492_v36  ;;  %vm19289_vm14 = vcmp.eq.s32.totalorder %v13696_v53, %v14063_v3  ;;  %vm19290_vm8 = vcmp.eq.s32.totalorder %v13696_v53, %v14078_v4 }
  0xfd   :  { %11063 = vmatpush2.msk.msra.mxu0 %vm19283_vm12, %v19492_v36  ;;  %11127 = vmatpush2.msk.msra.mxu1 %vm19284_vm0, %v19492_v36  ;;  %vm19291_vm12 = vcmp.eq.s32.totalorder %v13696_v53, %v14109_v14  ;;  %vm19292_vm0 = vcmp.eq.s32.totalorder %v13696_v53, %v14112_v15 }
  0xfe   :  { %11064 = vmatprep.subr.msk.mxu0 %vm19285_vm10, %v19492_v36  ;;  %11128 = vmatprep.subr.msk.mxu1 %vm19286_vm2, %v19492_v36  ;;  %vm19293_vm10 = vcmp.eq.s32.totalorder %v13723_v54, %v14063_v3  ;;  %vm19294_vm2 = vcmp.eq.s32.totalorder %v13723_v54, %v14078_v4 }
  0xff   :  { %11065 = vmatpush2.msk.msra.mxu0 %vm19287_vm4, %v19492_v36  ;;  %11129 = vmatpush2.msk.msra.mxu1 %vm19288_vm6, %v19492_v36  ;;  %vm19295_vm4 = vcmp.eq.s32.totalorder %v13723_v54, %v14109_v14  ;;  %vm19296_vm6 = vcmp.eq.s32.totalorder %v13723_v54, %v14112_v15 }
 0x100   :  { %11066 = vmatprep.subr.msk.mxu0 %vm19289_vm14, %v19492_v36  ;;  %11130 = vmatprep.subr.msk.mxu1 %vm19290_vm8, %v19492_v36  ;;  %vm19297_vm14 = vcmp.eq.s32.totalorder %v13750_v55, %v14063_v3  ;;  %vm19298_vm8 = vcmp.eq.s32.totalorder %v13750_v55, %v14078_v4 }
 0x101   :  { %11067 = vmatpush2.msk.msra.mxu0 %vm19291_vm12, %v19492_v36  ;;  %11131 = vmatpush2.msk.msra.mxu1 %vm19292_vm0, %v19492_v36  ;;  %vm19299_vm12 = vcmp.eq.s32.totalorder %v13750_v55, %v14109_v14  ;;  %vm19300_vm0 = vcmp.eq.s32.totalorder %v13750_v55, %v14112_v15 }
 0x102   :  { %11068 = vmatprep.subr.msk.mxu0 %vm19293_vm10, %v19492_v36  ;;  %11132 = vmatprep.subr.msk.mxu1 %vm19294_vm2, %v19492_v36  ;;  %vm19301_vm10 = vcmp.eq.s32.totalorder %v13777_v56, %v14063_v3  ;;  %vm19302_vm2 = vcmp.eq.s32.totalorder %v13777_v56, %v14078_v4 }
 0x103   :  { %11069 = vmatpush2.msk.msra.mxu0 %vm19295_vm4, %v19492_v36  ;;  %11133 = vmatpush2.msk.msra.mxu1 %vm19296_vm6, %v19492_v36  ;;  %vm19303_vm4 = vcmp.eq.s32.totalorder %v13777_v56, %v14109_v14  ;;  %vm19304_vm6 = vcmp.eq.s32.totalorder %v13777_v56, %v14112_v15 }
 0x104   :  { %11070 = vmatprep.subr.msk.mxu0 %vm19297_vm14, %v19492_v36  ;;  %11134 = vmatprep.subr.msk.mxu1 %vm19298_vm8, %v19492_v36  ;;  %vm19305_vm14 = vcmp.eq.s32.totalorder %v13804_v57, %v14063_v3  ;;  %vm19306_vm8 = vcmp.eq.s32.totalorder %v13804_v57, %v14078_v4 }
 0x105   :  { %11071 = vmatpush2.msk.msra.mxu0 %vm19299_vm12, %v19492_v36  ;;  %11135 = vmatpush2.msk.msra.mxu1 %vm19300_vm0, %v19492_v36  ;;  %vm19307_vm12 = vcmp.eq.s32.totalorder %v13804_v57, %v14109_v14  ;;  %vm19308_vm0 = vcmp.eq.s32.totalorder %v13804_v57, %v14112_v15 }
 0x106   :  { %11072 = vmatprep.subr.msk.mxu0 %vm19301_vm10, %v19492_v36  ;;  %11136 = vmatprep.subr.msk.mxu1 %vm19302_vm2, %v19492_v36  ;;  %vm19309_vm10 = vcmp.eq.s32.totalorder %v13831_v58, %v14063_v3  ;;  %vm19310_vm2 = vcmp.eq.s32.totalorder %v13831_v58, %v14078_v4 }
 0x107   :  { %11073 = vmatpush2.msk.msra.mxu0 %vm19303_vm4, %v19492_v36  ;;  %11137 = vmatpush2.msk.msra.mxu1 %vm19304_vm6, %v19492_v36  ;;  %vm19311_vm4 = vcmp.eq.s32.totalorder %v13831_v58, %v14109_v14  ;;  %vm19312_vm6 = vcmp.eq.s32.totalorder %v13831_v58, %v14112_v15 }
 0x108   :  { %11074 = vmatprep.subr.msk.mxu0 %vm19305_vm14, %v19492_v36  ;;  %11138 = vmatprep.subr.msk.mxu1 %vm19306_vm8, %v19492_v36  ;;  %vm19313_vm14 = vcmp.eq.s32.totalorder %v13858_v59, %v14063_v3  ;;  %vm19314_vm8 = vcmp.eq.s32.totalorder %v13858_v59, %v14078_v4 }
 0x109   :  { %11075 = vmatpush2.msk.msra.mxu0 %vm19307_vm12, %v19492_v36  ;;  %11139 = vmatpush2.msk.msra.mxu1 %vm19308_vm0, %v19492_v36  ;;  %vm19315_vm12 = vcmp.eq.s32.totalorder %v13858_v59, %v14109_v14  ;;  %vm19316_vm0 = vcmp.eq.s32.totalorder %v13858_v59, %v14112_v15 }
 0x10a   :  { %11076 = vmatprep.subr.msk.mxu0 %vm19309_vm10, %v19492_v36  ;;  %11140 = vmatprep.subr.msk.mxu1 %vm19310_vm2, %v19492_v36  ;;  %vm19317_vm10 = vcmp.eq.s32.totalorder %v13885_v60, %v14063_v3  ;;  %vm19318_vm2 = vcmp.eq.s32.totalorder %v13885_v60, %v14078_v4 }
 0x10b   :  { %11077 = vmatpush2.msk.msra.mxu0 %vm19311_vm4, %v19492_v36  ;;  %11141 = vmatpush2.msk.msra.mxu1 %vm19312_vm6, %v19492_v36  ;;  %vm19319_vm4 = vcmp.eq.s32.totalorder %v13885_v60, %v14109_v14  ;;  %vm19320_vm6 = vcmp.eq.s32.totalorder %v13885_v60, %v14112_v15 }
 0x10c   :  { %11078 = vmatprep.subr.msk.mxu0 %vm19313_vm14, %v19492_v36  ;;  %11142 = vmatprep.subr.msk.mxu1 %vm19314_vm8, %v19492_v36  ;;  %vm19321_vm14 = vcmp.eq.s32.totalorder %v13961_v61, %v14063_v3  ;;  %vm19322_vm8 = vcmp.eq.s32.totalorder %v13961_v61, %v14078_v4 }
 0x10d   :  { %11079 = vmatpush2.msk.msra.mxu0 %vm19315_vm12, %v19492_v36  ;;  %11143 = vmatpush2.msk.msra.mxu1 %vm19316_vm0, %v19492_v36  ;;  %vm19324_vm12 = vcmp.eq.s32.totalorder %v13961_v61, %v14109_v14  ;;  %vm631_vm0 = vcmp.eq.s32.totalorder %v13961_v61, %v14112_v15 }
 0x10e   :  { %11080 = vmatprep.subr.msk.mxu0 %vm19317_vm10, %v19492_v36  ;;  %11144 = vmatprep.subr.msk.mxu1 %vm19318_vm2, %v19492_v36  ;;  %vm19325_vm10 = vcmp.eq.s32.totalorder %v13980_v62, %v14063_v3  ;;  %vm19326_vm2 = vcmp.eq.s32.totalorder %v13980_v62, %v14078_v4 }
 0x10f   :  { %11081 = vmatpush2.msk.msra.mxu0 %vm19319_vm4, %v19492_v36  ;;  %11145 = vmatpush2.msk.msra.mxu1 %vm19320_vm6, %v19492_v36  ;;  %vm19327_vm4 = vcmp.eq.s32.totalorder %v13980_v62, %v14109_v14  ;;  %vm19328_vm6 = vcmp.eq.s32.totalorder %v13980_v62, %v14112_v15 }
 0x110   :  { %11082 = vmatprep.subr.msk.mxu0 %vm19321_vm14, %v19492_v36  ;;  %11146 = vmatprep.subr.msk.mxu1 %vm19322_vm8, %v19492_v36  ;;  %vm19329_vm14 = vcmp.eq.s32.totalorder %v14007_v63, %v14063_v3  ;;  %vm19340_vm8 = vcmp.eq.s32.totalorder %v14007_v63, %v14078_v4 }
 0x111   :  { %11083 = vmatpush2.msk.msra.mxu0 %vm19324_vm12, %v19492_v36  ;;  %11147 = vmatpush2.msk.msra.mxu1 %vm631_vm0, %v19492_v36  ;;  %vm19336_vm12 = vcmp.eq.s32.totalorder %v14007_v63, %v14112_v15 }
 0x112   :  { %11084 = vmatprep.subr.msk.mxu0 %vm19325_vm10, %v19492_v36  ;;  %11148 = vmatprep.subr.msk.mxu1 %vm19326_vm2, %v19492_v36  ;;  %vm19331_vm10 = vcmp.eq.s32.totalorder %v14034_v0, %v14063_v3  ;;  %vm19332_vm2 = vcmp.eq.s32.totalorder %v14034_v0, %v14078_v4 }
 0x113   :  { %11085 = vmatpush2.msk.msra.mxu0 %vm19327_vm4, %v19492_v36  ;;  %11149 = vmatpush2.msk.msra.mxu1 %vm19328_vm6, %v19492_v36  ;;  %vm19333_vm4 = vcmp.eq.s32.totalorder %v14034_v0, %v14109_v14  ;;  %vm19334_vm6 = vcmp.eq.s32.totalorder %v14034_v0, %v14112_v15 }
 0x114   :  { %11086 = vmatprep.subr.msk.mxu0 %vm19329_vm14, %v19492_v36  ;;  %11150 = vmatprep.subr.msk.mxu1 %vm19340_vm8, %v19492_v36  ;;  %vm19335_vm14 = vcmp.eq.s32.totalorder %v13178_v21, %v14839_v25  ;;  %vm19348_vm8 = vcmp.eq.s32.totalorder %v13226_v34, %v14875_v35 }
 0x115   :  { %11087 = vmatpush2.msk.msra.mxu0 %vm19330_vm1, %v19492_v36  ;;  %11151 = vmatpush2.msk.msra.mxu1 %vm19336_vm12, %v19492_v36  ;;  %vm19337_vm1 = vcmp.eq.s32.totalorder %v13178_v21, %v14843_v26  ;;  %vm19344_vm12 = vcmp.eq.s32.totalorder %v13210_v30, %v14875_v35 }
 0x116   :  { %11088 = vmatprep.subr.msk.mxu0 %vm19331_vm10, %v19492_v36  ;;  %11152 = vmatprep.subr.msk.mxu1 %vm19332_vm2, %v19492_v36  ;;  %vm19338_vm10 = vcmp.eq.s32.totalorder %v13178_v21, %v14859_v33  ;;  %vm19339_vm2 = vcmp.eq.s32.totalorder %v13178_v21, %v14875_v35 }
 0x117   :  { %11089 = vmatpush2.msk.msra.mxu0 %vm19333_vm4, %v19492_v36  ;;  %11153 = vmatpush2.msk.msra.mxu1 %vm19334_vm6, %v19492_v36  ;;  %vm19341_vm4 = vcmp.eq.s32.totalorder %v13210_v30, %v14839_v25  ;;  %vm19342_vm6 = vcmp.eq.s32.totalorder %v13210_v30, %v14843_v26 }
 0x118   :  { %1417 = vmatmul.mubr.f32.vlgmr.msra.gmra.mxu0 %v14116_v20  ;;  %1488 = vmatmul.mubr.f32.vlgmr.msra.gmra.mxu1 %v14116_v20 }
 0x119   :  { %11154 = vmatprep.subr.msk.mxu0 %vm19335_vm14, %v19492_v36  ;;  %11218 = vmatprep.subr.msk.mxu1 %vm19337_vm1, %v19492_v36  ;;  %vm19343_vm14 = vcmp.eq.s32.totalorder %v13210_v30, %v14859_v33  ;;  %vm19345_vm1 = vcmp.eq.s32.totalorder %v13226_v34, %v14839_v25 }
 0x11a   :  { %11155 = vmatpush1.msk.msra.mxu0 %vm19338_vm10, %v19492_v36  ;;  %1558 = vmatprep.mubr.f32.mxu0 %v14114_v17  ;;  %vm19346_vm10 = vcmp.eq.s32.totalorder %v13226_v34, %v14843_v26 }
 0x11b   :  { %11219 = vmatpush1.msk.msra.mxu1 %vm19339_vm2, %v19492_v36  ;;  %1629 = vmatprep.mubr.f32.mxu1 %v14114_v17  ;;  %vm19347_vm2 = vcmp.eq.s32.totalorder %v13226_v34, %v14859_v33 }
 0x11c   :  { %11156 = vmatprep.subr.msk.mxu0 %vm19341_vm4, %v19492_v36  ;;  %11220 = vmatprep.subr.msk.mxu1 %vm19342_vm6, %v19492_v36  ;;  %vm19349_vm4 = vcmp.eq.s32.totalorder %v13244_v37, %v14839_v25  ;;  %vm19350_vm6 = vcmp.eq.s32.totalorder %v13244_v37, %v14843_v26 }
 0x11d   :  { %11157 = vmatpush1.msk.msra.mxu0 %vm19343_vm14, %v19492_v36  ;;  %11221 = vmatpush1.msk.msra.mxu1 %vm19344_vm12, %v19492_v36  ;;  %vm19351_vm14 = vcmp.eq.s32.totalorder %v13244_v37, %v14859_v33  ;;  %vm19352_vm12 = vcmp.eq.s32.totalorder %v13244_v37, %v14875_v35 }
 0x11e   :  { %11158 = vmatprep.subr.msk.mxu0 %vm19345_vm1, %v19492_v36  ;;  %11222 = vmatprep.subr.msk.mxu1 %vm19346_vm10, %v19492_v36  ;;  %vm19353_vm1 = vcmp.eq.s32.totalorder %v13267_v38, %v14839_v25  ;;  %vm19354_vm10 = vcmp.eq.s32.totalorder %v13267_v38, %v14843_v26 }
 0x11f   :  { %11159 = vmatpush1.msk.msra.mxu0 %vm19347_vm2, %v19492_v36  ;;  %11223 = vmatpush1.msk.msra.mxu1 %vm19348_vm8, %v19492_v36  ;;  %vm19355_vm2 = vcmp.eq.s32.totalorder %v13267_v38, %v14859_v33  ;;  %vm19356_vm8 = vcmp.eq.s32.totalorder %v13267_v38, %v14875_v35 }
 0x120   :  { %11160 = vmatprep.subr.msk.mxu0 %vm19349_vm4, %v19492_v36  ;;  %11224 = vmatprep.subr.msk.mxu1 %vm19350_vm6, %v19492_v36  ;;  %vm19357_vm4 = vcmp.eq.s32.totalorder %v13294_v39, %v14839_v25  ;;  %vm19358_vm6 = vcmp.eq.s32.totalorder %v13294_v39, %v14843_v26 }
 0x121   :  { %11161 = vmatpush1.msk.msra.mxu0 %vm19351_vm14, %v19492_v36  ;;  %11225 = vmatpush1.msk.msra.mxu1 %vm19352_vm12, %v19492_v36  ;;  %vm19359_vm14 = vcmp.eq.s32.totalorder %v13294_v39, %v14859_v33  ;;  %vm19360_vm12 = vcmp.eq.s32.totalorder %v13294_v39, %v14875_v35 }
 0x122   :  { %11162 = vmatprep.subr.msk.mxu0 %vm19353_vm1, %v19492_v36  ;;  %11226 = vmatprep.subr.msk.mxu1 %vm19354_vm10, %v19492_v36  ;;  %vm19361_vm1 = vcmp.eq.s32.totalorder %v13321_v40, %v14839_v25  ;;  %vm19362_vm10 = vcmp.eq.s32.totalorder %v13321_v40, %v14843_v26 }
 0x123   :  { %11163 = vmatpush1.msk.msra.mxu0 %vm19355_vm2, %v19492_v36  ;;  %11227 = vmatpush1.msk.msra.mxu1 %vm19356_vm8, %v19492_v36  ;;  %vm19363_vm2 = vcmp.eq.s32.totalorder %v13321_v40, %v14859_v33  ;;  %vm19364_vm8 = vcmp.eq.s32.totalorder %v13321_v40, %v14875_v35 }
 0x124   :  { %11164 = vmatprep.subr.msk.mxu0 %vm19357_vm4, %v19492_v36  ;;  %11228 = vmatprep.subr.msk.mxu1 %vm19358_vm6, %v19492_v36  ;;  %vm19365_vm4 = vcmp.eq.s32.totalorder %v13348_v41, %v14839_v25  ;;  %vm19366_vm6 = vcmp.eq.s32.totalorder %v13348_v41, %v14843_v26 }
 0x125   :  { %11165 = vmatpush1.msk.msra.mxu0 %vm19359_vm14, %v19492_v36  ;;  %11229 = vmatpush1.msk.msra.mxu1 %vm19360_vm12, %v19492_v36  ;;  %vm19367_vm14 = vcmp.eq.s32.totalorder %v13348_v41, %v14859_v33  ;;  %vm19368_vm12 = vcmp.eq.s32.totalorder %v13348_v41, %v14875_v35 }
 0x126   :  { %11166 = vmatprep.subr.msk.mxu0 %vm19361_vm1, %v19492_v36  ;;  %11230 = vmatprep.subr.msk.mxu1 %vm19362_vm10, %v19492_v36  ;;  %vm19369_vm1 = vcmp.eq.s32.totalorder %v13375_v42, %v14839_v25  ;;  %vm19370_vm10 = vcmp.eq.s32.totalorder %v13375_v42, %v14843_v26 }
 0x127   :  { %11167 = vmatpush1.msk.msra.mxu0 %vm19363_vm2, %v19492_v36  ;;  %11231 = vmatpush1.msk.msra.mxu1 %vm19364_vm8, %v19492_v36  ;;  %vm19371_vm2 = vcmp.eq.s32.totalorder %v13375_v42, %v14859_v33  ;;  %vm19372_vm8 = vcmp.eq.s32.totalorder %v13375_v42, %v14875_v35 }
 0x128   :  { %11168 = vmatprep.subr.msk.mxu0 %vm19365_vm4, %v19492_v36  ;;  %11232 = vmatprep.subr.msk.mxu1 %vm19366_vm6, %v19492_v36  ;;  %vm19373_vm4 = vcmp.eq.s32.totalorder %v13402_v43, %v14839_v25  ;;  %vm19374_vm6 = vcmp.eq.s32.totalorder %v13402_v43, %v14843_v26 }
 0x129   :  { %11169 = vmatpush1.msk.msra.mxu0 %vm19367_vm14, %v19492_v36  ;;  %11233 = vmatpush1.msk.msra.mxu1 %vm19368_vm12, %v19492_v36  ;;  %vm19375_vm14 = vcmp.eq.s32.totalorder %v13402_v43, %v14859_v33  ;;  %vm19376_vm12 = vcmp.eq.s32.totalorder %v13402_v43, %v14875_v35 }
 0x12a   :  { %11170 = vmatprep.subr.msk.mxu0 %vm19369_vm1, %v19492_v36  ;;  %11234 = vmatprep.subr.msk.mxu1 %vm19370_vm10, %v19492_v36  ;;  %vm19377_vm1 = vcmp.eq.s32.totalorder %v13429_v44, %v14839_v25  ;;  %vm19378_vm10 = vcmp.eq.s32.totalorder %v13429_v44, %v14843_v26 }
 0x12b   :  { %11171 = vmatpush1.msk.msra.mxu0 %vm19371_vm2, %v19492_v36  ;;  %11235 = vmatpush1.msk.msra.mxu1 %vm19372_vm8, %v19492_v36  ;;  %vm19379_vm2 = vcmp.eq.s32.totalorder %v13429_v44, %v14859_v33  ;;  %vm19380_vm8 = vcmp.eq.s32.totalorder %v13429_v44, %v14875_v35 }
 0x12c   :  { %11172 = vmatprep.subr.msk.mxu0 %vm19373_vm4, %v19492_v36  ;;  %11236 = vmatprep.subr.msk.mxu1 %vm19374_vm6, %v19492_v36  ;;  %vm19381_vm4 = vcmp.eq.s32.totalorder %v13456_v45, %v14839_v25  ;;  %vm19382_vm6 = vcmp.eq.s32.totalorder %v13456_v45, %v14843_v26 }
 0x12d   :  { %11173 = vmatpush1.msk.msra.mxu0 %vm19375_vm14, %v19492_v36  ;;  %11237 = vmatpush1.msk.msra.mxu1 %vm19376_vm12, %v19492_v36  ;;  %vm19383_vm14 = vcmp.eq.s32.totalorder %v13456_v45, %v14859_v33  ;;  %vm19384_vm12 = vcmp.eq.s32.totalorder %v13456_v45, %v14875_v35 }
 0x12e   :  { %11174 = vmatprep.subr.msk.mxu0 %vm19377_vm1, %v19492_v36  ;;  %11238 = vmatprep.subr.msk.mxu1 %vm19378_vm10, %v19492_v36  ;;  %vm19385_vm1 = vcmp.eq.s32.totalorder %v13483_v46, %v14839_v25  ;;  %vm19386_vm10 = vcmp.eq.s32.totalorder %v13483_v46, %v14843_v26 }
 0x12f   :  { %11175 = vmatpush1.msk.msra.mxu0 %vm19379_vm2, %v19492_v36  ;;  %11239 = vmatpush1.msk.msra.mxu1 %vm19380_vm8, %v19492_v36  ;;  %vm19387_vm2 = vcmp.eq.s32.totalorder %v13483_v46, %v14859_v33  ;;  %vm19388_vm8 = vcmp.eq.s32.totalorder %v13483_v46, %v14875_v35 }
 0x130   :  { %11176 = vmatprep.subr.msk.mxu0 %vm19381_vm4, %v19492_v36  ;;  %11240 = vmatprep.subr.msk.mxu1 %vm19382_vm6, %v19492_v36  ;;  %vm19389_vm4 = vcmp.eq.s32.totalorder %v13510_v47, %v14839_v25  ;;  %vm19390_vm6 = vcmp.eq.s32.totalorder %v13510_v47, %v14843_v26 }
 0x131   :  { %11177 = vmatpush1.msk.msra.mxu0 %vm19383_vm14, %v19492_v36  ;;  %11241 = vmatpush1.msk.msra.mxu1 %vm19384_vm12, %v19492_v36  ;;  %vm19391_vm14 = vcmp.eq.s32.totalorder %v13510_v47, %v14859_v33  ;;  %vm19392_vm12 = vcmp.eq.s32.totalorder %v13510_v47, %v14875_v35 }
 0x132   :  { %11178 = vmatprep.subr.msk.mxu0 %vm19385_vm1, %v19492_v36  ;;  %11242 = vmatprep.subr.msk.mxu1 %vm19386_vm10, %v19492_v36  ;;  %vm19393_vm1 = vcmp.eq.s32.totalorder %v13537_v48, %v14839_v25  ;;  %vm19394_vm10 = vcmp.eq.s32.totalorder %v13537_v48, %v14843_v26 }
 0x133   :  { %11179 = vmatpush1.msk.msra.mxu0 %vm19387_vm2, %v19492_v36  ;;  %11243 = vmatpush1.msk.msra.mxu1 %vm19388_vm8, %v19492_v36  ;;  %vm19395_vm2 = vcmp.eq.s32.totalorder %v13537_v48, %v14859_v33  ;;  %vm19396_vm8 = vcmp.eq.s32.totalorder %v13537_v48, %v14875_v35 }
 0x134   :  { %11180 = vmatprep.subr.msk.mxu0 %vm19389_vm4, %v19492_v36  ;;  %11244 = vmatprep.subr.msk.mxu1 %vm19390_vm6, %v19492_v36  ;;  %vm19397_vm4 = vcmp.eq.s32.totalorder %v13151_v12, %v14839_v25  ;;  %vm19398_vm6 = vcmp.eq.s32.totalorder %v13151_v12, %v14843_v26 }
 0x135   :  { %11181 = vmatpush1.msk.msra.mxu0 %vm19391_vm14, %v19492_v36  ;;  %11245 = vmatpush1.msk.msra.mxu1 %vm19392_vm12, %v19492_v36  ;;  %vm19399_vm14 = vcmp.eq.s32.totalorder %v13151_v12, %v14859_v33  ;;  %vm19400_vm12 = vcmp.eq.s32.totalorder %v13151_v12, %v14875_v35 }
 0x136   :  { %11182 = vmatprep.subr.msk.mxu0 %vm19393_vm1, %v19492_v36  ;;  %11246 = vmatprep.subr.msk.mxu1 %vm19394_vm10, %v19492_v36  ;;  %vm19401_vm1 = vcmp.eq.s32.totalorder %v13588_v49, %v14839_v25  ;;  %vm19402_vm10 = vcmp.eq.s32.totalorder %v13588_v49, %v14843_v26 }
 0x137   :  { %11183 = vmatpush1.msk.msra.mxu0 %vm19395_vm2, %v19492_v36  ;;  %11247 = vmatpush1.msk.msra.mxu1 %vm19396_vm8, %v19492_v36  ;;  %vm19403_vm2 = vcmp.eq.s32.totalorder %v13588_v49, %v14859_v33  ;;  %vm19404_vm8 = vcmp.eq.s32.totalorder %v13588_v49, %v14875_v35 }
 0x138   :  { %11184 = vmatprep.subr.msk.mxu0 %vm19397_vm4, %v19492_v36  ;;  %11248 = vmatprep.subr.msk.mxu1 %vm19398_vm6, %v19492_v36  ;;  %vm19405_vm4 = vcmp.eq.s32.totalorder %v13615_v50, %v14839_v25  ;;  %vm19406_vm6 = vcmp.eq.s32.totalorder %v13615_v50, %v14843_v26 }
 0x139   :  { %11185 = vmatpush1.msk.msra.mxu0 %vm19399_vm14, %v19492_v36  ;;  %11249 = vmatpush1.msk.msra.mxu1 %vm19400_vm12, %v19492_v36  ;;  %vm19407_vm14 = vcmp.eq.s32.totalorder %v13615_v50, %v14859_v33  ;;  %vm19408_vm12 = vcmp.eq.s32.totalorder %v13615_v50, %v14875_v35 }
 0x13a   :  { %11186 = vmatprep.subr.msk.mxu0 %vm19401_vm1, %v19492_v36  ;;  %11250 = vmatprep.subr.msk.mxu1 %vm19402_vm10, %v19492_v36  ;;  %vm19409_vm1 = vcmp.eq.s32.totalorder %v13642_v51, %v14839_v25  ;;  %vm19410_vm10 = vcmp.eq.s32.totalorder %v13642_v51, %v14843_v26 }
 0x13b   :  { %11187 = vmatpush2.msk.msra.mxu0 %vm19403_vm2, %v19492_v36  ;;  %11251 = vmatpush2.msk.msra.mxu1 %vm19404_vm8, %v19492_v36  ;;  %vm19411_vm2 = vcmp.eq.s32.totalorder %v13642_v51, %v14859_v33  ;;  %vm19412_vm8 = vcmp.eq.s32.totalorder %v13642_v51, %v14875_v35 }
 0x13c   :  { %11188 = vmatprep.subr.msk.mxu0 %vm19405_vm4, %v19492_v36  ;;  %11252 = vmatprep.subr.msk.mxu1 %vm19406_vm6, %v19492_v36  ;;  %vm19413_vm4 = vcmp.eq.s32.totalorder %v13669_v52, %v14839_v25  ;;  %vm19414_vm6 = vcmp.eq.s32.totalorder %v13669_v52, %v14843_v26 }
 0x13d   :  { %11189 = vmatpush2.msk.msra.mxu0 %vm19407_vm14, %v19492_v36  ;;  %11253 = vmatpush2.msk.msra.mxu1 %vm19408_vm12, %v19492_v36  ;;  %vm19415_vm14 = vcmp.eq.s32.totalorder %v13669_v52, %v14859_v33  ;;  %vm19416_vm12 = vcmp.eq.s32.totalorder %v13669_v52, %v14875_v35 }
 0x13e   :  { %11190 = vmatprep.subr.msk.mxu0 %vm19409_vm1, %v19492_v36  ;;  %11254 = vmatprep.subr.msk.mxu1 %vm19410_vm10, %v19492_v36  ;;  %vm19417_vm1 = vcmp.eq.s32.totalorder %v13696_v53, %v14839_v25  ;;  %vm19418_vm10 = vcmp.eq.s32.totalorder %v13696_v53, %v14843_v26 }
 0x13f   :  { %11191 = vmatpush2.msk.msra.mxu0 %vm19411_vm2, %v19492_v36  ;;  %11255 = vmatpush2.msk.msra.mxu1 %vm19412_vm8, %v19492_v36  ;;  %vm19419_vm2 = vcmp.eq.s32.totalorder %v13696_v53, %v14859_v33  ;;  %vm19420_vm8 = vcmp.eq.s32.totalorder %v13696_v53, %v14875_v35 }
 0x140   :  { %11192 = vmatprep.subr.msk.mxu0 %vm19413_vm4, %v19492_v36  ;;  %11256 = vmatprep.subr.msk.mxu1 %vm19414_vm6, %v19492_v36  ;;  %vm19421_vm4 = vcmp.eq.s32.totalorder %v13723_v54, %v14839_v25  ;;  %vm19422_vm6 = vcmp.eq.s32.totalorder %v13723_v54, %v14843_v26 }
 0x141   :  { %11193 = vmatpush2.msk.msra.mxu0 %vm19415_vm14, %v19492_v36  ;;  %11257 = vmatpush2.msk.msra.mxu1 %vm19416_vm12, %v19492_v36  ;;  %vm19423_vm14 = vcmp.eq.s32.totalorder %v13723_v54, %v14859_v33  ;;  %vm19424_vm12 = vcmp.eq.s32.totalorder %v13723_v54, %v14875_v35 }
 0x142   :  { %11194 = vmatprep.subr.msk.mxu0 %vm19417_vm1, %v19492_v36  ;;  %11258 = vmatprep.subr.msk.mxu1 %vm19418_vm10, %v19492_v36  ;;  %vm19425_vm1 = vcmp.eq.s32.totalorder %v13750_v55, %v14839_v25  ;;  %vm19426_vm10 = vcmp.eq.s32.totalorder %v13750_v55, %v14843_v26 }
 0x143   :  { %11195 = vmatpush2.msk.msra.mxu0 %vm19419_vm2, %v19492_v36  ;;  %11259 = vmatpush2.msk.msra.mxu1 %vm19420_vm8, %v19492_v36  ;;  %vm19427_vm2 = vcmp.eq.s32.totalorder %v13750_v55, %v14859_v33  ;;  %vm19428_vm8 = vcmp.eq.s32.totalorder %v13750_v55, %v14875_v35 }
 0x144   :  { %11196 = vmatprep.subr.msk.mxu0 %vm19421_vm4, %v19492_v36  ;;  %11260 = vmatprep.subr.msk.mxu1 %vm19422_vm6, %v19492_v36  ;;  %vm19429_vm4 = vcmp.eq.s32.totalorder %v13777_v56, %v14839_v25  ;;  %vm19430_vm6 = vcmp.eq.s32.totalorder %v13777_v56, %v14843_v26 }
 0x145   :  { %11197 = vmatpush2.msk.msra.mxu0 %vm19423_vm14, %v19492_v36  ;;  %11261 = vmatpush2.msk.msra.mxu1 %vm19424_vm12, %v19492_v36  ;;  %vm19431_vm14 = vcmp.eq.s32.totalorder %v13777_v56, %v14859_v33  ;;  %vm19432_vm12 = vcmp.eq.s32.totalorder %v13777_v56, %v14875_v35 }
 0x146   :  { %11198 = vmatprep.subr.msk.mxu0 %vm19425_vm1, %v19492_v36  ;;  %11262 = vmatprep.subr.msk.mxu1 %vm19426_vm10, %v19492_v36  ;;  %vm19433_vm1 = vcmp.eq.s32.totalorder %v13804_v57, %v14839_v25  ;;  %vm19434_vm10 = vcmp.eq.s32.totalorder %v13804_v57, %v14843_v26 }
 0x147   :  { %11199 = vmatpush2.msk.msra.mxu0 %vm19427_vm2, %v19492_v36  ;;  %11263 = vmatpush2.msk.msra.mxu1 %vm19428_vm8, %v19492_v36  ;;  %vm19435_vm2 = vcmp.eq.s32.totalorder %v13804_v57, %v14859_v33  ;;  %vm19436_vm8 = vcmp.eq.s32.totalorder %v13804_v57, %v14875_v35 }
 0x148   :  { %11200 = vmatprep.subr.msk.mxu0 %vm19429_vm4, %v19492_v36  ;;  %11264 = vmatprep.subr.msk.mxu1 %vm19430_vm6, %v19492_v36  ;;  %vm19437_vm4 = vcmp.eq.s32.totalorder %v13831_v58, %v14839_v25  ;;  %vm19438_vm6 = vcmp.eq.s32.totalorder %v13831_v58, %v14843_v26 }
 0x149   :  { %11201 = vmatpush2.msk.msra.mxu0 %vm19431_vm14, %v19492_v36  ;;  %11265 = vmatpush2.msk.msra.mxu1 %vm19432_vm12, %v19492_v36  ;;  %vm19439_vm14 = vcmp.eq.s32.totalorder %v13831_v58, %v14859_v33  ;;  %vm19440_vm12 = vcmp.eq.s32.totalorder %v13831_v58, %v14875_v35 }
 0x14a   :  { %11202 = vmatprep.subr.msk.mxu0 %vm19433_vm1, %v19492_v36  ;;  %11266 = vmatprep.subr.msk.mxu1 %vm19434_vm10, %v19492_v36  ;;  %vm19441_vm1 = vcmp.eq.s32.totalorder %v13858_v59, %v14839_v25  ;;  %vm19442_vm10 = vcmp.eq.s32.totalorder %v13858_v59, %v14843_v26 }
 0x14b   :  { %11203 = vmatpush2.msk.msra.mxu0 %vm19435_vm2, %v19492_v36  ;;  %11267 = vmatpush2.msk.msra.mxu1 %vm19436_vm8, %v19492_v36  ;;  %vm19443_vm2 = vcmp.eq.s32.totalorder %v13858_v59, %v14859_v33  ;;  %vm19444_vm8 = vcmp.eq.s32.totalorder %v13858_v59, %v14875_v35 }
 0x14c   :  { %11204 = vmatprep.subr.msk.mxu0 %vm19437_vm4, %v19492_v36  ;;  %11268 = vmatprep.subr.msk.mxu1 %vm19438_vm6, %v19492_v36  ;;  %vm19445_vm4 = vcmp.eq.s32.totalorder %v13885_v60, %v14839_v25  ;;  %vm19446_vm6 = vcmp.eq.s32.totalorder %v13885_v60, %v14843_v26 }
 0x14d   :  { %11205 = vmatpush2.msk.msra.mxu0 %vm19439_vm14, %v19492_v36  ;;  %11269 = vmatpush2.msk.msra.mxu1 %vm19440_vm12, %v19492_v36  ;;  %vm19447_vm14 = vcmp.eq.s32.totalorder %v13885_v60, %v14859_v33  ;;  %vm19448_vm12 = vcmp.eq.s32.totalorder %v13885_v60, %v14875_v35 }
 0x14e   :  { %11206 = vmatprep.subr.msk.mxu0 %vm19441_vm1, %v19492_v36  ;;  %11270 = vmatprep.subr.msk.mxu1 %vm19442_vm10, %v19492_v36  ;;  %vm19449_vm1 = vcmp.eq.s32.totalorder %v13961_v61, %v14839_v25  ;;  %vm19450_vm10 = vcmp.eq.s32.totalorder %v13961_v61, %v14843_v26 }
 0x14f   :  { %11207 = vmatpush2.msk.msra.mxu0 %vm19443_vm2, %v19492_v36  ;;  %11271 = vmatpush2.msk.msra.mxu1 %vm19444_vm8, %v19492_v36  ;;  %vm19451_vm2 = vcmp.eq.s32.totalorder %v13961_v61, %v14859_v33  ;;  %vm19452_vm8 = vcmp.eq.s32.totalorder %v13961_v61, %v14875_v35 }
 0x150   :  { %11208 = vmatprep.subr.msk.mxu0 %vm19445_vm4, %v19492_v36  ;;  %11272 = vmatprep.subr.msk.mxu1 %vm19446_vm6, %v19492_v36  ;;  %vm19453_vm4 = vcmp.eq.s32.totalorder %v13980_v62, %v14839_v25  ;;  %vm19454_vm6 = vcmp.eq.s32.totalorder %v13980_v62, %v14843_v26 }
 0x151   :  { %11209 = vmatpush2.msk.msra.mxu0 %vm19447_vm14, %v19492_v36  ;;  %11273 = vmatpush2.msk.msra.mxu1 %vm19448_vm12, %v19492_v36  ;;  %vm19455_vm14 = vcmp.eq.s32.totalorder %v13980_v62, %v14859_v33  ;;  %vm19456_vm12 = vcmp.eq.s32.totalorder %v13980_v62, %v14875_v35 }
 0x152   :  { %11210 = vmatprep.subr.msk.mxu0 %vm19449_vm1, %v19492_v36  ;;  %11274 = vmatprep.subr.msk.mxu1 %vm19450_vm10, %v19492_v36  ;;  %vm19457_vm1 = vcmp.eq.s32.totalorder %v14007_v63, %v14839_v25  ;;  %vm610_vm10 = vcmp.eq.s32.totalorder %v14007_v63, %v14843_v26 }
 0x153   :  { %11211 = vmatpush2.msk.msra.mxu0 %vm19451_vm2, %v19492_v36  ;;  %11275 = vmatpush2.msk.msra.mxu1 %vm19452_vm8, %v19492_v36  ;;  %vm19459_vm2 = vcmp.eq.s32.totalorder %v14007_v63, %v14859_v33  ;;  %vm609_vm8 = vcmp.eq.s32.totalorder %v14007_v63, %v14875_v35 }
 0x154   :  { %11212 = vmatprep.subr.msk.mxu0 %vm19453_vm4, %v19492_v36  ;;  %11276 = vmatprep.subr.msk.mxu1 %vm19454_vm6, %v19492_v36  ;;  %vm19458_vm4 = vcmp.eq.s32.totalorder %v14034_v0, %v14839_v25  ;;  %vm19463_vm6 = vcmp.eq.s32.totalorder %v14034_v0, %v14843_v26 }
 0x155   :  { %11213 = vmatpush2.msk.msra.mxu0 %vm19455_vm14, %v19492_v36  ;;  %11277 = vmatpush2.msk.msra.mxu1 %vm19456_vm12, %v19492_v36  ;;  %vm19460_vm14 = vcmp.eq.s32.totalorder %v14034_v0, %v14859_v33  ;;  %vm19461_vm12 = vcmp.eq.s32.totalorder %v14034_v0, %v14875_v35 }
 0x156   :  { %11214 = vmatprep.subr.msk.mxu0 %vm19457_vm1, %v19492_v36  ;;  %11278 = vmatprep.subr.msk.mxu1 %vm610_vm10, %v19492_v36  ;;  %vm19462_vm1 = vcmp.eq.s32.totalorder %v13588_v49, %v15628_v1 }
 0x157   :  { %11215 = vmatpush2.msk.msra.mxu0 %vm19459_vm2, %v19492_v36  ;;  %11279 = vmatpush2.msk.msra.mxu1 %vm609_vm8, %v19492_v36  ;;  %vm19465_vm2 = vcmp.eq.s32.totalorder %v13615_v50, %v15628_v1 }
 0x158   :  { %11216 = vmatprep.subr.msk.mxu0 %vm19458_vm4, %v19492_v36  ;;  %11280 = vmatprep.subr.msk.mxu1 %vm19463_vm6, %v19492_v36  ;;  %vm19464_vm4 = vcmp.eq.s32.totalorder %v13178_v21, %v15628_v1  ;;  %vm19469_vm6 = vcmp.eq.s32.totalorder %v13669_v52, %v15628_v1 }
 0x159   :  { %11217 = vmatpush2.msk.msra.mxu0 %vm19460_vm14, %v19492_v36  ;;  %11281 = vmatpush2.msk.msra.mxu1 %vm19461_vm12, %v19492_v36  ;;  %vm19466_vm14 = vcmp.eq.s32.totalorder %v13210_v30, %v15628_v1  ;;  %vm19467_vm12 = vcmp.eq.s32.totalorder %v13642_v51, %v15628_v1 }
 0x15a   :  { %1559 = vmatmul.mubr.f32.vlgmr.msra.gmra.mxu0 %v14116_v20  ;;  %1630 = vmatmul.mubr.f32.vlgmr.msra.gmra.mxu1 %v14116_v20 }
 0x15b   :  { %11954 = vmatprep.subr.msk.mxu0 %vm19462_vm1, %v19492_v36  ;;  %1700 = vmatprep.mubr.f32.mxu0 %v14114_v17  ;;  %vm19468_vm1 = vcmp.eq.s32.totalorder %v13226_v34, %v15628_v1  ;;  %v258_v17 = vld [vmem:[%s19079_s4 + $0x88] sm:$0xff] }
 0x15c   :  { %11955 = vmatpush3.msk.msra.mxu0 %vm19464_vm4, %v19492_v36  ;;  %vm19470_vm4 = vcmp.eq.s32.totalorder %v13244_v37, %v15628_v1 }
 0x15d   :  { %11956 = vmatprep.subr.msk.mxu0 %vm19465_vm2, %v19492_v36  ;;  %vm19471_vm2 = vcmp.eq.s32.totalorder %v13696_v53, %v15628_v1 }
 0x15e   :  { %11957 = vmatpush3.msk.msra.mxu0 %vm19466_vm14, %v19492_v36  ;;  %vm19472_vm14 = vcmp.eq.s32.totalorder %v13267_v38, %v15628_v1 }
 0x15f   :  { %11958 = vmatprep.subr.msk.mxu0 %vm19467_vm12, %v19492_v36  ;;  %vm19473_vm12 = vcmp.eq.s32.totalorder %v13723_v54, %v15628_v1 }
 0x160   :  { %11959 = vmatpush3.msk.msra.mxu0 %vm19468_vm1, %v19492_v36  ;;  %vm19474_vm1 = vcmp.eq.s32.totalorder %v13294_v39, %v15628_v1 }
 0x161   :  { %11960 = vmatprep.subr.msk.mxu0 %vm19469_vm6, %v19492_v36  ;;  %vm19475_vm6 = vcmp.eq.s32.totalorder %v13750_v55, %v15628_v1 }
 0x162   :  { %11961 = vmatpush3.msk.msra.mxu0 %vm19470_vm4, %v19492_v36  ;;  %vm19476_vm4 = vcmp.eq.s32.totalorder %v13321_v40, %v15628_v1 }
 0x163   :  { %11962 = vmatprep.subr.msk.mxu0 %vm19471_vm2, %v19492_v36  ;;  %vm19477_vm2 = vcmp.eq.s32.totalorder %v13777_v56, %v15628_v1 }
 0x164   :  { %11963 = vmatpush3.msk.msra.mxu0 %vm19472_vm14, %v19492_v36  ;;  %vm19478_vm14 = vcmp.eq.s32.totalorder %v13348_v41, %v15628_v1 }
 0x165   :  { %11964 = vmatprep.subr.msk.mxu0 %vm19473_vm12, %v19492_v36  ;;  %vm19479_vm12 = vcmp.eq.s32.totalorder %v13804_v57, %v15628_v1 }
 0x166   :  { %11965 = vmatpush3.msk.msra.mxu0 %vm19474_vm1, %v19492_v36  ;;  %vm19480_vm1 = vcmp.eq.s32.totalorder %v13375_v42, %v15628_v1 }
 0x167   :  { %11966 = vmatprep.subr.msk.mxu0 %vm19475_vm6, %v19492_v36  ;;  %vm19481_vm6 = vcmp.eq.s32.totalorder %v13831_v58, %v15628_v1 }
 0x168   :  { %11967 = vmatpush3.msk.msra.mxu0 %vm19476_vm4, %v19492_v36  ;;  %vm19482_vm4 = vcmp.eq.s32.totalorder %v13402_v43, %v15628_v1 }
 0x169   :  { %11968 = vmatprep.subr.msk.mxu0 %vm19477_vm2, %v19492_v36  ;;  %vm19483_vm2 = vcmp.eq.s32.totalorder %v13858_v59, %v15628_v1 }
 0x16a   :  { %11969 = vmatpush3.msk.msra.mxu0 %vm19478_vm14, %v19492_v36  ;;  %vm19484_vm14 = vcmp.eq.s32.totalorder %v13429_v44, %v15628_v1 }
 0x16b   :  { %11970 = vmatprep.subr.msk.mxu0 %vm19479_vm12, %v19492_v36  ;;  %vm19485_vm12 = vcmp.eq.s32.totalorder %v13885_v60, %v15628_v1 }
 0x16c   :  { %11971 = vmatpush3.msk.msra.mxu0 %vm19480_vm1, %v19492_v36  ;;  %vm19486_vm1 = vcmp.eq.s32.totalorder %v13456_v45, %v15628_v1 }
 0x16d   :  { %11972 = vmatprep.subr.msk.mxu0 %vm19481_vm6, %v19492_v36  ;;  %vm19487_vm6 = vcmp.eq.s32.totalorder %v13961_v61, %v15628_v1 }
 0x16e   :  { %11973 = vmatpush3.msk.msra.mxu0 %vm19482_vm4, %v19492_v36  ;;  %vm19488_vm4 = vcmp.eq.s32.totalorder %v13483_v46, %v15628_v1 }
 0x16f   :  { %11974 = vmatprep.subr.msk.mxu0 %vm19483_vm2, %v19492_v36  ;;  %vm624_vm2 = vcmp.eq.s32.totalorder %v13980_v62, %v15628_v1 }
 0x170   :  { %11975 = vmatpush3.msk.msra.mxu0 %vm19484_vm14, %v19492_v36  ;;  %vm19489_vm14 = vcmp.eq.s32.totalorder %v13510_v47, %v15628_v1 }
 0x171   :  { %11976 = vmatprep.subr.msk.mxu0 %vm19485_vm12, %v19492_v36  ;;  %vm611_vm12 = vcmp.eq.s32.totalorder %v14007_v63, %v15628_v1 }
 0x172   :  { %11977 = vmatpush3.msk.msra.mxu0 %vm19486_vm1, %v19492_v36  ;;  %vm403_vm1 = vcmp.eq.s32.totalorder %v13537_v48, %v15628_v1 }
 0x173   :  { %11978 = vmatprep.subr.msk.mxu0 %vm19487_vm6, %v19492_v36  ;;  %vm598_vm6 = vcmp.eq.s32.totalorder %v14034_v0, %v15628_v1 }
 0x174   :  { %11979 = vmatpush3.msk.msra.mxu0 %vm19488_vm4, %v19492_v36  ;;  %vm390_vm4 = vcmp.eq.s32.totalorder %v13151_v12, %v15628_v1 }
 0x175   :  { %11980 = vmatprep.subr.msk.mxu0 %vm624_vm2, %v19492_v36 }
 0x176   :  { %11981 = vmatpush3.msk.msra.mxu0 %vm19489_vm14, %v19492_v36  ;;  %vm1710_vm14 = vcmask 64512  }
 0x177   :  { %11982 = vmatprep.subr.msk.mxu0 %vm611_vm12, %v19492_v36  ;;  %12332 = vmatprep.mubr.msk.f32.mxu1 %vm1710_vm14, %v243_v6  ;;  %v262_v6 = vld [vmem:[%s19079_s4 + $0xa8] sm:$0xff] }
 0x178   :  { %11983 = vmatpush3.msk.msra.mxu0 %vm403_vm1, %v19492_v36 }
 0x179   :  { %11984 = vmatprep.subr.msk.mxu0 %vm598_vm6, %v19492_v36 }
 0x17a   :  { %11985 = vmatpush3.msk.msra.mxu0 %vm390_vm4, %v19492_v36 }
 0x17b   :  { %1701 = vmatmul.mubr.f32.vlgmr.msra.gmra.mxu0 %v14116_v20  ;;  %v261_v20 = vld [vmem:[%s19079_s4 + $0xa0] sm:$0xff] }
 0x17c   :  { %12372 = vmatprep.mubr.msk.f32.mxu0 %vm1710_vm14, %v257_v2 }
 0x197   :  { %v1276_v9 = vpop.f32.mrf.mxu0  ;;  %v15886_v10 = vpop.f32.mrf.mxu1 }
 0x198   :  { %1707 = vrot.lane.b32.xlu0 %v1276_v9, %s13038_s14 }
 0x199   :  { %v1278_v11 = vpop.f32.mrf.mxu0  ;;  %v15890_v13 = vpop.f32.mrf.mxu1 }
 0x19a   :  { %1957 = vrot.lane.b32.xlu1 %v1278_v11, %s13038_s14 }
 0x19c   :  { %2297 = vrot.lane.b32.xlu0 %v15890_v13, %s13038_s14 }
 0x19e   :  { %2127 = vrot.lane.b32.xlu1 %v15886_v10, %s13038_s14 }
 0x1d8   :  { %v1418_v16 = vpop.f32.mrf.mxu0  ;;  %v1489_v24 = vpop.f32.mrf.mxu1 }
 0x1d9   :  { %2467 = vrot.lane.b32.xlu1 %v1418_v16, %s13038_s14  ;;  %12370 = vmatprep.subr.mxu0 %v1418_v16 }
 0x1da   :  { %v1420_v2 = vpop.f32.mrf.mxu0  ;;  %12371 = vmatpush3.msra.mxu0 %v1418_v16  ;;  %v1491_v36 = vpop.f32.mrf.mxu1  ;;  %v266_v16 = vld [vmem:[%s19079_s4 + $0xc8] sm:$0xff] }
 0x1db   :  { %12373 = vmatmul.mubr.msk.f32.vlgmr.msra.gmra.mxu0 %vm1710_vm14, %v258_v17  ;;  %2637 = vrot.lane.b32.xlu0 %v1420_v2, %s13038_s14  ;;  %v269_v17 = vld [vmem:[%s19079_s4 + $0xe0] sm:$0xff] }
 0x1dc   :  { %12380 = vmatprep.subr.mxu0 %v1420_v2  ;;  %12382 = vmatprep.mubr.msk.f32.mxu0 %vm1710_vm14, %v261_v20  ;;  %v270_v20 = vld [vmem:[%s19079_s4 + $0xe8] sm:$0xff] }
 0x1dd   :  { %12381 = vmatpush3.msra.mxu0 %v1420_v2  ;;  %2807 = vrot.lane.b32.xlu1 %v1489_v24, %s13038_s14  ;;  %v244_v2 = vld [vmem:[%s19079_s4 + $0x18] sm:$0xff] }
 0x1de   :  { %12390 = vmatprep.subr.mxu0 %v1489_v24 }
 0x1df   :  { %2977 = vrot.lane.b32.xlu0 %v1491_v36, %s13038_s14  ;;  %12383 = vmatmul.mubr.msk.f32.vlgmr.msra.gmra.mxu0 %vm1710_vm14, %v262_v6  ;;  %v242_v6 = vld [vmem:[%s19079_s4 + $0x8] sm:$0xff] }
 0x1e0   :  { %12391 = vmatpush3.msra.mxu0 %v1489_v24  ;;  %12392 = vmatprep.mubr.msk.f32.mxu0 %vm1710_vm14, %v265_v31  ;;  %v273_v31 = vld [vmem:[%s19079_s4 + $0x100] sm:$0xff] }
 0x1e1   :  { %12400 = vmatprep.subr.mxu0 %v1491_v36 }
 0x1e3   :  { %12393 = vmatmul.mubr.msk.f32.vlgmr.msra.gmra.mxu0 %vm1710_vm14, %v266_v16  ;;  %v245_v16 = vld [vmem:[%s19079_s4 + $0x20] sm:$0xff] }
 0x1e4   :  { %12401 = vmatpush3.msra.mxu0 %v1491_v36  ;;  %12402 = vmatprep.mubr.msk.f32.mxu0 %vm1710_vm14, %v269_v17  ;;  %v241_v36 = vld [vmem:[%s19079_s4] sm:$0xff] }
 0x1e7   :  { %12403 = vmatmul.mubr.msk.f32.vlgmr.msra.gmra.mxu0 %vm1710_vm14, %v270_v20  ;;  %v247_v20 = vld [vmem:[%s19079_s4 + $0x30] sm:$0xff] }
 0x1e8   :  { %12412 = vmatprep.mubr.msk.f32.mxu0 %vm1710_vm14, %v273_v31  ;;  %v249_v31 = vld [vmem:[%s19079_s4 + $0x40] sm:$0xff] }
 0x20a   :  { %v1708_v24 = vpop.permute.xlu0 %1707 }
 0x20b   :  { %12330 = vmatprep.subr.mxu1 %v1708_v24 }
 0x20c   :  { %12331 = vmatpush3.msra.mxu1 %v1708_v24  ;;  %v1958_v17 = vpop.permute.xlu1 %1957 }
 0x20d   :  { %12333 = vmatmul.mubr.msk.f32.vlgmr.msra.gmra.mxu1 %vm1710_vm14, %v244_v2  ;;  %12335 = vmatprep.subr.mxu1 %v1276_v9  ;;  %v274_v2 = vld [vmem:[%s19079_s4 + $0x108] sm:$0xff] }
 0x20e   :  { %12336 = vmatpush3.msra.mxu1 %v1276_v9  ;;  %12337 = vmatprep.mubr.msk.f32.mxu1 %vm1710_vm14, %v241_v36  ;;  %v246_v9 = vld [vmem:[%s19079_s4 + $0x28] sm:$0xff] }
 0x20f   :  { %12340 = vmatprep.subr.mxu1 %v1278_v11 }
 0x210   :  { %v2128_v36 = vpop.permute.xlu1 %2127 }
 0x211   :  { %12338 = vmatmul.mubr.msk.f32.vlgmr.msra.gmra.mxu1 %vm1710_vm14, %v242_v6  ;;  %v277_v6 = vld [vmem:[%s19079_s4 + $0x120] sm:$0xff] }
 0x212   :  { %12341 = vmatpush3.msra.mxu1 %v1278_v11  ;;  %12342 = vmatprep.mubr.msk.f32.mxu1 %vm1710_vm14, %v245_v16  ;;  %v248_v11 = vld [vmem:[%s19079_s4 + $0x38] sm:$0xff] }
 0x213   :  { %12345 = vmatprep.subr.mxu1 %v1958_v17 }
 0x215   :  { %12343 = vmatmul.mubr.msk.f32.vlgmr.msra.gmra.mxu1 %vm1710_vm14, %v246_v9  ;;  %v278_v9 = vld [vmem:[%s19079_s4 + $0x128] sm:$0xff] }
 0x216   :  { %12346 = vmatpush3.msra.mxu1 %v1958_v17  ;;  %12347 = vmatprep.mubr.msk.f32.mxu1 %vm1710_vm14, %v247_v20 }
 0x217   :  { %12350 = vmatprep.subr.mxu1 %v15886_v10 }
 0x219   :  { %12348 = vmatmul.mubr.msk.f32.vlgmr.msra.gmra.mxu1 %vm1710_vm14, %v248_v11  ;;  %v251_v11 = vld [vmem:[%s19079_s4 + $0x50] sm:$0xff] }
 0x21a   :  { %v1560_v24 = vpop.f32.mrf.mxu0  ;;  %12351 = vmatpush3.msra.mxu1 %v15886_v10  ;;  %12352 = vmatprep.mubr.msk.f32.mxu1 %vm1710_vm14, %v249_v31  ;;  %v1631_v16 = vpop.f32.mrf.mxu1  ;;  %v250_v10 = vld [vmem:[%s19079_s4 + $0x48] sm:$0xff]  ;;  %v281_v31 = vld [vmem:[%s19079_s4 + $0x140] sm:$0xff] }
 0x21b   :  { %3147 = vrot.lane.b32.xlu1 %v1560_v24, %s13038_s14  ;;  %12410 = vmatprep.subr.mxu0 %v1560_v24 }
 0x21c   :  { %v1562_v17 = vpop.f32.mrf.mxu0  ;;  %12411 = vmatpush3.msra.mxu0 %v1560_v24  ;;  %12355 = vmatprep.subr.mxu1 %v2128_v36  ;;  %v1633_v20 = vpop.f32.mrf.mxu1  ;;  %v252_v24 = vld [vmem:[%s19079_s4 + $0x58] sm:$0xff] }
 0x21d   :  { %12413 = vmatmul.mubr.msk.f32.vlgmr.msra.gmra.mxu0 %vm1710_vm14, %v274_v2  ;;  %3317 = vrot.lane.b32.xlu0 %v1562_v17, %s13038_s14  ;;  %v282_v2 = vld [vmem:[%s19079_s4 + $0x148] sm:$0xff] }
 0x21e   :  { %12420 = vmatprep.subr.mxu0 %v1562_v17  ;;  %12422 = vmatprep.mubr.msk.f32.mxu0 %vm1710_vm14, %v277_v6  ;;  %v285_v6 = vld [vmem:[%s19079_s4 + $0x160] sm:$0xff] }
 0x21f   :  { %12421 = vmatpush3.msra.mxu0 %v1562_v17  ;;  %3487 = vrot.lane.b32.xlu1 %v1631_v16, %s13038_s14  ;;  %v254_v17 = vld [vmem:[%s19079_s4 + $0x68] sm:$0xff] }
 0x220   :  { %12430 = vmatprep.subr.mxu0 %v1631_v16  ;;  %12353 = vmatmul.mubr.msk.f32.vlgmr.msra.gmra.mxu1 %vm1710_vm14, %v250_v10  ;;  %v286_v10 = vld [vmem:[%s19079_s4 + $0x168] sm:$0xff] }
 0x221   :  { %12356 = vmatpush3.msra.mxu1 %v2128_v36  ;;  %3657 = vrot.lane.b32.xlu0 %v1633_v20, %s13038_s14  ;;  %v253_v36 = vld [vmem:[%s19079_s4 + $0x60] sm:$0xff] }
 0x222   :  { %12423 = vmatmul.mubr.msk.f32.vlgmr.msra.gmra.mxu0 %vm1710_vm14, %v278_v9  ;;  %12360 = vmatprep.subr.mxu1 %v15890_v13  ;;  %v255_v9 = vld [vmem:[%s19079_s4 + $0x70] sm:$0xff] }
 0x223   :  { %12431 = vmatpush3.msra.mxu0 %v1631_v16  ;;  %12357 = vmatprep.mubr.msk.f32.mxu1 %vm1710_vm14, %v251_v11  ;;  %v2298_v16 = vpop.permute.xlu0 %2297  ;;  %v259_v11 = vld [vmem:[%s19079_s4 + $0x90] sm:$0xff] }
 0x224   :  { %12440 = vmatprep.subr.mxu0 %v1633_v20  ;;  %12432 = vmatprep.mubr.msk.f32.mxu0 %vm1710_vm14, %v281_v31  ;;  %v229_v31 = vadd.f32 %v15884_v8, %v14100_v5 }
 0x225   :  { %12358 = vmatmul.mubr.msk.f32.vlgmr.msra.gmra.mxu1 %vm1710_vm14, %v252_v24 }
 0x226   :  { %12361 = vmatpush3.msra.mxu1 %v15890_v13  ;;  %12433 = vmatmul.mubr.msk.f32.vlgmr.msra.gmra.mxu0 %vm1710_vm14, %v282_v2  ;;  %v289_v13 = vld [vmem:[%s19079_s4 + $0x180] sm:$0xff]  ;;  %v234_v2 = vmul.f32 0.2, %v229_v31 }
 0x227   :  { %12441 = vmatpush3.msra.mxu0 %v1633_v20  ;;  %12365 = vmatprep.subr.mxu1 %v2298_v16  ;;  %v256_v20 = vld [vmem:[%s19079_s4 + $0x78] sm:$0xff] }
 0x228   :  { %12362 = vmatprep.mubr.msk.f32.mxu1 %vm1710_vm14, %v253_v36  ;;  %12442 = vmatprep.mubr.msk.f32.mxu0 %vm1710_vm14, %v285_v6 }
 0x229   :  { %12363 = vmatmul.mubr.msk.f32.vlgmr.msra.gmra.mxu1 %vm1710_vm14, %v254_v17  ;;  %v16041_v17 = vmax.f32 %v229_v31, %v234_v2  ;;  %v264_v31 = vld [vmem:[%s19079_s4 + $0xb8] sm:$0xff]  ;;  %v267_v2 = vld [vmem:[%s19079_s4 + $0xd0] sm:$0xff] }
 0x22a   :  { %12366 = vmatpush3.msra.mxu1 %v2298_v16  ;;  %12443 = vmatmul.mubr.msk.f32.vlgmr.msra.gmra.mxu0 %vm1710_vm14, %v286_v10  ;;  %v290_v16 = vld [vmem:[%s19079_s4 + $0x188] sm:$0xff]  ;;  %v19513_v10 = vmov 1.0  }
 0x22b   :  { %12452 = vmatprep.mubr.msk.f32.mxu0 %vm1710_vm14, %v289_v13  ;;  %12367 = vmatprep.mubr.msk.f32.mxu1 %vm1710_vm14, %v255_v9  ;;  %v260_v13 = vld [vmem:[%s19079_s4 + $0x98] sm:$0xff] }
 0x22d   :  { %12368 = vmatmul.mubr.msk.f32.vlgmr.msra.gmra.mxu1 %vm1710_vm14, %v256_v20 }
 0x22e   :  { %12377 = vmatprep.mubr.msk.f32.mxu1 %vm1710_vm14, %v259_v11  ;;  %v263_v11 = vld [vmem:[%s19079_s4 + $0xb0] sm:$0xff] }
 0x23b   :  { %v11986_v24 = vpop.f32.mrf.mxu0 }
 0x23d   :  { %v11987_v36 = vpop.f32.mrf.mxu0 }
 0x23e   :  { %v11988_v6 = vadd.f32 %v11987_v36, %v11986_v24  ;;  %v268_v36 = vld [vmem:[%s19079_s4 + $0xd8] sm:$0xff] }
 0x240   :  { %12450 = vmatprep.subr.mxu0 %v11988_v6 }
 0x241   :  { %12451 = vmatpush3.msra.mxu0 %v11988_v6  ;;  %v271_v6 = vld [vmem:[%s19079_s4 + $0xf0] sm:$0xff] }
 0x242   :  { %12453 = vmatmul.mubr.msk.f32.vlgmr.msra.gmra.mxu0 %vm1710_vm14, %v290_v16  ;;  %11428 = vmatprep.subr.msk.mxu0 %vm576_vm3, %v19513_v10  ;;  %vm19514_vm3 = vcmp.eq.s32.totalorder %v13244_v37, %v13215_v32  ;;  %v272_v16 = vld [vmem:[%s19079_s4 + $0xf8] sm:$0xff] }
 0x243   :  { %11429 = vmatpush1.msk.msra.mxu0 %vm575_vm5, %v19513_v10  ;;  %3973 = vmatprep.mubr.f32.mxu0 %v16041_v17  ;;  %vm19515_vm5 = vcmp.eq.s32.totalorder %v13267_v38, %v13203_v28 }
 0x244   :  { %11430 = vmatprep.subr.msk.mxu0 %vm563_vm7, %v19513_v10  ;;  %vm19516_vm7 = vcmp.eq.s32.totalorder %v13267_v38, %v13215_v32 }
 0x245   :  { %11431 = vmatpush1.msk.msra.mxu0 %vm562_vm9, %v19513_v10  ;;  %vm19517_vm9 = vcmp.eq.s32.totalorder %v13294_v39, %v13203_v28 }
 0x246   :  { %11432 = vmatprep.subr.msk.mxu0 %vm550_vm11, %v19513_v10  ;;  %vm19518_vm11 = vcmp.eq.s32.totalorder %v13294_v39, %v13215_v32 }
 0x247   :  { %11433 = vmatpush1.msk.msra.mxu0 %vm549_vm13, %v19513_v10  ;;  %vm19519_vm13 = vcmp.eq.s32.totalorder %v13321_v40, %v13203_v28 }
 0x248   :  { %11434 = vmatprep.subr.msk.mxu0 %vm537_vm15, %v19513_v10  ;;  %vm19520_vm15 = vcmp.eq.s32.totalorder %v13321_v40, %v13215_v32 }
 0x249   :  { %11435 = vmatpush1.msk.msra.mxu0 %vm19514_vm3, %v19513_v10  ;;  %vm19521_vm3 = vcmp.eq.s32.totalorder %v13348_v41, %v13203_v28 }
 0x24a   :  { %11436 = vmatprep.subr.msk.mxu0 %vm19515_vm5, %v19513_v10  ;;  %vm19522_vm5 = vcmp.eq.s32.totalorder %v13348_v41, %v13215_v32 }
 0x24b   :  { %11437 = vmatpush1.msk.msra.mxu0 %vm19516_vm7, %v19513_v10  ;;  %v2468_v8 = vpop.permute.xlu1 %2467  ;;  %vm19523_vm7 = vcmp.eq.s32.totalorder %v13375_v42, %v13203_v28 }
 0x24c   :  { %11438 = vmatprep.subr.msk.mxu0 %vm19517_vm9, %v19513_v10  ;;  %12375 = vmatprep.subr.mxu1 %v2468_v8  ;;  %vm19524_vm9 = vcmp.eq.s32.totalorder %v13375_v42, %v13215_v32 }
 0x24d   :  { %11439 = vmatpush1.msk.msra.mxu0 %vm19518_vm11, %v19513_v10  ;;  %12376 = vmatpush3.msra.mxu1 %v2468_v8  ;;  %v2638_v9 = vpop.permute.xlu0 %2637  ;;  %vm19525_vm11 = vcmp.eq.s32.totalorder %v13402_v43, %v13203_v28  ;;  %v275_v8 = vld [vmem:[%s19079_s4 + $0x110] sm:$0xff] }
 0x24e   :  { %11440 = vmatprep.subr.msk.mxu0 %vm19519_vm13, %v19513_v10  ;;  %12378 = vmatmul.mubr.msk.f32.vlgmr.msra.gmra.mxu1 %vm1710_vm14, %v260_v13  ;;  %vm19526_vm13 = vcmp.eq.s32.totalorder %v13402_v43, %v13215_v32  ;;  %v227_v13 = vadd.f32 %v15882_v7, %v14100_v5 }
 0x24f   :  { %11441 = vmatpush1.msk.msra.mxu0 %vm19520_vm15, %v19513_v10  ;;  %12385 = vmatprep.subr.mxu1 %v2638_v9  ;;  %v2808_v20 = vpop.permute.xlu1 %2807  ;;  %vm19527_vm15 = vcmp.eq.s32.totalorder %v13429_v44, %v13203_v28 }
 0x250   :  { %11442 = vmatprep.subr.msk.mxu0 %vm19521_vm3, %v19513_v10  ;;  %12386 = vmatpush3.msra.mxu1 %v2638_v9  ;;  %vm19528_vm3 = vcmp.eq.s32.totalorder %v13429_v44, %v13215_v32  ;;  %v233_v5 = vmul.f32 0.2, %v227_v13 }
 0x251   :  { %11443 = vmatpush1.msk.msra.mxu0 %vm19522_vm5, %v19513_v10  ;;  %12395 = vmatprep.subr.mxu1 %v2808_v20  ;;  %v2978_v24 = vpop.permute.xlu0 %2977  ;;  %vm19529_vm5 = vcmp.eq.s32.totalorder %v13456_v45, %v13203_v28 }
 0x252   :  { %11444 = vmatprep.subr.msk.mxu0 %vm19523_vm7, %v19513_v10  ;;  %12387 = vmatprep.mubr.msk.f32.mxu1 %vm1710_vm14, %v263_v11  ;;  %vm19530_vm7 = vcmp.eq.s32.totalorder %v13456_v45, %v13215_v32  ;;  %v16327_v7 = vmax.f32 %v227_v13, %v233_v5  ;;  %v279_v11 = vld [vmem:[%s19079_s4 + $0x130] sm:$0xff] }
 0x253   :  { %11445 = vmatpush1.msk.msra.mxu0 %vm19524_vm9, %v19513_v10  ;;  %12388 = vmatmul.mubr.msk.f32.vlgmr.msra.gmra.mxu1 %vm1710_vm14, %v264_v31  ;;  %vm19531_vm9 = vcmp.eq.s32.totalorder %v13483_v46, %v13203_v28  ;;  %v280_v31 = vld [vmem:[%s19079_s4 + $0x138] sm:$0xff] }
 0x254   :  { %11446 = vmatprep.subr.msk.mxu0 %vm19525_vm11, %v19513_v10  ;;  %12396 = vmatpush3.msra.mxu1 %v2808_v20  ;;  %vm19532_vm11 = vcmp.eq.s32.totalorder %v13483_v46, %v13215_v32 }
 0x255   :  { %11447 = vmatpush1.msk.msra.mxu0 %vm19526_vm13, %v19513_v10  ;;  %12405 = vmatprep.subr.mxu1 %v2978_v24  ;;  %vm19533_vm13 = vcmp.eq.s32.totalorder %v13510_v47, %v13203_v28 }
 0x256   :  { %11448 = vmatprep.subr.msk.mxu0 %vm19527_vm15, %v19513_v10  ;;  %12397 = vmatprep.mubr.msk.f32.mxu1 %vm1710_vm14, %v267_v2  ;;  %vm19534_vm15 = vcmp.eq.s32.totalorder %v13510_v47, %v13215_v32  ;;  %v283_v2 = vld [vmem:[%s19079_s4 + $0x150] sm:$0xff] }
 0x257   :  { %11449 = vmatpush1.msk.msra.mxu0 %vm19528_vm3, %v19513_v10  ;;  %12398 = vmatmul.mubr.msk.f32.vlgmr.msra.gmra.mxu1 %vm1710_vm14, %v268_v36  ;;  %vm19535_vm3 = vcmp.eq.s32.totalorder %v13537_v48, %v13203_v28  ;;  %v284_v36 = vld [vmem:[%s19079_s4 + $0x158] sm:$0xff] }
 0x258   :  { %11450 = vmatprep.subr.msk.mxu0 %vm19529_vm5, %v19513_v10  ;;  %12406 = vmatpush3.msra.mxu1 %v2978_v24  ;;  %vm19536_vm5 = vcmp.eq.s32.totalorder %v13537_v48, %v13215_v32 }
 0x259   :  { %11451 = vmatpush1.msk.msra.mxu0 %vm19530_vm7, %v19513_v10  ;;  %12407 = vmatprep.mubr.msk.f32.mxu1 %vm1710_vm14, %v271_v6  ;;  %vm19537_vm7 = vcmp.eq.s32.totalorder %v13151_v12, %v13203_v28  ;;  %v287_v6 = vld [vmem:[%s19079_s4 + $0x170] sm:$0xff] }
 0x25a   :  { %11452 = vmatprep.subr.msk.mxu0 %vm19531_vm9, %v19513_v10  ;;  %vm19538_vm9 = vcmp.eq.s32.totalorder %v13151_v12, %v13215_v32 }
 0x25b   :  { %11453 = vmatpush1.msk.msra.mxu0 %vm19532_vm11, %v19513_v10  ;;  %12408 = vmatmul.mubr.msk.f32.vlgmr.msra.gmra.mxu1 %vm1710_vm14, %v272_v16  ;;  %vm19539_vm11 = vcmp.eq.s32.totalorder %v13588_v49, %v13203_v28  ;;  %v288_v16 = vld [vmem:[%s19079_s4 + $0x178] sm:$0xff] }
 0x25c   :  { %11454 = vmatprep.subr.msk.mxu0 %vm19533_vm13, %v19513_v10  ;;  %12417 = vmatprep.mubr.msk.f32.mxu1 %vm1710_vm14, %v275_v8  ;;  %vm19540_vm13 = vcmp.eq.s32.totalorder %v13588_v49, %v13215_v32 }
 0x25d   :  { %11455 = vmatpush1.msk.msra.mxu0 %vm19534_vm15, %v19513_v10  ;;  %vm19541_vm15 = vcmp.eq.s32.totalorder %v13615_v50, %v13203_v28 }
 0x25e   :  { %11456 = vmatprep.subr.msk.mxu0 %vm19535_vm3, %v19513_v10  ;;  %vm19542_vm3 = vcmp.eq.s32.totalorder %v13615_v50, %v13215_v32 }
 0x25f   :  { %11457 = vmatpush1.msk.msra.mxu0 %vm19536_vm5, %v19513_v10  ;;  %vm19543_vm5 = vcmp.eq.s32.totalorder %v13642_v51, %v13203_v28 }
 0x260   :  { %11458 = vmatprep.subr.msk.mxu0 %vm19537_vm7, %v19513_v10  ;;  %vm19544_vm7 = vcmp.eq.s32.totalorder %v13642_v51, %v13215_v32 }
 0x261   :  { %11459 = vmatpush1.msk.msra.mxu0 %vm19538_vm9, %v19513_v10  ;;  %vm19545_vm9 = vcmp.eq.s32.totalorder %v13669_v52, %v13203_v28 }
 0x262   :  { %11460 = vmatprep.subr.msk.mxu0 %vm19539_vm11, %v19513_v10  ;;  %vm19546_vm11 = vcmp.eq.s32.totalorder %v13669_v52, %v13215_v32 }
 0x263   :  { %11461 = vmatpush2.msk.msra.mxu0 %vm19540_vm13, %v19513_v10  ;;  %vm19547_vm13 = vcmp.eq.s32.totalorder %v13696_v53, %v13203_v28 }
 0x264   :  { %11462 = vmatprep.subr.msk.mxu0 %vm19541_vm15, %v19513_v10  ;;  %vm19548_vm15 = vcmp.eq.s32.totalorder %v13696_v53, %v13215_v32 }
 0x265   :  { %11463 = vmatpush2.msk.msra.mxu0 %vm19542_vm3, %v19513_v10  ;;  %vm19549_vm3 = vcmp.eq.s32.totalorder %v13723_v54, %v13203_v28 }
 0x266   :  { %11464 = vmatprep.subr.msk.mxu0 %vm19543_vm5, %v19513_v10  ;;  %vm19550_vm5 = vcmp.eq.s32.totalorder %v13723_v54, %v13215_v32 }
 0x267   :  { %11465 = vmatpush2.msk.msra.mxu0 %vm19544_vm7, %v19513_v10  ;;  %vm19551_vm7 = vcmp.eq.s32.totalorder %v13750_v55, %v13203_v28 }
 0x268   :  { %11466 = vmatprep.subr.msk.mxu0 %vm19545_vm9, %v19513_v10  ;;  %vm19552_vm9 = vcmp.eq.s32.totalorder %v13750_v55, %v13215_v32 }
 0x269   :  { %11467 = vmatpush2.msk.msra.mxu0 %vm19546_vm11, %v19513_v10  ;;  %vm19553_vm11 = vcmp.eq.s32.totalorder %v13777_v56, %v13203_v28 }
 0x26a   :  { %11468 = vmatprep.subr.msk.mxu0 %vm19547_vm13, %v19513_v10  ;;  %vm19554_vm13 = vcmp.eq.s32.totalorder %v13777_v56, %v13215_v32 }
 0x26b   :  { %11469 = vmatpush2.msk.msra.mxu0 %vm19548_vm15, %v19513_v10  ;;  %vm19555_vm15 = vcmp.eq.s32.totalorder %v13804_v57, %v13203_v28 }
 0x26c   :  { %11470 = vmatprep.subr.msk.mxu0 %vm19549_vm3, %v19513_v10  ;;  %vm19556_vm3 = vcmp.eq.s32.totalorder %v13804_v57, %v13215_v32 }
 0x26d   :  { %11471 = vmatpush2.msk.msra.mxu0 %vm19550_vm5, %v19513_v10  ;;  %vm19557_vm5 = vcmp.eq.s32.totalorder %v13831_v58, %v13203_v28 }
 0x26e   :  { %11472 = vmatprep.subr.msk.mxu0 %vm19551_vm7, %v19513_v10  ;;  %vm19558_vm7 = vcmp.eq.s32.totalorder %v13831_v58, %v13215_v32 }
 0x26f   :  { %11473 = vmatpush2.msk.msra.mxu0 %vm19552_vm9, %v19513_v10  ;;  %vm19559_vm9 = vcmp.eq.s32.totalorder %v13858_v59, %v13203_v28 }
 0x270   :  { %11474 = vmatprep.subr.msk.mxu0 %vm19553_vm11, %v19513_v10  ;;  %vm19560_vm11 = vcmp.eq.s32.totalorder %v13858_v59, %v13215_v32 }
 0x271   :  { %11475 = vmatpush2.msk.msra.mxu0 %vm19554_vm13, %v19513_v10  ;;  %vm19561_vm13 = vcmp.eq.s32.totalorder %v13885_v60, %v13203_v28 }
 0x272   :  { %11476 = vmatprep.subr.msk.mxu0 %vm19555_vm15, %v19513_v10  ;;  %vm19562_vm15 = vcmp.eq.s32.totalorder %v13885_v60, %v13215_v32 }
 0x273   :  { %11477 = vmatpush2.msk.msra.mxu0 %vm19556_vm3, %v19513_v10  ;;  %vm19563_vm3 = vcmp.eq.s32.totalorder %v13961_v61, %v13203_v28 }
 0x274   :  { %11478 = vmatprep.subr.msk.mxu0 %vm19557_vm5, %v19513_v10  ;;  %vm19564_vm5 = vcmp.eq.s32.totalorder %v13961_v61, %v13215_v32 }
 0x275   :  { %11479 = vmatpush2.msk.msra.mxu0 %vm19558_vm7, %v19513_v10  ;;  %vm19565_vm7 = vcmp.eq.s32.totalorder %v13980_v62, %v13203_v28 }
 0x276   :  { %11480 = vmatprep.subr.msk.mxu0 %vm19559_vm9, %v19513_v10  ;;  %vm19566_vm9 = vcmp.eq.s32.totalorder %v13980_v62, %v13215_v32 }
 0x277   :  { %11481 = vmatpush2.msk.msra.mxu0 %vm19560_vm11, %v19513_v10  ;;  %vm19567_vm11 = vcmp.eq.s32.totalorder %v14007_v63, %v13203_v28 }
 0x278   :  { %11482 = vmatprep.subr.msk.mxu0 %vm19561_vm13, %v19513_v10  ;;  %vm19568_vm13 = vcmp.eq.s32.totalorder %v14007_v63, %v13215_v32 }
 0x279   :  { %11483 = vmatpush2.msk.msra.mxu0 %vm19562_vm15, %v19513_v10  ;;  %vm19569_vm15 = vcmp.eq.s32.totalorder %v14034_v0, %v13203_v28 }
 0x27a   :  { %11484 = vmatprep.subr.msk.mxu0 %vm19563_vm3, %v19513_v10  ;;  %vm19570_vm3 = vcmp.eq.s32.totalorder %v14034_v0, %v13215_v32  ;;  %v276_v32 = vld [vmem:[%s19079_s4 + $0x118] sm:$0xff] }
 0x27b   :  { %11485 = vmatpush2.msk.msra.mxu0 %vm19564_vm5, %v19513_v10  ;;  %vm19571_vm5 = vcmp.eq.s32.totalorder %v13178_v21, %v14078_v4 }
 0x27c   :  { %11486 = vmatprep.subr.msk.mxu0 %vm19565_vm7, %v19513_v10  ;;  %vm19572_vm7 = vcmp.eq.s32.totalorder %v13178_v21, %v14112_v15 }
 0x27d   :  { %11487 = vmatpush2.msk.msra.mxu0 %vm19566_vm9, %v19513_v10  ;;  %vm19573_vm9 = vcmp.eq.s32.totalorder %v13210_v30, %v14078_v4 }
 0x27e   :  { %11488 = vmatprep.subr.msk.mxu0 %vm19567_vm11, %v19513_v10  ;;  %vm19574_vm11 = vcmp.eq.s32.totalorder %v13210_v30, %v14112_v15 }
 0x27f   :  { %11489 = vmatpush2.msk.msra.mxu0 %vm19568_vm13, %v19513_v10  ;;  %vm19575_vm13 = vcmp.eq.s32.totalorder %v13226_v34, %v14078_v4 }
 0x280   :  { %11490 = vmatprep.subr.msk.mxu0 %vm19569_vm15, %v19513_v10  ;;  %vm19576_vm15 = vcmp.eq.s32.totalorder %v13226_v34, %v14112_v15 }
 0x281   :  { %11491 = vmatpush2.msk.msra.mxu0 %vm19570_vm3, %v19513_v10  ;;  %vm19577_vm3 = vcmp.eq.s32.totalorder %v13244_v37, %v14078_v4 }
 0x282   :  { %3974 = vmatmul.mubr.f32.vlgmr.msra.gmra.mxu0 %v16327_v7  ;;  %11556 = vmatprep.subr.msk.mxu0 %vm19571_vm5, %v19513_v10  ;;  %vm19578_vm5 = vcmp.eq.s32.totalorder %v13244_v37, %v14112_v15 }
 0x283   :  { %11557 = vmatpush1.msk.msra.mxu0 %vm19572_vm7, %v19513_v10  ;;  %4115 = vmatprep.mubr.f32.mxu0 %v16041_v17  ;;  %vm19579_vm7 = vcmp.eq.s32.totalorder %v13267_v38, %v14078_v4 }
 0x284   :  { %11558 = vmatprep.subr.msk.mxu0 %vm19573_vm9, %v19513_v10  ;;  %vm19580_vm9 = vcmp.eq.s32.totalorder %v13267_v38, %v14112_v15 }
 0x285   :  { %11559 = vmatpush1.msk.msra.mxu0 %vm19574_vm11, %v19513_v10  ;;  %vm19581_vm11 = vcmp.eq.s32.totalorder %v13294_v39, %v14078_v4 }
 0x286   :  { %11560 = vmatprep.subr.msk.mxu0 %vm19575_vm13, %v19513_v10  ;;  %vm19582_vm13 = vcmp.eq.s32.totalorder %v13294_v39, %v14112_v15 }
 0x287   :  { %11561 = vmatpush1.msk.msra.mxu0 %vm19576_vm15, %v19513_v10  ;;  %vm19583_vm15 = vcmp.eq.s32.totalorder %v13321_v40, %v14078_v4 }
 0x288   :  { %11562 = vmatprep.subr.msk.mxu0 %vm19577_vm3, %v19513_v10  ;;  %vm19584_vm3 = vcmp.eq.s32.totalorder %v13321_v40, %v14112_v15 }
 0x289   :  { %11563 = vmatpush1.msk.msra.mxu0 %vm19578_vm5, %v19513_v10  ;;  %vm19585_vm5 = vcmp.eq.s32.totalorder %v13348_v41, %v14078_v4 }
 0x28a   :  { %11564 = vmatprep.subr.msk.mxu0 %vm19579_vm7, %v19513_v10  ;;  %vm19586_vm7 = vcmp.eq.s32.totalorder %v13348_v41, %v14112_v15 }
 0x28b   :  { %11565 = vmatpush1.msk.msra.mxu0 %vm19580_vm9, %v19513_v10  ;;  %vm19587_vm9 = vcmp.eq.s32.totalorder %v13375_v42, %v14078_v4 }
 0x28c   :  { %11566 = vmatprep.subr.msk.mxu0 %vm19581_vm11, %v19513_v10  ;;  %vm19588_vm11 = vcmp.eq.s32.totalorder %v13375_v42, %v14112_v15 }
 0x28d   :  { %11567 = vmatpush1.msk.msra.mxu0 %vm19582_vm13, %v19513_v10  ;;  %v3148_v28 = vpop.permute.xlu1 %3147  ;;  %vm19589_vm13 = vcmp.eq.s32.totalorder %v13402_v43, %v14078_v4 }
 0x28e   :  { %11568 = vmatprep.subr.msk.mxu0 %vm19583_vm15, %v19513_v10  ;;  %12415 = vmatprep.subr.mxu1 %v3148_v28  ;;  %vm19590_vm15 = vcmp.eq.s32.totalorder %v13402_v43, %v14112_v15 }
 0x28f   :  { %11569 = vmatpush1.msk.msra.mxu0 %vm19584_vm3, %v19513_v10  ;;  %12416 = vmatpush3.msra.mxu1 %v3148_v28  ;;  %v3318_v9 = vpop.permute.xlu0 %3317  ;;  %vm19591_vm3 = vcmp.eq.s32.totalorder %v13429_v44, %v14078_v4 }
 0x290   :  { %11570 = vmatprep.subr.msk.mxu0 %vm19585_vm5, %v19513_v10  ;;  %12418 = vmatmul.mubr.msk.f32.vlgmr.msra.gmra.mxu1 %vm1710_vm14, %v276_v32  ;;  %vm19592_vm5 = vcmp.eq.s32.totalorder %v13429_v44, %v14112_v15 }
 0x291   :  { %12425 = vmatprep.subr.mxu1 %v3318_v9  ;;  %11571 = vmatpush1.msk.msra.mxu0 %vm19586_vm7, %v19513_v10  ;;  %v3488_v20 = vpop.permute.xlu1 %3487  ;;  %vm19593_vm7 = vcmp.eq.s32.totalorder %v13456_v45, %v14078_v4 }
 0x292   :  { %12426 = vmatpush3.msra.mxu1 %v3318_v9  ;;  %11572 = vmatprep.subr.msk.mxu0 %vm19587_vm9, %v19513_v10  ;;  %vm19594_vm9 = vcmp.eq.s32.totalorder %v13456_v45, %v14112_v15 }
 0x293   :  { %12435 = vmatprep.subr.mxu1 %v3488_v20  ;;  %11573 = vmatpush1.msk.msra.mxu0 %vm19588_vm11, %v19513_v10  ;;  %v3658_v24 = vpop.permute.xlu0 %3657  ;;  %vm19595_vm11 = vcmp.eq.s32.totalorder %v13483_v46, %v14078_v4 }
 0x294   :  { %12427 = vmatprep.mubr.msk.f32.mxu1 %vm1710_vm14, %v279_v11  ;;  %11574 = vmatprep.subr.msk.mxu0 %vm19589_vm13, %v19513_v10  ;;  %vm19596_vm13 = vcmp.eq.s32.totalorder %v13483_v46, %v14112_v15 }
 0x295   :  { %12428 = vmatmul.mubr.msk.f32.vlgmr.msra.gmra.mxu1 %vm1710_vm14, %v280_v31  ;;  %11575 = vmatpush1.msk.msra.mxu0 %vm19590_vm15, %v19513_v10  ;;  %vm19597_vm15 = vcmp.eq.s32.totalorder %v13178_v21, %v13199_v27 }
 0x296   :  { %12436 = vmatpush3.msra.mxu1 %v3488_v20  ;;  %11576 = vmatprep.subr.msk.mxu0 %vm19591_vm3, %v19513_v10  ;;  %vm19598_vm3 = vcmp.eq.s32.totalorder %v13510_v47, %v14078_v4 }
 0x297   :  { %12445 = vmatprep.subr.mxu1 %v3658_v24  ;;  %11577 = vmatpush1.msk.msra.mxu0 %vm19592_vm5, %v19513_v10  ;;  %vm19599_vm5 = vcmp.eq.s32.totalorder %v13510_v47, %v14112_v15 }
 0x298   :  { %12437 = vmatprep.mubr.msk.f32.mxu1 %vm1710_vm14, %v283_v2  ;;  %11578 = vmatprep.subr.msk.mxu0 %vm19593_vm7, %v19513_v10  ;;  %vm19600_vm7 = vcmp.eq.s32.totalorder %v13178_v21, %v13207_v29 }
 0x299   :  { %12438 = vmatmul.mubr.msk.f32.vlgmr.msra.gmra.mxu1 %vm1710_vm14, %v284_v36  ;;  %11579 = vmatpush1.msk.msra.mxu0 %vm19594_vm9, %v19513_v10  ;;  %vm19601_vm9 = vcmp.eq.s32.totalorder %v13210_v30, %v13199_v27 }
 0x29a   :  { %12446 = vmatpush3.msra.mxu1 %v3658_v24  ;;  %11580 = vmatprep.subr.msk.mxu0 %vm19595_vm11, %v19513_v10  ;;  %vm19602_vm11 = vcmp.eq.s32.totalorder %v13537_v48, %v14078_v4 }
 0x29b   :  { %11581 = vmatpush1.msk.msra.mxu0 %vm19596_vm13, %v19513_v10  ;;  %12447 = vmatprep.mubr.msk.f32.mxu1 %vm1710_vm14, %v287_v6  ;;  %vm19603_vm13 = vcmp.eq.s32.totalorder %v13210_v30, %v13207_v29 }
 0x29c   :  { %11364 = vmatprep.subr.msk.mxu1 %vm19597_vm15, %v19513_v10  ;;  %11582 = vmatprep.subr.msk.mxu0 %vm19598_vm3, %v19513_v10  ;;  %vm19604_vm15 = vcmp.eq.s32.totalorder %v13537_v48, %v14112_v15  ;;  %vm19605_vm3 = vcmp.eq.s32.totalorder %v13226_v34, %v13199_v27 }
 0x29d   :  { %12448 = vmatmul.mubr.msk.f32.vlgmr.msra.gmra.mxu1 %vm1710_vm14, %v288_v16  ;;  %11583 = vmatpush1.msk.msra.mxu0 %vm19599_vm5, %v19513_v10  ;;  %vm19606_vm5 = vcmp.eq.s32.totalorder %v13151_v12, %v14078_v4 }
 0x29e   :  { %11365 = vmatpush1.msk.msra.mxu1 %vm19600_vm7, %v19513_v10  ;;  %3902 = vmatprep.mubr.f32.mxu1 %v16041_v17  ;;  %vm19607_vm7 = vcmp.eq.s32.totalorder %v13226_v34, %v13207_v29 }
 0x29f   :  { %11366 = vmatprep.subr.msk.mxu1 %vm19601_vm9, %v19513_v10  ;;  %11584 = vmatprep.subr.msk.mxu0 %vm19602_vm11, %v19513_v10  ;;  %vm19608_vm9 = vcmp.eq.s32.totalorder %v13151_v12, %v14112_v15  ;;  %vm19609_vm11 = vcmp.eq.s32.totalorder %v13244_v37, %v13199_v27 }
 0x2a0   :  { %11367 = vmatpush1.msk.msra.mxu1 %vm19603_vm13, %v19513_v10  ;;  %11585 = vmatpush1.msk.msra.mxu0 %vm19604_vm15, %v19513_v10  ;;  %vm19610_vm13 = vcmp.eq.s32.totalorder %v13588_v49, %v14078_v4  ;;  %vm19611_vm15 = vcmp.eq.s32.totalorder %v13244_v37, %v13207_v29 }
 0x2a1   :  { %11368 = vmatprep.subr.msk.mxu1 %vm19605_vm3, %v19513_v10  ;;  %11586 = vmatprep.subr.msk.mxu0 %vm19606_vm5, %v19513_v10  ;;  %vm19612_vm3 = vcmp.eq.s32.totalorder %v13588_v49, %v14112_v15  ;;  %vm19613_vm5 = vcmp.eq.s32.totalorder %v13267_v38, %v13199_v27 }
 0x2a2   :  { %11369 = vmatpush1.msk.msra.mxu1 %vm19607_vm7, %v19513_v10  ;;  %11587 = vmatpush1.msk.msra.mxu0 %vm19608_vm9, %v19513_v10  ;;  %vm19614_vm7 = vcmp.eq.s32.totalorder %v13615_v50, %v14078_v4  ;;  %vm19615_vm9 = vcmp.eq.s32.totalorder %v13267_v38, %v13207_v29 }
 0x2a3   :  { %11370 = vmatprep.subr.msk.mxu1 %vm19609_vm11, %v19513_v10  ;;  %11588 = vmatprep.subr.msk.mxu0 %vm19610_vm13, %v19513_v10  ;;  %vm19616_vm11 = vcmp.eq.s32.totalorder %v13615_v50, %v14112_v15  ;;  %vm19617_vm13 = vcmp.eq.s32.totalorder %v13294_v39, %v13199_v27 }
 0x2a4   :  { %11371 = vmatpush1.msk.msra.mxu1 %vm19611_vm15, %v19513_v10  ;;  %11589 = vmatpush2.msk.msra.mxu0 %vm19612_vm3, %v19513_v10  ;;  %vm19618_vm15 = vcmp.eq.s32.totalorder %v13642_v51, %v14078_v4  ;;  %vm19619_vm3 = vcmp.eq.s32.totalorder %v13294_v39, %v13207_v29 }
 0x2a5   :  { %11372 = vmatprep.subr.msk.mxu1 %vm19613_vm5, %v19513_v10  ;;  %11590 = vmatprep.subr.msk.mxu0 %vm19614_vm7, %v19513_v10  ;;  %vm19620_vm5 = vcmp.eq.s32.totalorder %v13642_v51, %v14112_v15  ;;  %vm19621_vm7 = vcmp.eq.s32.totalorder %v13321_v40, %v13199_v27 }
 0x2a6   :  { %11373 = vmatpush1.msk.msra.mxu1 %vm19615_vm9, %v19513_v10  ;;  %11591 = vmatpush2.msk.msra.mxu0 %vm19616_vm11, %v19513_v10  ;;  %vm19622_vm9 = vcmp.eq.s32.totalorder %v13669_v52, %v14078_v4  ;;  %vm19623_vm11 = vcmp.eq.s32.totalorder %v13321_v40, %v13207_v29 }
 0x2a7   :  { %11374 = vmatprep.subr.msk.mxu1 %vm19617_vm13, %v19513_v10  ;;  %11592 = vmatprep.subr.msk.mxu0 %vm19618_vm15, %v19513_v10  ;;  %vm19624_vm13 = vcmp.eq.s32.totalorder %v13669_v52, %v14112_v15  ;;  %vm19625_vm15 = vcmp.eq.s32.totalorder %v13348_v41, %v13199_v27 }
 0x2a8   :  { %11375 = vmatpush1.msk.msra.mxu1 %vm19619_vm3, %v19513_v10  ;;  %11593 = vmatpush2.msk.msra.mxu0 %vm19620_vm5, %v19513_v10  ;;  %vm19626_vm3 = vcmp.eq.s32.totalorder %v13696_v53, %v14078_v4  ;;  %vm19627_vm5 = vcmp.eq.s32.totalorder %v13348_v41, %v13207_v29 }
 0x2a9   :  { %11376 = vmatprep.subr.msk.mxu1 %vm19621_vm7, %v19513_v10  ;;  %11594 = vmatprep.subr.msk.mxu0 %vm19622_vm9, %v19513_v10  ;;  %vm19628_vm7 = vcmp.eq.s32.totalorder %v13696_v53, %v14112_v15  ;;  %vm19629_vm9 = vcmp.eq.s32.totalorder %v13375_v42, %v13199_v27 }
 0x2aa   :  { %11377 = vmatpush1.msk.msra.mxu1 %vm19623_vm11, %v19513_v10  ;;  %11595 = vmatpush2.msk.msra.mxu0 %vm19624_vm13, %v19513_v10  ;;  %vm19630_vm11 = vcmp.eq.s32.totalorder %v13723_v54, %v14078_v4  ;;  %vm19631_vm13 = vcmp.eq.s32.totalorder %v13375_v42, %v13207_v29 }
 0x2ab   :  { %11378 = vmatprep.subr.msk.mxu1 %vm19625_vm15, %v19513_v10  ;;  %11596 = vmatprep.subr.msk.mxu0 %vm19626_vm3, %v19513_v10  ;;  %vm19632_vm15 = vcmp.eq.s32.totalorder %v13723_v54, %v14112_v15  ;;  %vm19633_vm3 = vcmp.eq.s32.totalorder %v13402_v43, %v13199_v27 }
 0x2ac   :  { %11379 = vmatpush1.msk.msra.mxu1 %vm19627_vm5, %v19513_v10  ;;  %11597 = vmatpush2.msk.msra.mxu0 %vm19628_vm7, %v19513_v10  ;;  %vm19634_vm5 = vcmp.eq.s32.totalorder %v13750_v55, %v14078_v4  ;;  %vm19635_vm7 = vcmp.eq.s32.totalorder %v13402_v43, %v13207_v29 }
 0x2ad   :  { %11380 = vmatprep.subr.msk.mxu1 %vm19629_vm9, %v19513_v10  ;;  %11598 = vmatprep.subr.msk.mxu0 %vm19630_vm11, %v19513_v10  ;;  %vm19636_vm9 = vcmp.eq.s32.totalorder %v13750_v55, %v14112_v15  ;;  %vm19637_vm11 = vcmp.eq.s32.totalorder %v13429_v44, %v13199_v27 }
 0x2ae   :  { %11381 = vmatpush1.msk.msra.mxu1 %vm19631_vm13, %v19513_v10  ;;  %11599 = vmatpush2.msk.msra.mxu0 %vm19632_vm15, %v19513_v10  ;;  %vm19638_vm13 = vcmp.eq.s32.totalorder %v13777_v56, %v14078_v4  ;;  %vm19639_vm15 = vcmp.eq.s32.totalorder %v13429_v44, %v13207_v29 }
 0x2af   :  { %11382 = vmatprep.subr.msk.mxu1 %vm19633_vm3, %v19513_v10  ;;  %11600 = vmatprep.subr.msk.mxu0 %vm19634_vm5, %v19513_v10  ;;  %vm19640_vm3 = vcmp.eq.s32.totalorder %v13777_v56, %v14112_v15  ;;  %vm19641_vm5 = vcmp.eq.s32.totalorder %v13456_v45, %v13199_v27 }
 0x2b0   :  { %11383 = vmatpush1.msk.msra.mxu1 %vm19635_vm7, %v19513_v10  ;;  %11601 = vmatpush2.msk.msra.mxu0 %vm19636_vm9, %v19513_v10  ;;  %vm19642_vm7 = vcmp.eq.s32.totalorder %v13804_v57, %v14078_v4  ;;  %vm19643_vm9 = vcmp.eq.s32.totalorder %v13456_v45, %v13207_v29 }
 0x2b1   :  { %11384 = vmatprep.subr.msk.mxu1 %vm19637_vm11, %v19513_v10  ;;  %11602 = vmatprep.subr.msk.mxu0 %vm19638_vm13, %v19513_v10  ;;  %vm19644_vm11 = vcmp.eq.s32.totalorder %v13804_v57, %v14112_v15  ;;  %vm19645_vm13 = vcmp.eq.s32.totalorder %v13483_v46, %v13199_v27 }
 0x2b2   :  { %11385 = vmatpush1.msk.msra.mxu1 %vm19639_vm15, %v19513_v10  ;;  %11603 = vmatpush2.msk.msra.mxu0 %vm19640_vm3, %v19513_v10  ;;  %vm19646_vm15 = vcmp.eq.s32.totalorder %v13831_v58, %v14078_v4  ;;  %vm19647_vm3 = vcmp.eq.s32.totalorder %v13483_v46, %v13207_v29 }
 0x2b3   :  { %11386 = vmatprep.subr.msk.mxu1 %vm19641_vm5, %v19513_v10  ;;  %11604 = vmatprep.subr.msk.mxu0 %vm19642_vm7, %v19513_v10  ;;  %vm19648_vm5 = vcmp.eq.s32.totalorder %v13831_v58, %v14112_v15  ;;  %vm19649_vm7 = vcmp.eq.s32.totalorder %v13510_v47, %v13199_v27 }
 0x2b4   :  { %11387 = vmatpush1.msk.msra.mxu1 %vm19643_vm9, %v19513_v10  ;;  %11605 = vmatpush2.msk.msra.mxu0 %vm19644_vm11, %v19513_v10  ;;  %vm19650_vm9 = vcmp.eq.s32.totalorder %v13858_v59, %v14078_v4  ;;  %vm19651_vm11 = vcmp.eq.s32.totalorder %v13510_v47, %v13207_v29 }
 0x2b5   :  { %11388 = vmatprep.subr.msk.mxu1 %vm19645_vm13, %v19513_v10  ;;  %11606 = vmatprep.subr.msk.mxu0 %vm19646_vm15, %v19513_v10  ;;  %vm19652_vm13 = vcmp.eq.s32.totalorder %v13858_v59, %v14112_v15  ;;  %vm19653_vm15 = vcmp.eq.s32.totalorder %v13537_v48, %v13199_v27 }
 0x2b6   :  { %11389 = vmatpush1.msk.msra.mxu1 %vm19647_vm3, %v19513_v10  ;;  %11607 = vmatpush2.msk.msra.mxu0 %vm19648_vm5, %v19513_v10  ;;  %vm19654_vm3 = vcmp.eq.s32.totalorder %v13885_v60, %v14078_v4  ;;  %vm19655_vm5 = vcmp.eq.s32.totalorder %v13537_v48, %v13207_v29 }
 0x2b7   :  { %11390 = vmatprep.subr.msk.mxu1 %vm19649_vm7, %v19513_v10  ;;  %11608 = vmatprep.subr.msk.mxu0 %vm19650_vm9, %v19513_v10  ;;  %vm19656_vm7 = vcmp.eq.s32.totalorder %v13885_v60, %v14112_v15  ;;  %vm19657_vm9 = vcmp.eq.s32.totalorder %v13151_v12, %v13199_v27 }
 0x2b8   :  { %11391 = vmatpush1.msk.msra.mxu1 %vm19651_vm11, %v19513_v10  ;;  %11609 = vmatpush2.msk.msra.mxu0 %vm19652_vm13, %v19513_v10  ;;  %vm19658_vm11 = vcmp.eq.s32.totalorder %v13961_v61, %v14078_v4  ;;  %vm19659_vm13 = vcmp.eq.s32.totalorder %v13151_v12, %v13207_v29 }
 0x2b9   :  { %11392 = vmatprep.subr.msk.mxu1 %vm19653_vm15, %v19513_v10  ;;  %11610 = vmatprep.subr.msk.mxu0 %vm19654_vm3, %v19513_v10  ;;  %vm19660_vm15 = vcmp.eq.s32.totalorder %v13588_v49, %v13199_v27  ;;  %vm19661_vm3 = vcmp.eq.s32.totalorder %v13980_v62, %v14078_v4 }
 0x2ba   :  { %11393 = vmatpush1.msk.msra.mxu1 %vm19655_vm5, %v19513_v10  ;;  %11611 = vmatpush2.msk.msra.mxu0 %vm19656_vm7, %v19513_v10  ;;  %vm19662_vm5 = vcmp.eq.s32.totalorder %v13588_v49, %v13207_v29  ;;  %vm19663_vm7 = vcmp.eq.s32.totalorder %v13980_v62, %v14112_v15 }
 0x2bb   :  { %11394 = vmatprep.subr.msk.mxu1 %vm19657_vm9, %v19513_v10  ;;  %11612 = vmatprep.subr.msk.mxu0 %vm19658_vm11, %v19513_v10  ;;  %vm19665_vm9 = vcmp.eq.s32.totalorder %v14007_v63, %v14078_v4  ;;  %vm19666_vm11 = vcmp.eq.s32.totalorder %v13615_v50, %v13207_v29 }
 0x2bc   :  { %11395 = vmatpush1.msk.msra.mxu1 %vm19659_vm13, %v19513_v10  ;;  %11613 = vmatpush2.msk.msra.mxu0 %vm631_vm0, %v19513_v10  ;;  %vm19664_vm0 = vcmp.eq.s32.totalorder %v13615_v50, %v13199_v27  ;;  %vm19667_vm13 = vcmp.eq.s32.totalorder %v14007_v63, %v14112_v15 }
 0x2bd   :  { %11396 = vmatprep.subr.msk.mxu1 %vm19660_vm15, %v19513_v10  ;;  %11614 = vmatprep.subr.msk.mxu0 %vm19661_vm3, %v19513_v10  ;;  %vm19668_vm15 = vcmp.eq.s32.totalorder %v13642_v51, %v13199_v27  ;;  %vm19669_vm3 = vcmp.eq.s32.totalorder %v14034_v0, %v14078_v4 }
 0x2be   :  { %11397 = vmatpush2.msk.msra.mxu1 %vm19662_vm5, %v19513_v10  ;;  %11615 = vmatpush2.msk.msra.mxu0 %vm19663_vm7, %v19513_v10  ;;  %vm19670_vm5 = vcmp.eq.s32.totalorder %v13642_v51, %v13207_v29  ;;  %vm19671_vm7 = vcmp.eq.s32.totalorder %v14034_v0, %v14112_v15 }
 0x2bf   :  { %11398 = vmatprep.subr.msk.mxu1 %vm19664_vm0, %v19513_v10  ;;  %11616 = vmatprep.subr.msk.mxu0 %vm19665_vm9, %v19513_v10  ;;  %vm19672_vm0 = vcmp.eq.s32.totalorder %v13669_v52, %v13199_v27  ;;  %vm19673_vm9 = vcmp.eq.s32.totalorder %v13178_v21, %v14843_v26 }
 0x2c0   :  { %11399 = vmatpush2.msk.msra.mxu1 %vm19666_vm11, %v19513_v10  ;;  %11617 = vmatpush2.msk.msra.mxu0 %vm19667_vm13, %v19513_v10  ;;  %vm19674_vm11 = vcmp.eq.s32.totalorder %v13669_v52, %v13207_v29  ;;  %vm19675_vm13 = vcmp.eq.s32.totalorder %v13178_v21, %v14875_v35 }
 0x2c1   :  { %11400 = vmatprep.subr.msk.mxu1 %vm19668_vm15, %v19513_v10  ;;  %11618 = vmatprep.subr.msk.mxu0 %vm19669_vm3, %v19513_v10  ;;  %vm19676_vm15 = vcmp.eq.s32.totalorder %v13696_v53, %v13199_v27  ;;  %vm19677_vm3 = vcmp.eq.s32.totalorder %v13210_v30, %v14843_v26 }
 0x2c2   :  { %11401 = vmatpush2.msk.msra.mxu1 %vm19670_vm5, %v19513_v10  ;;  %11619 = vmatpush2.msk.msra.mxu0 %vm19671_vm7, %v19513_v10  ;;  %vm19678_vm5 = vcmp.eq.s32.totalorder %v13696_v53, %v13207_v29  ;;  %vm19679_vm7 = vcmp.eq.s32.totalorder %v13210_v30, %v14875_v35 }
 0x2c3   :  { %11402 = vmatprep.subr.msk.mxu1 %vm19672_vm0, %v19513_v10  ;;  %4116 = vmatmul.mubr.f32.vlgmr.msra.gmra.mxu0 %v16327_v7  ;;  %vm19680_vm0 = vcmp.eq.s32.totalorder %v13723_v54, %v13199_v27 }
 0x2c4   :  { %11684 = vmatprep.subr.msk.mxu0 %vm19673_vm9, %v19513_v10  ;;  %11403 = vmatpush2.msk.msra.mxu1 %vm19674_vm11, %v19513_v10  ;;  %vm19681_vm9 = vcmp.eq.s32.totalorder %v13226_v34, %v14843_v26  ;;  %vm19682_vm11 = vcmp.eq.s32.totalorder %v13723_v54, %v13207_v29 }
 0x2c5   :  { %11685 = vmatpush1.msk.msra.mxu0 %vm19675_vm13, %v19513_v10  ;;  %4257 = vmatprep.mubr.f32.mxu0 %v16041_v17  ;;  %vm19683_vm13 = vcmp.eq.s32.totalorder %v13226_v34, %v14875_v35 }
 0x2c6   :  { %11404 = vmatprep.subr.msk.mxu1 %vm19676_vm15, %v19513_v10  ;;  %11686 = vmatprep.subr.msk.mxu0 %vm19677_vm3, %v19513_v10  ;;  %vm19684_vm15 = vcmp.eq.s32.totalorder %v13750_v55, %v13199_v27  ;;  %vm19685_vm3 = vcmp.eq.s32.totalorder %v13244_v37, %v14843_v26 }
 0x2c7   :  { %11405 = vmatpush2.msk.msra.mxu1 %vm19678_vm5, %v19513_v10  ;;  %11687 = vmatpush1.msk.msra.mxu0 %vm19679_vm7, %v19513_v10  ;;  %vm19686_vm5 = vcmp.eq.s32.totalorder %v13750_v55, %v13207_v29  ;;  %vm19687_vm7 = vcmp.eq.s32.totalorder %v13244_v37, %v14875_v35 }
 0x2c8   :  { %11406 = vmatprep.subr.msk.mxu1 %vm19680_vm0, %v19513_v10  ;;  %11688 = vmatprep.subr.msk.mxu0 %vm19681_vm9, %v19513_v10  ;;  %vm19688_vm0 = vcmp.eq.s32.totalorder %v13777_v56, %v13199_v27  ;;  %vm19689_vm9 = vcmp.eq.s32.totalorder %v13267_v38, %v14843_v26 }
 0x2c9   :  { %11407 = vmatpush2.msk.msra.mxu1 %vm19682_vm11, %v19513_v10  ;;  %11689 = vmatpush1.msk.msra.mxu0 %vm19683_vm13, %v19513_v10  ;;  %vm19690_vm11 = vcmp.eq.s32.totalorder %v13777_v56, %v13207_v29  ;;  %vm19691_vm13 = vcmp.eq.s32.totalorder %v13267_v38, %v14875_v35 }
 0x2ca   :  { %11408 = vmatprep.subr.msk.mxu1 %vm19684_vm15, %v19513_v10  ;;  %11690 = vmatprep.subr.msk.mxu0 %vm19685_vm3, %v19513_v10  ;;  %vm19692_vm15 = vcmp.eq.s32.totalorder %v13804_v57, %v13199_v27  ;;  %vm19693_vm3 = vcmp.eq.s32.totalorder %v13294_v39, %v14843_v26 }
 0x2cb   :  { %11409 = vmatpush2.msk.msra.mxu1 %vm19686_vm5, %v19513_v10  ;;  %11691 = vmatpush1.msk.msra.mxu0 %vm19687_vm7, %v19513_v10  ;;  %vm19694_vm5 = vcmp.eq.s32.totalorder %v13804_v57, %v13207_v29  ;;  %vm19695_vm7 = vcmp.eq.s32.totalorder %v13294_v39, %v14875_v35 }
 0x2cc   :  { %11410 = vmatprep.subr.msk.mxu1 %vm19688_vm0, %v19513_v10  ;;  %11692 = vmatprep.subr.msk.mxu0 %vm19689_vm9, %v19513_v10  ;;  %vm19696_vm0 = vcmp.eq.s32.totalorder %v13831_v58, %v13199_v27  ;;  %vm19697_vm9 = vcmp.eq.s32.totalorder %v13321_v40, %v14843_v26 }
 0x2cd   :  { %11411 = vmatpush2.msk.msra.mxu1 %vm19690_vm11, %v19513_v10  ;;  %11693 = vmatpush1.msk.msra.mxu0 %vm19691_vm13, %v19513_v10  ;;  %v12334_v4 = vpop.f32.mrf.mxu1  ;;  %vm19698_vm11 = vcmp.eq.s32.totalorder %v13831_v58, %v13207_v29  ;;  %vm19699_vm13 = vcmp.eq.s32.totalorder %v13321_v40, %v14875_v35 }
 0x2ce   :  { %11412 = vmatprep.subr.msk.mxu1 %vm19692_vm15, %v19513_v10  ;;  %11694 = vmatprep.subr.msk.mxu0 %vm19693_vm3, %v19513_v10  ;;  %vm19700_vm15 = vcmp.eq.s32.totalorder %v13858_v59, %v13199_v27  ;;  %vm19701_vm3 = vcmp.eq.s32.totalorder %v13348_v41, %v14843_v26 }
 0x2cf   :  { %11413 = vmatpush2.msk.msra.mxu1 %vm19694_vm5, %v19513_v10  ;;  %11695 = vmatpush1.msk.msra.mxu0 %vm19695_vm7, %v19513_v10  ;;  %v1783_v15 = vpop.f32.mrf.mxu1  ;;  %vm19702_vm5 = vcmp.eq.s32.totalorder %v13858_v59, %v13207_v29  ;;  %vm19703_vm7 = vcmp.eq.s32.totalorder %v13348_v41, %v14875_v35 }
 0x2d0   :  { %11414 = vmatprep.subr.msk.mxu1 %vm19696_vm0, %v19513_v10  ;;  %11696 = vmatprep.subr.msk.mxu0 %vm19697_vm9, %v19513_v10  ;;  %vm19704_vm0 = vcmp.eq.s32.totalorder %v13885_v60, %v13199_v27  ;;  %vm19705_vm9 = vcmp.eq.s32.totalorder %v13375_v42, %v14843_v26 }
 0x2d1   :  { %11415 = vmatpush2.msk.msra.mxu1 %vm19698_vm11, %v19513_v10  ;;  %11697 = vmatpush1.msk.msra.mxu0 %vm19699_vm13, %v19513_v10  ;;  %v12339_v8 = vpop.f32.mrf.mxu1  ;;  %vm19706_vm11 = vcmp.eq.s32.totalorder %v13885_v60, %v13207_v29  ;;  %vm19707_vm13 = vcmp.eq.s32.totalorder %v13375_v42, %v14875_v35 }
 0x2d2   :  { %11416 = vmatprep.subr.msk.mxu1 %vm19700_vm15, %v19513_v10  ;;  %11698 = vmatprep.subr.msk.mxu0 %vm19701_vm3, %v19513_v10  ;;  %v1870_v13 = vadd.f32 %v12339_v8, %v12334_v4  ;;  %vm19708_vm15 = vcmp.eq.s32.totalorder %v13961_v61, %v13199_v27  ;;  %vm19709_vm3 = vcmp.eq.s32.totalorder %v13402_v43, %v14843_v26 }
 0x2d3   :  { %11417 = vmatpush2.msk.msra.mxu1 %vm19702_vm5, %v19513_v10  ;;  %11699 = vmatpush1.msk.msra.mxu0 %vm19703_vm7, %v19513_v10  ;;  %v1864_v5 = vpop.f32.mrf.mxu1  ;;  %vm19710_vm5 = vcmp.eq.s32.totalorder %v13961_v61, %v13207_v29  ;;  %vm19711_vm7 = vcmp.eq.s32.totalorder %v13402_v43, %v14875_v35 }
 0x2d4   :  { %11418 = vmatprep.subr.msk.mxu1 %vm19704_vm0, %v19513_v10  ;;  %11700 = vmatprep.subr.msk.mxu0 %vm19705_vm9, %v19513_v10  ;;  %v1865_v9 = vadd.f32 %v1864_v5, %v1783_v15  ;;  %vm19712_vm0 = vcmp.eq.s32.totalorder %v13980_v62, %v13199_v27  ;;  %vm19713_vm9 = vcmp.eq.s32.totalorder %v13429_v44, %v14843_v26 }
 0x2d5   :  { %11419 = vmatpush2.msk.msra.mxu1 %vm19706_vm11, %v19513_v10  ;;  %11701 = vmatpush1.msk.msra.mxu0 %vm19707_vm13, %v19513_v10  ;;  %v12344_v28 = vpop.f32.mrf.mxu1  ;;  %vm19714_vm11 = vcmp.eq.s32.totalorder %v13980_v62, %v13207_v29  ;;  %vm19715_vm13 = vcmp.eq.s32.totalorder %v13429_v44, %v14875_v35 }
 0x2d6   :  { %11420 = vmatprep.subr.msk.mxu1 %vm19708_vm15, %v19513_v10  ;;  %11702 = vmatprep.subr.msk.mxu0 %vm19709_vm3, %v19513_v10  ;;  %v1955_v32 = vadd.f32 %v12344_v28, %v1870_v13  ;;  %vm19716_vm15 = vcmp.eq.s32.totalorder %v14007_v63, %v13199_v27  ;;  %vm19717_vm3 = vcmp.eq.s32.totalorder %v13456_v45, %v14843_v26 }
 0x2d7   :  { %11421 = vmatpush2.msk.msra.mxu1 %vm19710_vm5, %v19513_v10  ;;  %11703 = vmatpush1.msk.msra.mxu0 %vm19711_vm7, %v19513_v10  ;;  %v1945_v20 = vpop.f32.mrf.mxu1  ;;  %vm19718_vm5 = vcmp.eq.s32.totalorder %v14007_v63, %v13207_v29  ;;  %vm19719_vm7 = vcmp.eq.s32.totalorder %v13456_v45, %v14875_v35 }
 0x2d8   :  { %11422 = vmatprep.subr.msk.mxu1 %vm19712_vm0, %v19513_v10  ;;  %11704 = vmatprep.subr.msk.mxu0 %vm19713_vm9, %v19513_v10  ;;  %v1954_v24 = vadd.f32 %v1945_v20, %v1865_v9  ;;  %vm19720_vm0 = vcmp.eq.s32.totalorder %v14034_v0, %v13199_v27  ;;  %vm19721_vm9 = vcmp.eq.s32.totalorder %v13483_v46, %v14843_v26 }
 0x2d9   :  { %11423 = vmatpush2.msk.msra.mxu1 %vm19714_vm11, %v19513_v10  ;;  %11705 = vmatpush1.msk.msra.mxu0 %vm19715_vm13, %v19513_v10  ;;  %v12349_v11 = vpop.f32.mrf.mxu1  ;;  %vm19722_vm11 = vcmp.eq.s32.totalorder %v14034_v0, %v13207_v29  ;;  %vm19723_vm13 = vcmp.eq.s32.totalorder %v13483_v46, %v14875_v35 }
 0x2da   :  { %11424 = vmatprep.subr.msk.mxu1 %vm19716_vm15, %v19513_v10  ;;  %11706 = vmatprep.subr.msk.mxu0 %vm19717_vm3, %v19513_v10  ;;  %v2042_v31 = vadd.f32 %v12349_v11, %v1955_v32  ;;  %vm19724_vm15 = vcmp.eq.s32.totalorder %v13178_v21, %v14063_v3  ;;  %vm19725_vm3 = vcmp.eq.s32.totalorder %v13510_v47, %v14843_v26 }
 0x2db   :  { %11425 = vmatpush2.msk.msra.mxu1 %vm19718_vm5, %v19513_v10  ;;  %11707 = vmatpush1.msk.msra.mxu0 %vm19719_vm7, %v19513_v10  ;;  %v2032_v2 = vpop.f32.mrf.mxu1  ;;  %vm19726_vm5 = vcmp.eq.s32.totalorder %v13178_v21, %v14109_v14  ;;  %vm19727_vm7 = vcmp.eq.s32.totalorder %v13510_v47, %v14875_v35 }
 0x2dc   :  { %11426 = vmatprep.subr.msk.mxu1 %vm19720_vm0, %v19513_v10  ;;  %11708 = vmatprep.subr.msk.mxu0 %vm19721_vm9, %v19513_v10  ;;  %v2041_v27 = vadd.f32 %v2032_v2, %v1954_v24  ;;  %vm19728_vm0 = vcmp.eq.s32.totalorder %v13210_v30, %v14063_v3  ;;  %vm19729_vm9 = vcmp.eq.s32.totalorder %v13537_v48, %v14843_v26  ;;  %v12374_v2 = vpop.f32.mrf.mxu0 }
 0x2dd   :  { %11427 = vmatpush2.msk.msra.mxu1 %vm19722_vm11, %v19513_v10  ;;  %11709 = vmatpush1.msk.msra.mxu0 %vm19723_vm13, %v19513_v10  ;;  %vm19730_vm11 = vcmp.eq.s32.totalorder %v13210_v30, %v14109_v14  ;;  %vm19731_vm13 = vcmp.eq.s32.totalorder %v13537_v48, %v14875_v35 }
 0x2de   :  { %3903 = vmatmul.mubr.f32.vlgmr.msra.gmra.mxu1 %v16327_v7  ;;  %11492 = vmatprep.subr.msk.mxu1 %vm19724_vm15, %v19513_v10  ;;  %vm19732_vm15 = vcmp.eq.s32.totalorder %v13226_v34, %v14063_v3 }
 0x2df   :  { %11710 = vmatprep.subr.msk.mxu0 %vm19725_vm3, %v19513_v10  ;;  %11493 = vmatpush1.msk.msra.mxu1 %vm19726_vm5, %v19513_v10  ;;  %vm19733_vm3 = vcmp.eq.s32.totalorder %v13151_v12, %v14843_v26  ;;  %vm19734_vm5 = vcmp.eq.s32.totalorder %v13226_v34, %v14109_v14 }
 0x2e0   :  { %4044 = vmatprep.mubr.f32.mxu1 %v16041_v17  ;;  %11711 = vmatpush1.msk.msra.mxu0 %vm19727_vm7, %v19513_v10  ;;  %v12354_v29 = vpop.f32.mrf.mxu1  ;;  %vm19735_vm7 = vcmp.eq.s32.totalorder %v13151_v12, %v14875_v35 }
 0x2e1   :  { %11494 = vmatprep.subr.msk.mxu1 %vm19728_vm0, %v19513_v10  ;;  %11712 = vmatprep.subr.msk.mxu0 %vm19729_vm9, %v19513_v10  ;;  %v2125_v36 = vadd.f32 %v12354_v29, %v2042_v31  ;;  %vm19736_vm0 = vcmp.eq.s32.totalorder %v13244_v37, %v14063_v3  ;;  %vm19737_vm9 = vcmp.eq.s32.totalorder %v13588_v49, %v14843_v26 }
 0x2e2   :  { %11495 = vmatpush1.msk.msra.mxu1 %vm19730_vm11, %v19513_v10  ;;  %11713 = vmatpush1.msk.msra.mxu0 %vm19731_vm13, %v19513_v10  ;;  %v2115_v6 = vpop.f32.mrf.mxu1  ;;  %vm19738_vm11 = vcmp.eq.s32.totalorder %v13244_v37, %v14109_v14  ;;  %vm19739_vm13 = vcmp.eq.s32.totalorder %v13588_v49, %v14875_v35 }
 0x2e3   :  { %11496 = vmatprep.subr.msk.mxu1 %vm19732_vm15, %v19513_v10  ;;  %11714 = vmatprep.subr.msk.mxu0 %vm19733_vm3, %v19513_v10  ;;  %v2124_v16 = vadd.f32 %v2115_v6, %v2041_v27  ;;  %vm19740_vm15 = vcmp.eq.s32.totalorder %v13267_v38, %v14063_v3  ;;  %vm19741_vm3 = vcmp.eq.s32.totalorder %v13615_v50, %v14843_v26  ;;  %v2455_v27 = vpop.f32.mrf.mxu0 }
 0x2e4   :  { %11497 = vmatpush1.msk.msra.mxu1 %vm19734_vm5, %v19513_v10  ;;  %11715 = vmatpush1.msk.msra.mxu0 %vm19735_vm7, %v19513_v10  ;;  %vm19742_vm5 = vcmp.eq.s32.totalorder %v13267_v38, %v14109_v14  ;;  %vm19743_vm7 = vcmp.eq.s32.totalorder %v13615_v50, %v14875_v35 }
 0x2e5   :  { %11498 = vmatprep.subr.msk.mxu1 %vm19736_vm0, %v19513_v10  ;;  %11716 = vmatprep.subr.msk.mxu0 %vm19737_vm9, %v19513_v10  ;;  %v12359_v4 = vpop.f32.mrf.mxu1  ;;  %vm19744_vm0 = vcmp.eq.s32.totalorder %v13294_v39, %v14063_v3  ;;  %vm19745_vm9 = vcmp.eq.s32.totalorder %v13642_v51, %v14843_v26  ;;  %v12384_v29 = vpop.f32.mrf.mxu0 }
 0x2e6   :  { %11499 = vmatpush1.msk.msra.mxu1 %vm19738_vm11, %v19513_v10  ;;  %11717 = vmatpush2.msk.msra.mxu0 %vm19739_vm13, %v19513_v10  ;;  %v2212_v15 = vadd.f32 %v12359_v4, %v2125_v36  ;;  %vm19746_vm11 = vcmp.eq.s32.totalorder %v13294_v39, %v14109_v14  ;;  %vm19747_vm13 = vcmp.eq.s32.totalorder %v13642_v51, %v14875_v35 }
 0x2e7   :  { %11500 = vmatprep.subr.msk.mxu1 %vm19740_vm15, %v19513_v10  ;;  %11718 = vmatprep.subr.msk.mxu0 %vm19741_vm3, %v19513_v10  ;;  %v2202_v8 = vpop.f32.mrf.mxu1  ;;  %vm19748_vm15 = vcmp.eq.s32.totalorder %v13321_v40, %v14063_v3  ;;  %vm19749_vm3 = vcmp.eq.s32.totalorder %v13669_v52, %v14843_v26 }
 0x2e8   :  { %11501 = vmatpush1.msk.msra.mxu1 %vm19742_vm5, %v19513_v10  ;;  %11719 = vmatpush2.msk.msra.mxu0 %vm19743_vm7, %v19513_v10  ;;  %v2211_v13 = vadd.f32 %v2202_v8, %v2124_v16  ;;  %vm19750_vm5 = vcmp.eq.s32.totalorder %v13321_v40, %v14109_v14  ;;  %vm19751_vm7 = vcmp.eq.s32.totalorder %v13669_v52, %v14875_v35 }
 0x2e9   :  { %11502 = vmatprep.subr.msk.mxu1 %vm19744_vm0, %v19513_v10  ;;  %11720 = vmatprep.subr.msk.mxu0 %vm19745_vm9, %v19513_v10  ;;  %v12364_v5 = vpop.f32.mrf.mxu1  ;;  %vm19752_vm0 = vcmp.eq.s32.totalorder %v13348_v41, %v14063_v3  ;;  %vm19753_vm9 = vcmp.eq.s32.totalorder %v13696_v53, %v14843_v26 }
 0x2ea   :  { %11503 = vmatpush1.msk.msra.mxu1 %vm19746_vm11, %v19513_v10  ;;  %11721 = vmatpush2.msk.msra.mxu0 %vm19747_vm13, %v19513_v10  ;;  %v2295_v28 = vadd.f32 %v12364_v5, %v2212_v15  ;;  %vm19754_vm11 = vcmp.eq.s32.totalorder %v13348_v41, %v14109_v14  ;;  %vm19755_vm13 = vcmp.eq.s32.totalorder %v13696_v53, %v14875_v35 }
 0x2eb   :  { %11504 = vmatprep.subr.msk.mxu1 %vm19748_vm15, %v19513_v10  ;;  %11722 = vmatprep.subr.msk.mxu0 %vm19749_vm3, %v19513_v10  ;;  %v2285_v32 = vpop.f32.mrf.mxu1  ;;  %vm19756_vm15 = vcmp.eq.s32.totalorder %v13375_v42, %v14063_v3  ;;  %vm19757_vm3 = vcmp.eq.s32.totalorder %v13723_v54, %v14843_v26 }
 0x2ec   :  { %11505 = vmatpush1.msk.msra.mxu1 %vm19750_vm5, %v19513_v10  ;;  %11723 = vmatpush2.msk.msra.mxu0 %vm19751_vm7, %v19513_v10  ;;  %v2294_v9 = vadd.f32 %v2285_v32, %v2211_v13  ;;  %vm19758_vm5 = vcmp.eq.s32.totalorder %v13375_v42, %v14109_v14  ;;  %vm19759_vm7 = vcmp.eq.s32.totalorder %v13723_v54, %v14875_v35 }
 0x2ed   :  { %11506 = vmatprep.subr.msk.mxu1 %vm19752_vm0, %v19513_v10  ;;  %11724 = vmatprep.subr.msk.mxu0 %vm19753_vm9, %v19513_v10  ;;  %v12369_v20 = vpop.f32.mrf.mxu1  ;;  %vm19760_vm0 = vcmp.eq.s32.totalorder %v13402_v43, %v14063_v3  ;;  %vm19761_vm9 = vcmp.eq.s32.totalorder %v13750_v55, %v14843_v26 }
 0x2ee   :  { %11507 = vmatpush1.msk.msra.mxu1 %vm19754_vm11, %v19513_v10  ;;  %11725 = vmatpush2.msk.msra.mxu0 %vm19755_vm13, %v19513_v10  ;;  %v2382_v11 = vadd.f32 %v12369_v20, %v2295_v28  ;;  %vm19762_vm11 = vcmp.eq.s32.totalorder %v13402_v43, %v14109_v14  ;;  %vm19763_vm13 = vcmp.eq.s32.totalorder %v13750_v55, %v14875_v35 }
 0x2ef   :  { %11508 = vmatprep.subr.msk.mxu1 %vm19756_vm15, %v19513_v10  ;;  %11726 = vmatprep.subr.msk.mxu0 %vm19757_vm3, %v19513_v10  ;;  %v2372_v31 = vpop.f32.mrf.mxu1  ;;  %vm19764_vm15 = vcmp.eq.s32.totalorder %v13429_v44, %v14063_v3  ;;  %vm19765_vm3 = vcmp.eq.s32.totalorder %v13777_v56, %v14843_v26 }
 0x2f0   :  { %11509 = vmatpush1.msk.msra.mxu1 %vm19758_vm5, %v19513_v10  ;;  %11727 = vmatpush2.msk.msra.mxu0 %vm19759_vm7, %v19513_v10  ;;  %v2381_v24 = vadd.f32 %v2372_v31, %v2294_v9  ;;  %vm19766_vm5 = vcmp.eq.s32.totalorder %v13429_v44, %v14109_v14  ;;  %vm19767_vm7 = vcmp.eq.s32.totalorder %v13777_v56, %v14875_v35 }
 0x2f1   :  { %11510 = vmatprep.subr.msk.mxu1 %vm19760_vm0, %v19513_v10  ;;  %11728 = vmatprep.subr.msk.mxu0 %vm19761_vm9, %v19513_v10  ;;  %vm19768_vm0 = vcmp.eq.s32.totalorder %v13456_v45, %v14063_v3  ;;  %vm19769_vm9 = vcmp.eq.s32.totalorder %v13804_v57, %v14843_v26  ;;  %v2465_v6 = vadd.f32 %v12374_v2, %v2382_v11 }
 0x2f2   :  { %11511 = vmatpush1.msk.msra.mxu1 %vm19762_vm11, %v19513_v10  ;;  %11729 = vmatpush2.msk.msra.mxu0 %vm19763_vm13, %v19513_v10  ;;  %vm19770_vm11 = vcmp.eq.s32.totalorder %v13456_v45, %v14109_v14  ;;  %vm19771_vm13 = vcmp.eq.s32.totalorder %v13804_v57, %v14875_v35  ;;  %v2464_v16 = vadd.f32 %v2455_v27, %v2381_v24 }
 0x2f3   :  { %11512 = vmatprep.subr.msk.mxu1 %vm19764_vm15, %v19513_v10  ;;  %11730 = vmatprep.subr.msk.mxu0 %vm19765_vm3, %v19513_v10  ;;  %vm19772_vm15 = vcmp.eq.s32.totalorder %v13483_v46, %v14063_v3  ;;  %vm19773_vm3 = vcmp.eq.s32.totalorder %v13831_v58, %v14843_v26 }
 0x2f4   :  { %11513 = vmatpush1.msk.msra.mxu1 %vm19766_vm5, %v19513_v10  ;;  %11731 = vmatpush2.msk.msra.mxu0 %vm19767_vm7, %v19513_v10  ;;  %vm19774_vm5 = vcmp.eq.s32.totalorder %v13483_v46, %v14109_v14  ;;  %vm19775_vm7 = vcmp.eq.s32.totalorder %v13831_v58, %v14875_v35 }
 0x2f5   :  { %11514 = vmatprep.subr.msk.mxu1 %vm19768_vm0, %v19513_v10  ;;  %11732 = vmatprep.subr.msk.mxu0 %vm19769_vm9, %v19513_v10  ;;  %vm19776_vm0 = vcmp.eq.s32.totalorder %v13510_v47, %v14063_v3  ;;  %vm19777_vm9 = vcmp.eq.s32.totalorder %v13858_v59, %v14843_v26 }
 0x2f6   :  { %11515 = vmatpush1.msk.msra.mxu1 %vm19770_vm11, %v19513_v10  ;;  %11733 = vmatpush2.msk.msra.mxu0 %vm19771_vm13, %v19513_v10  ;;  %vm19778_vm11 = vcmp.eq.s32.totalorder %v13510_v47, %v14109_v14  ;;  %vm19779_vm13 = vcmp.eq.s32.totalorder %v13858_v59, %v14875_v35 }
 0x2f7   :  { %11516 = vmatprep.subr.msk.mxu1 %vm19772_vm15, %v19513_v10  ;;  %11734 = vmatprep.subr.msk.mxu0 %vm19773_vm3, %v19513_v10  ;;  %vm19780_vm15 = vcmp.eq.s32.totalorder %v13537_v48, %v14063_v3  ;;  %vm19781_vm3 = vcmp.eq.s32.totalorder %v13885_v60, %v14843_v26 }
 0x2f8   :  { %11517 = vmatpush1.msk.msra.mxu1 %vm19774_vm5, %v19513_v10  ;;  %11735 = vmatpush2.msk.msra.mxu0 %vm19775_vm7, %v19513_v10  ;;  %vm19782_vm5 = vcmp.eq.s32.totalorder %v13537_v48, %v14109_v14  ;;  %vm19783_vm7 = vcmp.eq.s32.totalorder %v13885_v60, %v14875_v35 }
 0x2f9   :  { %11518 = vmatprep.subr.msk.mxu1 %vm19776_vm0, %v19513_v10  ;;  %11736 = vmatprep.subr.msk.mxu0 %vm19777_vm9, %v19513_v10  ;;  %vm19784_vm0 = vcmp.eq.s32.totalorder %v13151_v12, %v14063_v3  ;;  %vm19785_vm9 = vcmp.eq.s32.totalorder %v13961_v61, %v14843_v26 }
 0x2fa   :  { %11519 = vmatpush1.msk.msra.mxu1 %vm19778_vm11, %v19513_v10  ;;  %11737 = vmatpush2.msk.msra.mxu0 %vm19779_vm13, %v19513_v10  ;;  %vm19786_vm11 = vcmp.eq.s32.totalorder %v13151_v12, %v14109_v14  ;;  %vm19787_vm13 = vcmp.eq.s32.totalorder %v13961_v61, %v14875_v35 }
 0x2fb   :  { %11520 = vmatprep.subr.msk.mxu1 %vm19780_vm15, %v19513_v10  ;;  %11738 = vmatprep.subr.msk.mxu0 %vm19781_vm3, %v19513_v10  ;;  %vm19788_vm15 = vcmp.eq.s32.totalorder %v13588_v49, %v14063_v3  ;;  %vm19789_vm3 = vcmp.eq.s32.totalorder %v13980_v62, %v14843_v26 }
 0x2fc   :  { %11521 = vmatpush1.msk.msra.mxu1 %vm19782_vm5, %v19513_v10  ;;  %11739 = vmatpush2.msk.msra.mxu0 %vm19783_vm7, %v19513_v10  ;;  %vm19790_vm5 = vcmp.eq.s32.totalorder %v13588_v49, %v14109_v14  ;;  %vm19791_vm7 = vcmp.eq.s32.totalorder %v13980_v62, %v14875_v35 }
 0x2fd   :  { %11522 = vmatprep.subr.msk.mxu1 %vm19784_vm0, %v19513_v10  ;;  %11740 = vmatprep.subr.msk.mxu0 %vm19785_vm9, %v19513_v10  ;;  %vm19792_vm0 = vcmp.eq.s32.totalorder %v13615_v50, %v14063_v3  ;;  %vm19793_vm9 = vcmp.eq.s32.totalorder %v13615_v50, %v14109_v14 }
 0x2fe   :  { %11523 = vmatpush1.msk.msra.mxu1 %vm19786_vm11, %v19513_v10  ;;  %11741 = vmatpush2.msk.msra.mxu0 %vm19787_vm13, %v19513_v10  ;;  %vm19794_vm11 = vcmp.eq.s32.totalorder %v13642_v51, %v14063_v3  ;;  %vm19795_vm13 = vcmp.eq.s32.totalorder %v14034_v0, %v14843_v26  ;;  %v12963_v26 = vld [vmem:[%s19079_s4 + $0x10] sm:$0xff] }
 0x2ff   :  { %11524 = vmatprep.subr.msk.mxu1 %vm19788_vm15, %v19513_v10  ;;  %11742 = vmatprep.subr.msk.mxu0 %vm19789_vm3, %v19513_v10  ;;  %vm19798_vm15 = vcmp.eq.s32.totalorder %v13669_v52, %v14063_v3  ;;  %vm19799_vm3 = vcmp.eq.s32.totalorder %v13669_v52, %v14109_v14 }
 0x300   :  { %11525 = vmatpush2.msk.msra.mxu1 %vm19790_vm5, %v19513_v10  ;;  %11743 = vmatpush2.msk.msra.mxu0 %vm19791_vm7, %v19513_v10  ;;  %vm19800_vm5 = vcmp.eq.s32.totalorder %v13696_v53, %v14063_v3  ;;  %vm19801_vm7 = vcmp.eq.s32.totalorder %v13696_v53, %v14109_v14 }
 0x301   :  { %11526 = vmatprep.subr.msk.mxu1 %vm19792_vm0, %v19513_v10  ;;  %11744 = vmatprep.subr.msk.mxu0 %vm610_vm10, %v19513_v10  ;;  %vm19796_vm10 = vcmp.eq.s32.totalorder %v13642_v51, %v14109_v14  ;;  %vm19802_vm0 = vcmp.eq.s32.totalorder %v13723_v54, %v14063_v3 }
 0x302   :  { %11527 = vmatpush2.msk.msra.mxu1 %vm19793_vm9, %v19513_v10  ;;  %11745 = vmatpush2.msk.msra.mxu0 %vm609_vm8, %v19513_v10  ;;  %vm19797_vm8 = vcmp.eq.s32.totalorder %v14034_v0, %v14875_v35  ;;  %v2625_v35 = vpop.f32.mrf.mxu0  ;;  %vm19803_vm9 = vcmp.eq.s32.totalorder %v13723_v54, %v14109_v14 }
 0x303   :  { %11528 = vmatprep.subr.msk.mxu1 %vm19794_vm11, %v19513_v10  ;;  %11746 = vmatprep.subr.msk.mxu0 %vm19795_vm13, %v19513_v10  ;;  %vm19804_vm11 = vcmp.eq.s32.totalorder %v13750_v55, %v14063_v3  ;;  %vm19805_vm13 = vcmp.eq.s32.totalorder %v13750_v55, %v14109_v14 }
 0x304   :  { %11529 = vmatpush2.msk.msra.mxu1 %vm19796_vm10, %v19513_v10  ;;  %11747 = vmatpush2.msk.msra.mxu0 %vm19797_vm8, %v19513_v10  ;;  %v12394_v36 = vpop.f32.mrf.mxu0  ;;  %vm19806_vm10 = vcmp.eq.s32.totalorder %v13777_v56, %v14063_v3  ;;  %vm19807_vm8 = vcmp.eq.s32.totalorder %v13777_v56, %v14109_v14 }
 0x305   :  { %11530 = vmatprep.subr.msk.mxu1 %vm19798_vm15, %v19513_v10  ;;  %4258 = vmatmul.mubr.f32.vlgmr.msra.gmra.mxu0 %v16327_v7  ;;  %vm19808_vm15 = vcmp.eq.s32.totalorder %v13804_v57, %v14063_v3 }
 0x306   :  { %11531 = vmatpush2.msk.msra.mxu1 %vm19799_vm3, %v19513_v10  ;;  %12457 = vmatprep.mubr.msk.f32.mxu0 %vm1710_vm14, %v12963_v26  ;;  %v2795_v15 = vpop.f32.mrf.mxu0  ;;  %vm19809_vm3 = vcmp.eq.s32.totalorder %v13804_v57, %v14109_v14 }
 0x307   :  { %11532 = vmatprep.subr.msk.mxu1 %vm19800_vm5, %v19513_v10  ;;  %vm19810_vm5 = vcmp.eq.s32.totalorder %v13831_v58, %v14063_v3 }
 0x308   :  { %11533 = vmatpush2.msk.msra.mxu1 %vm19801_vm7, %v19513_v10  ;;  %vm19811_vm7 = vcmp.eq.s32.totalorder %v13831_v58, %v14109_v14  ;;  %v12404_v32 = vpop.f32.mrf.mxu0 }
 0x309   :  { %11534 = vmatprep.subr.msk.mxu1 %vm19802_vm0, %v19513_v10  ;;  %vm19812_vm0 = vcmp.eq.s32.totalorder %v13858_v59, %v14063_v3 }
 0x30a   :  { %11535 = vmatpush2.msk.msra.mxu1 %vm19803_vm9, %v19513_v10  ;;  %vm19813_vm9 = vcmp.eq.s32.totalorder %v13858_v59, %v14109_v14  ;;  %v2965_v27 = vpop.f32.mrf.mxu0 }
 0x30b   :  { %11536 = vmatprep.subr.msk.mxu1 %vm19804_vm11, %v19513_v10  ;;  %vm19814_vm11 = vcmp.eq.s32.totalorder %v13885_v60, %v14063_v3 }
 0x30c   :  { %11537 = vmatpush2.msk.msra.mxu1 %vm19805_vm13, %v19513_v10  ;;  %vm19815_vm13 = vcmp.eq.s32.totalorder %v13885_v60, %v14109_v14 }
 0x30d   :  { %11538 = vmatprep.subr.msk.mxu1 %vm19806_vm10, %v19513_v10  ;;  %vm19816_vm10 = vcmp.eq.s32.totalorder %v13961_v61, %v14063_v3 }
 0x30e   :  { %11539 = vmatpush2.msk.msra.mxu1 %vm19807_vm8, %v19513_v10  ;;  %v12379_v4 = vpop.f32.mrf.mxu1  ;;  %vm19817_vm8 = vcmp.eq.s32.totalorder %v13961_v61, %v14109_v14 }
 0x30f   :  { %11540 = vmatprep.subr.msk.mxu1 %vm19808_vm15, %v19513_v10  ;;  %v2552_v8 = vadd.f32 %v12379_v4, %v2465_v6  ;;  %vm19818_vm15 = vcmp.eq.s32.totalorder %v13980_v62, %v14063_v3  ;;  %v12414_v4 = vpop.f32.mrf.mxu0 }
 0x310   :  { %11541 = vmatpush2.msk.msra.mxu1 %vm19809_vm3, %v19513_v10  ;;  %v2542_v13 = vpop.f32.mrf.mxu1  ;;  %vm19819_vm3 = vcmp.eq.s32.totalorder %v13980_v62, %v14109_v14 }
 0x311   :  { %11542 = vmatprep.subr.msk.mxu1 %vm19810_vm5, %v19513_v10  ;;  %v2551_v5 = vadd.f32 %v2542_v13, %v2464_v16  ;;  %v2635_v28 = vadd.f32 %v12384_v29, %v2552_v8  ;;  %vm19820_vm5 = vcmp.eq.s32.totalorder %v14007_v63, %v14063_v3 }
 0x312   :  { %11543 = vmatpush2.msk.msra.mxu1 %vm19811_vm7, %v19513_v10  ;;  %vm19821_vm7 = vcmp.eq.s32.totalorder %v14007_v63, %v14109_v14 }
 0x313   :  { %11544 = vmatprep.subr.msk.mxu1 %vm19812_vm0, %v19513_v10  ;;  %v12389_v9 = vpop.f32.mrf.mxu1  ;;  %v2634_v20 = vadd.f32 %v2625_v35, %v2551_v5  ;;  %vm19822_vm0 = vcmp.eq.s32.totalorder %v14034_v0, %v14063_v3 }
 0x314   :  { %11545 = vmatpush2.msk.msra.mxu1 %vm19813_vm9, %v19513_v10  ;;  %v2722_v11 = vadd.f32 %v12389_v9, %v2635_v28  ;;  %vm19823_vm9 = vcmp.eq.s32.totalorder %v14034_v0, %v14109_v14  ;;  %v3135_v9 = vpop.f32.mrf.mxu0 }
 0x315   :  { %11546 = vmatprep.subr.msk.mxu1 %vm19814_vm11, %v19513_v10  ;;  %v2712_v31 = vpop.f32.mrf.mxu1  ;;  %vm19824_vm11 = vcmp.eq.s32.totalorder %v13178_v21, %v14839_v25 }
 0x316   :  { %11547 = vmatpush2.msk.msra.mxu1 %vm19815_vm13, %v19513_v10  ;;  %v2721_v24 = vadd.f32 %v2712_v31, %v2634_v20  ;;  %v2805_v2 = vadd.f32 %v12394_v36, %v2722_v11  ;;  %vm19825_vm13 = vcmp.eq.s32.totalorder %v13178_v21, %v14859_v33  ;;  %v12424_v14 = vpop.f32.mrf.mxu0 }
 0x317   :  { %11548 = vmatprep.subr.msk.mxu1 %vm19816_vm10, %v19513_v10  ;;  %v12399_v29 = vpop.f32.mrf.mxu1  ;;  %vm19826_vm10 = vcmp.eq.s32.totalorder %v13210_v30, %v14839_v25 }
 0x318   :  { %11549 = vmatpush2.msk.msra.mxu1 %vm19817_vm8, %v19513_v10  ;;  %v2892_v26 = vadd.f32 %v12399_v29, %v2805_v2  ;;  %v2804_v35 = vadd.f32 %v2795_v15, %v2721_v24  ;;  %vm19827_vm8 = vcmp.eq.s32.totalorder %v13210_v30, %v14859_v33  ;;  %v3305_v20 = vpop.f32.mrf.mxu0 }
 0x319   :  { %11550 = vmatprep.subr.msk.mxu1 %vm19818_vm15, %v19513_v10  ;;  %v2882_v36 = vpop.f32.mrf.mxu1  ;;  %vm19828_vm15 = vcmp.eq.s32.totalorder %v13226_v34, %v14839_v25 }
 0x31a   :  { %11551 = vmatpush2.msk.msra.mxu1 %vm19819_vm3, %v19513_v10  ;;  %v2891_v6 = vadd.f32 %v2882_v36, %v2804_v35  ;;  %v2975_v16 = vadd.f32 %v12404_v32, %v2892_v26  ;;  %vm19829_vm3 = vcmp.eq.s32.totalorder %v13226_v34, %v14859_v33  ;;  %v12434_v11 = vpop.f32.mrf.mxu0 }
 0x31b   :  { %11552 = vmatprep.subr.msk.mxu1 %vm19820_vm5, %v19513_v10  ;;  %v12409_v15 = vpop.f32.mrf.mxu1  ;;  %vm19830_vm5 = vcmp.eq.s32.totalorder %v13244_v37, %v14839_v25 }
 0x31c   :  { %11553 = vmatpush2.msk.msra.mxu1 %vm19821_vm7, %v19513_v10  ;;  %v3062_v8 = vadd.f32 %v12409_v15, %v2975_v16  ;;  %v2974_v13 = vadd.f32 %v2965_v27, %v2891_v6  ;;  %vm19831_vm7 = vcmp.eq.s32.totalorder %v13244_v37, %v14859_v33  ;;  %v3475_v24 = vpop.f32.mrf.mxu0 }
 0x31d   :  { %11554 = vmatprep.subr.msk.mxu1 %vm19822_vm0, %v19513_v10  ;;  %v3052_v5 = vpop.f32.mrf.mxu1  ;;  %vm19832_vm0 = vcmp.eq.s32.totalorder %v13267_v38, %v14839_v25 }
 0x31e   :  { %11555 = vmatpush2.msk.msra.mxu1 %vm19823_vm9, %v19513_v10  ;;  %v3061_v28 = vadd.f32 %v3052_v5, %v2974_v13  ;;  %v3145_v32 = vadd.f32 %v12414_v4, %v3062_v8  ;;  %vm19833_vm9 = vcmp.eq.s32.totalorder %v13267_v38, %v14859_v33  ;;  %v12444_v35 = vpop.f32.mrf.mxu0 }
 0x31f   :  { %4045 = vmatmul.mubr.f32.vlgmr.msra.gmra.mxu1 %v16327_v7  ;;  %11620 = vmatprep.subr.msk.mxu1 %vm19824_vm11, %v19513_v10  ;;  %vm19834_vm11 = vcmp.eq.s32.totalorder %v13294_v39, %v14839_v25 }
 0x320   :  { %11621 = vmatpush1.msk.msra.mxu1 %vm19825_vm13, %v19513_v10  ;;  %4186 = vmatprep.mubr.f32.mxu1 %v16041_v17  ;;  %v3144_v3 = vadd.f32 %v3135_v9, %v3061_v28  ;;  %vm19835_vm13 = vcmp.eq.s32.totalorder %v13294_v39, %v14859_v33  ;;  %v3645_v13 = vpop.f32.mrf.mxu0 }
 0x321   :  { %11622 = vmatprep.subr.msk.mxu1 %vm19826_vm10, %v19513_v10  ;;  %vm19836_vm10 = vcmp.eq.s32.totalorder %v13321_v40, %v14839_v25 }
 0x322   :  { %11623 = vmatpush1.msk.msra.mxu1 %vm19827_vm8, %v19513_v10  ;;  %vm19837_vm8 = vcmp.eq.s32.totalorder %v13321_v40, %v14859_v33 }
 0x323   :  { %11624 = vmatprep.subr.msk.mxu1 %vm19828_vm15, %v19513_v10  ;;  %vm19838_vm15 = vcmp.eq.s32.totalorder %v13348_v41, %v14839_v25 }
 0x324   :  { %11625 = vmatpush1.msk.msra.mxu1 %vm19829_vm3, %v19513_v10  ;;  %vm19839_vm3 = vcmp.eq.s32.totalorder %v13348_v41, %v14859_v33 }
 0x325   :  { %11626 = vmatprep.subr.msk.mxu1 %vm19830_vm5, %v19513_v10  ;;  %vm19840_vm5 = vcmp.eq.s32.totalorder %v13375_v42, %v14839_v25 }
 0x326   :  { %11627 = vmatpush1.msk.msra.mxu1 %vm19831_vm7, %v19513_v10  ;;  %vm19841_vm7 = vcmp.eq.s32.totalorder %v13375_v42, %v14859_v33 }
 0x327   :  { %11628 = vmatprep.subr.msk.mxu1 %vm19832_vm0, %v19513_v10  ;;  %vm19842_vm0 = vcmp.eq.s32.totalorder %v13402_v43, %v14839_v25 }
 0x328   :  { %11629 = vmatpush1.msk.msra.mxu1 %vm19833_vm9, %v19513_v10  ;;  %vm19843_vm9 = vcmp.eq.s32.totalorder %v13402_v43, %v14859_v33 }
 0x329   :  { %11630 = vmatprep.subr.msk.mxu1 %vm19834_vm11, %v19513_v10  ;;  %vm19844_vm11 = vcmp.eq.s32.totalorder %v13429_v44, %v14839_v25 }
 0x32a   :  { %11631 = vmatpush1.msk.msra.mxu1 %vm19835_vm13, %v19513_v10  ;;  %vm19845_vm13 = vcmp.eq.s32.totalorder %v13429_v44, %v14859_v33 }
 0x32b   :  { %11632 = vmatprep.subr.msk.mxu1 %vm19836_vm10, %v19513_v10  ;;  %vm19846_vm10 = vcmp.eq.s32.totalorder %v13456_v45, %v14839_v25 }
 0x32c   :  { %11633 = vmatpush1.msk.msra.mxu1 %vm19837_vm8, %v19513_v10  ;;  %vm19847_vm8 = vcmp.eq.s32.totalorder %v13456_v45, %v14859_v33 }
 0x32d   :  { %11634 = vmatprep.subr.msk.mxu1 %vm19838_vm15, %v19513_v10  ;;  %vm19848_vm15 = vcmp.eq.s32.totalorder %v13483_v46, %v14839_v25 }
 0x32e   :  { %11635 = vmatpush1.msk.msra.mxu1 %vm19839_vm3, %v19513_v10  ;;  %vm19849_vm3 = vcmp.eq.s32.totalorder %v13483_v46, %v14859_v33 }
 0x32f   :  { %11636 = vmatprep.subr.msk.mxu1 %vm19840_vm5, %v19513_v10  ;;  %vm19850_vm5 = vcmp.eq.s32.totalorder %v13510_v47, %v14839_v25 }
 0x330   :  { %11637 = vmatpush1.msk.msra.mxu1 %vm19841_vm7, %v19513_v10  ;;  %vm19851_vm7 = vcmp.eq.s32.totalorder %v13510_v47, %v14859_v33 }
 0x331   :  { %11638 = vmatprep.subr.msk.mxu1 %vm19842_vm0, %v19513_v10  ;;  %vm19852_vm0 = vcmp.eq.s32.totalorder %v13537_v48, %v14839_v25 }
 0x332   :  { %11639 = vmatpush1.msk.msra.mxu1 %vm19843_vm9, %v19513_v10  ;;  %vm19853_vm9 = vcmp.eq.s32.totalorder %v13537_v48, %v14859_v33 }
 0x333   :  { %11640 = vmatprep.subr.msk.mxu1 %vm19844_vm11, %v19513_v10  ;;  %vm19854_vm11 = vcmp.eq.s32.totalorder %v13151_v12, %v14839_v25 }
 0x334   :  { %11641 = vmatpush1.msk.msra.mxu1 %vm19845_vm13, %v19513_v10  ;;  %vm19855_vm13 = vcmp.eq.s32.totalorder %v13151_v12, %v14859_v33 }
 0x335   :  { %11642 = vmatprep.subr.msk.mxu1 %vm19846_vm10, %v19513_v10  ;;  %vm19856_vm10 = vcmp.eq.s32.totalorder %v13588_v49, %v14839_v25 }
 0x336   :  { %11643 = vmatpush1.msk.msra.mxu1 %vm19847_vm8, %v19513_v10  ;;  %vm19857_vm8 = vcmp.eq.s32.totalorder %v13588_v49, %v14859_v33 }
 0x337   :  { %11644 = vmatprep.subr.msk.mxu1 %vm19848_vm15, %v19513_v10  ;;  %vm19858_vm15 = vcmp.eq.s32.totalorder %v13615_v50, %v14839_v25 }
 0x338   :  { %11645 = vmatpush1.msk.msra.mxu1 %vm19849_vm3, %v19513_v10  ;;  %vm19859_vm3 = vcmp.eq.s32.totalorder %v13615_v50, %v14859_v33 }
 0x339   :  { %11646 = vmatprep.subr.msk.mxu1 %vm19850_vm5, %v19513_v10  ;;  %vm19860_vm5 = vcmp.eq.s32.totalorder %v13642_v51, %v14839_v25 }
 0x33a   :  { %11647 = vmatpush1.msk.msra.mxu1 %vm19851_vm7, %v19513_v10  ;;  %vm19861_vm7 = vcmp.eq.s32.totalorder %v13642_v51, %v14859_v33 }
 0x33b   :  { %11648 = vmatprep.subr.msk.mxu1 %vm19852_vm0, %v19513_v10  ;;  %vm19862_vm0 = vcmp.eq.s32.totalorder %v13669_v52, %v14839_v25 }
 0x33c   :  { %11649 = vmatpush1.msk.msra.mxu1 %vm19853_vm9, %v19513_v10  ;;  %vm19863_vm9 = vcmp.eq.s32.totalorder %v13669_v52, %v14859_v33 }
 0x33d   :  { %11650 = vmatprep.subr.msk.mxu1 %vm19854_vm11, %v19513_v10  ;;  %vm19864_vm11 = vcmp.eq.s32.totalorder %v13696_v53, %v14839_v25 }
 0x33e   :  { %11651 = vmatpush1.msk.msra.mxu1 %vm19855_vm13, %v19513_v10  ;;  %vm19865_vm13 = vcmp.eq.s32.totalorder %v13696_v53, %v14859_v33 }
 0x33f   :  { %11652 = vmatprep.subr.msk.mxu1 %vm19856_vm10, %v19513_v10  ;;  %vm19866_vm10 = vcmp.eq.s32.totalorder %v13723_v54, %v14839_v25 }
 0x340   :  { %11653 = vmatpush2.msk.msra.mxu1 %vm19857_vm8, %v19513_v10  ;;  %vm19867_vm8 = vcmp.eq.s32.totalorder %v13723_v54, %v14859_v33 }
 0x341   :  { %11654 = vmatprep.subr.msk.mxu1 %vm19858_vm15, %v19513_v10  ;;  %vm19868_vm15 = vcmp.eq.s32.totalorder %v13750_v55, %v14839_v25 }
 0x342   :  { %11655 = vmatpush2.msk.msra.mxu1 %vm19859_vm3, %v19513_v10  ;;  %vm19869_vm3 = vcmp.eq.s32.totalorder %v13750_v55, %v14859_v33 }
 0x343   :  { %11656 = vmatprep.subr.msk.mxu1 %vm19860_vm5, %v19513_v10  ;;  %vm19870_vm5 = vcmp.eq.s32.totalorder %v13777_v56, %v14839_v25 }
 0x344   :  { %11657 = vmatpush2.msk.msra.mxu1 %vm19861_vm7, %v19513_v10  ;;  %vm19871_vm7 = vcmp.eq.s32.totalorder %v13777_v56, %v14859_v33 }
 0x345   :  { %11658 = vmatprep.subr.msk.mxu1 %vm19862_vm0, %v19513_v10  ;;  %vm19872_vm0 = vcmp.eq.s32.totalorder %v13804_v57, %v14839_v25 }
 0x346   :  { %11659 = vmatpush2.msk.msra.mxu1 %vm19863_vm9, %v19513_v10  ;;  %vm19873_vm9 = vcmp.eq.s32.totalorder %v13804_v57, %v14859_v33 }
 0x347   :  { %11660 = vmatprep.subr.msk.mxu1 %vm19864_vm11, %v19513_v10  ;;  %vm19874_vm11 = vcmp.eq.s32.totalorder %v13831_v58, %v14839_v25 }
 0x348   :  { %11661 = vmatpush2.msk.msra.mxu1 %vm19865_vm13, %v19513_v10  ;;  %vm19875_vm13 = vcmp.eq.s32.totalorder %v13831_v58, %v14859_v33 }
 0x349   :  { %11662 = vmatprep.subr.msk.mxu1 %vm19866_vm10, %v19513_v10  ;;  %vm19876_vm10 = vcmp.eq.s32.totalorder %v13858_v59, %v14839_v25 }
 0x34a   :  { %11663 = vmatpush2.msk.msra.mxu1 %vm19867_vm8, %v19513_v10  ;;  %vm19877_vm8 = vcmp.eq.s32.totalorder %v13858_v59, %v14859_v33 }
 0x34b   :  { %11664 = vmatprep.subr.msk.mxu1 %vm19868_vm15, %v19513_v10  ;;  %vm19878_vm15 = vcmp.eq.s32.totalorder %v13885_v60, %v14839_v25 }
 0x34c   :  { %11665 = vmatpush2.msk.msra.mxu1 %vm19869_vm3, %v19513_v10  ;;  %vm19879_vm3 = vcmp.eq.s32.totalorder %v13885_v60, %v14859_v33 }
 0x34d   :  { %11666 = vmatprep.subr.msk.mxu1 %vm19870_vm5, %v19513_v10  ;;  %vm19880_vm5 = vcmp.eq.s32.totalorder %v13961_v61, %v14839_v25 }
 0x34e   :  { %11667 = vmatpush2.msk.msra.mxu1 %vm19871_vm7, %v19513_v10  ;;  %vm19881_vm7 = vcmp.eq.s32.totalorder %v13961_v61, %v14859_v33 }
 0x34f   :  { %11668 = vmatprep.subr.msk.mxu1 %vm19872_vm0, %v19513_v10  ;;  %vm19882_vm0 = vcmp.eq.s32.totalorder %v13980_v62, %v14839_v25 }
 0x350   :  { %11669 = vmatpush2.msk.msra.mxu1 %vm19873_vm9, %v19513_v10  ;;  %v12419_v31 = vpop.f32.mrf.mxu1  ;;  %vm19883_vm9 = vcmp.eq.s32.totalorder %v13980_v62, %v14859_v33 }
 0x351   :  { %11670 = vmatprep.subr.msk.mxu1 %vm19874_vm11, %v19513_v10  ;;  %v3232_v2 = vadd.f32 %v12419_v31, %v3145_v32  ;;  %vm19884_vm11 = vcmp.eq.s32.totalorder %v14007_v63, %v14839_v25 }
 0x352   :  { %11671 = vmatpush2.msk.msra.mxu1 %vm19875_vm13, %v19513_v10  ;;  %v3222_v27 = vpop.f32.mrf.mxu1  ;;  %vm19885_vm13 = vcmp.eq.s32.totalorder %v14007_v63, %v14859_v33  ;;  %v12976_v63 = vld [vmem:[%s19079_s4 + $0x20] sm:$0xff] }
 0x353   :  { %11672 = vmatprep.subr.msk.mxu1 %vm19876_vm10, %v19513_v10  ;;  %v3231_v29 = vadd.f32 %v3222_v27, %v3144_v3  ;;  %v3315_v26 = vadd.f32 %v12424_v14, %v3232_v2  ;;  %vm19886_vm10 = vcmp.eq.s32.totalorder %v14034_v0, %v14839_v25 }
 0x354   :  { %11673 = vmatpush2.msk.msra.mxu1 %vm19877_vm8, %v19513_v10  ;;  %vm19887_vm8 = vcmp.eq.s32.totalorder %v14034_v0, %v14859_v33  ;;  %v12977_v0 = vld [vmem:[%s19079_s4 + $0x28] sm:$0xff] }
 0x355   :  { %11674 = vmatprep.subr.msk.mxu1 %vm19878_vm15, %v19513_v10  ;;  %v12429_v36 = vpop.f32.mrf.mxu1  ;;  %v3314_v6 = vadd.f32 %v3305_v20, %v3231_v29  ;;  %v17651_v20 = vpop.f32.mrf.mxu0  ;;  %vm19888_vm15 = vcmp.eq.s32.totalorder %v13588_v49, %v15628_v1  ;;  %v12965_v49 = vld [vmem:[%s19079_s4 + $0x88] sm:$0xff]  ;;  %v12979_v29 = vld [vmem:[%s19079_s4 + $0x38] sm:$0xff] }
 0x356   :  { %11675 = vmatpush2.msk.msra.mxu1 %vm19879_vm3, %v19513_v10  ;;  %v3402_v16 = vadd.f32 %v12429_v36, %v3315_v26  ;;  %vm19889_vm3 = vcmp.eq.s32.totalorder %v13178_v21, %v15628_v1  ;;  %v12964_v21 = vld [vmem:[%s19079_s4 + $0x80] sm:$0xff] }
 0x357   :  { %11676 = vmatprep.subr.msk.mxu1 %vm19880_vm5, %v19513_v10  ;;  %v3392_v4 = vpop.f32.mrf.mxu1  ;;  %v3815_v33 = vpop.f32.mrf.mxu0  ;;  %vm19890_vm5 = vcmp.eq.s32.totalorder %v13615_v50, %v15628_v1  ;;  %v12966_v50 = vld [vmem:[%s19079_s4 + $0xa0] sm:$0xff] }
 0x358   :  { %11677 = vmatpush2.msk.msra.mxu1 %vm19881_vm7, %v19513_v10  ;;  %v3401_v15 = vadd.f32 %v3392_v4, %v3314_v6  ;;  %v3485_v8 = vadd.f32 %v12434_v11, %v3402_v16  ;;  %vm19891_vm7 = vcmp.eq.s32.totalorder %v13210_v30, %v15628_v1  ;;  %v12981_v6 = vld [vmem:[%s19079_s4 + $0x40] sm:$0xff]  ;;  %v12982_v16 = vld [vmem:[%s19079_s4 + $0x48] sm:$0xff] }
 0x359   :  { %11678 = vmatprep.subr.msk.mxu1 %vm19882_vm0, %v19513_v10  ;;  %v12439_v5 = vpop.f32.mrf.mxu1  ;;  %vm19892_vm0 = vcmp.eq.s32.totalorder %v13642_v51, %v15628_v1  ;;  %v12983_v4 = vld [vmem:[%s19079_s4 + $0x120] sm:$0xff] }
 0x35a   :  { %11679 = vmatpush2.msk.msra.mxu1 %vm19883_vm9, %v19513_v10  ;;  %v3572_v28 = vadd.f32 %v12439_v5, %v3485_v8  ;;  %v3484_v32 = vadd.f32 %v3475_v24, %v3401_v15  ;;  %vm19893_vm9 = vcmp.eq.s32.totalorder %v13226_v34, %v15628_v1  ;;  %v17801_v34 = vpop.f32.mrf.mxu0  ;;  %v12984_v8 = vld [vmem:[%s19079_s4 + $0x128] sm:$0xff]  ;;  %v12985_v5 = vld [vmem:[%s19079_s4 + $0x50] sm:$0xff] }
 0x35b   :  { %11680 = vmatprep.subr.msk.mxu1 %vm19884_vm11, %v19513_v10  ;;  %v3562_v9 = vpop.f32.mrf.mxu1  ;;  %vm19894_vm11 = vcmp.eq.s32.totalorder %v13669_v52, %v15628_v1  ;;  %v12967_v52 = vld [vmem:[%s19079_s4 + $0xa8] sm:$0xff] }
 0x35c   :  { %11681 = vmatpush2.msk.msra.mxu1 %vm19885_vm13, %v19513_v10  ;;  %v3571_v3 = vadd.f32 %v3562_v9, %v3484_v32  ;;  %v3655_v14 = vadd.f32 %v12444_v35, %v3572_v28  ;;  %vm19895_vm13 = vcmp.eq.s32.totalorder %v13244_v37, %v15628_v1  ;;  %v12980_v35 = vld [vmem:[%s19079_s4 + $0x108] sm:$0xff]  ;;  %v12986_v28 = vld [vmem:[%s19079_s4 + $0x58] sm:$0xff] }
 0x35d   :  { %11682 = vmatprep.subr.msk.mxu1 %vm19886_vm10, %v19513_v10  ;;  %v12449_v11 = vpop.f32.mrf.mxu1  ;;  %vm19896_vm10 = vcmp.eq.s32.totalorder %v13696_v53, %v15628_v1  ;;  %v12968_v53 = vld [vmem:[%s19079_s4 + $0xc0] sm:$0xff]  ;;  %v292_v32 = vld [vmem:[%s19080_s5 + $0x8] sm:$0xff] }
 0x35e   :  { %11683 = vmatpush2.msk.msra.mxu1 %vm19887_vm8, %v19513_v10  ;;  %v17661_v31 = vadd.f32 %v12449_v11, %v3655_v14  ;;  %v3654_v24 = vadd.f32 %v3645_v13, %v3571_v3  ;;  %vm19897_vm8 = vcmp.eq.s32.totalorder %v13267_v38, %v15628_v1  ;;  %v17806_v38 = vpop.f32.mrf.mxu0  ;;  %v291_v13 = vld [vmem:[%s19080_s5] sm:$0xff]  ;;  %v12988_v14 = vld [vmem:[%s19079_s4 + $0x148] sm:$0xff] }
 0x35f   :  { %4187 = vmatmul.mubr.f32.vlgmr.msra.gmra.mxu1 %v16327_v7  ;;  %12064 = vmatprep.subr.msk.mxu1 %vm19888_vm15, %v19513_v10  ;;  %v3732_v2 = vpop.f32.mrf.mxu1  ;;  %vm19898_vm15 = vcmp.eq.s32.totalorder %v13723_v54, %v15628_v1  ;;  %v12969_v54 = vld [vmem:[%s19079_s4 + $0xc8] sm:$0xff]  ;;  %v12987_v3 = vld [vmem:[%s19079_s4 + $0x140] sm:$0xff] }
 0x360   :  { %12065 = vmatpush3.msk.msra.mxu1 %vm19889_vm3, %v19513_v10  ;;  %4328 = vmatprep.mubr.f32.mxu1 %v16041_v17  ;;  %v3741_v25 = vadd.f32 %v3732_v2, %v3654_v24  ;;  %vm19899_vm3 = vcmp.eq.s32.totalorder %v13294_v39, %v15628_v1  ;;  %v12989_v11 = vld [vmem:[%s19079_s4 + $0x60] sm:$0xff]  ;;  %v12991_v2 = vld [vmem:[%s19079_s4 + $0x68] sm:$0xff] }
 0x361   :  { %12066 = vmatprep.subr.msk.mxu1 %vm19890_vm5, %v19513_v10  ;;  %vm19900_vm5 = vcmp.eq.s32.totalorder %v13750_v55, %v15628_v1  ;;  %v12970_v55 = vld [vmem:[%s19079_s4 + $0xe0] sm:$0xff] }
 0x362   :  { %v17677_v27 = vadd.f32 %v3815_v33, %v3741_v25  ;;  %12067 = vmatpush3.msk.msra.mxu1 %vm19891_vm7, %v19513_v10  ;;  %vm19901_vm7 = vcmp.eq.s32.totalorder %v13321_v40, %v15628_v1  ;;  %v12990_v24 = vld [vmem:[%s19079_s4 + $0x160] sm:$0xff]  ;;  %v12992_v25 = vld [vmem:[%s19079_s4 + $0x168] sm:$0xff]  ;;  %v12993_v33 = vld [vmem:[%s19079_s4 + $0x70] sm:$0xff] }
 0x363   :  { %12068 = vmatprep.subr.msk.mxu1 %vm19892_vm0, %v19513_v10  ;;  %vm19902_vm0 = vcmp.eq.s32.totalorder %v13777_v56, %v15628_v1  ;;  %v12971_v56 = vld [vmem:[%s19079_s4 + $0xe8] sm:$0xff] }
 0x364   :  { %12069 = vmatpush3.msk.msra.mxu1 %vm19893_vm9, %v19513_v10  ;;  %vm19903_vm9 = vcmp.eq.s32.totalorder %v13348_v41, %v15628_v1 }
 0x365   :  { %12070 = vmatprep.subr.msk.mxu1 %vm19894_vm11, %v19513_v10  ;;  %vm19904_vm11 = vcmp.eq.s32.totalorder %v13804_v57, %v15628_v1  ;;  %v12972_v57 = vld [vmem:[%s19079_s4 + $0x100] sm:$0xff] }
 0x366   :  { %12071 = vmatpush3.msk.msra.mxu1 %vm19895_vm13, %v19513_v10  ;;  %vm19905_vm13 = vcmp.eq.s32.totalorder %v13375_v42, %v15628_v1 }
 0x367   :  { %12072 = vmatprep.subr.msk.mxu1 %vm19896_vm10, %v19513_v10  ;;  %vm19906_vm10 = vcmp.eq.s32.totalorder %v13831_v58, %v15628_v1 }
 0x368   :  { %12073 = vmatpush3.msk.msra.mxu1 %vm19897_vm8, %v19513_v10  ;;  %vm19907_vm8 = vcmp.eq.s32.totalorder %v13402_v43, %v15628_v1 }
 0x369   :  { %12074 = vmatprep.subr.msk.mxu1 %vm19898_vm15, %v19513_v10  ;;  %vm19908_vm15 = vcmp.eq.s32.totalorder %v13858_v59, %v15628_v1  ;;  %v12973_v59 = vld [vmem:[%s19079_s4 + $0x18] sm:$0xff] }
 0x36a   :  { %12075 = vmatpush3.msk.msra.mxu1 %vm19899_vm3, %v19513_v10  ;;  %vm19909_vm3 = vcmp.eq.s32.totalorder %v13429_v44, %v15628_v1 }
 0x36b   :  { %12076 = vmatprep.subr.msk.mxu1 %vm19900_vm5, %v19513_v10  ;;  %vm19910_vm5 = vcmp.eq.s32.totalorder %v13885_v60, %v15628_v1  ;;  %v12974_v60 = vld [vmem:[%s19079_s4] sm:$0xff] }
 0x36c   :  { %12077 = vmatpush3.msk.msra.mxu1 %vm19901_vm7, %v19513_v10  ;;  %vm19911_vm7 = vcmp.eq.s32.totalorder %v13456_v45, %v15628_v1 }
 0x36d   :  { %12078 = vmatprep.subr.msk.mxu1 %vm19902_vm0, %v19513_v10  ;;  %vm19912_vm0 = vcmp.eq.s32.totalorder %v13961_v61, %v15628_v1  ;;  %v12975_v61 = vld [vmem:[%s19079_s4 + $0x8] sm:$0xff] }
 0x36e   :  { %12079 = vmatpush3.msk.msra.mxu1 %vm19903_vm9, %v19513_v10  ;;  %vm19913_vm9 = vcmp.eq.s32.totalorder %v13483_v46, %v15628_v1 }
 0x36f   :  { %12080 = vmatprep.subr.msk.mxu1 %vm19904_vm11, %v19513_v10  ;;  %vm19914_vm11 = vcmp.eq.s32.totalorder %v13510_v47, %v15628_v1  ;;  %v12978_v1 = vld [vmem:[%s19079_s4 + $0x30] sm:$0xff] }
 0x370   :  { %12081 = vmatpush3.msk.msra.mxu1 %vm19905_vm13, %v19513_v10 }
 0x371   :  { %12082 = vmatprep.subr.msk.mxu1 %vm19906_vm10, %v19513_v10 }
 0x372   :  { %12083 = vmatpush3.msk.msra.mxu1 %vm19907_vm8, %v19513_v10 }
 0x373   :  { %12084 = vmatprep.subr.msk.mxu1 %vm19908_vm15, %v19513_v10 }
 0x374   :  { %12085 = vmatpush3.msk.msra.mxu1 %vm19909_vm3, %v19513_v10 }
 0x375   :  { %12086 = vmatprep.subr.msk.mxu1 %vm19910_vm5, %v19513_v10 }
 0x376   :  { %12087 = vmatpush3.msk.msra.mxu1 %vm19911_vm7, %v19513_v10 }
 0x377   :  { %12088 = vmatprep.subr.msk.mxu1 %vm19912_vm0, %v19513_v10 }
 0x378   :  { %12089 = vmatpush3.msk.msra.mxu1 %vm19913_vm9, %v19513_v10 }
 0x379   :  { %12090 = vmatprep.subr.msk.mxu1 %vm624_vm2, %v19513_v10  ;;  %vm6309_vm2 = vcmask 523264  }
 0x37a   :  { %12091 = vmatpush3.msk.msra.mxu1 %vm19914_vm11, %v19513_v10 }
 0x37b   :  { %12092 = vmatprep.subr.msk.mxu1 %vm611_vm12, %v19513_v10 }
 0x37c   :  { %12093 = vmatpush3.msk.msra.mxu1 %vm403_vm1, %v19513_v10 }
 0x37d   :  { %12094 = vmatprep.subr.msk.mxu1 %vm598_vm6, %v19513_v10 }
 0x37e   :  { %12095 = vmatpush3.msk.msra.mxu1 %vm390_vm4, %v19513_v10 }
 0x37f   :  { %4329 = vmatmul.mubr.f32.vlgmr.msra.gmra.mxu1 %v16327_v7 }
 0x380   :  { %12497 = vmatprep.mubr.msk.f32.mxu1 %vm1710_vm14, %v12964_v21  ;;  %v12994_v21 = vld [vmem:[%s19079_s4 + $0x180] sm:$0xff] }
 0x383   :  { %v4117_v41 = vpop.f32.mrf.mxu0 }
 0x385   :  { %v4119_v51 = vpop.f32.mrf.mxu0 }
 0x39e   :  { %v3904_v30 = vpop.f32.mrf.mxu1 }
 0x39f   :  { %4335 = vrot.lane.b32.xlu1 %v3904_v30, %s13038_s14 }
 0x3a0   :  { %v3906_v37 = vpop.f32.mrf.mxu1 }
 0x3a1   :  { %4566 = vrot.lane.b32.xlu0 %v3906_v37, %s13038_s14 }
 0x3a3   :  { %4724 = vrot.lane.b32.xlu1 %v17801_v34, %s13038_s14 }
 0x3a5   :  { %4882 = vrot.lane.b32.xlu0 %v17806_v38, %s13038_s14 }
 0x3c5   :  { %v4259_v36 = vpop.f32.mrf.mxu0 }
 0x3c7   :  { %v4261_v15 = vpop.f32.mrf.mxu0 }
 0x3df   :  { %v4046_v39 = vpop.f32.mrf.mxu1 }
 0x3e0   :  { %12495 = vmatprep.subr.mxu1 %v4046_v39  ;;  %5040 = vrot.lane.b32.xlu1 %v4046_v39, %s13038_s14 }
 0x3e1   :  { %v4048_v40 = vpop.f32.mrf.mxu1  ;;  %12496 = vmatpush3.msra.mxu1 %v4046_v39 }
 0x3e2   :  { %12498 = vmatmul.mubr.msk.f32.vlgmr.msra.gmra.mxu1 %vm1710_vm14, %v12965_v49  ;;  %12505 = vmatprep.subr.mxu1 %v4048_v40 }
 0x3e3   :  { %5198 = vrot.lane.b32.xlu0 %v4048_v40, %s13038_s14  ;;  %12506 = vmatpush3.msra.mxu1 %v4048_v40  ;;  %v12997_v40 = vld [vmem:[%s19079_s4 + $0x188] sm:$0xff] }
 0x3e4   :  { %5356 = vrot.lane.b32.xlu1 %v4117_v41, %s13038_s14  ;;  %12515 = vmatprep.subr.mxu1 %v4117_v41 }
 0x3e5   :  { %12507 = vmatprep.mubr.msk.f32.mxu1 %vm1710_vm14, %v12966_v50 }
 0x3e6   :  { %12508 = vmatmul.mubr.msk.f32.vlgmr.msra.gmra.mxu1 %vm1710_vm14, %v12967_v52 }
 0x3e7   :  { %12516 = vmatpush3.msra.mxu1 %v4117_v41  ;;  %5514 = vrot.lane.b32.xlu0 %v4119_v51, %s13038_s14  ;;  %v19915_v41 = vmov 0.0  }
 0x3e8   :  { %12525 = vmatprep.subr.mxu1 %v4119_v51  ;;  %12517 = vmatprep.mubr.msk.f32.mxu1 %vm1710_vm14, %v12968_v53  ;;  %v12999_v53 = vld [vmem:[%s19079_s4 + $0xb0] sm:$0xff] }
 0x3ea   :  { %12518 = vmatmul.mubr.msk.f32.vlgmr.msra.gmra.mxu1 %vm1710_vm14, %v12969_v54 }
 0x3eb   :  { %12526 = vmatpush3.msra.mxu1 %v4119_v51  ;;  %12527 = vmatprep.mubr.msk.f32.mxu1 %vm1710_vm14, %v12970_v55  ;;  %v12998_v51 = vld [vmem:[%s19079_s4 + $0x98] sm:$0xff] }
 0x3ec   :  { %v13000_v55 = vld [vmem:[%s19079_s4 + $0xb8] sm:$0xff] }
 0x3ee   :  { %12528 = vmatmul.mubr.msk.f32.vlgmr.msra.gmra.mxu1 %vm1710_vm14, %v12971_v56  ;;  %v13001_v56 = vld [vmem:[%s19079_s4 + $0xd0] sm:$0xff] }
 0x3ef   :  { %12537 = vmatprep.mubr.msk.f32.mxu1 %vm1710_vm14, %v12972_v57  ;;  %v13002_v57 = vld [vmem:[%s19079_s4 + $0xd8] sm:$0xff] }
 0x411   :  { %v4336_v58 = vpop.permute.xlu1 %4335 }
 0x412   :  { %12455 = vmatprep.subr.mxu0 %v4336_v58 }
 0x413   :  { %12456 = vmatpush3.msra.mxu0 %v4336_v58  ;;  %v4567_v62 = vpop.permute.xlu0 %4566  ;;  %v13003_v58 = vld [vmem:[%s19079_s4 + $0xf0] sm:$0xff] }
 0x414   :  { %12458 = vmatmul.mubr.msk.f32.vlgmr.msra.gmra.mxu0 %vm1710_vm14, %v12973_v59  ;;  %12460 = vmatprep.subr.mxu0 %v3904_v30  ;;  %v13004_v59 = vld [vmem:[%s19079_s4 + $0xf8] sm:$0xff] }
 0x415   :  { %12461 = vmatpush3.msra.mxu0 %v3904_v30  ;;  %12462 = vmatprep.mubr.msk.f32.mxu0 %vm1710_vm14, %v12974_v60  ;;  %v4725_v26 = vpop.permute.xlu1 %4724  ;;  %v12995_v30 = vld [vmem:[%s19079_s4 + $0x78] sm:$0xff]  ;;  %v13005_v60 = vld [vmem:[%s19079_s4 + $0x110] sm:$0xff] }
 0x416   :  { %12465 = vmatprep.subr.mxu0 %v3906_v37 }
 0x417   :  { %v4883_v9 = vpop.permute.xlu0 %4882 }
 0x418   :  { %12463 = vmatmul.mubr.msk.f32.vlgmr.msra.gmra.mxu0 %vm1710_vm14, %v12975_v61 }
 0x419   :  { %12466 = vmatpush3.msra.mxu0 %v3906_v37  ;;  %12467 = vmatprep.mubr.msk.f32.mxu0 %vm1710_vm14, %v12976_v63  ;;  %v13006_v63 = vld [vmem:[%s19079_s4 + $0x118] sm:$0xff] }
 0x41a   :  { %12470 = vmatprep.subr.mxu0 %v4567_v62 }
 0x41c   :  { %12468 = vmatmul.mubr.msk.f32.vlgmr.msra.gmra.mxu0 %vm1710_vm14, %v12977_v0  ;;  %v13007_v0 = vld [vmem:[%s19079_s4 + $0x130] sm:$0xff] }
 0x41d   :  { %12471 = vmatpush3.msra.mxu0 %v4567_v62  ;;  %12472 = vmatprep.mubr.msk.f32.mxu0 %vm1710_vm14, %v12978_v1 }
 0x41e   :  { %12475 = vmatprep.subr.mxu0 %v17801_v34 }
 0x41f   :  { %v4188_v17 = vpop.f32.mrf.mxu1 }
 0x420   :  { %5672 = vrot.lane.b32.xlu1 %v4188_v17, %s13038_s14  ;;  %12535 = vmatprep.subr.mxu1 %v4188_v17 }
 0x421   :  { %v4190_v7 = vpop.f32.mrf.mxu1  ;;  %12473 = vmatmul.mubr.msk.f32.vlgmr.msra.gmra.mxu0 %vm1710_vm14, %v12979_v29  ;;  %12536 = vmatpush3.msra.mxu1 %v4188_v17  ;;  %v13008_v17 = vld [vmem:[%s19079_s4 + $0x138] sm:$0xff] }
 0x422   :  { %12476 = vmatpush3.msra.mxu0 %v17801_v34  ;;  %5830 = vrot.lane.b32.xlu0 %v4190_v7, %s13038_s14  ;;  %v12996_v34 = vld [vmem:[%s19079_s4 + $0x90] sm:$0xff] }
 0x423   :  { %12480 = vmatprep.subr.mxu0 %v4725_v26  ;;  %12538 = vmatmul.mubr.msk.f32.vlgmr.msra.gmra.mxu1 %vm1710_vm14, %v12980_v35  ;;  %v13011_v35 = vld [vmem:[%s19079_s4 + $0x170] sm:$0xff] }
 0x424   :  { %12545 = vmatprep.subr.mxu1 %v4190_v7  ;;  %12477 = vmatprep.mubr.msk.f32.mxu0 %vm1710_vm14, %v12981_v6 }
 0x425   :  { %12546 = vmatpush3.msra.mxu1 %v4190_v7  ;;  %5988 = vrot.lane.b32.xlu1 %v4259_v36, %s13038_s14  ;;  %v13009_v7 = vld [vmem:[%s19079_s4 + $0x150] sm:$0xff] }
 0x426   :  { %12555 = vmatprep.subr.mxu1 %v4259_v36  ;;  %12478 = vmatmul.mubr.msk.f32.vlgmr.msra.gmra.mxu0 %vm1710_vm14, %v12982_v16 }
 0x427   :  { %12481 = vmatpush3.msra.mxu0 %v4725_v26  ;;  %12547 = vmatprep.mubr.msk.f32.mxu1 %vm1710_vm14, %v12983_v4  ;;  %v13010_v26 = vld [vmem:[%s19079_s4 + $0x158] sm:$0xff] }
 0x428   :  { %12485 = vmatprep.subr.mxu0 %v17806_v38  ;;  %12548 = vmatmul.mubr.msk.f32.vlgmr.msra.gmra.mxu1 %vm1710_vm14, %v12984_v8 }
 0x429   :  { %12556 = vmatpush3.msra.mxu1 %v4259_v36  ;;  %6146 = vrot.lane.b32.xlu0 %v4261_v15, %s13038_s14  ;;  %v13012_v36 = vld [vmem:[%s19079_s4 + $0x178] sm:$0xff] }
 0x42a   :  { %12565 = vmatprep.subr.mxu1 %v4261_v15  ;;  %12482 = vmatprep.mubr.msk.f32.mxu0 %vm1710_vm14, %v12985_v5 }
 0x42b   :  { %3828 = vperm.xlu1 %12958, %v291_v13   ;;  %12483 = vmatmul.mubr.msk.f32.vlgmr.msra.gmra.mxu0 %vm1710_vm14, %v12986_v28 }
 0x42c   :  { %12486 = vmatpush3.msra.mxu0 %v17806_v38  ;;  %12557 = vmatprep.mubr.msk.f32.mxu1 %vm1710_vm14, %v12987_v3 }
 0x42d   :  { %12490 = vmatprep.subr.mxu0 %v4883_v9  ;;  %12558 = vmatmul.mubr.msk.f32.vlgmr.msra.gmra.mxu1 %vm1710_vm14, %v12988_v14 }
 0x42e   :  { %3833 = vperm.xlu0 %12957, %v292_v32   ;;  %12566 = vmatpush3.msra.mxu1 %v4261_v15 }
 0x42f   :  { %12487 = vmatprep.mubr.msk.f32.mxu0 %vm1710_vm14, %v12989_v11  ;;  %12567 = vmatprep.mubr.msk.f32.mxu1 %vm1710_vm14, %v12990_v24 }
 0x430   :  { %12488 = vmatmul.mubr.msk.f32.vlgmr.msra.gmra.mxu0 %vm1710_vm14, %v12991_v2 }
 0x431   :  { %12491 = vmatpush3.msra.mxu0 %v4883_v9  ;;  %12568 = vmatmul.mubr.msk.f32.vlgmr.msra.gmra.mxu1 %vm1710_vm14, %v12992_v25 }
 0x432   :  { %12492 = vmatprep.mubr.msk.f32.mxu0 %vm1710_vm14, %v12993_v33  ;;  %12577 = vmatprep.mubr.msk.f32.mxu1 %vm1710_vm14, %v12994_v21 }
 0x434   :  { %12493 = vmatmul.mubr.msk.f32.vlgmr.msra.gmra.mxu0 %vm1710_vm14, %v12995_v30 }
 0x435   :  { %12502 = vmatprep.mubr.msk.f32.mxu0 %vm1710_vm14, %v12996_v34 }
 0x43f   :  { %v12096_v37 = vpop.f32.mrf.mxu1 }
 0x441   :  { %v12097_v38 = vpop.f32.mrf.mxu1 }
 0x442   :  { %v12098_v39 = vadd.f32 %v12097_v38, %v12096_v37 }
 0x444   :  { %12575 = vmatprep.subr.mxu1 %v12098_v39 }
 0x445   :  { %12576 = vmatpush3.msra.mxu1 %v12098_v39 }
 0x446   :  { %12578 = vmatmul.mubr.msk.f32.vlgmr.msra.gmra.mxu1 %vm1710_vm14, %v12997_v40 }
 0x447   :  { %6651 = vmatprep.mubr.f32.mxu1 %v19915_v41 }
 0x452   :  { %v5041_v49 = vpop.permute.xlu1 %5040 }
 0x453   :  { %12500 = vmatprep.subr.mxu0 %v5041_v49 }
 0x454   :  { %12501 = vmatpush3.msra.mxu0 %v5041_v49 }
 0x455   :  { %v5199_v50 = vpop.permute.xlu0 %5198  ;;  %12503 = vmatmul.mubr.msk.f32.vlgmr.msra.gmra.mxu0 %vm1710_vm14, %v12998_v51 }
 0x456   :  { %12510 = vmatprep.subr.mxu0 %v5199_v50  ;;  %v5357_v52 = vpop.permute.xlu1 %5356  ;;  %12512 = vmatprep.mubr.msk.f32.mxu0 %vm1710_vm14, %v12999_v53 }
 0x457   :  { %12511 = vmatpush3.msra.mxu0 %v5199_v50 }
 0x458   :  { %12520 = vmatprep.subr.mxu0 %v5357_v52 }
 0x459   :  { %v5515_v54 = vpop.permute.xlu0 %5514  ;;  %12513 = vmatmul.mubr.msk.f32.vlgmr.msra.gmra.mxu0 %vm1710_vm14, %v13000_v55 }
 0x45a   :  { %12521 = vmatpush3.msra.mxu0 %v5357_v52  ;;  %12522 = vmatprep.mubr.msk.f32.mxu0 %vm1710_vm14, %v13001_v56 }
 0x45b   :  { %12530 = vmatprep.subr.mxu0 %v5515_v54 }
 0x45d   :  { %12523 = vmatmul.mubr.msk.f32.vlgmr.msra.gmra.mxu0 %vm1710_vm14, %v13002_v57 }
 0x45e   :  { %12531 = vmatpush3.msra.mxu0 %v5515_v54  ;;  %12532 = vmatprep.mubr.msk.f32.mxu0 %vm1710_vm14, %v13003_v58 }
 0x461   :  { %12533 = vmatmul.mubr.msk.f32.vlgmr.msra.gmra.mxu0 %vm1710_vm14, %v13004_v59 }
 0x462   :  { %12542 = vmatprep.mubr.msk.f32.mxu0 %vm1710_vm14, %v13005_v60 }
 0x492   :  { %v5673_v61 = vpop.permute.xlu1 %5672 }
 0x493   :  { %12540 = vmatprep.subr.mxu0 %v5673_v61 }
 0x494   :  { %12541 = vmatpush3.msra.mxu0 %v5673_v61  ;;  %v5831_v62 = vpop.permute.xlu0 %5830 }
 0x495   :  { %12543 = vmatmul.mubr.msk.f32.vlgmr.msra.gmra.mxu0 %vm1710_vm14, %v13006_v63  ;;  %12550 = vmatprep.subr.mxu0 %v5831_v62 }
 0x496   :  { %12551 = vmatpush3.msra.mxu0 %v5831_v62  ;;  %12552 = vmatprep.mubr.msk.f32.mxu0 %vm1710_vm14, %v13007_v0 }
 0x497   :  { %v5989_v1 = vpop.permute.xlu1 %5988 }
 0x498   :  { %12560 = vmatprep.subr.mxu0 %v5989_v1 }
 0x499   :  { %12553 = vmatmul.mubr.msk.f32.vlgmr.msra.gmra.mxu0 %vm1710_vm14, %v13008_v17 }
 0x49a   :  { %12561 = vmatpush3.msra.mxu0 %v5989_v1  ;;  %12562 = vmatprep.mubr.msk.f32.mxu0 %vm1710_vm14, %v13009_v7 }
 0x49b   :  { %v6147_v29 = vpop.permute.xlu0 %6146 }
 0x49c   :  { %12570 = vmatprep.subr.mxu0 %v6147_v29 }
 0x49d   :  { %12563 = vmatmul.mubr.msk.f32.vlgmr.msra.gmra.mxu0 %vm1710_vm14, %v13010_v26 }
 0x49e   :  { %12571 = vmatpush3.msra.mxu0 %v6147_v29  ;;  %12572 = vmatprep.mubr.msk.f32.mxu0 %vm1710_vm14, %v13011_v35 }
 0x4a1   :  { %12573 = vmatmul.mubr.msk.f32.vlgmr.msra.gmra.mxu0 %vm1710_vm14, %v13012_v36 }
 0x4a2   :  { %6574 = vmatprep.mubr.f32.mxu0 %v19915_v41  ;;  %v12499_v38 = vpop.f32.mrf.mxu1 }
 0x4a4   :  { %v5028_v50 = vpop.f32.mrf.mxu1 }
 0x4a6   :  { %v18022_v6 = vpop.permute.xlu1 %3828  ;;  %v12509_v54 = vpop.f32.mrf.mxu1 }
 0x4a7   :  { %v18026_v16 = vadd.f32 %v18022_v6, %v17677_v27 }
 0x4a8   :  { %v5186_v58 = vpop.f32.mrf.mxu1 }
 0x4a9   :  { %v6310_v4 = vsel %vm6309_vm2, %v18026_v16, 0.0 }
 0x4aa   :  { %6311 = vadd.xlane.f32.xlu1 %v6310_v4  ;;  %v12519_v62 = vpop.f32.mrf.mxu1 }
 0x4ac   :  { %v5344_v17 = vpop.f32.mrf.mxu1 }
 0x4ae   :  { %v12529_v35 = vpop.f32.mrf.mxu1 }
 0x4d4   :  { %v12459_v15 = vpop.f32.mrf.mxu0 }
 0x4d6   :  { %v4404_v8 = vpop.f32.mrf.mxu0 }
 0x4d8   :  { %v12464_v13 = vpop.f32.mrf.mxu0 }
 0x4d9   :  { %v4485_v24 = vadd.f32 %v12464_v13, %v12459_v15 }
 0x4da   :  { %v4479_v5 = vpop.f32.mrf.mxu0 }
 0x4db   :  { %v4480_v2 = vadd.f32 %v4479_v5, %v4404_v8  ;;  %v5502_v8 = vpop.f32.mrf.mxu1 }
 0x4dc   :  { %v12469_v28 = vpop.f32.mrf.mxu0 }
 0x4dd   :  { %v4564_v33 = vadd.f32 %v12469_v28, %v4485_v24 }
 0x4de   :  { %v4554_v32 = vpop.f32.mrf.mxu0 }
 0x4df   :  { %v4563_v27 = vadd.f32 %v4554_v32, %v4480_v2 }
 0x4e1   :  { %v12474_v9 = vpop.f32.mrf.mxu0 }
 0x4e2   :  { %v4645_v30 = vadd.f32 %v12474_v9, %v4564_v33 }
 0x4e3   :  { %v4635_v3 = vpop.f32.mrf.mxu0  ;;  %v12539_v32 = vpop.f32.mrf.mxu1 }
 0x4e4   :  { %v4644_v34 = vadd.f32 %v4635_v3, %v4563_v27 }
 0x4e6   :  { %v12479_v14 = vpop.f32.mrf.mxu0 }
 0x4e7   :  { %v4722_v39 = vadd.f32 %v12479_v14, %v4645_v30 }
 0x4e8   :  { %v4712_v11 = vpop.f32.mrf.mxu0 }
 0x4e9   :  { %v4721_v40 = vadd.f32 %v4712_v11, %v4644_v34  ;;  %v5660_v11 = vpop.f32.mrf.mxu1 }
 0x4eb   :  { %v12484_v25 = vpop.f32.mrf.mxu0  ;;  %v12549_v2 = vpop.f32.mrf.mxu1 }
 0x4ec   :  { %v4803_v51 = vadd.f32 %v12484_v25, %v4722_v39 }
 0x4ed   :  { %v4793_v21 = vpop.f32.mrf.mxu0 }
 0x4ee   :  { %v4802_v52 = vadd.f32 %v4793_v21, %v4721_v40  ;;  %v5818_v21 = vpop.f32.mrf.mxu1 }
 0x4f0   :  { %v12489_v37 = vpop.f32.mrf.mxu0 }
 0x4f1   :  { %v4880_v55 = vadd.f32 %v12489_v37, %v4803_v51 }
 0x4f2   :  { %v4870_v49 = vpop.f32.mrf.mxu0 }
 0x4f3   :  { %v4879_v56 = vadd.f32 %v4870_v49, %v4802_v52 }
 0x4f4   :  { %v12494_v53 = vpop.f32.mrf.mxu0 }
 0x4f5   :  { %v4961_v59 = vadd.f32 %v12494_v53, %v4880_v55 }
 0x4f6   :  { %v4951_v57 = vpop.f32.mrf.mxu0 }
 0x4f7   :  { %v4960_v60 = vadd.f32 %v4951_v57, %v4879_v56  ;;  %v5038_v63 = vadd.f32 %v12499_v38, %v4961_v59  ;;  %v12559_v38 = vpop.f32.mrf.mxu1 }
 0x4f9   :  { %v5037_v0 = vadd.f32 %v5028_v50, %v4960_v60  ;;  %v5976_v50 = vpop.f32.mrf.mxu1 }
 0x4fb   :  { %v12569_v57 = vpop.f32.mrf.mxu1 }
 0x515   :  { %v12504_v61 = vpop.f32.mrf.mxu0 }
 0x516   :  { %v5119_v7 = vadd.f32 %v12504_v61, %v5038_v63 }
 0x517   :  { %v5109_v1 = vpop.f32.mrf.mxu0 }
 0x518   :  { %v5118_v29 = vadd.f32 %v5109_v1, %v5037_v0  ;;  %v5196_v36 = vadd.f32 %v12509_v54, %v5119_v7  ;;  %v6134_v0 = vpop.f32.mrf.mxu1 }
 0x519   :  { %v12514_v26 = vpop.f32.mrf.mxu0 }
 0x51a   :  { %v5195_v4 = vadd.f32 %v5186_v58, %v5118_v29  ;;  %v5277_v13 = vadd.f32 %v12514_v26, %v5196_v36  ;;  %v12579_v36 = vpop.f32.mrf.mxu1 }
 0x51b   :  { %v5267_v15 = vpop.f32.mrf.mxu0 }
 0x51c   :  { %v5276_v5 = vadd.f32 %v5267_v15, %v5195_v4  ;;  %v5354_v9 = vadd.f32 %v12519_v62, %v5277_v13 }
 0x51d   :  { %v12524_v28 = vpop.f32.mrf.mxu0 }
 0x51e   :  { %v5353_v3 = vadd.f32 %v5344_v17, %v5276_v5  ;;  %v5435_v24 = vadd.f32 %v12524_v28, %v5354_v9  ;;  %v3834_v28 = vpop.permute.xlu0 %3833 }
 0x51f   :  { %v5425_v14 = vpop.f32.mrf.mxu0 }
 0x520   :  { %v5434_v25 = vadd.f32 %v5425_v14, %v5353_v3  ;;  %v5512_v27 = vadd.f32 %v12529_v35, %v5435_v24  ;;  %v3825_v14 = vadd.f32 %v17651_v20, %v17661_v31 }
 0x521   :  { %v12534_v33 = vpop.f32.mrf.mxu0 }
 0x522   :  { %v5511_v30 = vadd.f32 %v5502_v8, %v5434_v25  ;;  %v5593_v37 = vadd.f32 %v12534_v33, %v5512_v27  ;;  %v3837_v25 = vadd.f32 %v3834_v28, %v3825_v14 }
 0x523   :  { %v5583_v34 = vpop.f32.mrf.mxu0 }
 0x524   :  { %v5592_v39 = vadd.f32 %v5583_v34, %v5511_v30  ;;  %v5670_v40 = vadd.f32 %v12539_v32, %v5593_v37  ;;  %v6292_v32 = vpop.f32.mrf.mxu1  ;;  %v6313_v33 = vsel %vm6309_vm2, %v3837_v25, 0.0 }
 0x526   :  { %v5669_v51 = vadd.f32 %v5660_v11, %v5592_v39 }
 0x533   :  { %v6312_v27 = vpop.xlane.xlu1 %6311 }
 0x555   :  { %v12544_v49 = vpop.f32.mrf.mxu0 }
 0x556   :  { %v5751_v52 = vadd.f32 %v12544_v49, %v5670_v40 }
 0x557   :  { %v5741_v53 = vpop.f32.mrf.mxu0 }
 0x558   :  { %v5750_v54 = vadd.f32 %v5741_v53, %v5669_v51  ;;  %v5828_v55 = vadd.f32 %v12549_v2, %v5751_v52 }
 0x559   :  { %v12554_v56 = vpop.f32.mrf.mxu0 }
 0x55a   :  { %v5827_v58 = vadd.f32 %v5818_v21, %v5750_v54  ;;  %v5909_v59 = vadd.f32 %v12554_v56, %v5828_v55 }
 0x55b   :  { %v5899_v60 = vpop.f32.mrf.mxu0 }
 0x55c   :  { %v5908_v61 = vadd.f32 %v5899_v60, %v5827_v58  ;;  %v5986_v62 = vadd.f32 %v12559_v38, %v5909_v59  ;;  %v6397_v58 = vld [vmem:[%s19083_s8] sm:$0xf] }
 0x55d   :  { %v12564_v63 = vpop.f32.mrf.mxu0  ;;  %v18064_v59 = vrot.slane %v6397_v58, %v13169_v18  ;;  %v18067_v60 = vrot.slane %v6397_v58, %v13172_v19 }
 0x55e   :  { %v5985_v1 = vadd.f32 %v5976_v50, %v5908_v61  ;;  %v6067_v17 = vadd.f32 %v12564_v63, %v5986_v62  ;;  %v18070_v61 = vrot.slane %v6397_v58, %v13181_v22  ;;  %v18073_v62 = vrot.slane %v6397_v58, %v13184_v23 }
 0x55f   :  { %v6057_v7 = vpop.f32.mrf.mxu0  ;;  %vm6469_vm4 = vcmp.eq.s32.totalorder %v13375_v42, %v18064_v59  ;;  %vm19502_vm6 = vcmp.eq.s32.totalorder %v13375_v42, %v18067_v60  ;;  %vm6465_vm1 = vcmp.eq.s32.totalorder %v13402_v43, %v18064_v59  ;;  %vm19499_vm13 = vcmp.eq.s32.totalorder %v13402_v43, %v18067_v60 }
 0x560   :  { %v6066_v29 = vadd.f32 %v6057_v7, %v5985_v1  ;;  %v6144_v26 = vadd.f32 %v12569_v57, %v6067_v17  ;;  %v6307_v57 = vld [vmem:[%s19082_s7] sm:$0xff]  ;;  %vm6468_vm12 = vcmp.eq.s32.totalorder %v13375_v42, %v18070_v61  ;;  %vm19500_vm14 = vcmp.eq.s32.totalorder %v13375_v42, %v18073_v62  ;;  %11830 = vmatprep.subr.msk.mxu0 %vm6469_vm4, %v19513_v10 }
 0x561   :  { %v12574_v35 = vpop.f32.mrf.mxu0  ;;  %11848 = vmatprep.subr.msk.mxu1 %vm19502_vm6, %v19513_v10  ;;  %vm6464_vm10 = vcmp.eq.s32.totalorder %v13402_v43, %v18070_v61  ;;  %11831 = vmatpush1.msk.msra.mxu0 %vm6468_vm12, %v19513_v10  ;;  %vm19494_vm8 = vcmp.eq.s32.totalorder %v13402_v43, %v18073_v62  ;;  %vm6461_vm15 = vcmp.eq.s32.totalorder %v13429_v44, %v18064_v59 }
 0x562   :  { %v6143_v4 = vadd.f32 %v6134_v0, %v6066_v29  ;;  %v6225_v15 = vadd.f32 %v12574_v35, %v6144_v26  ;;  %11849 = vmatpush1.msk.msra.mxu1 %vm19500_vm14, %v19513_v10  ;;  %vm19498_vm3 = vcmp.eq.s32.totalorder %v13429_v44, %v18067_v60  ;;  %11832 = vmatprep.subr.msk.mxu0 %vm6465_vm1, %v19513_v10  ;;  %v6305_v35 = vld [vmem:[%s19081_s6] sm:$0xff] }
 0x563   :  { %v6215_v8 = vpop.f32.mrf.mxu0  ;;  %11850 = vmatprep.subr.msk.mxu1 %vm19499_vm13, %v19513_v10  ;;  %vm6460_vm5 = vcmp.eq.s32.totalorder %v13429_v44, %v18070_v61  ;;  %vm19497_vm7 = vcmp.eq.s32.totalorder %v13429_v44, %v18073_v62  ;;  %11833 = vmatpush1.msk.msra.mxu0 %vm6464_vm10, %v19513_v10  ;;  %vm6457_vm0 = vcmp.eq.s32.totalorder %v13456_v45, %v18064_v59 }
 0x564   :  { %v6224_v13 = vadd.f32 %v6215_v8, %v6143_v4  ;;  %v6302_v5 = vadd.f32 %v12579_v36, %v6225_v15  ;;  %11851 = vmatpush1.msk.msra.mxu1 %vm19494_vm8, %v19513_v10  ;;  %vm19496_vm9 = vcmp.eq.s32.totalorder %v13456_v45, %v18067_v60  ;;  %11834 = vmatprep.subr.msk.mxu0 %vm6461_vm15, %v19513_v10  ;;  %v6306_v15 = vld [vmem:[%s19081_s6 + $0x8] sm:$0xff] }
 0x565   :  { %11852 = vmatprep.subr.msk.mxu1 %vm19498_vm3, %v19513_v10  ;;  %vm6456_vm11 = vcmp.eq.s32.totalorder %v13456_v45, %v18070_v61  ;;  %vm19495_vm8 = vcmp.eq.s32.totalorder %v13456_v45, %v18073_v62  ;;  %11835 = vmatpush1.msk.msra.mxu0 %vm6460_vm5, %v19513_v10  ;;  %vm19503_vm3 = vcmp.eq.s32.totalorder %v13483_v46, %v18073_v62 }
 0x566   :  { %v6301_v9 = vadd.f32 %v6292_v32, %v6224_v13  ;;  %v6304_v3 = vadd.f32 %v6302_v5, %v3834_v28  ;;  %11853 = vmatpush1.msk.msra.mxu1 %vm19497_vm7, %v19513_v10  ;;  %11836 = vmatprep.subr.msk.mxu0 %vm6457_vm0, %v19513_v10  ;;  %vm19505_vm7 = vcmp.eq.s32.totalorder %v13483_v46, %v18070_v61  ;;  %v6308_v13 = vld [vmem:[%s19082_s7 + $0x8] sm:$0xff]  ;;  %s13040_s7 = smov 112  }
 0x567   :  { %11854 = vmatprep.subr.msk.mxu1 %vm19496_vm9, %v19513_v10  ;;  %11837 = vmatpush1.msk.msra.mxu0 %vm6456_vm11, %v19513_v10  ;;  %vm19501_vm9 = vcmp.eq.s32.totalorder %v13483_v46, %v18067_v60  ;;  %vm19504_vm13 = vcmp.eq.s32.totalorder %v13510_v47, %v18064_v59  ;;  %vm19507_vm14 = vcmp.eq.s32.totalorder %v13510_v47, %v18067_v60 }
 0x568   :  { %v6321_v11 = vsel %vm6309_vm2, %v6304_v3, 0.0  ;;  %v6303_v24 = vadd.f32 %v6301_v9, %v18022_v6  ;;  %11855 = vmatpush1.msk.msra.mxu1 %vm19495_vm8, %v19513_v10  ;;  %vm19506_vm8 = vcmp.eq.s32.totalorder %v13483_v46, %v18064_v59  ;;  %vm19509_vm6 = vcmp.eq.s32.totalorder %v13510_v47, %v18073_v62 }
 0x569   :  { %6322 = vadd.xlane.f32.xlu1 %v6321_v11  ;;  %11838 = vmatprep.subr.msk.mxu0 %vm19506_vm8, %v19513_v10  ;;  %vm6446_vm8 = vcmp.eq.s32.totalorder %v13537_v48, %v18073_v62 }
 0x56a   :  { %v6318_v2 = vsel %vm6309_vm2, %v6303_v24, 0.0  ;;  %11856 = vmatprep.subr.msk.mxu1 %vm19501_vm9, %v19513_v10  ;;  %11839 = vmatpush1.msk.msra.mxu0 %vm19505_vm7, %v19513_v10  ;;  %vm19508_vm9 = vcmp.eq.s32.totalorder %v13510_v47, %v18070_v61  ;;  %vm6444_vm7 = vcmp.eq.s32.totalorder %v13537_v48, %v18070_v61 }
 0x56b   :  { %6319 = vadd.xlane.f32.xlu0 %v6318_v2  ;;  %11857 = vmatpush1.msk.msra.mxu1 %vm19503_vm3, %v19513_v10  ;;  %vm19510_vm3 = vcmp.eq.s32.totalorder %v13537_v48, %v18064_v59 }
 0x56c   :  { %11840 = vmatprep.subr.msk.mxu0 %vm19504_vm13, %v19513_v10  ;;  %11858 = vmatprep.subr.msk.mxu1 %vm19507_vm14, %v19513_v10  ;;  %vm6447_vm13 = vcmp.eq.s32.totalorder %v13537_v48, %v18067_v60  ;;  %vm6441_vm14 = vcmp.eq.s32.totalorder %v13151_v12, %v18064_v59 }
 0x56d   :  { %11841 = vmatpush1.msk.msra.mxu0 %vm19508_vm9, %v19513_v10  ;;  %11859 = vmatpush1.msk.msra.mxu1 %vm19509_vm6, %v19513_v10  ;;  %vm19512_vm9 = vcmp.eq.s32.totalorder %v13151_v12, %v18067_v60  ;;  %vm6440_vm6 = vcmp.eq.s32.totalorder %v13151_v12, %v18070_v61 }
 0x56e   :  { %11842 = vmatprep.subr.msk.mxu0 %vm19510_vm3, %v19513_v10  ;;  %11860 = vmatprep.subr.msk.mxu1 %vm6447_vm13, %v19513_v10  ;;  %vm19511_vm3 = vcmp.eq.s32.totalorder %v13151_v12, %v18073_v62 }
 0x56f   :  { %6314 = vadd.xlane.f32.xlu0 %v6313_v33  ;;  %11843 = vmatpush1.msk.msra.mxu0 %vm6444_vm7, %v19513_v10 }
 0x570   :  { %11861 = vmatpush1.msk.msra.mxu1 %vm6446_vm8, %v19513_v10  ;;  %11844 = vmatprep.subr.msk.mxu0 %vm6441_vm14, %v19513_v10 }
 0x571   :  { %11862 = vmatprep.subr.msk.mxu1 %vm19512_vm9, %v19513_v10  ;;  %11845 = vmatpush1.msk.msra.mxu0 %vm6440_vm6, %v19513_v10  ;;  %vm6672_vm9 = vcmask 130048  }
 0x572   :  { %11863 = vmatpush1.msk.msra.mxu1 %vm19511_vm3, %v19513_v10  ;;  %12580 = vmatprep.subr.mxu0 %v19915_v41  ;;  %vm13039_vm3 = vmmov 0  }
 0x573   :  { %12587 = vmatprep.subr.mxu1 %v19915_v41 }
 0x5f2   :  { %v6323_v37 = vpop.xlane.xlu1 %6322 }
 0x5f4   :  { %v6320_v21 = vpop.xlane.xlu0 %6319 }
 0x5f5   :  { %v6324_v30 = vadd.f32 %v6320_v21, %v6312_v27 }
 0x5f7   :  { %v6327_v34 = vmul.f32 0.0078125, %v6324_v30 }
 0x5f8   :  { %v6315_v38 = vpop.xlane.xlu0 %6314 }
 0x5f9   :  { %v18037_v20 = vsub.f32 %v18026_v16, %v6327_v34  ;;  %v18039_v31 = vsub.f32 %v6303_v24, %v6327_v34  ;;  %v6325_v6 = vadd.f32 %v6323_v37, %v6315_v38 }
 0x5fb   :  { %v6328_v39 = vmul.f32 0.0078125, %v6325_v6  ;;  %v6343_v40 = vmul.f32 %v18039_v31, %v18039_v31  ;;  %v6331_v49 = vmul.f32 %v18037_v20, %v18037_v20  ;;  %v18313_v6 = vld [vmem:[%s19084_s9] sm:$0x1] }
 0x5fd   :  { %v18045_v50 = vsub.f32 %v3837_v25, %v6328_v39  ;;  %v18047_v51 = vsub.f32 %v6304_v3, %v6328_v39  ;;  %v6345_v52 = vsel %vm6309_vm2, %v6343_v40, 0.0  ;;  %v6333_v53 = vsel %vm6309_vm2, %v6331_v49, 0.0 }
 0x5fe   :  { %6346 = vadd.xlane.f32.xlu1 %v6345_v52  ;;  %6334 = vadd.xlane.f32.xlu0 %v6333_v53 }
 0x5ff   :  { %v6344_v16 = vmul.f32 %v18047_v51, %v18047_v51  ;;  %v6332_v54 = vmul.f32 %v18045_v50, %v18045_v50 }
 0x601   :  { %v6348_v55 = vsel %vm6309_vm2, %v6344_v16, 0.0  ;;  %v6336_v56 = vsel %vm6309_vm2, %v6332_v54, 0.0 }
 0x602   :  { %6349 = vadd.xlane.f32.xlu1 %v6348_v55  ;;  %6337 = vadd.xlane.f32.xlu0 %v6336_v56  ;;  %v18397_v56 = vld [vmem:[%s19084_s9 + $0x3] sm:$0x1] }
 0x613   :  { %6375 = vperm.xlu1 %12958, %v6307_v57  }
 0x687   :  { %v6335_v18 = vpop.xlane.xlu0 %6334  ;;  %v6347_v19 = vpop.xlane.xlu1 %6346 }
 0x688   :  { %v6351_v23 = vadd.f32 %v6347_v19, %v6335_v18  ;;  %v18408_v18 = vld [vmem:[%s19084_s9 + $0x5] sm:$0x1] }
 0x68a   :  { %v6353_v63 = vmul.f32 0.0078125, %v6351_v23 }
 0x68b   :  { %v6338_v0 = vpop.xlane.xlu0 %6337  ;;  %v6350_v1 = vpop.xlane.xlu1 %6349 }
 0x68c   :  { %v6355_v17 = vadd.f32 1e-05, %v6353_v63  ;;  %v6352_v7 = vadd.f32 %v6350_v1, %v6338_v0  ;;  %v18419_v63 = vld [vmem:[%s19084_s9 + $0x7] sm:$0x1] }
 0x68e   :  { %12959 = vrsqrt.f32 %v6355_v17  ;;  %v6354_v29 = vmul.f32 0.0078125, %v6352_v7 }
 0x68f   :  { %v6376_v28 = vpop.permute.xlu1 %6375 }
 0x690   :  { %v6356_v26 = vadd.f32 1e-05, %v6354_v29 }
 0x692   :  { %12961 = vrsqrt.f32 %v6356_v26 }
 0x69b   :  { %v12960_v36 = vpop.eup %12959 }
 0x69c   :  { %v6359_v4 = vmul.f32 %v12960_v36, %v6305_v35  ;;  %v18434_v35 = vld [vmem:[%s19084_s9 + $0x9] sm:$0x1] }
 0x69e   :  { %6363 = vperm.xlu0 %12957, %v6359_v4  }
 0x69f   :  { %v12962_v8 = vpop.eup %12961 }
 0x6a0   :  { %v6360_v5 = vmul.f32 %v12962_v8, %v6306_v15  ;;  %v18443_v15 = vld [vmem:[%s19084_s9 + $0x1] sm:$0x1]  ;;  %v18450_v8 = vld [vmem:[%s19084_s9 + $0xb] sm:$0x1] }
 0x6a2   :  { %6380 = vperm.xlu0 %12957, %v6308_v13   ;;  %6368 = vperm.xlu1 %12958, %v6360_v5  }
 0x719   :  { %v6364_v32 = vpop.permute.xlu0 %6363 }
 0x71a   :  { %v6371_v9 = vmul.f32 %v6364_v32, %v18037_v20  ;;  %v6385_v3 = vmul.f32 %v6364_v32, %v18039_v31 }
 0x71c   :  { %v6383_v14 = vadd.f32 %v6376_v28, %v6371_v9  ;;  %v18280_v11 = vadd.f32 %v6385_v3, %v6376_v28  ;;  %v18464_v28 = vld [vmem:[%s19084_s9 + $0x2] sm:$0x1]  ;;  %v18472_v3 = vld [vmem:[%s19084_s9 + $0xd] sm:$0x1] }
 0x71d   :  { %v18282_v24 = vpop.permute.xlu1 %6368  ;;  %v18286_v33 = vpop.permute.xlu0 %6380 }
 0x71e   :  { %v6389_v2 = vmul.f32 0.2, %v6383_v14  ;;  %v6372_v25 = vmul.f32 %v18282_v24, %v18045_v50 }
 0x720   :  { %v6391_v27 = vmax.f32 %v6383_v14, %v6389_v2  ;;  %v6384_v21 = vadd.f32 %v18286_v33, %v6372_v25  ;;  %v18489_v25 = vld [vmem:[%s19084_s9 + $0xf] sm:$0x1] }
 0x722   :  { %v6390_v30 = vmul.f32 0.2, %v6384_v21  ;;  %11846 = vmatmul.mubr.msk.f32.vlgmr.msra.gmra.mxu0 %vm6309_vm2, %v6391_v27  ;;  %11864 = vmatmul.mubr.msk.f32.vlgmr.msra.gmra.mxu1 %vm6309_vm2, %v6391_v27  ;;  %v18494_v27 = vld [vmem:[%s19084_s9 + $0x4] sm:$0x1] }
 0x723   :  { %6580 = vmatprep.mubr.f32.mxu0 %v19915_v41  ;;  %6657 = vmatprep.mubr.f32.mxu1 %v19915_v41 }
 0x724   :  { %v6392_v34 = vmax.f32 %v6384_v21, %v6390_v30 }
 0x726   :  { %11847 = vmatmul.mubr.msk.f32.gmra.mxu0 %vm6309_vm2, %v6392_v34  ;;  %11865 = vmatmul.mubr.msk.f32.gmra.mxu1 %vm6309_vm2, %v6392_v34  ;;  %v18509_v34 = vld [vmem:[%s19084_s9 + $0x11] sm:$0x1] }
 0x727   :  { %12591 = vmatprep.mubr.msk.f32.mxu1 %vm13039_vm3, %v19915_v41  ;;  %12584 = vmatprep.mubr.msk.f32.mxu0 %vm13039_vm3, %v19915_v41 }
 0x7e2   :  { %v6576_v37 = vpop.f32.mrf.mxu0  ;;  %v18299_v38 = vpop.f32.mrf.mxu1 }
 0x7e3   :  { %8011 = vrot.lane.b32.xlu1 %v18299_v38, %s13040_s7  ;;  %6899 = vrot.lane.b32.xlu0 %v6576_v37, %s13041_s19 }
 0x7e4   :  { %v18304_v20 = vpop.f32.mrf.mxu0  ;;  %v18324_v39 = vpop.f32.mrf.mxu1 }
 0x7e6   :  { %v6582_v31 = vpop.f32.mrf.mxu0  ;;  %v18328_v40 = vpop.f32.mrf.mxu1 }
 0x7e7   :  { %7059 = vrot.lane.b32.xlu0 %v6576_v37, %s13042_s20  ;;  %7855 = vrot.lane.b32.xlu1 %v18304_v20, %s13043_s21 }
 0x7e8   :  { %12588 = vmatpush3.msra.mxu1 %v6582_v31  ;;  %v18338_v49 = vpop.f32.mrf.mxu0 }
 0x7e9   :  { %12589 = vmatprep.subr.mxu1 %v19915_v41 }
 0x7ea   :  { %12590 = vmatpush3.msra.mxu1 %v6576_v37 }
 0x7eb   :  { %7219 = vrot.lane.b32.xlu0 %v6576_v37, %s13043_s21  ;;  %6901 = vrot.lane.b32.xlu1 %v6582_v31, %s13041_s19 }
 0x7ec   :  { %12601 = vmatprep.subr.mxu1 %v19915_v41  ;;  %12592 = vmatmul.mubr.msk.f32.vlgmr.msra.gmra.mxu1 %vm6672_vm9, %v18313_v6 }
 0x7ed   :  { %12605 = vmatprep.mubr.msk.f32.mxu1 %vm13039_vm3, %v19915_v41 }
 0x7ef   :  { %6666 = vrot.lane.b32.xlu0 %v6576_v37, %s13040_s7  ;;  %7061 = vrot.lane.b32.xlu1 %v6582_v31, %s13042_s20 }
 0x7f3   :  { %6819 = vrot.lane.b32.xlu0 %v6576_v37, %s13044_s24  ;;  %7221 = vrot.lane.b32.xlu1 %v6582_v31, %s13043_s21 }
 0x7f7   :  { %7375 = vrot.lane.b32.xlu0 %v18304_v20, %s13040_s7  ;;  %8013 = vrot.lane.b32.xlu1 %v18328_v40, %s13040_s7 }
 0x7fb   :  { %7535 = vrot.lane.b32.xlu0 %v18304_v20, %s13041_s19  ;;  %8173 = vrot.lane.b32.xlu1 %v18328_v40, %s13041_s19 }
 0x7ff   :  { %7695 = vrot.lane.b32.xlu0 %v18304_v20, %s13042_s20  ;;  %7377 = vrot.lane.b32.xlu1 %v18338_v49, %s13040_s7 }
 0x803   :  { %6668 = vrot.lane.b32.xlu0 %v6582_v31, %s13040_s7  ;;  %7537 = vrot.lane.b32.xlu1 %v18338_v49, %s13041_s19 }
 0x807   :  { %6821 = vrot.lane.b32.xlu0 %v6582_v31, %s13044_s24  ;;  %7697 = vrot.lane.b32.xlu1 %v18338_v49, %s13042_s20 }
 0x80b   :  { %6981 = vrot.lane.b32.xlu0 %v6582_v31, %s13038_s14  ;;  %7857 = vrot.lane.b32.xlu1 %v18338_v49, %s13043_s21 }
 0x80f   :  { %6979 = vrot.lane.b32.xlu0 %v6576_v37, %s13038_s14  ;;  %8171 = vrot.lane.b32.xlu1 %v18299_v38, %s13041_s19 }
 0x813   :  { %7141 = vrot.lane.b32.xlu0 %v6582_v31, %s13045_s25  ;;  %8333 = vrot.lane.b32.xlu1 %v18328_v40, %s13042_s20 }
 0x817   :  { %7139 = vrot.lane.b32.xlu0 %v6576_v37, %s13045_s25  ;;  %8331 = vrot.lane.b32.xlu1 %v18299_v38, %s13042_s20 }
 0x81b   :  { %8491 = vrot.lane.b32.xlu0 %v18299_v38, %s13043_s21  ;;  %8493 = vrot.lane.b32.xlu1 %v18328_v40, %s13043_s21 }
 0x81f   :  { %7455 = vrot.lane.b32.xlu0 %v18304_v20, %s13044_s24  ;;  %7457 = vrot.lane.b32.xlu1 %v18338_v49, %s13044_s24 }
 0x823   :  { %7615 = vrot.lane.b32.xlu0 %v18304_v20, %s13038_s14  ;;  %7617 = vrot.lane.b32.xlu1 %v18338_v49, %s13038_s14 }
 0x827   :  { %7775 = vrot.lane.b32.xlu0 %v18304_v20, %s13045_s25  ;;  %7777 = vrot.lane.b32.xlu1 %v18338_v49, %s13045_s25 }
 0x82b   :  { %8091 = vrot.lane.b32.xlu0 %v18299_v38, %s13044_s24  ;;  %8093 = vrot.lane.b32.xlu1 %v18328_v40, %s13044_s24 }
 0x82f   :  { %8251 = vrot.lane.b32.xlu0 %v18299_v38, %s13038_s14  ;;  %8253 = vrot.lane.b32.xlu1 %v18328_v40, %s13038_s14 }
 0x833   :  { %8411 = vrot.lane.b32.xlu0 %v18299_v38, %s13045_s25  ;;  %8413 = vrot.lane.b32.xlu1 %v18328_v40, %s13045_s25 }
 0x855   :  { %v6900_v50 = vpop.permute.xlu0 %6899  ;;  %v18390_v52 = vpop.permute.xlu1 %8011 }
 0x859   :  { %v7060_v53 = vpop.permute.xlu0 %7059  ;;  %v18392_v16 = vpop.permute.xlu1 %7855 }
 0x85d   :  { %v7220_v54 = vpop.permute.xlu0 %7219  ;;  %v6902_v55 = vpop.permute.xlu1 %6901 }
 0x85e   :  { %12602 = vmatpush3.msra.mxu1 %v6902_v55  ;;  %v18552_v55 = vld [vmem:[%s19084_s9 + $0x8] sm:$0x1] }
 0x85f   :  { %12603 = vmatprep.subr.mxu1 %v19915_v41 }
 0x860   :  { %12604 = vmatpush3.msra.mxu1 %v6900_v50  ;;  %v18526_v50 = vld [vmem:[%s19084_s9 + $0x13] sm:$0x1] }
 0x861   :  { %v6667_v57 = vpop.permute.xlu0 %6666  ;;  %12615 = vmatprep.subr.mxu1 %v19915_v41  ;;  %v7062_v58 = vpop.permute.xlu1 %7061  ;;  %12606 = vmatmul.mubr.msk.f32.vlgmr.msra.gmra.mxu1 %vm6672_vm9, %v18397_v56 }
 0x862   :  { %12616 = vmatpush3.msra.mxu1 %v7062_v58  ;;  %12619 = vmatprep.mubr.msk.f32.mxu1 %vm13039_vm3, %v19915_v41  ;;  %v18587_v58 = vld [vmem:[%s19084_s9 + $0xa] sm:$0x1] }
 0x863   :  { %12617 = vmatprep.subr.mxu1 %v19915_v41 }
 0x864   :  { %12618 = vmatpush3.msra.mxu1 %v7060_v53 }
 0x865   :  { %v6820_v19 = vpop.permute.xlu0 %6819  ;;  %12629 = vmatprep.subr.mxu1 %v19915_v41  ;;  %v7222_v23 = vpop.permute.xlu1 %7221  ;;  %12620 = vmatmul.mubr.msk.f32.vlgmr.msra.gmra.mxu1 %vm6672_vm9, %v18408_v18 }
 0x866   :  { %12630 = vmatpush3.msra.mxu1 %v7222_v23  ;;  %12633 = vmatprep.mubr.msk.f32.mxu1 %vm13039_vm3, %v19915_v41 }
 0x867   :  { %12631 = vmatprep.subr.mxu1 %v19915_v41 }
 0x868   :  { %12632 = vmatpush3.msra.mxu1 %v7220_v54  ;;  %v18547_v54 = vld [vmem:[%s19084_s9 + $0x15] sm:$0x1] }
 0x869   :  { %v7376_v0 = vpop.permute.xlu0 %7375  ;;  %v18422_v1 = vpop.permute.xlu1 %8013  ;;  %12643 = vmatprep.subr.mxu1 %v19915_v41  ;;  %12634 = vmatmul.mubr.msk.f32.vlgmr.msra.gmra.mxu1 %vm6672_vm9, %v18419_v63 }
 0x86a   :  { %12647 = vmatprep.mubr.msk.f32.mxu1 %vm13039_vm3, %v19915_v41 }
 0x86d   :  { %v7536_v17 = vpop.permute.xlu0 %7535  ;;  %v18429_v7 = vpop.permute.xlu1 %8173 }
 0x871   :  { %v7696_v29 = vpop.permute.xlu0 %7695  ;;  %v7378_v26 = vpop.permute.xlu1 %7377 }
 0x872   :  { %12644 = vmatpush3.msra.mxu1 %v7378_v26 }
 0x873   :  { %12645 = vmatprep.subr.mxu1 %v19915_v41 }
 0x874   :  { %12646 = vmatpush3.msra.mxu1 %v7376_v0  ;;  %v18614_v0 = vld [vmem:[%s19084_s9 + $0xc] sm:$0x1] }
 0x875   :  { %v6669_v36 = vpop.permute.xlu0 %6668  ;;  %12657 = vmatprep.subr.mxu1 %v19915_v41  ;;  %v7538_v4 = vpop.permute.xlu1 %7537  ;;  %12648 = vmatmul.mubr.msk.f32.vlgmr.msra.gmra.mxu1 %vm6672_vm9, %v18434_v35 }
 0x876   :  { %12581 = vmatpush3.msra.mxu0 %v6669_v36  ;;  %12658 = vmatpush3.msra.mxu1 %v7538_v4  ;;  %v18673_v36 = vld [vmem:[%s19084_s9 + $0x10] sm:$0x1] }
 0x877   :  { %12582 = vmatprep.subr.mxu0 %v19915_v41  ;;  %12659 = vmatprep.subr.mxu1 %v19915_v41 }
 0x878   :  { %12583 = vmatpush3.msra.mxu0 %v6667_v57  ;;  %12660 = vmatpush3.msra.mxu1 %v7536_v17  ;;  %v18568_v57 = vld [vmem:[%s19084_s9 + $0x17] sm:$0x1]  ;;  %v6386_v17 = vmul.f32 %v18282_v24, %v18047_v51  ;;  %v6393_v51 = vmul.f32 0.2, %v18280_v11 }
 0x879   :  { %12585 = vmatmul.mubr.msk.f32.vlgmr.msra.gmra.mxu0 %vm6672_vm9, %v18443_v15  ;;  %12594 = vmatprep.subr.mxu0 %v19915_v41  ;;  %v6822_v13 = vpop.permute.xlu0 %6821  ;;  %v7698_v5 = vpop.permute.xlu1 %7697 }
 0x87a   :  { %12661 = vmatprep.mubr.msk.f32.mxu1 %vm13039_vm3, %v19915_v41  ;;  %12671 = vmatprep.subr.mxu1 %v19915_v41  ;;  %v6388_v24 = vadd.f32 %v6386_v17, %v18286_v33  ;;  %v6661_v33 = vpop.f32.mrf.mxu1 }
 0x87b   :  { %12595 = vmatpush3.msra.mxu0 %v6822_v13  ;;  %12662 = vmatmul.mubr.msk.f32.vlgmr.msra.gmra.mxu1 %vm6672_vm9, %v18450_v8 }
 0x87c   :  { %12672 = vmatpush3.msra.mxu1 %v7698_v5  ;;  %12596 = vmatprep.subr.mxu0 %v19915_v41  ;;  %v6394_v13 = vmul.f32 0.2, %v6388_v24 }
 0x87d   :  { %12673 = vmatprep.subr.mxu1 %v19915_v41  ;;  %12597 = vmatpush3.msra.mxu0 %v6820_v19  ;;  %v6982_v32 = vpop.permute.xlu0 %6981  ;;  %v7858_v9 = vpop.permute.xlu1 %7857 }
 0x87e   :  { %12598 = vmatprep.mubr.msk.f32.mxu0 %vm13039_vm3, %v19915_v41  ;;  %12674 = vmatpush3.msra.mxu1 %v7696_v29  ;;  %v18643_v29 = vld [vmem:[%s19084_s9 + $0xe] sm:$0x1]  ;;  %v6396_v5 = vmax.f32 %v6388_v24, %v6394_v13 }
 0x87f   :  { %12599 = vmatmul.mubr.msk.f32.vlgmr.msra.gmra.mxu0 %vm6672_vm9, %v18464_v28  ;;  %12608 = vmatprep.subr.mxu0 %v19915_v41 }
 0x880   :  { %12675 = vmatprep.mubr.msk.f32.mxu1 %vm13039_vm3, %v19915_v41  ;;  %12685 = vmatprep.subr.mxu1 %v19915_v41 }
 0x881   :  { %12609 = vmatpush3.msra.mxu0 %v6982_v32  ;;  %12676 = vmatmul.mubr.msk.f32.vlgmr.msra.gmra.mxu1 %vm6672_vm9, %v18472_v3  ;;  %v6980_v14 = vpop.permute.xlu0 %6979  ;;  %v8172_v2 = vpop.permute.xlu1 %8171 }
 0x882   :  { %12686 = vmatpush3.msra.mxu1 %v7858_v9  ;;  %12610 = vmatprep.subr.mxu0 %v19915_v41  ;;  %v18714_v9 = vld [vmem:[%s19084_s9 + $0x14] sm:$0x1] }
 0x883   :  { %12687 = vmatprep.subr.mxu1 %v19915_v41  ;;  %12689 = vmatprep.mubr.msk.f32.mxu1 %vm13039_vm3, %v19915_v41 }
 0x884   :  { %12688 = vmatpush3.msra.mxu1 %v18392_v16  ;;  %12611 = vmatpush3.msra.mxu0 %v6980_v14 }
 0x885   :  { %12699 = vmatprep.subr.mxu1 %v19915_v41  ;;  %12612 = vmatprep.mubr.msk.f32.mxu0 %vm13039_vm3, %v19915_v41  ;;  %v7142_v21 = vpop.permute.xlu0 %7141  ;;  %v8334_v30 = vpop.permute.xlu1 %8333 }
 0x886   :  { %12690 = vmatmul.mubr.msk.f32.vlgmr.msra.gmra.mxu1 %vm6672_vm9, %v18489_v25  ;;  %12613 = vmatmul.mubr.msk.f32.vlgmr.msra.gmra.mxu0 %vm6672_vm9, %v18494_v27 }
 0x887   :  { %12700 = vmatpush3.msra.mxu1 %v18422_v1  ;;  %12622 = vmatprep.subr.mxu0 %v19915_v41 }
 0x888   :  { %12701 = vmatprep.subr.mxu1 %v19915_v41  ;;  %12703 = vmatprep.mubr.msk.f32.mxu1 %vm13039_vm3, %v19915_v41 }
 0x889   :  { %12702 = vmatpush3.msra.mxu1 %v18390_v52  ;;  %12623 = vmatpush3.msra.mxu0 %v7142_v21  ;;  %v8332_v37 = vpop.permute.xlu1 %8331  ;;  %v7140_v31 = vpop.permute.xlu0 %7139  ;;  %v18531_v52 = vld [vmem:[%s19084_s9 + $0x6] sm:$0x1] }
 0x88a   :  { %12713 = vmatprep.subr.mxu1 %v19915_v41  ;;  %12704 = vmatmul.mubr.msk.f32.vlgmr.msra.gmra.mxu1 %vm6672_vm9, %v18509_v34 }
 0x88b   :  { %12714 = vmatpush3.msra.mxu1 %v18429_v7  ;;  %12624 = vmatprep.subr.mxu0 %v19915_v41 }
 0x88c   :  { %12715 = vmatprep.subr.mxu1 %v19915_v41  ;;  %12717 = vmatprep.mubr.msk.f32.mxu1 %vm13039_vm3, %v19915_v41 }
 0x88d   :  { %12716 = vmatpush3.msra.mxu1 %v8172_v2  ;;  %12625 = vmatpush3.msra.mxu0 %v7140_v31  ;;  %v8494_v53 = vpop.permute.xlu1 %8493  ;;  %v8492_v16 = vpop.permute.xlu0 %8491  ;;  %v18729_v2 = vld [vmem:[%s19084_s9 + $0x16] sm:$0x1] }
 0x88e   :  { %12727 = vmatprep.subr.mxu1 %v19915_v41  ;;  %12626 = vmatprep.mubr.msk.f32.mxu0 %vm13039_vm3, %v19915_v41 }
 0x88f   :  { %12718 = vmatmul.mubr.msk.f32.vlgmr.msra.gmra.mxu1 %vm6672_vm9, %v18526_v50  ;;  %12627 = vmatmul.mubr.msk.f32.vlgmr.msra.gmra.mxu0 %vm6672_vm9, %v18531_v52 }
 0x890   :  { %12728 = vmatpush3.msra.mxu1 %v8334_v30  ;;  %12636 = vmatprep.subr.mxu0 %v19915_v41  ;;  %v18740_v30 = vld [vmem:[%s19084_s9 + $0x18] sm:$0x1] }
 0x891   :  { %12729 = vmatprep.subr.mxu1 %v19915_v41  ;;  %12637 = vmatpush3.msra.mxu0 %v18338_v49  ;;  %v7458_v49 = vpop.permute.xlu1 %7457 }
 0x892   :  { %12730 = vmatpush3.msra.mxu1 %v8332_v37  ;;  %12638 = vmatprep.subr.mxu0 %v19915_v41 }
 0x893   :  { %12731 = vmatprep.mubr.msk.f32.mxu1 %vm13039_vm3, %v19915_v41  ;;  %12741 = vmatprep.subr.mxu1 %v19915_v41 }
 0x894   :  { %12639 = vmatpush3.msra.mxu0 %v18304_v20  ;;  %12640 = vmatprep.mubr.msk.f32.mxu0 %vm13039_vm3, %v19915_v41  ;;  %v7456_v20 = vpop.permute.xlu0 %7455 }
 0x895   :  { %12732 = vmatmul.mubr.msk.f32.vlgmr.msra.gmra.mxu1 %vm6672_vm9, %v18547_v54  ;;  %12641 = vmatmul.mubr.msk.f32.vlgmr.msra.gmra.mxu0 %vm6672_vm9, %v18552_v55  ;;  %v7618_v19 = vpop.permute.xlu1 %7617 }
 0x896   :  { %12742 = vmatpush3.msra.mxu1 %v8494_v53  ;;  %12650 = vmatprep.subr.mxu0 %v19915_v41 }
 0x897   :  { %12743 = vmatprep.subr.mxu1 %v19915_v41  ;;  %12745 = vmatprep.mubr.msk.f32.mxu1 %vm13039_vm3, %v19915_v41 }
 0x898   :  { %12744 = vmatpush3.msra.mxu1 %v8492_v16  ;;  %12651 = vmatpush3.msra.mxu0 %v7458_v49  ;;  %v7616_v23 = vpop.permute.xlu0 %7615 }
 0x899   :  { %11891 = vmatprep.subr.msk.mxu1 %vm6469_vm4, %v19513_v10  ;;  %12746 = vmatmul.mubr.msk.f32.vlgmr.msra.gmra.mxu1 %vm6672_vm9, %v18568_v57  ;;  %v7778_v1 = vpop.permute.xlu1 %7777  ;;  %vm19916_vm4 = vcmp.eq.s32.totalorder %v13483_v46, %v18064_v59 }
 0x89a   :  { %11892 = vmatpush1.msk.msra.mxu1 %vm6468_vm12, %v19513_v10  ;;  %12652 = vmatprep.subr.mxu0 %v19915_v41  ;;  %vm19917_vm12 = vcmp.eq.s32.totalorder %v13483_v46, %v18070_v61 }
 0x89b   :  { %11893 = vmatprep.subr.msk.mxu1 %vm6465_vm1, %v19513_v10  ;;  %12653 = vmatpush3.msra.mxu0 %v7456_v20  ;;  %vm19918_vm1 = vcmp.eq.s32.totalorder %v13510_v47, %v18064_v59 }
 0x89c   :  { %12654 = vmatprep.mubr.msk.f32.mxu0 %vm13039_vm3, %v19915_v41  ;;  %11894 = vmatpush1.msk.msra.mxu1 %vm6464_vm10, %v19513_v10  ;;  %v7776_v7 = vpop.permute.xlu0 %7775  ;;  %vm19919_vm10 = vcmp.eq.s32.totalorder %v13510_v47, %v18070_v61  ;;  %v18702_v61 = vld [vmem:[%s19084_s9 + $0x12] sm:$0x1] }
 0x89d   :  { %12655 = vmatmul.mubr.msk.f32.vlgmr.msra.gmra.mxu0 %vm6672_vm9, %v18587_v58  ;;  %12664 = vmatprep.subr.mxu0 %v19915_v41  ;;  %v8094_v26 = vpop.permute.xlu1 %8093 }
 0x89e   :  { %11895 = vmatprep.subr.msk.mxu1 %vm6461_vm15, %v19513_v10  ;;  %12665 = vmatpush3.msra.mxu0 %v7618_v19  ;;  %vm19920_vm15 = vcmp.eq.s32.totalorder %v13537_v48, %v18064_v59 }
 0x89f   :  { %11896 = vmatpush1.msk.msra.mxu1 %vm6460_vm5, %v19513_v10  ;;  %12666 = vmatprep.subr.mxu0 %v19915_v41  ;;  %vm19923_vm5 = vcmp.eq.s32.totalorder %v13402_v43, %v18067_v60 }
 0x8a0   :  { %11897 = vmatprep.subr.msk.mxu1 %vm6457_vm0, %v19513_v10  ;;  %12667 = vmatpush3.msra.mxu0 %v7616_v23  ;;  %v8092_v4 = vpop.permute.xlu0 %8091  ;;  %vm19925_vm0 = vcmp.eq.s32.totalorder %v13429_v44, %v18067_v60 }
 0x8a1   :  { %12668 = vmatprep.mubr.msk.f32.mxu0 %vm13039_vm3, %v19915_v41  ;;  %11898 = vmatpush1.msk.msra.mxu1 %vm6456_vm11, %v19513_v10  ;;  %vm19926_vm11 = vcmp.eq.s32.totalorder %v13429_v44, %v18073_v62 }
 0x8a2   :  { %12669 = vmatmul.mubr.msk.f32.vlgmr.msra.gmra.mxu0 %vm6672_vm9, %v18614_v0  ;;  %12678 = vmatprep.subr.mxu0 %v19915_v41 }
 0x8a3   :  { %11899 = vmatprep.subr.msk.mxu1 %vm19916_vm4, %v19513_v10  ;;  %12679 = vmatpush3.msra.mxu0 %v7778_v1  ;;  %vm19927_vm4 = vcmp.eq.s32.totalorder %v13456_v45, %v18067_v60 }
 0x8a4   :  { %11900 = vmatpush1.msk.msra.mxu1 %vm19917_vm12, %v19513_v10  ;;  %12680 = vmatprep.subr.mxu0 %v19915_v41  ;;  %v8252_v32 = vpop.permute.xlu0 %8251  ;;  %vm19928_vm12 = vcmp.eq.s32.totalorder %v13456_v45, %v18073_v62 }
 0x8a5   :  { %11901 = vmatprep.subr.msk.mxu1 %vm19918_vm1, %v19513_v10  ;;  %12681 = vmatpush3.msra.mxu0 %v7776_v7  ;;  %vm19929_vm1 = vcmp.eq.s32.totalorder %v13483_v46, %v18067_v60 }
 0x8a6   :  { %12682 = vmatprep.mubr.msk.f32.mxu0 %vm13039_vm3, %v19915_v41  ;;  %11902 = vmatpush1.msk.msra.mxu1 %vm19919_vm10, %v19513_v10  ;;  %vm19930_vm10 = vcmp.eq.s32.totalorder %v13483_v46, %v18073_v62 }
 0x8a7   :  { %12683 = vmatmul.mubr.msk.f32.vlgmr.msra.gmra.mxu0 %vm6672_vm9, %v18643_v29  ;;  %12692 = vmatprep.subr.mxu0 %v19915_v41 }
 0x8a8   :  { %11903 = vmatprep.subr.msk.mxu1 %vm19920_vm15, %v19513_v10  ;;  %12693 = vmatpush3.msra.mxu0 %v18328_v40  ;;  %v18681_v40 = vmax.f32 %v18280_v11, %v6393_v51  ;;  %v8412_v21 = vpop.permute.xlu0 %8411  ;;  %vm19931_vm15 = vcmp.eq.s32.totalorder %v13510_v47, %v18067_v60 }
 0x8a9   :  { %11904 = vmatpush1.msk.msra.mxu1 %vm6444_vm7, %v19513_v10  ;;  %12694 = vmatprep.subr.mxu0 %v19915_v41  ;;  %vm19924_vm7 = vcmp.eq.s32.totalorder %v13402_v43, %v18073_v62 }
 0x8aa   :  { %11905 = vmatprep.subr.msk.mxu1 %vm6441_vm14, %v19513_v10  ;;  %12695 = vmatpush3.msra.mxu0 %v18299_v38  ;;  %v8254_v38 = vpop.permute.xlu1 %8253  ;;  %vm19922_vm14 = vcmp.eq.s32.totalorder %v13375_v42, %v18073_v62 }
 0x8ab   :  { %12696 = vmatprep.mubr.msk.f32.mxu0 %vm13039_vm3, %v19915_v41  ;;  %11906 = vmatpush1.msk.msra.mxu1 %vm6440_vm6, %v19513_v10  ;;  %vm19921_vm6 = vcmp.eq.s32.totalorder %v13375_v42, %v18067_v60 }
 0x8ac   :  { %8725 = vmatprep.mubr.f32.mxu1 %v19915_v41  ;;  %12697 = vmatmul.mubr.msk.f32.vlgmr.msra.gmra.mxu0 %vm6672_vm9, %v18673_v36  ;;  %v18692_v59 = vpop.f32.mrf.mxu1 }
 0x8ad   :  { %12706 = vmatprep.subr.mxu0 %v19915_v41  ;;  %11907 = vmatmul.mubr.msk.f32.vlgmr.msra.gmra.mxu1 %vm6309_vm2, %v18681_v40 }
 0x8ae   :  { %12707 = vmatpush3.msra.mxu0 %v8094_v26  ;;  %12710 = vmatprep.mubr.msk.f32.mxu0 %vm13039_vm3, %v19915_v41  ;;  %v12593_v11 = vpop.f32.mrf.mxu1  ;;  %v8414_v14 = vpop.permute.xlu1 %8413 }
 0x8af   :  { %12708 = vmatprep.subr.mxu0 %v19915_v41  ;;  %8731 = vmatprep.mubr.f32.mxu1 %v19915_v41 }
 0x8b0   :  { %12709 = vmatpush3.msra.mxu0 %v8092_v4  ;;  %12755 = vmatprep.subr.mxu1 %v19915_v41 }
 0x8b1   :  { %12711 = vmatmul.mubr.msk.f32.vlgmr.msra.gmra.mxu0 %vm6672_vm9, %v18702_v61  ;;  %12720 = vmatprep.subr.mxu0 %v19915_v41 }
 0x8b2   :  { %11908 = vmatmul.mubr.msk.f32.gmra.mxu1 %vm6309_vm2, %v6396_v5  ;;  %12721 = vmatpush3.msra.mxu0 %v8254_v38 }
 0x8b3   :  { %12722 = vmatprep.subr.mxu0 %v19915_v41  ;;  %12724 = vmatprep.mubr.msk.f32.mxu0 %vm13039_vm3, %v19915_v41 }
 0x8b4   :  { %12723 = vmatpush3.msra.mxu0 %v8252_v32  ;;  %12759 = vmatprep.mubr.msk.f32.mxu1 %vm13039_vm3, %v19915_v41 }
 0x8b5   :  { %12725 = vmatmul.mubr.msk.f32.vlgmr.msra.gmra.mxu0 %vm6672_vm9, %v18714_v9  ;;  %12734 = vmatprep.subr.mxu0 %v19915_v41 }
 0x8b6   :  { %12735 = vmatpush3.msra.mxu0 %v8414_v14  ;;  %12738 = vmatprep.mubr.msk.f32.mxu0 %vm13039_vm3, %v19915_v41 }
 0x8b7   :  { %12736 = vmatprep.subr.mxu0 %v19915_v41 }
 0x8b8   :  { %12737 = vmatpush3.msra.mxu0 %v8412_v21 }
 0x8b9   :  { %12739 = vmatmul.mubr.msk.f32.vlgmr.msra.gmra.mxu0 %vm6672_vm9, %v18729_v2  ;;  %12748 = vmatprep.subr.mxu0 %v19915_v41 }
 0x8ba   :  { %12749 = vmatpush3.msra.mxu0 %v6661_v33  ;;  %12752 = vmatprep.mubr.msk.f32.mxu0 %vm13039_vm3, %v19915_v41 }
 0x8bb   :  { %12750 = vmatprep.subr.mxu0 %v19915_v41 }
 0x8bc   :  { %12751 = vmatpush3.msra.mxu0 %v18324_v39 }
 0x8bd   :  { %12753 = vmatmul.mubr.msk.f32.vlgmr.msra.gmra.mxu0 %vm6672_vm9, %v18740_v30  ;;  %11909 = vmatprep.subr.msk.mxu0 %vm19921_vm6, %v19513_v10  ;;  %vm19932_vm6 = vcmp.eq.s32.totalorder %v13510_v47, %v18073_v62 }
 0x8be   :  { %11910 = vmatpush1.msk.msra.mxu0 %vm19922_vm14, %v19513_v10  ;;  %8802 = vmatprep.mubr.f32.mxu0 %v19915_v41  ;;  %vm19933_vm14 = vcmp.eq.s32.totalorder %v13151_v12, %v18067_v60 }
 0x8bf   :  { %11911 = vmatprep.subr.msk.mxu0 %vm19923_vm5, %v19513_v10  ;;  %vm19934_vm5 = vcmp.eq.s32.totalorder %v13151_v12, %v18073_v62 }
 0x8c0   :  { %11912 = vmatpush1.msk.msra.mxu0 %vm19924_vm7, %v19513_v10 }
 0x8c1   :  { %11913 = vmatprep.subr.msk.mxu0 %vm19925_vm0, %v19513_v10 }
 0x8c2   :  { %11914 = vmatpush1.msk.msra.mxu0 %vm19926_vm11, %v19513_v10 }
 0x8c3   :  { %11915 = vmatprep.subr.msk.mxu0 %vm19927_vm4, %v19513_v10 }
 0x8c4   :  { %11916 = vmatpush1.msk.msra.mxu0 %vm19928_vm12, %v19513_v10 }
 0x8c5   :  { %11917 = vmatprep.subr.msk.mxu0 %vm19929_vm1, %v19513_v10 }
 0x8c6   :  { %11918 = vmatpush1.msk.msra.mxu0 %vm19930_vm10, %v19513_v10 }
 0x8c7   :  { %11919 = vmatprep.subr.msk.mxu0 %vm19931_vm15, %v19513_v10 }
 0x8c8   :  { %11920 = vmatpush1.msk.msra.mxu0 %vm19932_vm6, %v19513_v10 }
 0x8c9   :  { %11921 = vmatprep.subr.msk.mxu0 %vm6447_vm13, %v19513_v10  ;;  %vm10876_vm13 = vcmask 8200  }
 0x8ca   :  { %11922 = vmatpush1.msk.msra.mxu0 %vm6446_vm8, %v19513_v10 }
 0x8cb   :  { %11923 = vmatprep.subr.msk.mxu0 %vm19933_vm14, %v19513_v10 }
 0x8cc   :  { %11924 = vmatpush1.msk.msra.mxu0 %vm19934_vm5, %v19513_v10 }
 0x8cd   :  { %11925 = vmatmul.mubr.msk.f32.vlgmr.msra.gmra.mxu0 %vm6309_vm2, %v18681_v40  ;;  %12762 = vmatprep.subr.mxu0 %v19915_v41 }
 0x8ce   :  { %8808 = vmatprep.mubr.f32.mxu0 %v19915_v41 }
 0x8d1   :  { %11926 = vmatmul.mubr.msk.f32.gmra.mxu0 %vm6309_vm2, %v6396_v5  ;;  %vm10797_vm2 = vcmask 0  }
 0x8d2   :  { %12766 = vmatprep.mubr.msk.f32.mxu0 %vm13039_vm3, %v19915_v41 }
 0x921   :  { %v6974_v42 = vpop.f32.mrf.mxu1 }
 0x923   :  { %v12607_v43 = vpop.f32.mrf.mxu1 }
 0x925   :  { %v7134_v44 = vpop.f32.mrf.mxu1 }
 0x927   :  { %v12621_v45 = vpop.f32.mrf.mxu1 }
 0x929   :  { %v7294_v46 = vpop.f32.mrf.mxu1 }
 0x92b   :  { %v12635_v47 = vpop.f32.mrf.mxu1 }
 0x935   :  { %v7450_v12 = vpop.f32.mrf.mxu1 }
 0x937   :  { %v12649_v48 = vpop.f32.mrf.mxu1 }
 0x939   :  { %v6742_v10 = vpop.f32.mrf.mxu0 }
 0x93a   :  { %v6816_v37 = vadd.f32 %v18692_v59, %v6742_v10 }
 0x93b   :  { %v7610_v60 = vpop.f32.mrf.mxu1  ;;  %v12586_v62 = vpop.f32.mrf.mxu0 }
 0x93d   :  { %v12663_v39 = vpop.f32.mrf.mxu1 }
 0x93f   :  { %v6894_v31 = vpop.f32.mrf.mxu0 }
 0x940   :  { %v6898_v53 = vadd.f32 %v6894_v31, %v6816_v37 }
 0x941   :  { %v7770_v16 = vpop.f32.mrf.mxu1  ;;  %v12600_v49 = vpop.f32.mrf.mxu0 }
 0x942   :  { %v6978_v20 = vadd.f32 %v6974_v42, %v6898_v53 }
 0x943   :  { %v12677_v19 = vpop.f32.mrf.mxu1 }
 0x946   :  { %v7930_v23 = vpop.f32.mrf.mxu1  ;;  %v7054_v1 = vpop.f32.mrf.mxu0 }
 0x947   :  { %v7058_v17 = vadd.f32 %v7054_v1, %v6978_v20 }
 0x948   :  { %v12691_v7 = vpop.f32.mrf.mxu1  ;;  %v12614_v51 = vpop.f32.mrf.mxu0 }
 0x949   :  { %v7138_v24 = vadd.f32 %v7134_v44, %v7058_v17 }
 0x94a   :  { %v8086_v26 = vpop.f32.mrf.mxu1 }
 0x94c   :  { %v12705_v33 = vpop.f32.mrf.mxu1 }
 0x94f   :  { %v8246_v40 = vpop.f32.mrf.mxu1  ;;  %v7214_v4 = vpop.f32.mrf.mxu0 }
 0x950   :  { %v7218_v13 = vadd.f32 %v7214_v4, %v7138_v24 }
 0x951   :  { %v12719_v11 = vpop.f32.mrf.mxu1  ;;  %v12628_v38 = vpop.f32.mrf.mxu0 }
 0x952   :  { %v7298_v59 = vadd.f32 %v7294_v46, %v7218_v13 }
 0x955   :  { %v8406_v5 = vpop.f32.mrf.mxu1  ;;  %v7368_v32 = vpop.f32.mrf.mxu0 }
 0x956   :  { %v7372_v14 = vadd.f32 %v7368_v32, %v7298_v59 }
 0x957   :  { %v12733_v21 = vpop.f32.mrf.mxu1  ;;  %v12642_v42 = vpop.f32.mrf.mxu0 }
 0x958   :  { %v7454_v43 = vadd.f32 %v7450_v12, %v7372_v14 }
 0x959   :  { %v8566_v45 = vpop.f32.mrf.mxu1 }
 0x95b   :  { %v12747_v47 = vpop.f32.mrf.mxu1 }
 0x95d   :  { %v7530_v48 = vpop.f32.mrf.mxu0 }
 0x95e   :  { %v7534_v10 = vadd.f32 %v7530_v48, %v7454_v43  ;;  %v6423_v48 = vld [vmem:[#allocation2] sm:$0x1] }
 0x95f   :  { %v12656_v62 = vpop.f32.mrf.mxu0 }
 0x960   :  { %v7614_v44 = vadd.f32 %v7610_v60, %v7534_v10 }
 0x962   :  { %v7690_v39 = vpop.f32.mrf.mxu0 }
 0x963   :  { %v7694_v37 = vadd.f32 %v7690_v39, %v7614_v44 }
 0x964   :  { %v12670_v31 = vpop.f32.mrf.mxu0 }
 0x965   :  { %v7774_v53 = vadd.f32 %v7770_v16, %v7694_v37 }
 0x967   :  { %v7850_v49 = vpop.f32.mrf.mxu0 }
 0x968   :  { %v7854_v20 = vadd.f32 %v7850_v49, %v7774_v53 }
 0x969   :  { %v12684_v19 = vpop.f32.mrf.mxu0 }
 0x96a   :  { %v7934_v46 = vadd.f32 %v7930_v23, %v7854_v20 }
 0x96c   :  { %v8004_v1 = vpop.f32.mrf.mxu0 }
 0x96d   :  { %v8008_v17 = vadd.f32 %v8004_v1, %v7934_v46  ;;  %v8727_v7 = vpop.f32.mrf.mxu1 }
 0x96e   :  { %8817 = vrot.lane.b32.xlu0 %v8727_v7, %s13040_s7  ;;  %v12698_v12 = vpop.f32.mrf.mxu0 }
 0x96f   :  { %v18820_v51 = vpop.f32.mrf.mxu1  ;;  %v8090_v24 = vadd.f32 %v8086_v26, %v8008_v17 }
 0x971   :  { %v8166_v33 = vpop.f32.mrf.mxu0 }
 0x972   :  { %v8170_v4 = vadd.f32 %v8166_v33, %v8090_v24  ;;  %v8733_v60 = vpop.f32.mrf.mxu1  ;;  %8963 = vrot.lane.b32.xlu0 %v8727_v7, %s13044_s24 }
 0x973   :  { %8819 = vrot.lane.b32.xlu1 %v8733_v60, %s13040_s7  ;;  %12763 = vmatpush3.msra.mxu0 %v8733_v60  ;;  %v12712_v16 = vpop.f32.mrf.mxu0 }
 0x974   :  { %12764 = vmatprep.subr.mxu0 %v19915_v41  ;;  %v8250_v23 = vadd.f32 %v8246_v40, %v8170_v4 }
 0x975   :  { %12765 = vmatpush3.msra.mxu0 %v8727_v7  ;;  %v8326_v13 = vpop.f32.mrf.mxu0 }
 0x976   :  { %v8330_v11 = vadd.f32 %v8326_v13, %v8250_v23  ;;  %9040 = vrot.lane.b32.xlu0 %v8727_v7, %s13041_s19  ;;  %12776 = vmatprep.subr.mxu0 %v19915_v41 }
 0x977   :  { %8965 = vrot.lane.b32.xlu1 %v8733_v60, %s13044_s24  ;;  %v12726_v26 = vpop.f32.mrf.mxu0  ;;  %12767 = vmatmul.mubr.msk.f32.vlgmr.msra.gmra.mxu0 %vm6672_vm9, %v18313_v6 }
 0x978   :  { %v8410_v38 = vadd.f32 %v8406_v5, %v8330_v11  ;;  %12780 = vmatprep.mubr.msk.f32.mxu0 %vm13039_vm3, %v19915_v41  ;;  %v18845_v5 = vpop.f32.mrf.mxu1  ;;  %v10722_v11 = vld [vmem:[%s19086_s11 + $0x8] sm:$0xff]  ;;  %v10721_v26 = vld [vmem:[%s19086_s11] sm:$0xff]  ;;  %s13046_s11 = smov 1  }
 0x979   :  { %v8486_v59 = vpop.f32.mrf.mxu0 }
 0x97a   :  { %v8490_v32 = vadd.f32 %v8486_v59, %v8410_v38  ;;  %9117 = vrot.lane.b32.xlu0 %v8727_v7, %s13038_s14 }
 0x97b   :  { %9042 = vrot.lane.b32.xlu1 %v8733_v60, %s13041_s19  ;;  %v12740_v40 = vpop.f32.mrf.mxu0 }
 0x97c   :  { %v8570_v14 = vadd.f32 %v8566_v45, %v8490_v32 }
 0x97d   :  { %v8640_v21 = vpop.f32.mrf.mxu0 }
 0x97e   :  { %v18834_v42 = vadd.f32 %v8640_v21, %v8570_v14  ;;  %9194 = vrot.lane.b32.xlu0 %v8727_v7, %s13042_s20 }
 0x97f   :  { %9119 = vrot.lane.b32.xlu1 %v8733_v60, %s13038_s14  ;;  %v12754_v6 = vpop.f32.mrf.mxu0 }
 0x982   :  { %9271 = vrot.lane.b32.xlu0 %v8727_v7, %s13045_s25 }
 0x983   :  { %9196 = vrot.lane.b32.xlu1 %v8733_v60, %s13042_s20 }
 0x986   :  { %9348 = vrot.lane.b32.xlu0 %v8727_v7, %s13043_s21 }
 0x987   :  { %9273 = vrot.lane.b32.xlu1 %v8733_v60, %s13045_s25 }
 0x98a   :  { %9498 = vrot.lane.b32.xlu0 %v18820_v51, %s13040_s7 }
 0x98b   :  { %9350 = vrot.lane.b32.xlu1 %v8733_v60, %s13043_s21 }
 0x98d   :  { %v18867_v43 = vpop.f32.mrf.mxu0 }
 0x98e   :  { %9575 = vrot.lane.b32.xlu0 %v18820_v51, %s13044_s24 }
 0x98f   :  { %9500 = vrot.lane.b32.xlu1 %v18845_v5, %s13040_s7  ;;  %v18873_v45 = vpop.f32.mrf.mxu0 }
 0x991   :  { %v18879_v47 = vpop.f32.mrf.mxu0 }
 0x992   :  { %9652 = vrot.lane.b32.xlu0 %v18820_v51, %s13041_s19 }
 0x993   :  { %9577 = vrot.lane.b32.xlu1 %v18845_v5, %s13044_s24 }
 0x996   :  { %9729 = vrot.lane.b32.xlu0 %v18820_v51, %s13038_s14 }
 0x997   :  { %9654 = vrot.lane.b32.xlu1 %v18845_v5, %s13041_s19 }
 0x99a   :  { %9806 = vrot.lane.b32.xlu0 %v18820_v51, %s13042_s20 }
 0x99b   :  { %9731 = vrot.lane.b32.xlu1 %v18845_v5, %s13038_s14 }
 0x99e   :  { %9883 = vrot.lane.b32.xlu0 %v18820_v51, %s13045_s25 }
 0x99f   :  { %9808 = vrot.lane.b32.xlu1 %v18845_v5, %s13042_s20 }
 0x9a2   :  { %9960 = vrot.lane.b32.xlu0 %v18820_v51, %s13043_s21 }
 0x9a3   :  { %9885 = vrot.lane.b32.xlu1 %v18845_v5, %s13045_s25 }
 0x9a6   :  { %10110 = vrot.lane.b32.xlu0 %v18867_v43, %s13040_s7 }
 0x9a7   :  { %9962 = vrot.lane.b32.xlu1 %v18845_v5, %s13043_s21 }
 0x9aa   :  { %10187 = vrot.lane.b32.xlu0 %v18867_v43, %s13044_s24 }
 0x9ab   :  { %10112 = vrot.lane.b32.xlu1 %v18879_v47, %s13040_s7 }
 0x9ae   :  { %10264 = vrot.lane.b32.xlu0 %v18867_v43, %s13041_s19 }
 0x9af   :  { %10189 = vrot.lane.b32.xlu1 %v18879_v47, %s13044_s24 }
 0x9b2   :  { %10341 = vrot.lane.b32.xlu0 %v18867_v43, %s13038_s14 }
 0x9b3   :  { %10266 = vrot.lane.b32.xlu1 %v18879_v47, %s13041_s19 }
 0x9b6   :  { %10418 = vrot.lane.b32.xlu0 %v18867_v43, %s13042_s20 }
 0x9b7   :  { %10343 = vrot.lane.b32.xlu1 %v18879_v47, %s13038_s14 }
 0x9ba   :  { %10495 = vrot.lane.b32.xlu0 %v18867_v43, %s13045_s25 }
 0x9bb   :  { %10420 = vrot.lane.b32.xlu1 %v18879_v47, %s13042_s20  ;;  %s13047_s20 = smov [#allocation4]  }
 0x9be   :  { %10572 = vrot.lane.b32.xlu0 %v18867_v43, %s13043_s21 }
 0x9bf   :  { %10497 = vrot.lane.b32.xlu1 %v18879_v47, %s13045_s25 }
 0x9c3   :  { %10574 = vrot.lane.b32.xlu1 %v18879_v47, %s13043_s21  ;;  %s10884_s21 = sshll.u32 %s13047_s20, 4  ;;  %s10885_s21 = int_to_ptr.vmem [resolvable:$true] %s10884_s21 }
 0x9c4   :  { %s13013_s24 = scalar_lea.vmem %s10885_s21, 16  ;;  %s13017_s25 = scalar_lea.vmem %s10885_s21, 32 }
 0x9c5   :  { %p13014_p0 = scmp.ne.s32.totalorder %s10885_s21, %s13013_s24  ;;  %p13018_p1 = scmp.lt.s32.totalorder %s10885_s21, %s10885_s21 }
 0x9c6   :  { %p13019_p2 = scmp.lt.s32.totalorder %s13017_s25, %s13013_s24 }
 0x9c7   :  { %8647 = vperm.xlu1 %12958, %v6423_v48  }
 0x9c8   :  { %p13020_p3 = por %p13019_p2, %p13018_p1 }
 0x9ca   :  { %p13021_p4 = pnand %p13020_p3, %p13014_p0 }
 0x9e0   :  { %v8818_v10 = vpop.permute.xlu0 %8817 }
 0x9e4   :  { %v8964_v62 = vpop.permute.xlu0 %8963 }
 0x9e5   :  { %v8820_v44 = vpop.permute.xlu1 %8819 }
 0x9e6   :  { %12756 = vmatpush3.msra.mxu1 %v8820_v44 }
 0x9e7   :  { %12757 = vmatprep.subr.mxu1 %v19915_v41 }
 0x9e8   :  { %12758 = vmatpush3.msra.mxu1 %v8818_v10  ;;  %v9041_v39 = vpop.permute.xlu0 %9040 }
 0x9e9   :  { %12769 = vmatprep.subr.mxu1 %v19915_v41  ;;  %v8966_v37 = vpop.permute.xlu1 %8965  ;;  %12760 = vmatmul.mubr.msk.f32.vlgmr.msra.gmra.mxu1 %vm6672_vm9, %v18443_v15 }
 0x9ea   :  { %12770 = vmatpush3.msra.mxu1 %v8966_v37  ;;  %12773 = vmatprep.mubr.msk.f32.mxu1 %vm13039_vm3, %v19915_v41 }
 0x9eb   :  { %12771 = vmatprep.subr.mxu1 %v19915_v41 }
 0x9ec   :  { %12772 = vmatpush3.msra.mxu1 %v8964_v62  ;;  %v9118_v31 = vpop.permute.xlu0 %9117 }
 0x9ed   :  { %v9043_v53 = vpop.permute.xlu1 %9042  ;;  %12783 = vmatprep.subr.mxu1 %v19915_v41  ;;  %12774 = vmatmul.mubr.msk.f32.vlgmr.msra.gmra.mxu1 %vm6672_vm9, %v18464_v28 }
 0x9ee   :  { %12777 = vmatpush3.msra.mxu0 %v9043_v53  ;;  %12787 = vmatprep.mubr.msk.f32.mxu1 %vm13039_vm3, %v19915_v41 }
 0x9ef   :  { %12778 = vmatprep.subr.mxu0 %v19915_v41 }
 0x9f0   :  { %12779 = vmatpush3.msra.mxu0 %v9041_v39  ;;  %v9195_v15 = vpop.permute.xlu0 %9194 }
 0x9f1   :  { %v9120_v49 = vpop.permute.xlu1 %9119  ;;  %12790 = vmatprep.subr.mxu0 %v19915_v41  ;;  %12781 = vmatmul.mubr.msk.f32.vlgmr.msra.gmra.mxu0 %vm6672_vm9, %v18397_v56 }
 0x9f2   :  { %12784 = vmatpush3.msra.mxu1 %v9120_v49  ;;  %12794 = vmatprep.mubr.msk.f32.mxu0 %vm13039_vm3, %v19915_v41 }
 0x9f3   :  { %12785 = vmatprep.subr.mxu1 %v19915_v41 }
 0x9f4   :  { %12786 = vmatpush3.msra.mxu1 %v9118_v31  ;;  %v9272_v28 = vpop.permute.xlu0 %9271 }
 0x9f5   :  { %v9197_v20 = vpop.permute.xlu1 %9196  ;;  %12797 = vmatprep.subr.mxu1 %v19915_v41  ;;  %12788 = vmatmul.mubr.msk.f32.vlgmr.msra.gmra.mxu1 %vm6672_vm9, %v18494_v27 }
 0x9f6   :  { %12791 = vmatpush3.msra.mxu0 %v9197_v20  ;;  %12801 = vmatprep.mubr.msk.f32.mxu1 %vm13039_vm3, %v19915_v41 }
 0x9f7   :  { %12792 = vmatprep.subr.mxu0 %v19915_v41 }
 0x9f8   :  { %12793 = vmatpush3.msra.mxu0 %v9195_v15  ;;  %v9349_v56 = vpop.permute.xlu0 %9348 }
 0x9f9   :  { %v9274_v19 = vpop.permute.xlu1 %9273  ;;  %12804 = vmatprep.subr.mxu0 %v19915_v41  ;;  %12795 = vmatmul.mubr.msk.f32.vlgmr.msra.gmra.mxu0 %vm6672_vm9, %v18408_v18 }
 0x9fa   :  { %12798 = vmatpush3.msra.mxu1 %v9274_v19  ;;  %12808 = vmatprep.mubr.msk.f32.mxu0 %vm13039_vm3, %v19915_v41 }
 0x9fb   :  { %12799 = vmatprep.subr.mxu1 %v19915_v41 }
 0x9fc   :  { %12800 = vmatpush3.msra.mxu1 %v9272_v28  ;;  %v9499_v27 = vpop.permute.xlu0 %9498 }
 0x9fd   :  { %12811 = vmatprep.subr.mxu1 %v19915_v41  ;;  %v9351_v46 = vpop.permute.xlu1 %9350  ;;  %12802 = vmatmul.mubr.msk.f32.vlgmr.msra.gmra.mxu1 %vm6672_vm9, %v18531_v52 }
 0x9fe   :  { %12805 = vmatpush3.msra.mxu0 %v9351_v46  ;;  %12812 = vmatpush3.msra.mxu1 %v18845_v5 }
 0x9ff   :  { %12806 = vmatprep.subr.mxu0 %v19915_v41  ;;  %12813 = vmatprep.subr.mxu1 %v19915_v41 }
 0xa00   :  { %12807 = vmatpush3.msra.mxu0 %v9349_v56  ;;  %12814 = vmatpush3.msra.mxu1 %v18820_v51  ;;  %v9576_v18 = vpop.permute.xlu0 %9575 }
 0xa01   :  { %12818 = vmatprep.subr.mxu0 %v19915_v41  ;;  %v9501_v1 = vpop.permute.xlu1 %9500  ;;  %12809 = vmatmul.mubr.msk.f32.vlgmr.msra.gmra.mxu0 %vm6672_vm9, %v18419_v63 }
 0xa02   :  { %12819 = vmatpush3.msra.mxu0 %v9501_v1  ;;  %12815 = vmatprep.mubr.msk.f32.mxu1 %vm13039_vm3, %v19915_v41 }
 0xa03   :  { %12820 = vmatprep.subr.mxu0 %v19915_v41  ;;  %12825 = vmatprep.subr.mxu1 %v19915_v41 }
 0xa04   :  { %12821 = vmatpush3.msra.mxu0 %v9499_v27  ;;  %v9653_v52 = vpop.permute.xlu0 %9652  ;;  %12816 = vmatmul.mubr.msk.f32.vlgmr.msra.gmra.mxu1 %vm6672_vm9, %v18552_v55 }
 0xa05   :  { %v9578_v17 = vpop.permute.xlu1 %9577  ;;  %12822 = vmatprep.mubr.msk.f32.mxu0 %vm13039_vm3, %v19915_v41  ;;  %12832 = vmatprep.subr.mxu0 %v19915_v41 }
 0xa06   :  { %12826 = vmatpush3.msra.mxu1 %v9578_v17  ;;  %12823 = vmatmul.mubr.msk.f32.vlgmr.msra.gmra.mxu0 %vm6672_vm9, %v18434_v35 }
 0xa07   :  { %12827 = vmatprep.subr.mxu1 %v19915_v41  ;;  %12829 = vmatprep.mubr.msk.f32.mxu1 %vm13039_vm3, %v19915_v41 }
 0xa08   :  { %12828 = vmatpush3.msra.mxu1 %v9576_v18  ;;  %v9730_v63 = vpop.permute.xlu0 %9729  ;;  %12836 = vmatprep.mubr.msk.f32.mxu0 %vm13039_vm3, %v19915_v41 }
 0xa09   :  { %v9655_v55 = vpop.permute.xlu1 %9654  ;;  %12839 = vmatprep.subr.mxu1 %v19915_v41  ;;  %12830 = vmatmul.mubr.msk.f32.vlgmr.msra.gmra.mxu1 %vm6672_vm9, %v18587_v58 }
 0xa0a   :  { %12833 = vmatpush3.msra.mxu0 %v9655_v55  ;;  %12843 = vmatprep.mubr.msk.f32.mxu1 %vm13039_vm3, %v19915_v41 }
 0xa0b   :  { %12834 = vmatprep.subr.mxu0 %v19915_v41 }
 0xa0c   :  { %12835 = vmatpush3.msra.mxu0 %v9653_v52  ;;  %v9807_v35 = vpop.permute.xlu0 %9806 }
 0xa0d   :  { %v9732_v7 = vpop.permute.xlu1 %9731  ;;  %12846 = vmatprep.subr.mxu0 %v19915_v41  ;;  %12837 = vmatmul.mubr.msk.f32.vlgmr.msra.gmra.mxu0 %vm6672_vm9, %v18450_v8 }
 0xa0e   :  { %12840 = vmatpush3.msra.mxu1 %v9732_v7  ;;  %12850 = vmatprep.mubr.msk.f32.mxu0 %vm13039_vm3, %v19915_v41 }
 0xa0f   :  { %12841 = vmatprep.subr.mxu1 %v19915_v41 }
 0xa10   :  { %12842 = vmatpush3.msra.mxu1 %v9730_v63  ;;  %v9884_v58 = vpop.permute.xlu0 %9883 }
 0xa11   :  { %v9809_v12 = vpop.permute.xlu1 %9808  ;;  %12853 = vmatprep.subr.mxu1 %v19915_v41  ;;  %12844 = vmatmul.mubr.msk.f32.vlgmr.msra.gmra.mxu1 %vm6672_vm9, %v18614_v0 }
 0xa12   :  { %12847 = vmatpush3.msra.mxu0 %v9809_v12  ;;  %12857 = vmatprep.mubr.msk.f32.mxu1 %vm13039_vm3, %v19915_v41 }
 0xa13   :  { %12848 = vmatprep.subr.mxu0 %v19915_v41 }
 0xa14   :  { %12849 = vmatpush3.msra.mxu0 %v9807_v35  ;;  %v9961_v8 = vpop.permute.xlu0 %9960 }
 0xa15   :  { %v9886_v51 = vpop.permute.xlu1 %9885  ;;  %12860 = vmatprep.subr.mxu0 %v19915_v41  ;;  %12851 = vmatmul.mubr.msk.f32.vlgmr.msra.gmra.mxu0 %vm6672_vm9, %v18472_v3 }
 0xa16   :  { %12854 = vmatpush3.msra.mxu1 %v9886_v51  ;;  %12864 = vmatprep.mubr.msk.f32.mxu0 %vm13039_vm3, %v19915_v41 }
 0xa17   :  { %12855 = vmatprep.subr.mxu1 %v19915_v41 }
 0xa18   :  { %12856 = vmatpush3.msra.mxu1 %v9884_v58  ;;  %v10111_v0 = vpop.permute.xlu0 %10110 }
 0xa19   :  { %12867 = vmatprep.subr.mxu1 %v19915_v41  ;;  %v9963_v24 = vpop.permute.xlu1 %9962  ;;  %12858 = vmatmul.mubr.msk.f32.vlgmr.msra.gmra.mxu1 %vm6672_vm9, %v18643_v29 }
 0xa1a   :  { %12861 = vmatpush3.msra.mxu0 %v9963_v24  ;;  %12868 = vmatpush3.msra.mxu1 %v18879_v47 }
 0xa1b   :  { %12862 = vmatprep.subr.mxu0 %v19915_v41  ;;  %12869 = vmatprep.subr.mxu1 %v19915_v41 }
 0xa1c   :  { %12863 = vmatpush3.msra.mxu0 %v9961_v8  ;;  %12870 = vmatpush3.msra.mxu1 %v18867_v43  ;;  %v10188_v3 = vpop.permute.xlu0 %10187 }
 0xa1d   :  { %12874 = vmatprep.subr.mxu0 %v19915_v41  ;;  %v10113_v33 = vpop.permute.xlu1 %10112  ;;  %12865 = vmatmul.mubr.msk.f32.vlgmr.msra.gmra.mxu0 %vm6672_vm9, %v18489_v25 }
 0xa1e   :  { %12875 = vmatpush3.msra.mxu0 %v10113_v33  ;;  %12871 = vmatprep.mubr.msk.f32.mxu1 %vm13039_vm3, %v19915_v41 }
 0xa1f   :  { %12876 = vmatprep.subr.mxu0 %v19915_v41  ;;  %12881 = vmatprep.subr.mxu1 %v19915_v41 }
 0xa20   :  { %12877 = vmatpush3.msra.mxu0 %v10111_v0  ;;  %v10265_v29 = vpop.permute.xlu0 %10264  ;;  %12872 = vmatmul.mubr.msk.f32.vlgmr.msra.gmra.mxu1 %vm6672_vm9, %v18673_v36 }
 0xa21   :  { %v10190_v4 = vpop.permute.xlu1 %10189  ;;  %12878 = vmatprep.mubr.msk.f32.mxu0 %vm13039_vm3, %v19915_v41  ;;  %12888 = vmatprep.subr.mxu0 %v19915_v41 }
 0xa22   :  { %12882 = vmatpush3.msra.mxu1 %v10190_v4  ;;  %12879 = vmatmul.mubr.msk.f32.vlgmr.msra.gmra.mxu0 %vm6672_vm9, %v18509_v34 }
 0xa23   :  { %12883 = vmatprep.subr.mxu1 %v19915_v41  ;;  %12885 = vmatprep.mubr.msk.f32.mxu1 %vm13039_vm3, %v19915_v41 }
 0xa24   :  { %12884 = vmatpush3.msra.mxu1 %v10188_v3  ;;  %12892 = vmatprep.mubr.msk.f32.mxu0 %vm13039_vm3, %v19915_v41  ;;  %v10342_v25 = vpop.permute.xlu0 %10341 }
 0xa25   :  { %v10267_v36 = vpop.permute.xlu1 %10266  ;;  %12895 = vmatprep.subr.mxu1 %v19915_v41  ;;  %12886 = vmatmul.mubr.msk.f32.vlgmr.msra.gmra.mxu1 %vm6672_vm9, %v18702_v61 }
 0xa26   :  { %12889 = vmatpush3.msra.mxu0 %v10267_v36  ;;  %12899 = vmatprep.mubr.msk.f32.mxu1 %vm13039_vm3, %v19915_v41 }
 0xa27   :  { %12890 = vmatprep.subr.mxu0 %v19915_v41 }
 0xa28   :  { %12891 = vmatpush3.msra.mxu0 %v10265_v29  ;;  %v10419_v60 = vpop.permute.xlu0 %10418 }
 0xa29   :  { %v10344_v34 = vpop.permute.xlu1 %10343  ;;  %12902 = vmatprep.subr.mxu0 %v19915_v41  ;;  %12893 = vmatmul.mubr.msk.f32.vlgmr.msra.gmra.mxu0 %vm6672_vm9, %v18526_v50 }
 0xa2a   :  { %12896 = vmatpush3.msra.mxu1 %v10344_v34  ;;  %12906 = vmatprep.mubr.msk.f32.mxu0 %vm13039_vm3, %v19915_v41 }
 0xa2b   :  { %12897 = vmatprep.subr.mxu1 %v19915_v41 }
 0xa2c   :  { %12898 = vmatpush3.msra.mxu1 %v10342_v25  ;;  %v10496_v50 = vpop.permute.xlu0 %10495 }
 0xa2d   :  { %v10421_v61 = vpop.permute.xlu1 %10420  ;;  %12909 = vmatprep.subr.mxu1 %v19915_v41  ;;  %12900 = vmatmul.mubr.msk.f32.vlgmr.msra.gmra.mxu1 %vm6672_vm9, %v18714_v9  ;;  %v8812_v9 = vpop.f32.mrf.mxu0 }
 0xa2e   :  { %12903 = vmatpush3.msra.mxu0 %v10421_v61  ;;  %12913 = vmatprep.mubr.msk.f32.mxu1 %vm13039_vm3, %v19915_v41 }
 0xa2f   :  { %12904 = vmatprep.subr.mxu0 %v19915_v41 }
 0xa30   :  { %12905 = vmatpush3.msra.mxu0 %v10419_v60  ;;  %v10573_v13 = vpop.permute.xlu0 %10572 }
 0xa31   :  { %v10498_v16 = vpop.permute.xlu1 %10497  ;;  %12907 = vmatmul.mubr.msk.f32.vlgmr.msra.gmra.mxu0 %vm6672_vm9, %v18547_v54  ;;  %12916 = vmatprep.subr.mxu0 %v19915_v41 }
 0xa32   :  { %12910 = vmatpush3.msra.mxu1 %v10498_v16  ;;  %12920 = vmatprep.mubr.msk.f32.mxu0 %vm13039_vm3, %v19915_v41 }
 0xa33   :  { %12911 = vmatprep.subr.mxu1 %v19915_v41 }
 0xa34   :  { %12912 = vmatpush3.msra.mxu1 %v10496_v50 }
 0xa35   :  { %12923 = vmatprep.subr.mxu1 %v19915_v41  ;;  %v10575_v23 = vpop.permute.xlu1 %10574  ;;  %12914 = vmatmul.mubr.msk.f32.vlgmr.msra.gmra.mxu1 %vm6672_vm9, %v18729_v2 }
 0xa36   :  { %12917 = vmatpush3.msra.mxu0 %v10575_v23  ;;  %12924 = vmatpush3.msra.mxu1 %v8812_v9 }
 0xa37   :  { %12918 = vmatprep.subr.mxu0 %v19915_v41  ;;  %12925 = vmatprep.subr.mxu1 %v19915_v41  ;;  %v8959_v54 = vpop.f32.mrf.mxu0 }
 0xa38   :  { %12919 = vmatpush3.msra.mxu0 %v10573_v13  ;;  %12926 = vmatpush3.msra.mxu1 %v18873_v45 }
 0xa39   :  { %12921 = vmatmul.mubr.msk.f32.vlgmr.msra.gmra.mxu0 %vm6672_vm9, %v18568_v57  ;;  %12927 = vmatprep.mubr.msk.f32.mxu1 %vm13039_vm3, %v19915_v41  ;;  %v12768_v2 = vpop.f32.mrf.mxu0 }
 0xa3a   :  { %12928 = vmatmul.mubr.msk.f32.vlgmr.msra.gmra.mxu1 %vm6672_vm9, %v18740_v30  ;;  %12930 = vmatprep.subr.mxu0 %v19915_v41 }
 0xa3b   :  { %12931 = vmatpush3.msra.mxu0 %v10722_v11  ;;  %12934 = vmatprep.mubr.msk.f32.mxu0 %vm13039_vm3, %v19915_v41 }
 0xa3c   :  { %12932 = vmatprep.subr.mxu0 %v19915_v41  ;;  %12937 = vmatprep.subr.mxu1 %v19915_v41 }
 0xa3d   :  { %12933 = vmatpush3.msra.mxu0 %v10721_v26  ;;  %12938 = vmatpush3.msra.mxu1 %v10722_v11 }
 0xa3e   :  { %12939 = vmatprep.subr.mxu1 %v19915_v41  ;;  %12941 = vmatprep.mubr.msk.f32.mxu1 %vm13039_vm3, %v19915_v41 }
 0xa3f   :  { %12940 = vmatpush3.msra.mxu1 %v10721_v26 }
 0xa42   :  { %v8648_v57 = vpop.permute.xlu1 %8647 }
 0xa43   :  { %v19065_v30 = vrot.slane %v8648_v57, %v13181_v22 }
 0xa45   :  { %v8654_v38 = vadd.f32 %v19065_v30, %v18834_v42 }
 0xa47   :  { %12935 = vmatmul.mubr.msk.f32.vlgmr.msra.gmra.mxu0 %vm6672_vm9, %v8654_v38 }
 0xaa9   :  { %v8889_v59 = vpop.f32.mrf.mxu1 }
 0xaaa   :  { %v8960_v32 = vadd.f32 %v8959_v54, %v8889_v59 }
 0xaab   :  { %v12761_v40 = vpop.f32.mrf.mxu1 }
 0xaad   :  { %v9035_v14 = vpop.f32.mrf.mxu1 }
 0xaae   :  { %v9039_v21 = vadd.f32 %v9035_v14, %v8960_v32 }
 0xaaf   :  { %v12775_v6 = vpop.f32.mrf.mxu1 }
 0xab1   :  { %v9112_v5 = vpop.f32.mrf.mxu0 }
 0xab2   :  { %v9116_v43 = vadd.f32 %v9112_v5, %v9039_v21 }
 0xab3   :  { %v12782_v45 = vpop.f32.mrf.mxu0 }
 0xab5   :  { %v9189_v41 = vpop.f32.mrf.mxu1 }
 0xab6   :  { %v9193_v47 = vadd.f32 %v9189_v41, %v9116_v43 }
 0xab7   :  { %v12789_v48 = vpop.f32.mrf.mxu1 }
 0xab9   :  { %v9266_v10 = vpop.f32.mrf.mxu0 }
 0xaba   :  { %v9270_v22 = vadd.f32 %v9266_v10, %v9193_v47  ;;  %v10723_v47 = vld [vmem:[#allocation3] sm:$0x1] }
 0xabb   :  { %v12796_v62 = vpop.f32.mrf.mxu0 }
 0xabd   :  { %v9343_v44 = vpop.f32.mrf.mxu1 }
 0xabe   :  { %v9347_v39 = vadd.f32 %v9343_v44, %v9270_v22 }
 0xabf   :  { %v12803_v42 = vpop.f32.mrf.mxu1 }
 0xac1   :  { %v9420_v37 = vpop.f32.mrf.mxu0 }
 0xac2   :  { %v9424_v31 = vadd.f32 %v9420_v37, %v9347_v39 }
 0xac3   :  { %v12810_v53 = vpop.f32.mrf.mxu0 }
 0xac4   :  { %v9491_v15 = vpop.f32.mrf.mxu1 }
 0xac5   :  { %v9495_v49 = vadd.f32 %v9491_v15, %v9424_v31 }
 0xac6   :  { %v12817_v28 = vpop.f32.mrf.mxu1  ;;  %v9570_v20 = vpop.f32.mrf.mxu0 }
 0xac7   :  { %v9574_v56 = vadd.f32 %v9570_v20, %v9495_v49 }
 0xac8   :  { %v12824_v19 = vpop.f32.mrf.mxu0 }
 0xac9   :  { %v9647_v27 = vpop.f32.mrf.mxu1 }
 0xaca   :  { %v9651_v46 = vadd.f32 %v9647_v27, %v9574_v56 }
 0xacb   :  { %v12831_v18 = vpop.f32.mrf.mxu1 }
 0xacd   :  { %v9724_v1 = vpop.f32.mrf.mxu0 }
 0xace   :  { %v9728_v52 = vadd.f32 %v9724_v1, %v9651_v46 }
 0xacf   :  { %v12838_v17 = vpop.f32.mrf.mxu0 }
 0xad1   :  { %v9801_v63 = vpop.f32.mrf.mxu1 }
 0xad2   :  { %v9805_v55 = vadd.f32 %v9801_v63, %v9728_v52 }
 0xad3   :  { %v12845_v35 = vpop.f32.mrf.mxu1 }
 0xad5   :  { %v9878_v7 = vpop.f32.mrf.mxu0 }
 0xad6   :  { %v9882_v58 = vadd.f32 %v9878_v7, %v9805_v55 }
 0xad7   :  { %v12852_v12 = vpop.f32.mrf.mxu0 }
 0xad9   :  { %v9955_v8 = vpop.f32.mrf.mxu1 }
 0xada   :  { %v9959_v51 = vadd.f32 %v9955_v8, %v9882_v58 }
 0xadb   :  { %v12859_v0 = vpop.f32.mrf.mxu1 }
 0xadd   :  { %v10032_v24 = vpop.f32.mrf.mxu0 }
 0xade   :  { %v10036_v3 = vadd.f32 %v10032_v24, %v9959_v51 }
 0xadf   :  { %v12866_v33 = vpop.f32.mrf.mxu0 }
 0xae0   :  { %v10103_v29 = vpop.f32.mrf.mxu1 }
 0xae1   :  { %v10107_v4 = vadd.f32 %v10103_v29, %v10036_v3 }
 0xae2   :  { %v12873_v25 = vpop.f32.mrf.mxu1  ;;  %v10182_v36 = vpop.f32.mrf.mxu0 }
 0xae3   :  { %v10186_v34 = vadd.f32 %v10182_v36, %v10107_v4 }
 0xae4   :  { %v12880_v60 = vpop.f32.mrf.mxu0 }
 0xae5   :  { %v10259_v61 = vpop.f32.mrf.mxu1 }
 0xae6   :  { %v10263_v16 = vadd.f32 %v10259_v61, %v10186_v34 }
 0xae7   :  { %v12887_v50 = vpop.f32.mrf.mxu1 }
 0xae9   :  { %v10336_v9 = vpop.f32.mrf.mxu0 }
 0xaea   :  { %v10340_v13 = vadd.f32 %v10336_v9, %v10263_v16 }
 0xaeb   :  { %v12894_v23 = vpop.f32.mrf.mxu0 }
 0xaed   :  { %v10413_v54 = vpop.f32.mrf.mxu1 }
 0xaee   :  { %v10417_v2 = vadd.f32 %v10413_v54, %v10340_v13 }
 0xaef   :  { %v12901_v11 = vpop.f32.mrf.mxu1 }
 0xaf1   :  { %v10490_v26 = vpop.f32.mrf.mxu0 }
 0xaf2   :  { %v10494_v38 = vadd.f32 %v10490_v26, %v10417_v2 }
 0xaf3   :  { %v12908_v57 = vpop.f32.mrf.mxu0 }
 0xaf5   :  { %v10567_v59 = vpop.f32.mrf.mxu1 }
 0xaf6   :  { %v10571_v40 = vadd.f32 %v10567_v59, %v10494_v38 }
 0xaf7   :  { %v12915_v32 = vpop.f32.mrf.mxu1 }
 0xaf9   :  { %v10644_v14 = vpop.f32.mrf.mxu0 }
 0xafa   :  { %v10648_v21 = vadd.f32 %v10644_v14, %v10571_v40  ;;  %v10715_v6 = vpop.f32.mrf.mxu1 }
 0xafb   :  { %v12922_v5 = vpop.f32.mrf.mxu0 }
 0xafc   :  { %v10719_v43 = vadd.f32 %v10715_v6, %v10648_v21  ;;  %v12929_v45 = vpop.f32.mrf.mxu1 }
 0xafe   :  { %v10720_v41 = vadd.f32 %v10719_v43, %v19065_v30 }
 0xb00   :  { %12942 = vmatmul.mubr.msk.f32.vlgmr.msra.gmra.mxu1 %vm6672_vm9, %v10720_v41 }
 0xb07   :  { %v10793_v48 = vpop.f32.mrf.mxu0 }
 0xb08   :  { %v10794_v10 = vadd.f32 %v10793_v48, %v10723_v47 }
 0xb09   :  { %v12936_v22 = vpop.f32.mrf.mxu0 }
 0xb0a   :  { %10798 = vst.msk [vmem:[#allocation4] sm:$0x1] %vm10797_vm2, %v10794_v10 }
 0xbc0   :  { %v10868_v62 = vpop.f32.mrf.mxu1 }
 0xbc1   :  { %v10869_v44 = vadd.f32 %v10868_v62, %v10723_v47 }
 0xbc2   :  { %v12943_v39 = vpop.f32.mrf.mxu1 }
 0xbc3   :  { %10873 = vrot.lane.b32.xlu0 %v10869_v44, %s13046_s11 }
 0xc35   :  { %v10874_v42 = vpop.permute.xlu0 %10873 }
 0xc36   :  { %10877 = vst.msk [vmem:[#allocation4] sm:$0x1] %vm10876_vm13, %v10874_v42 }
 0xc37   :  { %13024 = shalt.err (!%p13021_p4)
}
 0xc38   :  { %10887 = dma.vmem_to_hbm [thread:$0]  %s10885_s21, 16, %s19087_s13, [#allocation5]  }
 0xc39   :  { %13033 = dma.done.wait [#allocation5], 16  }
 0xc3a   :  { %13034 = vsyncadd [#allocation5], 4294967280 }
 0xc3b   :  { %10891 = vsyncpa [#allocation5], 1 }

</bundles_post_ra>
